<compile_context>
chip_gen: v5e
topology: v5e:2x2
jax: 0.10.0
libtpu: 0.0.40
codegen_flags: <defaults>
</compile_context>

<pallas_src>
import math
import functools

import numpy as np
import jax
import jax.numpy as jnp
from jax import lax
from jax.experimental import pallas as pl
from jax.experimental.pallas import tpu as pltpu

EPS = 1e-6
N_LAYERS = 6
NEG_INF = -1e30


# ----------------------------- in-kernel helpers -----------------------------

def _erf(x):
    # Abramowitz & Stegun 7.1.26 rational approximation (|err| < 1.5e-7): exact erf at
    # float32 precision.  Used for PyTorch's exact (erf-based) GELU.
    p = 0.3275911
    a1, a2, a3, a4, a5 = (0.254829592, -0.284496736, 1.421413741,
                          -1.453152027, 1.061405429)
    z = jnp.abs(x)
    # Route the reciprocal to the EUP instead of a multi-op VALU divide (free slot).
    t = pl.reciprocal(1.0 + p * z)
    poly = ((((a5 * t + a4) * t + a3) * t + a2) * t + a1) * t
    y = 1.0 - poly * jnp.exp(-z * z)
    return jnp.where(x >= 0.0, y, -y)


def _gelu_exact(x):
    return 0.5 * x * (1.0 + _erf(x * (1.0 / math.sqrt(2.0))))


def _layernorm(x, gamma, beta):
    mean = jnp.mean(x, axis=-1, keepdims=True)
    var = jnp.mean((x - mean) ** 2, axis=-1, keepdims=True)
    return (x - mean) * lax.rsqrt(var + EPS) * gamma + beta


# ---------------------------------- kernel -----------------------------------

def fused_encoders_kernel(x_ref, mselv_ref, amask_ref,
                          g1_ref, b1_ref,
                          wqkv_ref, bqkv_ref,
                          wo_ref, bo_ref,
                          g2_ref, b2_ref,
                          w1_ref, c1_ref, w2_ref, c2_ref,
                          o_ref,
                          *, n_layers, n_heads, head_dim):
    f32 = jnp.float32
    x = x_ref[...]                       # (B*S, D) residual stream, VMEM/vreg resident
    mselv = mselv_ref[...]               # (H*B*S, N) 0/1 head-merge permutation matrix
    amask = amask_ref[...]               # (N, N) additive same-head mask (0 / -1e30)
    bs = x.shape[0]                      # B*S rows
    cw = 3 * head_dim                    # per-chunk width of the interleaved qkv slab

    for l in range(n_layers):            # 6 layers fully unrolled, static weight index
        # ---- ln1 + fused (scaled-q | k | v) projection: ONE matmul per layer ----
        xn = _layernorm(x, g1_ref[l], b1_ref[l])
        qkv = jnp.dot(xn, wqkv_ref[l], preferred_element_type=f32) + bqkv_ref[l]

        # ---- faithful "quirky" head split (flat reshape semantics) ----
        # Host interleaved the qkv columns per head_dim chunk, so the split is one
        # sublane stack of n_heads width-(3*Hd) lane chunks + 3 static lane slices.
        stacked = jnp.concatenate(
            [qkv[:, c * cw:(c + 1) * cw] for c in range(n_heads)], axis=0)
        qs = stacked[:, 0:head_dim]                  # 1/sqrt(D) already folded into wq
        ks = stacked[:, head_dim:2 * head_dim]
        vs = stacked[:, 2 * head_dim:3 * head_dim]

        # ---- all B*H heads in one masked softmax(QK^T) V ----
        s = lax.dot_general(qs, ks, (((1,), (1,)), ((), ())),
                            preferred_element_type=f32) + amask
        m = jnp.max(s, axis=-1, keepdims=True)
        e = jnp.exp(s - m)
        p_attn = e * pl.reciprocal(jnp.sum(e, axis=-1, keepdims=True))
        attn = jnp.dot(p_attn, vs, preferred_element_type=f32)          # (N, Hd)

        # ---- head merge (real transpose) folded into 2 matmuls ----
        aperm = jnp.dot(mselv, attn, preferred_element_type=f32)        # (H*B*S, Hd)
        gathered = jnp.concatenate(
            [aperm[h * bs:(h + 1) * bs, :] for h in range(n_heads)], axis=-1)
        h_res = (x + jnp.dot(gathered, wo_ref[l], preferred_element_type=f32)
                 + bo_ref[l])

        # ---- ln2 + FFN (exact erf GELU) + residual ----
        hn = _layernorm(h_res, g2_ref[l], b2_ref[l])
        f = jnp.dot(hn, w1_ref[l], preferred_element_type=f32) + c1_ref[l]
        f = _gelu_exact(f)
        f = jnp.dot(f, w2_ref[l], preferred_element_type=f32) + c2_ref[l]
        x = f + h_res

    o_ref[...] = x


# --------------------------- host-side constants ------------------------------

def _attention_constants(batch, seq, emb_dim, n_heads):
    """Host-precomputed constants encoding the reference's quirky head split/merge.

    Stacked-row convention used by the kernel:
        i = c * (B*S) + b*S + s,  c = head_dim-wide lane-chunk index of row (b, s).
    PyTorch's flat reshape maps split-view (b, h, s2) -> s = (h*S+s2)//r, c = (h*S+s2)%r,
    with r = D // head_dim (== n_heads).
    """
    head_dim = emb_dim // n_heads
    r = emb_dim // head_dim
    bs = batch * seq
    n = r * bs

    # additive same-(batch, head) mask for the (N, N) stacked score matrix
    head_of = np.zeros((n,), np.int64)
    for c in range(r):
        for b in range(batch):
            for s in range(seq):
                i = c * bs + b * seq + s
                head_of[i] = b * n_heads + (s * r + c) // seq
    amask_add = np.where(head_of[:, None] == head_of[None, :],
                         0.0, NEG_INF).astype(np.float32)

    # merge selector, stacked over heads: row h*(B*S) + (b*S + s2) picks the stacked
    # attention row holding head-h output at quirky position (b, s2).
    msel_v = np.zeros((n_heads * bs, n), np.float32)
    for h in range(n_heads):
        for b in range(batch):
            for s2 in range(seq):
                hs = h * seq + s2
                s, c = hs // r, hs % r
                msel_v[h * bs + b * seq + s2, c * bs + b * seq + s] = 1.0
    return jnp.asarray(msel_v), jnp.asarray(amask_add)


def _fuse_qkv(wq, bq, wk, bk, wv, bv, n_heads, scale):
    """Fuse wq/wk/wv into one (L, D, 3D) weight with columns interleaved per head_dim
    chunk ([q_c0|k_c0|v_c0|q_c1|...]) and the 1/sqrt(emb_dim) scale folded into q."""
    n_layers, emb_dim, _ = wq.shape
    head_dim = emb_dim // n_heads

    def wchunk(w):                        # (L, D, D)  -> (L, D, H, Hd)
        return w.reshape(n_layers, emb_dim, n_heads, head_dim)

    def bchunk(b):                        # (L, 1, D)  -> (L, 1, H, Hd)
        return b.reshape(n_layers, 1, n_heads, head_dim)

    wqkv = jnp.stack([wchunk(wq * scale), wchunk(wk), wchunk(wv)], axis=3)
    bqkv = jnp.stack([bchunk(bq * scale), bchunk(bk), bchunk(bv)], axis=3)
    return (wqkv.reshape(n_layers, emb_dim, 3 * emb_dim),
            bqkv.reshape(n_layers, 1, 3 * emb_dim))


# --------------------------------- wrapper ------------------------------------

@functools.partial(jax.jit, static_argnames=("n_heads",))
def n_encoders_forward(x, params, n_heads):
    B, S, D = x.shape
    head_dim = D // n_heads
    (g1, b1, wq, bq, wk, bk, wv, bv, wo, bo, g2, b2, w1, c1, w2, c2) = params
    n_layers = g1.shape[0]
    scale = 1.0 / math.sqrt(D)            # reference scales by 1/sqrt(emb_dim)

    wqkv, bqkv = _fuse_qkv(wq, bq, wk, bk, wv, bv, n_heads, scale)
    msel_v, amask_add = _attention_constants(B, S, D, n_heads)

    kernel = functools.partial(
        fused_encoders_kernel,
        n_layers=n_layers, n_heads=n_heads, head_dim=head_dim)

    vmem_spec = pl.BlockSpec(memory_space=pltpu.MemorySpace.VMEM)
    inputs = (x.reshape(B * S, D), msel_v, amask_add,
              g1, b1, wqkv, bqkv, wo, bo, g2, b2, w1, c1, w2, c2)

    out2d = pl.pallas_call(
        kernel,
        out_shape=jax.ShapeDtypeStruct((B * S, D), jnp.float32),
        in_specs=[vmem_spec] * len(inputs),
        out_specs=vmem_spec,
    )(*inputs)
    # TODO(synk): for real ViT batches on v7x, add a leading "parallel" batch grid axis
    # to shard across the 2 TensorCores; at B=2 the single-call form is faster.
    return out2d.reshape(B, S, D)


# --------------------------- deterministic params ------------------------------

def _linear_params(key, fan_in, fan_out, n_layers):
    kw, kb = jax.random.split(key)
    # Stored as (in_features, out_features) == PyTorch weight.T, stacked over layers.
    w = jax.random.normal(kw, (n_layers, fan_in, fan_out), jnp.float32) * 0.02
    b = jax.random.normal(kb, (n_layers, 1, fan_out), jnp.float32) * 0.02
    return w, b


def init_params(key, emb_dim, n_layers=N_LAYERS):
    hidden = 4 * emb_dim
    k1, k2, k3, k4, k5, k6 = jax.random.split(key, 6)
    g1 = jnp.ones((n_layers, 1, emb_dim), jnp.float32)
    b1 = jnp.zeros((n_layers, 1, emb_dim), jnp.float32)
    g2 = jnp.ones((n_layers, 1, emb_dim), jnp.float32)
    b2 = jnp.zeros((n_layers, 1, emb_dim), jnp.float32)
    wq, bq = _linear_params(k1, emb_dim, emb_dim, n_layers)
    wk, bk = _linear_params(k2, emb_dim, emb_dim, n_layers)
    wv, bv = _linear_params(k3, emb_dim, emb_dim, n_layers)
    wo, bo = _linear_params(k4, emb_dim, emb_dim, n_layers)
    w1, c1 = _linear_params(k5, emb_dim, hidden, n_layers)
    w2, c2 = _linear_params(k6, hidden, emb_dim, n_layers)
    return (g1, b1, wq, bq, wk, bk, wv, bv, wo, bo, g2, b2, w1, c1, w2, c2)


# ----------------------- pure-JAX reference (parity check) ---------------------

def reference_forward(x, params, n_heads):
    """Pure-JAX replica of the PyTorch module (quirky reshape semantics included)."""
    (g1, b1, wq, bq, wk, bk, wv, bv, wo, bo, g2, b2, w1, c1, w2, c2) = params
    B, S, D = x.shape
    hd = D // n_heads
    hp = jax.lax.Precision.HIGHEST

    def ln(v, g, b):
        mu = v.mean(-1, keepdims=True)
        var = ((v - mu) ** 2).mean(-1, keepdims=True)
        return (v - mu) / jnp.sqrt(var + EPS) * g + b

    for l in range(g1.shape[0]):
        res = x
        xn = ln(x, g1[l], b1[l])
        q = jnp.einsum("bsd,de->bse", xn, wq[l], precision=hp) + bq[l]
        k = jnp.einsum("bsd,de->bse", xn, wk[l], precision=hp) + bk[l]
        v = jnp.einsum("bsd,de->bse", xn, wv[l], precision=hp) + bv[l]
        # .view(B,S,H,Hd).reshape(B,H,S,Hd) on contiguous data == flat reinterpretation
        q = q.reshape(B, n_heads, S, hd)
        k = k.reshape(B, n_heads, S, hd)
        v = v.reshape(B, n_heads, S, hd)
        a = jnp.einsum("bhqd,bhkd->bhqk", q, k, precision=hp) / math.sqrt(D)
        a = jax.nn.softmax(a, axis=-1)
        o = jnp.einsum("bhqk,bhkd->bhqd", a, v, precision=hp)
        o = o.transpose(0, 2, 1, 3).reshape(B, S, D)        # real transpose merge
        x = res + jnp.einsum("bsd,de->bse", o, wo[l], precision=hp) + bo[l]
        res = x
        xn = ln(x, g2[l], b2[l])
        f = jnp.einsum("bsd,de->bse", xn, w1[l], precision=hp) + c1[l]
        f = jax.nn.gelu(f, approximate=False)
        f = jnp.einsum("bsd,de->bse", f, w2[l], precision=hp) + c2[l]
        x = res + f
    return x


if __name__ == "__main__":
    # Small shapes consistent with the module: emb_dim=16, n_heads=4 (head_dim=4),
    # batch=2, seq_len=8.  (args.dropout exists but forward() never applies it.)
    B, S, D, H = 2, 8, 16, 4
    key = jax.random.PRNGKey(0)
    kx, kp = jax.random.split(key)
    x = jax.random.normal(kx, (B, S, D), jnp.float32)
    params = init_params(kp, D)

    y = n_encoders_forward(x, params, n_heads=H)
    y = jax.block_until_ready(y)
    assert y.shape == (B, S, D) and y.dtype == jnp.float32
    assert bool(jnp.all(jnp.isfinite(y)))

    # Parity check against the pure-JAX replica of the PyTorch forward pass.
    y_ref = reference_forward(x, params, H)
    err = float(jnp.max(jnp.abs(y - y_ref)))
    assert err < 2e-3, f"parity check failed: max abs err {err}"

    print("KERNEL_OK")
</pallas_src>

<mosaic_0001>
module attributes {stable_mosaic.version = 11 : i64} {
  func.func @fused_encoders_kernel(%arg0: memref<16x16xf32, #tpu.memory_space<vmem>>, %arg1: memref<64x64xf32, #tpu.memory_space<vmem>>, %arg2: memref<64x64xf32, #tpu.memory_space<vmem>>, %arg3: memref<6x1x16xf32, #tpu.memory_space<vmem>>, %arg4: memref<6x1x16xf32, #tpu.memory_space<vmem>>, %arg5: memref<6x16x48xf32, #tpu.memory_space<vmem>>, %arg6: memref<6x1x48xf32, #tpu.memory_space<vmem>>, %arg7: memref<6x16x16xf32, #tpu.memory_space<vmem>>, %arg8: memref<6x1x16xf32, #tpu.memory_space<vmem>>, %arg9: memref<6x1x16xf32, #tpu.memory_space<vmem>>, %arg10: memref<6x1x16xf32, #tpu.memory_space<vmem>>, %arg11: memref<6x16x64xf32, #tpu.memory_space<vmem>>, %arg12: memref<6x1x64xf32, #tpu.memory_space<vmem>>, %arg13: memref<6x64x16xf32, #tpu.memory_space<vmem>>, %arg14: memref<6x1x16xf32, #tpu.memory_space<vmem>>, %arg15: memref<16x16xf32, #tpu.memory_space<vmem>>) attributes {dimension_semantics = [], scalar_prefetch = 0 : i64, scratch_operands = 0 : i64, tpu.core_type = #tpu.core_type<tc>} {
    %c0 = arith.constant 0 : index
    %c0_0 = arith.constant 0 : index
    %0 = vector.load %arg0[%c0, %c0_0] : memref<16x16xf32, #tpu.memory_space<vmem>>, vector<16x16xf32>
    %c0_1 = arith.constant 0 : index
    %c0_2 = arith.constant 0 : index
    %1 = vector.load %arg1[%c0_1, %c0_2] : memref<64x64xf32, #tpu.memory_space<vmem>>, vector<64x64xf32>
    %c0_3 = arith.constant 0 : index
    %c0_4 = arith.constant 0 : index
    %2 = vector.load %arg2[%c0_3, %c0_4] : memref<64x64xf32, #tpu.memory_space<vmem>>, vector<64x64xf32>
    %c0_5 = arith.constant 0 : index
    %c0_6 = arith.constant 0 : index
    %c0_7 = arith.constant 0 : index
    %3 = vector.load %arg3[%c0_5, %c0_6, %c0_7] : memref<6x1x16xf32, #tpu.memory_space<vmem>>, vector<1x1x16xf32>
    %4 = vector.shape_cast %3 : vector<1x1x16xf32> to vector<1x16xf32>
    %c0_8 = arith.constant 0 : index
    %c0_9 = arith.constant 0 : index
    %c0_10 = arith.constant 0 : index
    %5 = vector.load %arg4[%c0_8, %c0_9, %c0_10] : memref<6x1x16xf32, #tpu.memory_space<vmem>>, vector<1x1x16xf32>
    %6 = vector.shape_cast %5 : vector<1x1x16xf32> to vector<1x16xf32>
    %cst = arith.constant dense<0.000000e+00> : vector<16xf32>
    %7 = vector.multi_reduction <add>, %0, %cst [1] : vector<16x16xf32> to vector<16xf32>
    %8 = vector.shape_cast %7 : vector<16xf32> to vector<16x1xf32>
    %cst_11 = arith.constant 1.600000e+01 : f32
    %9 = vector.broadcast %cst_11 : f32 to vector<16x1xf32>
    %10 = arith.divf %8, %9 : vector<16x1xf32>
    %11 = vector.broadcast %10 : vector<16x1xf32> to vector<16x16xf32>
    %12 = arith.subf %0, %11 : vector<16x16xf32>
    %13 = arith.mulf %12, %12 : vector<16x16xf32>
    %cst_12 = arith.constant dense<0.000000e+00> : vector<16xf32>
    %14 = vector.multi_reduction <add>, %13, %cst_12 [1] : vector<16x16xf32> to vector<16xf32>
    %15 = vector.shape_cast %14 : vector<16xf32> to vector<16x1xf32>
    %cst_13 = arith.constant 1.600000e+01 : f32
    %16 = vector.broadcast %cst_13 : f32 to vector<16x1xf32>
    %17 = arith.divf %15, %16 : vector<16x1xf32>
    %18 = vector.broadcast %10 : vector<16x1xf32> to vector<16x16xf32>
    %19 = arith.subf %0, %18 : vector<16x16xf32>
    %cst_14 = arith.constant 9.99999997E-7 : f32
    %20 = vector.broadcast %cst_14 : f32 to vector<16x1xf32>
    %21 = arith.addf %17, %20 : vector<16x1xf32>
    %22 = math.rsqrt %21 : vector<16x1xf32>
    %23 = vector.broadcast %22 : vector<16x1xf32> to vector<16x16xf32>
    %24 = arith.mulf %19, %23 : vector<16x16xf32>
    %25 = vector.broadcast %4 : vector<1x16xf32> to vector<16x16xf32>
    %26 = arith.mulf %24, %25 : vector<16x16xf32>
    %27 = vector.broadcast %6 : vector<1x16xf32> to vector<16x16xf32>
    %28 = arith.addf %26, %27 : vector<16x16xf32>
    %c0_15 = arith.constant 0 : index
    %c0_16 = arith.constant 0 : index
    %c0_17 = arith.constant 0 : index
    %29 = vector.load %arg5[%c0_15, %c0_16, %c0_17] : memref<6x16x48xf32, #tpu.memory_space<vmem>>, vector<1x16x48xf32>
    %30 = vector.shape_cast %29 : vector<1x16x48xf32> to vector<16x48xf32>
    %cst_18 = arith.constant dense<0.000000e+00> : vector<16x48xf32>
    %31 = tpu.matmul %28, %30, %cst_18 {dimension_numbers = #tpu.dot_dimension_numbers<[1], [0], [0], [1], [0, 0, 1, 1], [], []>} : vector<16x16xf32>, vector<16x48xf32>, vector<16x48xf32> -> vector<16x48xf32>
    %c0_19 = arith.constant 0 : index
    %c0_20 = arith.constant 0 : index
    %c0_21 = arith.constant 0 : index
    %32 = vector.load %arg6[%c0_19, %c0_20, %c0_21] : memref<6x1x48xf32, #tpu.memory_space<vmem>>, vector<1x1x48xf32>
    %33 = vector.shape_cast %32 : vector<1x1x48xf32> to vector<1x48xf32>
    %34 = vector.broadcast %33 : vector<1x48xf32> to vector<16x48xf32>
    %35 = arith.addf %31, %34 : vector<16x48xf32>
    %36 = vector.extract_strided_slice %35 {offsets = [0, 0], sizes = [16, 12], strides = [1, 1]} : vector<16x48xf32> to vector<16x12xf32>
    %37 = vector.extract_strided_slice %35 {offsets = [0, 12], sizes = [16, 12], strides = [1, 1]} : vector<16x48xf32> to vector<16x12xf32>
    %38 = vector.extract_strided_slice %35 {offsets = [0, 24], sizes = [16, 12], strides = [1, 1]} : vector<16x48xf32> to vector<16x12xf32>
    %39 = vector.extract_strided_slice %35 {offsets = [0, 36], sizes = [16, 12], strides = [1, 1]} : vector<16x48xf32> to vector<16x12xf32>
    %40 = tpu.concatenate %36, %37, %38, %39 in 0 : vector<16x12xf32>, vector<16x12xf32>, vector<16x12xf32>, vector<16x12xf32> -> vector<64x12xf32>
    %41 = vector.extract_strided_slice %40 {offsets = [0, 0], sizes = [64, 4], strides = [1, 1]} : vector<64x12xf32> to vector<64x4xf32>
    %42 = vector.extract_strided_slice %40 {offsets = [0, 4], sizes = [64, 4], strides = [1, 1]} : vector<64x12xf32> to vector<64x4xf32>
    %43 = vector.extract_strided_slice %40 {offsets = [0, 8], sizes = [64, 4], strides = [1, 1]} : vector<64x12xf32> to vector<64x4xf32>
    %cst_22 = arith.constant dense<0.000000e+00> : vector<64x64xf32>
    %44 = tpu.matmul %41, %42, %cst_22 {dimension_numbers = #tpu.dot_dimension_numbers<[1], [1], [0], [0], [0, 0, 1, 0], [], []>} : vector<64x4xf32>, vector<64x4xf32>, vector<64x64xf32> -> vector<64x64xf32>
    %45 = arith.addf %44, %2 : vector<64x64xf32>
    %cst_23 = arith.constant dense<0xFF800000> : vector<64xf32>
    %46 = vector.multi_reduction <maximumf>, %45, %cst_23 [1] : vector<64x64xf32> to vector<64xf32>
    %47 = vector.shape_cast %46 : vector<64xf32> to vector<64x1xf32>
    %48 = vector.broadcast %47 : vector<64x1xf32> to vector<64x64xf32>
    %49 = arith.subf %45, %48 : vector<64x64xf32>
    %50 = math.exp %49 : vector<64x64xf32>
    %cst_24 = arith.constant dense<0.000000e+00> : vector<64xf32>
    %51 = vector.multi_reduction <add>, %50, %cst_24 [1] : vector<64x64xf32> to vector<64xf32>
    %52 = vector.shape_cast %51 : vector<64xf32> to vector<64x1xf32>
    %53 = tpu.reciprocal %52 : vector<64x1xf32> -> vector<64x1xf32>
    %54 = vector.broadcast %53 : vector<64x1xf32> to vector<64x64xf32>
    %55 = arith.mulf %50, %54 : vector<64x64xf32>
    %cst_25 = arith.constant dense<0.000000e+00> : vector<64x4xf32>
    %56 = tpu.matmul %55, %43, %cst_25 {dimension_numbers = #tpu.dot_dimension_numbers<[1], [0], [0], [1], [0, 0, 1, 1], [], []>} : vector<64x64xf32>, vector<64x4xf32>, vector<64x4xf32> -> vector<64x4xf32>
    %cst_26 = arith.constant dense<0.000000e+00> : vector<64x4xf32>
    %57 = tpu.matmul %1, %56, %cst_26 {dimension_numbers = #tpu.dot_dimension_numbers<[1], [0], [0], [1], [0, 0, 1, 1], [], []>} : vector<64x64xf32>, vector<64x4xf32>, vector<64x4xf32> -> vector<64x4xf32>
    %58 = vector.extract_strided_slice %57 {offsets = [0, 0], sizes = [16, 4], strides = [1, 1]} : vector<64x4xf32> to vector<16x4xf32>
    %59 = vector.extract_strided_slice %57 {offsets = [16, 0], sizes = [16, 4], strides = [1, 1]} : vector<64x4xf32> to vector<16x4xf32>
    %60 = vector.extract_strided_slice %57 {offsets = [32, 0], sizes = [16, 4], strides = [1, 1]} : vector<64x4xf32> to vector<16x4xf32>
    %61 = vector.extract_strided_slice %57 {offsets = [48, 0], sizes = [16, 4], strides = [1, 1]} : vector<64x4xf32> to vector<16x4xf32>
    %62 = tpu.concatenate %58, %59, %60, %61 in 1 : vector<16x4xf32>, vector<16x4xf32>, vector<16x4xf32>, vector<16x4xf32> -> vector<16x16xf32>
    %c0_27 = arith.constant 0 : index
    %c0_28 = arith.constant 0 : index
    %c0_29 = arith.constant 0 : index
    %63 = vector.load %arg7[%c0_27, %c0_28, %c0_29] : memref<6x16x16xf32, #tpu.memory_space<vmem>>, vector<1x16x16xf32>
    %64 = vector.shape_cast %63 : vector<1x16x16xf32> to vector<16x16xf32>
    %cst_30 = arith.constant dense<0.000000e+00> : vector<16x16xf32>
    %65 = tpu.matmul %62, %64, %cst_30 {dimension_numbers = #tpu.dot_dimension_numbers<[1], [0], [0], [1], [0, 0, 1, 1], [], []>} : vector<16x16xf32>, vector<16x16xf32>, vector<16x16xf32> -> vector<16x16xf32>
    %66 = arith.addf %0, %65 : vector<16x16xf32>
    %c0_31 = arith.constant 0 : index
    %c0_32 = arith.constant 0 : index
    %c0_33 = arith.constant 0 : index
    %67 = vector.load %arg8[%c0_31, %c0_32, %c0_33] : memref<6x1x16xf32, #tpu.memory_space<vmem>>, vector<1x1x16xf32>
    %68 = vector.shape_cast %67 : vector<1x1x16xf32> to vector<1x16xf32>
    %69 = vector.broadcast %68 : vector<1x16xf32> to vector<16x16xf32>
    %70 = arith.addf %66, %69 : vector<16x16xf32>
    %c0_34 = arith.constant 0 : index
    %c0_35 = arith.constant 0 : index
    %c0_36 = arith.constant 0 : index
    %71 = vector.load %arg9[%c0_34, %c0_35, %c0_36] : memref<6x1x16xf32, #tpu.memory_space<vmem>>, vector<1x1x16xf32>
    %72 = vector.shape_cast %71 : vector<1x1x16xf32> to vector<1x16xf32>
    %c0_37 = arith.constant 0 : index
    %c0_38 = arith.constant 0 : index
    %c0_39 = arith.constant 0 : index
    %73 = vector.load %arg10[%c0_37, %c0_38, %c0_39] : memref<6x1x16xf32, #tpu.memory_space<vmem>>, vector<1x1x16xf32>
    %74 = vector.shape_cast %73 : vector<1x1x16xf32> to vector<1x16xf32>
    %cst_40 = arith.constant dense<0.000000e+00> : vector<16xf32>
    %75 = vector.multi_reduction <add>, %70, %cst_40 [1] : vector<16x16xf32> to vector<16xf32>
    %76 = vector.shape_cast %75 : vector<16xf32> to vector<16x1xf32>
    %cst_41 = arith.constant 1.600000e+01 : f32
    %77 = vector.broadcast %cst_41 : f32 to vector<16x1xf32>
    %78 = arith.divf %76, %77 : vector<16x1xf32>
    %79 = vector.broadcast %78 : vector<16x1xf32> to vector<16x16xf32>
    %80 = arith.subf %70, %79 : vector<16x16xf32>
    %81 = arith.mulf %80, %80 : vector<16x16xf32>
    %cst_42 = arith.constant dense<0.000000e+00> : vector<16xf32>
    %82 = vector.multi_reduction <add>, %81, %cst_42 [1] : vector<16x16xf32> to vector<16xf32>
    %83 = vector.shape_cast %82 : vector<16xf32> to vector<16x1xf32>
    %cst_43 = arith.constant 1.600000e+01 : f32
    %84 = vector.broadcast %cst_43 : f32 to vector<16x1xf32>
    %85 = arith.divf %83, %84 : vector<16x1xf32>
    %86 = vector.broadcast %78 : vector<16x1xf32> to vector<16x16xf32>
    %87 = arith.subf %70, %86 : vector<16x16xf32>
    %cst_44 = arith.constant 9.99999997E-7 : f32
    %88 = vector.broadcast %cst_44 : f32 to vector<16x1xf32>
    %89 = arith.addf %85, %88 : vector<16x1xf32>
    %90 = math.rsqrt %89 : vector<16x1xf32>
    %91 = vector.broadcast %90 : vector<16x1xf32> to vector<16x16xf32>
    %92 = arith.mulf %87, %91 : vector<16x16xf32>
    %93 = vector.broadcast %72 : vector<1x16xf32> to vector<16x16xf32>
    %94 = arith.mulf %92, %93 : vector<16x16xf32>
    %95 = vector.broadcast %74 : vector<1x16xf32> to vector<16x16xf32>
    %96 = arith.addf %94, %95 : vector<16x16xf32>
    %c0_45 = arith.constant 0 : index
    %c0_46 = arith.constant 0 : index
    %c0_47 = arith.constant 0 : index
    %97 = vector.load %arg11[%c0_45, %c0_46, %c0_47] : memref<6x16x64xf32, #tpu.memory_space<vmem>>, vector<1x16x64xf32>
    %98 = vector.shape_cast %97 : vector<1x16x64xf32> to vector<16x64xf32>
    %cst_48 = arith.constant dense<0.000000e+00> : vector<16x64xf32>
    %99 = tpu.matmul %96, %98, %cst_48 {dimension_numbers = #tpu.dot_dimension_numbers<[1], [0], [0], [1], [0, 0, 1, 1], [], []>} : vector<16x16xf32>, vector<16x64xf32>, vector<16x64xf32> -> vector<16x64xf32>
    %c0_49 = arith.constant 0 : index
    %c0_50 = arith.constant 0 : index
    %c0_51 = arith.constant 0 : index
    %100 = vector.load %arg12[%c0_49, %c0_50, %c0_51] : memref<6x1x64xf32, #tpu.memory_space<vmem>>, vector<1x1x64xf32>
    %101 = vector.shape_cast %100 : vector<1x1x64xf32> to vector<1x64xf32>
    %102 = vector.broadcast %101 : vector<1x64xf32> to vector<16x64xf32>
    %103 = arith.addf %99, %102 : vector<16x64xf32>
    %cst_52 = arith.constant 5.000000e-01 : f32
    %104 = vector.broadcast %cst_52 : f32 to vector<16x64xf32>
    %105 = arith.mulf %104, %103 : vector<16x64xf32>
    %cst_53 = arith.constant 0.707106769 : f32
    %106 = vector.broadcast %cst_53 : f32 to vector<16x64xf32>
    %107 = arith.mulf %103, %106 : vector<16x64xf32>
    %108 = math.absf %107 : vector<16x64xf32>
    %cst_54 = arith.constant 0.327591091 : f32
    %109 = vector.broadcast %cst_54 : f32 to vector<16x64xf32>
    %110 = arith.mulf %109, %108 : vector<16x64xf32>
    %cst_55 = arith.constant 1.000000e+00 : f32
    %111 = vector.broadcast %cst_55 : f32 to vector<16x64xf32>
    %112 = arith.addf %111, %110 : vector<16x64xf32>
    %113 = tpu.reciprocal %112 : vector<16x64xf32> -> vector<16x64xf32>
    %cst_56 = arith.constant 1.06140542 : f32
    %114 = vector.broadcast %cst_56 : f32 to vector<16x64xf32>
    %115 = arith.mulf %114, %113 : vector<16x64xf32>
    %cst_57 = arith.constant -1.45315206 : f32
    %116 = vector.broadcast %cst_57 : f32 to vector<16x64xf32>
    %117 = arith.addf %115, %116 : vector<16x64xf32>
    %118 = arith.mulf %117, %113 : vector<16x64xf32>
    %cst_58 = arith.constant 1.42141378 : f32
    %119 = vector.broadcast %cst_58 : f32 to vector<16x64xf32>
    %120 = arith.addf %118, %119 : vector<16x64xf32>
    %121 = arith.mulf %120, %113 : vector<16x64xf32>
    %cst_59 = arith.constant -0.284496725 : f32
    %122 = vector.broadcast %cst_59 : f32 to vector<16x64xf32>
    %123 = arith.addf %121, %122 : vector<16x64xf32>
    %124 = arith.mulf %123, %113 : vector<16x64xf32>
    %cst_60 = arith.constant 0.254829586 : f32
    %125 = vector.broadcast %cst_60 : f32 to vector<16x64xf32>
    %126 = arith.addf %124, %125 : vector<16x64xf32>
    %127 = arith.mulf %126, %113 : vector<16x64xf32>
    %cst_61 = arith.constant 0.000000e+00 : f32
    %128 = vector.broadcast %cst_61 : f32 to vector<16x64xf32>
    %129 = arith.subf %128, %108 : vector<16x64xf32>
    %130 = arith.mulf %129, %108 : vector<16x64xf32>
    %131 = math.exp %130 : vector<16x64xf32>
    %132 = arith.mulf %127, %131 : vector<16x64xf32>
    %cst_62 = arith.constant 1.000000e+00 : f32
    %133 = vector.broadcast %cst_62 : f32 to vector<16x64xf32>
    %134 = arith.subf %133, %132 : vector<16x64xf32>
    %cst_63 = arith.constant 0.000000e+00 : f32
    %135 = vector.broadcast %cst_63 : f32 to vector<16x64xf32>
    %136 = arith.cmpf oge, %107, %135 : vector<16x64xf32>
    %cst_64 = arith.constant 0.000000e+00 : f32
    %137 = vector.broadcast %cst_64 : f32 to vector<16x64xf32>
    %138 = arith.subf %137, %134 : vector<16x64xf32>
    %139 = arith.select %136, %134, %138 : vector<16x64xi1>, vector<16x64xf32>
    %cst_65 = arith.constant 1.000000e+00 : f32
    %140 = vector.broadcast %cst_65 : f32 to vector<16x64xf32>
    %141 = arith.addf %140, %139 : vector<16x64xf32>
    %142 = arith.mulf %105, %141 : vector<16x64xf32>
    %c0_66 = arith.constant 0 : index
    %c0_67 = arith.constant 0 : index
    %c0_68 = arith.constant 0 : index
    %143 = vector.load %arg13[%c0_66, %c0_67, %c0_68] : memref<6x64x16xf32, #tpu.memory_space<vmem>>, vector<1x64x16xf32>
    %144 = vector.shape_cast %143 : vector<1x64x16xf32> to vector<64x16xf32>
    %cst_69 = arith.constant dense<0.000000e+00> : vector<16x16xf32>
    %145 = tpu.matmul %142, %144, %cst_69 {dimension_numbers = #tpu.dot_dimension_numbers<[1], [0], [0], [1], [0, 0, 1, 1], [], []>} : vector<16x64xf32>, vector<64x16xf32>, vector<16x16xf32> -> vector<16x16xf32>
    %c0_70 = arith.constant 0 : index
    %c0_71 = arith.constant 0 : index
    %c0_72 = arith.constant 0 : index
    %146 = vector.load %arg14[%c0_70, %c0_71, %c0_72] : memref<6x1x16xf32, #tpu.memory_space<vmem>>, vector<1x1x16xf32>
    %147 = vector.shape_cast %146 : vector<1x1x16xf32> to vector<1x16xf32>
    %148 = vector.broadcast %147 : vector<1x16xf32> to vector<16x16xf32>
    %149 = arith.addf %145, %148 : vector<16x16xf32>
    %150 = arith.addf %149, %70 : vector<16x16xf32>
    %c1 = arith.constant 1 : index
    %c0_73 = arith.constant 0 : index
    %c0_74 = arith.constant 0 : index
    %151 = vector.load %arg3[%c1, %c0_73, %c0_74] : memref<6x1x16xf32, #tpu.memory_space<vmem>>, vector<1x1x16xf32>
    %152 = vector.shape_cast %151 : vector<1x1x16xf32> to vector<1x16xf32>
    %c1_75 = arith.constant 1 : index
    %c0_76 = arith.constant 0 : index
    %c0_77 = arith.constant 0 : index
    %153 = vector.load %arg4[%c1_75, %c0_76, %c0_77] : memref<6x1x16xf32, #tpu.memory_space<vmem>>, vector<1x1x16xf32>
    %154 = vector.shape_cast %153 : vector<1x1x16xf32> to vector<1x16xf32>
    %cst_78 = arith.constant dense<0.000000e+00> : vector<16xf32>
    %155 = vector.multi_reduction <add>, %150, %cst_78 [1] : vector<16x16xf32> to vector<16xf32>
    %156 = vector.shape_cast %155 : vector<16xf32> to vector<16x1xf32>
    %cst_79 = arith.constant 1.600000e+01 : f32
    %157 = vector.broadcast %cst_79 : f32 to vector<16x1xf32>
    %158 = arith.divf %156, %157 : vector<16x1xf32>
    %159 = vector.broadcast %158 : vector<16x1xf32> to vector<16x16xf32>
    %160 = arith.subf %150, %159 : vector<16x16xf32>
    %161 = arith.mulf %160, %160 : vector<16x16xf32>
    %cst_80 = arith.constant dense<0.000000e+00> : vector<16xf32>
    %162 = vector.multi_reduction <add>, %161, %cst_80 [1] : vector<16x16xf32> to vector<16xf32>
    %163 = vector.shape_cast %162 : vector<16xf32> to vector<16x1xf32>
    %cst_81 = arith.constant 1.600000e+01 : f32
    %164 = vector.broadcast %cst_81 : f32 to vector<16x1xf32>
    %165 = arith.divf %163, %164 : vector<16x1xf32>
    %166 = vector.broadcast %158 : vector<16x1xf32> to vector<16x16xf32>
    %167 = arith.subf %150, %166 : vector<16x16xf32>
    %cst_82 = arith.constant 9.99999997E-7 : f32
    %168 = vector.broadcast %cst_82 : f32 to vector<16x1xf32>
    %169 = arith.addf %165, %168 : vector<16x1xf32>
    %170 = math.rsqrt %169 : vector<16x1xf32>
    %171 = vector.broadcast %170 : vector<16x1xf32> to vector<16x16xf32>
    %172 = arith.mulf %167, %171 : vector<16x16xf32>
    %173 = vector.broadcast %152 : vector<1x16xf32> to vector<16x16xf32>
    %174 = arith.mulf %172, %173 : vector<16x16xf32>
    %175 = vector.broadcast %154 : vector<1x16xf32> to vector<16x16xf32>
    %176 = arith.addf %174, %175 : vector<16x16xf32>
    %c1_83 = arith.constant 1 : index
    %c0_84 = arith.constant 0 : index
    %c0_85 = arith.constant 0 : index
    %177 = vector.load %arg5[%c1_83, %c0_84, %c0_85] : memref<6x16x48xf32, #tpu.memory_space<vmem>>, vector<1x16x48xf32>
    %178 = vector.shape_cast %177 : vector<1x16x48xf32> to vector<16x48xf32>
    %cst_86 = arith.constant dense<0.000000e+00> : vector<16x48xf32>
    %179 = tpu.matmul %176, %178, %cst_86 {dimension_numbers = #tpu.dot_dimension_numbers<[1], [0], [0], [1], [0, 0, 1, 1], [], []>} : vector<16x16xf32>, vector<16x48xf32>, vector<16x48xf32> -> vector<16x48xf32>
    %c1_87 = arith.constant 1 : index
    %c0_88 = arith.constant 0 : index
    %c0_89 = arith.constant 0 : index
    %180 = vector.load %arg6[%c1_87, %c0_88, %c0_89] : memref<6x1x48xf32, #tpu.memory_space<vmem>>, vector<1x1x48xf32>
    %181 = vector.shape_cast %180 : vector<1x1x48xf32> to vector<1x48xf32>
    %182 = vector.broadcast %181 : vector<1x48xf32> to vector<16x48xf32>
    %183 = arith.addf %179, %182 : vector<16x48xf32>
    %184 = vector.extract_strided_slice %183 {offsets = [0, 0], sizes = [16, 12], strides = [1, 1]} : vector<16x48xf32> to vector<16x12xf32>
    %185 = vector.extract_strided_slice %183 {offsets = [0, 12], sizes = [16, 12], strides = [1, 1]} : vector<16x48xf32> to vector<16x12xf32>
    %186 = vector.extract_strided_slice %183 {offsets = [0, 24], sizes = [16, 12], strides = [1, 1]} : vector<16x48xf32> to vector<16x12xf32>
    %187 = vector.extract_strided_slice %183 {offsets = [0, 36], sizes = [16, 12], strides = [1, 1]} : vector<16x48xf32> to vector<16x12xf32>
    %188 = tpu.concatenate %184, %185, %186, %187 in 0 : vector<16x12xf32>, vector<16x12xf32>, vector<16x12xf32>, vector<16x12xf32> -> vector<64x12xf32>
    %189 = vector.extract_strided_slice %188 {offsets = [0, 0], sizes = [64, 4], strides = [1, 1]} : vector<64x12xf32> to vector<64x4xf32>
    %190 = vector.extract_strided_slice %188 {offsets = [0, 4], sizes = [64, 4], strides = [1, 1]} : vector<64x12xf32> to vector<64x4xf32>
    %191 = vector.extract_strided_slice %188 {offsets = [0, 8], sizes = [64, 4], strides = [1, 1]} : vector<64x12xf32> to vector<64x4xf32>
    %cst_90 = arith.constant dense<0.000000e+00> : vector<64x64xf32>
    %192 = tpu.matmul %189, %190, %cst_90 {dimension_numbers = #tpu.dot_dimension_numbers<[1], [1], [0], [0], [0, 0, 1, 0], [], []>} : vector<64x4xf32>, vector<64x4xf32>, vector<64x64xf32> -> vector<64x64xf32>
    %193 = arith.addf %192, %2 : vector<64x64xf32>
    %cst_91 = arith.constant dense<0xFF800000> : vector<64xf32>
    %194 = vector.multi_reduction <maximumf>, %193, %cst_91 [1] : vector<64x64xf32> to vector<64xf32>
    %195 = vector.shape_cast %194 : vector<64xf32> to vector<64x1xf32>
    %196 = vector.broadcast %195 : vector<64x1xf32> to vector<64x64xf32>
    %197 = arith.subf %193, %196 : vector<64x64xf32>
    %198 = math.exp %197 : vector<64x64xf32>
    %cst_92 = arith.constant dense<0.000000e+00> : vector<64xf32>
    %199 = vector.multi_reduction <add>, %198, %cst_92 [1] : vector<64x64xf32> to vector<64xf32>
    %200 = vector.shape_cast %199 : vector<64xf32> to vector<64x1xf32>
    %201 = tpu.reciprocal %200 : vector<64x1xf32> -> vector<64x1xf32>
    %202 = vector.broadcast %201 : vector<64x1xf32> to vector<64x64xf32>
    %203 = arith.mulf %198, %202 : vector<64x64xf32>
    %cst_93 = arith.constant dense<0.000000e+00> : vector<64x4xf32>
    %204 = tpu.matmul %203, %191, %cst_93 {dimension_numbers = #tpu.dot_dimension_numbers<[1], [0], [0], [1], [0, 0, 1, 1], [], []>} : vector<64x64xf32>, vector<64x4xf32>, vector<64x4xf32> -> vector<64x4xf32>
    %cst_94 = arith.constant dense<0.000000e+00> : vector<64x4xf32>
    %205 = tpu.matmul %1, %204, %cst_94 {dimension_numbers = #tpu.dot_dimension_numbers<[1], [0], [0], [1], [0, 0, 1, 1], [], []>} : vector<64x64xf32>, vector<64x4xf32>, vector<64x4xf32> -> vector<64x4xf32>
    %206 = vector.extract_strided_slice %205 {offsets = [0, 0], sizes = [16, 4], strides = [1, 1]} : vector<64x4xf32> to vector<16x4xf32>
    %207 = vector.extract_strided_slice %205 {offsets = [16, 0], sizes = [16, 4], strides = [1, 1]} : vector<64x4xf32> to vector<16x4xf32>
    %208 = vector.extract_strided_slice %205 {offsets = [32, 0], sizes = [16, 4], strides = [1, 1]} : vector<64x4xf32> to vector<16x4xf32>
    %209 = vector.extract_strided_slice %205 {offsets = [48, 0], sizes = [16, 4], strides = [1, 1]} : vector<64x4xf32> to vector<16x4xf32>
    %210 = tpu.concatenate %206, %207, %208, %209 in 1 : vector<16x4xf32>, vector<16x4xf32>, vector<16x4xf32>, vector<16x4xf32> -> vector<16x16xf32>
    %c1_95 = arith.constant 1 : index
    %c0_96 = arith.constant 0 : index
    %c0_97 = arith.constant 0 : index
    %211 = vector.load %arg7[%c1_95, %c0_96, %c0_97] : memref<6x16x16xf32, #tpu.memory_space<vmem>>, vector<1x16x16xf32>
    %212 = vector.shape_cast %211 : vector<1x16x16xf32> to vector<16x16xf32>
    %cst_98 = arith.constant dense<0.000000e+00> : vector<16x16xf32>
    %213 = tpu.matmul %210, %212, %cst_98 {dimension_numbers = #tpu.dot_dimension_numbers<[1], [0], [0], [1], [0, 0, 1, 1], [], []>} : vector<16x16xf32>, vector<16x16xf32>, vector<16x16xf32> -> vector<16x16xf32>
    %214 = arith.addf %150, %213 : vector<16x16xf32>
    %c1_99 = arith.constant 1 : index
    %c0_100 = arith.constant 0 : index
    %c0_101 = arith.constant 0 : index
    %215 = vector.load %arg8[%c1_99, %c0_100, %c0_101] : memref<6x1x16xf32, #tpu.memory_space<vmem>>, vector<1x1x16xf32>
    %216 = vector.shape_cast %215 : vector<1x1x16xf32> to vector<1x16xf32>
    %217 = vector.broadcast %216 : vector<1x16xf32> to vector<16x16xf32>
    %218 = arith.addf %214, %217 : vector<16x16xf32>
    %c1_102 = arith.constant 1 : index
    %c0_103 = arith.constant 0 : index
    %c0_104 = arith.constant 0 : index
    %219 = vector.load %arg9[%c1_102, %c0_103, %c0_104] : memref<6x1x16xf32, #tpu.memory_space<vmem>>, vector<1x1x16xf32>
    %220 = vector.shape_cast %219 : vector<1x1x16xf32> to vector<1x16xf32>
    %c1_105 = arith.constant 1 : index
    %c0_106 = arith.constant 0 : index
    %c0_107 = arith.constant 0 : index
    %221 = vector.load %arg10[%c1_105, %c0_106, %c0_107] : memref<6x1x16xf32, #tpu.memory_space<vmem>>, vector<1x1x16xf32>
    %222 = vector.shape_cast %221 : vector<1x1x16xf32> to vector<1x16xf32>
    %cst_108 = arith.constant dense<0.000000e+00> : vector<16xf32>
    %223 = vector.multi_reduction <add>, %218, %cst_108 [1] : vector<16x16xf32> to vector<16xf32>
    %224 = vector.shape_cast %223 : vector<16xf32> to vector<16x1xf32>
    %cst_109 = arith.constant 1.600000e+01 : f32
    %225 = vector.broadcast %cst_109 : f32 to vector<16x1xf32>
    %226 = arith.divf %224, %225 : vector<16x1xf32>
    %227 = vector.broadcast %226 : vector<16x1xf32> to vector<16x16xf32>
    %228 = arith.subf %218, %227 : vector<16x16xf32>
    %229 = arith.mulf %228, %228 : vector<16x16xf32>
    %cst_110 = arith.constant dense<0.000000e+00> : vector<16xf32>
    %230 = vector.multi_reduction <add>, %229, %cst_110 [1] : vector<16x16xf32> to vector<16xf32>
    %231 = vector.shape_cast %230 : vector<16xf32> to vector<16x1xf32>
    %cst_111 = arith.constant 1.600000e+01 : f32
    %232 = vector.broadcast %cst_111 : f32 to vector<16x1xf32>
    %233 = arith.divf %231, %232 : vector<16x1xf32>
    %234 = vector.broadcast %226 : vector<16x1xf32> to vector<16x16xf32>
    %235 = arith.subf %218, %234 : vector<16x16xf32>
    %cst_112 = arith.constant 9.99999997E-7 : f32
    %236 = vector.broadcast %cst_112 : f32 to vector<16x1xf32>
    %237 = arith.addf %233, %236 : vector<16x1xf32>
    %238 = math.rsqrt %237 : vector<16x1xf32>
    %239 = vector.broadcast %238 : vector<16x1xf32> to vector<16x16xf32>
    %240 = arith.mulf %235, %239 : vector<16x16xf32>
    %241 = vector.broadcast %220 : vector<1x16xf32> to vector<16x16xf32>
    %242 = arith.mulf %240, %241 : vector<16x16xf32>
    %243 = vector.broadcast %222 : vector<1x16xf32> to vector<16x16xf32>
    %244 = arith.addf %242, %243 : vector<16x16xf32>
    %c1_113 = arith.constant 1 : index
    %c0_114 = arith.constant 0 : index
    %c0_115 = arith.constant 0 : index
    %245 = vector.load %arg11[%c1_113, %c0_114, %c0_115] : memref<6x16x64xf32, #tpu.memory_space<vmem>>, vector<1x16x64xf32>
    %246 = vector.shape_cast %245 : vector<1x16x64xf32> to vector<16x64xf32>
    %cst_116 = arith.constant dense<0.000000e+00> : vector<16x64xf32>
    %247 = tpu.matmul %244, %246, %cst_116 {dimension_numbers = #tpu.dot_dimension_numbers<[1], [0], [0], [1], [0, 0, 1, 1], [], []>} : vector<16x16xf32>, vector<16x64xf32>, vector<16x64xf32> -> vector<16x64xf32>
    %c1_117 = arith.constant 1 : index
    %c0_118 = arith.constant 0 : index
    %c0_119 = arith.constant 0 : index
    %248 = vector.load %arg12[%c1_117, %c0_118, %c0_119] : memref<6x1x64xf32, #tpu.memory_space<vmem>>, vector<1x1x64xf32>
    %249 = vector.shape_cast %248 : vector<1x1x64xf32> to vector<1x64xf32>
    %250 = vector.broadcast %249 : vector<1x64xf32> to vector<16x64xf32>
    %251 = arith.addf %247, %250 : vector<16x64xf32>
    %cst_120 = arith.constant 5.000000e-01 : f32
    %252 = vector.broadcast %cst_120 : f32 to vector<16x64xf32>
    %253 = arith.mulf %252, %251 : vector<16x64xf32>
    %cst_121 = arith.constant 0.707106769 : f32
    %254 = vector.broadcast %cst_121 : f32 to vector<16x64xf32>
    %255 = arith.mulf %251, %254 : vector<16x64xf32>
    %256 = math.absf %255 : vector<16x64xf32>
    %cst_122 = arith.constant 0.327591091 : f32
    %257 = vector.broadcast %cst_122 : f32 to vector<16x64xf32>
    %258 = arith.mulf %257, %256 : vector<16x64xf32>
    %cst_123 = arith.constant 1.000000e+00 : f32
    %259 = vector.broadcast %cst_123 : f32 to vector<16x64xf32>
    %260 = arith.addf %259, %258 : vector<16x64xf32>
    %261 = tpu.reciprocal %260 : vector<16x64xf32> -> vector<16x64xf32>
    %cst_124 = arith.constant 1.06140542 : f32
    %262 = vector.broadcast %cst_124 : f32 to vector<16x64xf32>
    %263 = arith.mulf %262, %261 : vector<16x64xf32>
    %cst_125 = arith.constant -1.45315206 : f32
    %264 = vector.broadcast %cst_125 : f32 to vector<16x64xf32>
    %265 = arith.addf %263, %264 : vector<16x64xf32>
    %266 = arith.mulf %265, %261 : vector<16x64xf32>
    %cst_126 = arith.constant 1.42141378 : f32
    %267 = vector.broadcast %cst_126 : f32 to vector<16x64xf32>
    %268 = arith.addf %266, %267 : vector<16x64xf32>
    %269 = arith.mulf %268, %261 : vector<16x64xf32>
    %cst_127 = arith.constant -0.284496725 : f32
    %270 = vector.broadcast %cst_127 : f32 to vector<16x64xf32>
    %271 = arith.addf %269, %270 : vector<16x64xf32>
    %272 = arith.mulf %271, %261 : vector<16x64xf32>
    %cst_128 = arith.constant 0.254829586 : f32
    %273 = vector.broadcast %cst_128 : f32 to vector<16x64xf32>
    %274 = arith.addf %272, %273 : vector<16x64xf32>
    %275 = arith.mulf %274, %261 : vector<16x64xf32>
    %cst_129 = arith.constant 0.000000e+00 : f32
    %276 = vector.broadcast %cst_129 : f32 to vector<16x64xf32>
    %277 = arith.subf %276, %256 : vector<16x64xf32>
    %278 = arith.mulf %277, %256 : vector<16x64xf32>
    %279 = math.exp %278 : vector<16x64xf32>
    %280 = arith.mulf %275, %279 : vector<16x64xf32>
    %cst_130 = arith.constant 1.000000e+00 : f32
    %281 = vector.broadcast %cst_130 : f32 to vector<16x64xf32>
    %282 = arith.subf %281, %280 : vector<16x64xf32>
    %cst_131 = arith.constant 0.000000e+00 : f32
    %283 = vector.broadcast %cst_131 : f32 to vector<16x64xf32>
    %284 = arith.cmpf oge, %255, %283 : vector<16x64xf32>
    %cst_132 = arith.constant 0.000000e+00 : f32
    %285 = vector.broadcast %cst_132 : f32 to vector<16x64xf32>
    %286 = arith.subf %285, %282 : vector<16x64xf32>
    %287 = arith.select %284, %282, %286 : vector<16x64xi1>, vector<16x64xf32>
    %cst_133 = arith.constant 1.000000e+00 : f32
    %288 = vector.broadcast %cst_133 : f32 to vector<16x64xf32>
    %289 = arith.addf %288, %287 : vector<16x64xf32>
    %290 = arith.mulf %253, %289 : vector<16x64xf32>
    %c1_134 = arith.constant 1 : index
    %c0_135 = arith.constant 0 : index
    %c0_136 = arith.constant 0 : index
    %291 = vector.load %arg13[%c1_134, %c0_135, %c0_136] : memref<6x64x16xf32, #tpu.memory_space<vmem>>, vector<1x64x16xf32>
    %292 = vector.shape_cast %291 : vector<1x64x16xf32> to vector<64x16xf32>
    %cst_137 = arith.constant dense<0.000000e+00> : vector<16x16xf32>
    %293 = tpu.matmul %290, %292, %cst_137 {dimension_numbers = #tpu.dot_dimension_numbers<[1], [0], [0], [1], [0, 0, 1, 1], [], []>} : vector<16x64xf32>, vector<64x16xf32>, vector<16x16xf32> -> vector<16x16xf32>
    %c1_138 = arith.constant 1 : index
    %c0_139 = arith.constant 0 : index
    %c0_140 = arith.constant 0 : index
    %294 = vector.load %arg14[%c1_138, %c0_139, %c0_140] : memref<6x1x16xf32, #tpu.memory_space<vmem>>, vector<1x1x16xf32>
    %295 = vector.shape_cast %294 : vector<1x1x16xf32> to vector<1x16xf32>
    %296 = vector.broadcast %295 : vector<1x16xf32> to vector<16x16xf32>
    %297 = arith.addf %293, %296 : vector<16x16xf32>
    %298 = arith.addf %297, %218 : vector<16x16xf32>
    %c2 = arith.constant 2 : index
    %c0_141 = arith.constant 0 : index
    %c0_142 = arith.constant 0 : index
    %299 = vector.load %arg3[%c2, %c0_141, %c0_142] : memref<6x1x16xf32, #tpu.memory_space<vmem>>, vector<1x1x16xf32>
    %300 = vector.shape_cast %299 : vector<1x1x16xf32> to vector<1x16xf32>
    %c2_143 = arith.constant 2 : index
    %c0_144 = arith.constant 0 : index
    %c0_145 = arith.constant 0 : index
    %301 = vector.load %arg4[%c2_143, %c0_144, %c0_145] : memref<6x1x16xf32, #tpu.memory_space<vmem>>, vector<1x1x16xf32>
    %302 = vector.shape_cast %301 : vector<1x1x16xf32> to vector<1x16xf32>
    %cst_146 = arith.constant dense<0.000000e+00> : vector<16xf32>
    %303 = vector.multi_reduction <add>, %298, %cst_146 [1] : vector<16x16xf32> to vector<16xf32>
    %304 = vector.shape_cast %303 : vector<16xf32> to vector<16x1xf32>
    %cst_147 = arith.constant 1.600000e+01 : f32
    %305 = vector.broadcast %cst_147 : f32 to vector<16x1xf32>
    %306 = arith.divf %304, %305 : vector<16x1xf32>
    %307 = vector.broadcast %306 : vector<16x1xf32> to vector<16x16xf32>
    %308 = arith.subf %298, %307 : vector<16x16xf32>
    %309 = arith.mulf %308, %308 : vector<16x16xf32>
    %cst_148 = arith.constant dense<0.000000e+00> : vector<16xf32>
    %310 = vector.multi_reduction <add>, %309, %cst_148 [1] : vector<16x16xf32> to vector<16xf32>
    %311 = vector.shape_cast %310 : vector<16xf32> to vector<16x1xf32>
    %cst_149 = arith.constant 1.600000e+01 : f32
    %312 = vector.broadcast %cst_149 : f32 to vector<16x1xf32>
    %313 = arith.divf %311, %312 : vector<16x1xf32>
    %314 = vector.broadcast %306 : vector<16x1xf32> to vector<16x16xf32>
    %315 = arith.subf %298, %314 : vector<16x16xf32>
    %cst_150 = arith.constant 9.99999997E-7 : f32
    %316 = vector.broadcast %cst_150 : f32 to vector<16x1xf32>
    %317 = arith.addf %313, %316 : vector<16x1xf32>
    %318 = math.rsqrt %317 : vector<16x1xf32>
    %319 = vector.broadcast %318 : vector<16x1xf32> to vector<16x16xf32>
    %320 = arith.mulf %315, %319 : vector<16x16xf32>
    %321 = vector.broadcast %300 : vector<1x16xf32> to vector<16x16xf32>
    %322 = arith.mulf %320, %321 : vector<16x16xf32>
    %323 = vector.broadcast %302 : vector<1x16xf32> to vector<16x16xf32>
    %324 = arith.addf %322, %323 : vector<16x16xf32>
    %c2_151 = arith.constant 2 : index
    %c0_152 = arith.constant 0 : index
    %c0_153 = arith.constant 0 : index
    %325 = vector.load %arg5[%c2_151, %c0_152, %c0_153] : memref<6x16x48xf32, #tpu.memory_space<vmem>>, vector<1x16x48xf32>
    %326 = vector.shape_cast %325 : vector<1x16x48xf32> to vector<16x48xf32>
    %cst_154 = arith.constant dense<0.000000e+00> : vector<16x48xf32>
    %327 = tpu.matmul %324, %326, %cst_154 {dimension_numbers = #tpu.dot_dimension_numbers<[1], [0], [0], [1], [0, 0, 1, 1], [], []>} : vector<16x16xf32>, vector<16x48xf32>, vector<16x48xf32> -> vector<16x48xf32>
    %c2_155 = arith.constant 2 : index
    %c0_156 = arith.constant 0 : index
    %c0_157 = arith.constant 0 : index
    %328 = vector.load %arg6[%c2_155, %c0_156, %c0_157] : memref<6x1x48xf32, #tpu.memory_space<vmem>>, vector<1x1x48xf32>
    %329 = vector.shape_cast %328 : vector<1x1x48xf32> to vector<1x48xf32>
    %330 = vector.broadcast %329 : vector<1x48xf32> to vector<16x48xf32>
    %331 = arith.addf %327, %330 : vector<16x48xf32>
    %332 = vector.extract_strided_slice %331 {offsets = [0, 0], sizes = [16, 12], strides = [1, 1]} : vector<16x48xf32> to vector<16x12xf32>
    %333 = vector.extract_strided_slice %331 {offsets = [0, 12], sizes = [16, 12], strides = [1, 1]} : vector<16x48xf32> to vector<16x12xf32>
    %334 = vector.extract_strided_slice %331 {offsets = [0, 24], sizes = [16, 12], strides = [1, 1]} : vector<16x48xf32> to vector<16x12xf32>
    %335 = vector.extract_strided_slice %331 {offsets = [0, 36], sizes = [16, 12], strides = [1, 1]} : vector<16x48xf32> to vector<16x12xf32>
    %336 = tpu.concatenate %332, %333, %334, %335 in 0 : vector<16x12xf32>, vector<16x12xf32>, vector<16x12xf32>, vector<16x12xf32> -> vector<64x12xf32>
    %337 = vector.extract_strided_slice %336 {offsets = [0, 0], sizes = [64, 4], strides = [1, 1]} : vector<64x12xf32> to vector<64x4xf32>
    %338 = vector.extract_strided_slice %336 {offsets = [0, 4], sizes = [64, 4], strides = [1, 1]} : vector<64x12xf32> to vector<64x4xf32>
    %339 = vector.extract_strided_slice %336 {offsets = [0, 8], sizes = [64, 4], strides = [1, 1]} : vector<64x12xf32> to vector<64x4xf32>
    %cst_158 = arith.constant dense<0.000000e+00> : vector<64x64xf32>
    %340 = tpu.matmul %337, %338, %cst_158 {dimension_numbers = #tpu.dot_dimension_numbers<[1], [1], [0], [0], [0, 0, 1, 0], [], []>} : vector<64x4xf32>, vector<64x4xf32>, vector<64x64xf32> -> vector<64x64xf32>
    %341 = arith.addf %340, %2 : vector<64x64xf32>
    %cst_159 = arith.constant dense<0xFF800000> : vector<64xf32>
    %342 = vector.multi_reduction <maximumf>, %341, %cst_159 [1] : vector<64x64xf32> to vector<64xf32>
    %343 = vector.shape_cast %342 : vector<64xf32> to vector<64x1xf32>
    %344 = vector.broadcast %343 : vector<64x1xf32> to vector<64x64xf32>
    %345 = arith.subf %341, %344 : vector<64x64xf32>
    %346 = math.exp %345 : vector<64x64xf32>
    %cst_160 = arith.constant dense<0.000000e+00> : vector<64xf32>
    %347 = vector.multi_reduction <add>, %346, %cst_160 [1] : vector<64x64xf32> to vector<64xf32>
    %348 = vector.shape_cast %347 : vector<64xf32> to vector<64x1xf32>
    %349 = tpu.reciprocal %348 : vector<64x1xf32> -> vector<64x1xf32>
    %350 = vector.broadcast %349 : vector<64x1xf32> to vector<64x64xf32>
    %351 = arith.mulf %346, %350 : vector<64x64xf32>
    %cst_161 = arith.constant dense<0.000000e+00> : vector<64x4xf32>
    %352 = tpu.matmul %351, %339, %cst_161 {dimension_numbers = #tpu.dot_dimension_numbers<[1], [0], [0], [1], [0, 0, 1, 1], [], []>} : vector<64x64xf32>, vector<64x4xf32>, vector<64x4xf32> -> vector<64x4xf32>
    %cst_162 = arith.constant dense<0.000000e+00> : vector<64x4xf32>
    %353 = tpu.matmul %1, %352, %cst_162 {dimension_numbers = #tpu.dot_dimension_numbers<[1], [0], [0], [1], [0, 0, 1, 1], [], []>} : vector<64x64xf32>, vector<64x4xf32>, vector<64x4xf32> -> vector<64x4xf32>
    %354 = vector.extract_strided_slice %353 {offsets = [0, 0], sizes = [16, 4], strides = [1, 1]} : vector<64x4xf32> to vector<16x4xf32>
    %355 = vector.extract_strided_slice %353 {offsets = [16, 0], sizes = [16, 4], strides = [1, 1]} : vector<64x4xf32> to vector<16x4xf32>
    %356 = vector.extract_strided_slice %353 {offsets = [32, 0], sizes = [16, 4], strides = [1, 1]} : vector<64x4xf32> to vector<16x4xf32>
    %357 = vector.extract_strided_slice %353 {offsets = [48, 0], sizes = [16, 4], strides = [1, 1]} : vector<64x4xf32> to vector<16x4xf32>
    %358 = tpu.concatenate %354, %355, %356, %357 in 1 : vector<16x4xf32>, vector<16x4xf32>, vector<16x4xf32>, vector<16x4xf32> -> vector<16x16xf32>
    %c2_163 = arith.constant 2 : index
    %c0_164 = arith.constant 0 : index
    %c0_165 = arith.constant 0 : index
    %359 = vector.load %arg7[%c2_163, %c0_164, %c0_165] : memref<6x16x16xf32, #tpu.memory_space<vmem>>, vector<1x16x16xf32>
    %360 = vector.shape_cast %359 : vector<1x16x16xf32> to vector<16x16xf32>
    %cst_166 = arith.constant dense<0.000000e+00> : vector<16x16xf32>
    %361 = tpu.matmul %358, %360, %cst_166 {dimension_numbers = #tpu.dot_dimension_numbers<[1], [0], [0], [1], [0, 0, 1, 1], [], []>} : vector<16x16xf32>, vector<16x16xf32>, vector<16x16xf32> -> vector<16x16xf32>
    %362 = arith.addf %298, %361 : vector<16x16xf32>
    %c2_167 = arith.constant 2 : index
    %c0_168 = arith.constant 0 : index
    %c0_169 = arith.constant 0 : index
    %363 = vector.load %arg8[%c2_167, %c0_168, %c0_169] : memref<6x1x16xf32, #tpu.memory_space<vmem>>, vector<1x1x16xf32>
    %364 = vector.shape_cast %363 : vector<1x1x16xf32> to vector<1x16xf32>
    %365 = vector.broadcast %364 : vector<1x16xf32> to vector<16x16xf32>
    %366 = arith.addf %362, %365 : vector<16x16xf32>
    %c2_170 = arith.constant 2 : index
    %c0_171 = arith.constant 0 : index
    %c0_172 = arith.constant 0 : index
    %367 = vector.load %arg9[%c2_170, %c0_171, %c0_172] : memref<6x1x16xf32, #tpu.memory_space<vmem>>, vector<1x1x16xf32>
    %368 = vector.shape_cast %367 : vector<1x1x16xf32> to vector<1x16xf32>
    %c2_173 = arith.constant 2 : index
    %c0_174 = arith.constant 0 : index
    %c0_175 = arith.constant 0 : index
    %369 = vector.load %arg10[%c2_173, %c0_174, %c0_175] : memref<6x1x16xf32, #tpu.memory_space<vmem>>, vector<1x1x16xf32>
    %370 = vector.shape_cast %369 : vector<1x1x16xf32> to vector<1x16xf32>
    %cst_176 = arith.constant dense<0.000000e+00> : vector<16xf32>
    %371 = vector.multi_reduction <add>, %366, %cst_176 [1] : vector<16x16xf32> to vector<16xf32>
    %372 = vector.shape_cast %371 : vector<16xf32> to vector<16x1xf32>
    %cst_177 = arith.constant 1.600000e+01 : f32
    %373 = vector.broadcast %cst_177 : f32 to vector<16x1xf32>
    %374 = arith.divf %372, %373 : vector<16x1xf32>
    %375 = vector.broadcast %374 : vector<16x1xf32> to vector<16x16xf32>
    %376 = arith.subf %366, %375 : vector<16x16xf32>
    %377 = arith.mulf %376, %376 : vector<16x16xf32>
    %cst_178 = arith.constant dense<0.000000e+00> : vector<16xf32>
    %378 = vector.multi_reduction <add>, %377, %cst_178 [1] : vector<16x16xf32> to vector<16xf32>
    %379 = vector.shape_cast %378 : vector<16xf32> to vector<16x1xf32>
    %cst_179 = arith.constant 1.600000e+01 : f32
    %380 = vector.broadcast %cst_179 : f32 to vector<16x1xf32>
    %381 = arith.divf %379, %380 : vector<16x1xf32>
    %382 = vector.broadcast %374 : vector<16x1xf32> to vector<16x16xf32>
    %383 = arith.subf %366, %382 : vector<16x16xf32>
    %cst_180 = arith.constant 9.99999997E-7 : f32
    %384 = vector.broadcast %cst_180 : f32 to vector<16x1xf32>
    %385 = arith.addf %381, %384 : vector<16x1xf32>
    %386 = math.rsqrt %385 : vector<16x1xf32>
    %387 = vector.broadcast %386 : vector<16x1xf32> to vector<16x16xf32>
    %388 = arith.mulf %383, %387 : vector<16x16xf32>
    %389 = vector.broadcast %368 : vector<1x16xf32> to vector<16x16xf32>
    %390 = arith.mulf %388, %389 : vector<16x16xf32>
    %391 = vector.broadcast %370 : vector<1x16xf32> to vector<16x16xf32>
    %392 = arith.addf %390, %391 : vector<16x16xf32>
    %c2_181 = arith.constant 2 : index
    %c0_182 = arith.constant 0 : index
    %c0_183 = arith.constant 0 : index
    %393 = vector.load %arg11[%c2_181, %c0_182, %c0_183] : memref<6x16x64xf32, #tpu.memory_space<vmem>>, vector<1x16x64xf32>
    %394 = vector.shape_cast %393 : vector<1x16x64xf32> to vector<16x64xf32>
    %cst_184 = arith.constant dense<0.000000e+00> : vector<16x64xf32>
    %395 = tpu.matmul %392, %394, %cst_184 {dimension_numbers = #tpu.dot_dimension_numbers<[1], [0], [0], [1], [0, 0, 1, 1], [], []>} : vector<16x16xf32>, vector<16x64xf32>, vector<16x64xf32> -> vector<16x64xf32>
    %c2_185 = arith.constant 2 : index
    %c0_186 = arith.constant 0 : index
    %c0_187 = arith.constant 0 : index
    %396 = vector.load %arg12[%c2_185, %c0_186, %c0_187] : memref<6x1x64xf32, #tpu.memory_space<vmem>>, vector<1x1x64xf32>
    %397 = vector.shape_cast %396 : vector<1x1x64xf32> to vector<1x64xf32>
    %398 = vector.broadcast %397 : vector<1x64xf32> to vector<16x64xf32>
    %399 = arith.addf %395, %398 : vector<16x64xf32>
    %cst_188 = arith.constant 5.000000e-01 : f32
    %400 = vector.broadcast %cst_188 : f32 to vector<16x64xf32>
    %401 = arith.mulf %400, %399 : vector<16x64xf32>
    %cst_189 = arith.constant 0.707106769 : f32
    %402 = vector.broadcast %cst_189 : f32 to vector<16x64xf32>
    %403 = arith.mulf %399, %402 : vector<16x64xf32>
    %404 = math.absf %403 : vector<16x64xf32>
    %cst_190 = arith.constant 0.327591091 : f32
    %405 = vector.broadcast %cst_190 : f32 to vector<16x64xf32>
    %406 = arith.mulf %405, %404 : vector<16x64xf32>
    %cst_191 = arith.constant 1.000000e+00 : f32
    %407 = vector.broadcast %cst_191 : f32 to vector<16x64xf32>
    %408 = arith.addf %407, %406 : vector<16x64xf32>
    %409 = tpu.reciprocal %408 : vector<16x64xf32> -> vector<16x64xf32>
    %cst_192 = arith.constant 1.06140542 : f32
    %410 = vector.broadcast %cst_192 : f32 to vector<16x64xf32>
    %411 = arith.mulf %410, %409 : vector<16x64xf32>
    %cst_193 = arith.constant -1.45315206 : f32
    %412 = vector.broadcast %cst_193 : f32 to vector<16x64xf32>
    %413 = arith.addf %411, %412 : vector<16x64xf32>
    %414 = arith.mulf %413, %409 : vector<16x64xf32>
    %cst_194 = arith.constant 1.42141378 : f32
    %415 = vector.broadcast %cst_194 : f32 to vector<16x64xf32>
    %416 = arith.addf %414, %415 : vector<16x64xf32>
    %417 = arith.mulf %416, %409 : vector<16x64xf32>
    %cst_195 = arith.constant -0.284496725 : f32
    %418 = vector.broadcast %cst_195 : f32 to vector<16x64xf32>
    %419 = arith.addf %417, %418 : vector<16x64xf32>
    %420 = arith.mulf %419, %409 : vector<16x64xf32>
    %cst_196 = arith.constant 0.254829586 : f32
    %421 = vector.broadcast %cst_196 : f32 to vector<16x64xf32>
    %422 = arith.addf %420, %421 : vector<16x64xf32>
    %423 = arith.mulf %422, %409 : vector<16x64xf32>
    %cst_197 = arith.constant 0.000000e+00 : f32
    %424 = vector.broadcast %cst_197 : f32 to vector<16x64xf32>
    %425 = arith.subf %424, %404 : vector<16x64xf32>
    %426 = arith.mulf %425, %404 : vector<16x64xf32>
    %427 = math.exp %426 : vector<16x64xf32>
    %428 = arith.mulf %423, %427 : vector<16x64xf32>
    %cst_198 = arith.constant 1.000000e+00 : f32
    %429 = vector.broadcast %cst_198 : f32 to vector<16x64xf32>
    %430 = arith.subf %429, %428 : vector<16x64xf32>
    %cst_199 = arith.constant 0.000000e+00 : f32
    %431 = vector.broadcast %cst_199 : f32 to vector<16x64xf32>
    %432 = arith.cmpf oge, %403, %431 : vector<16x64xf32>
    %cst_200 = arith.constant 0.000000e+00 : f32
    %433 = vector.broadcast %cst_200 : f32 to vector<16x64xf32>
    %434 = arith.subf %433, %430 : vector<16x64xf32>
    %435 = arith.select %432, %430, %434 : vector<16x64xi1>, vector<16x64xf32>
    %cst_201 = arith.constant 1.000000e+00 : f32
    %436 = vector.broadcast %cst_201 : f32 to vector<16x64xf32>
    %437 = arith.addf %436, %435 : vector<16x64xf32>
    %438 = arith.mulf %401, %437 : vector<16x64xf32>
    %c2_202 = arith.constant 2 : index
    %c0_203 = arith.constant 0 : index
    %c0_204 = arith.constant 0 : index
    %439 = vector.load %arg13[%c2_202, %c0_203, %c0_204] : memref<6x64x16xf32, #tpu.memory_space<vmem>>, vector<1x64x16xf32>
    %440 = vector.shape_cast %439 : vector<1x64x16xf32> to vector<64x16xf32>
    %cst_205 = arith.constant dense<0.000000e+00> : vector<16x16xf32>
    %441 = tpu.matmul %438, %440, %cst_205 {dimension_numbers = #tpu.dot_dimension_numbers<[1], [0], [0], [1], [0, 0, 1, 1], [], []>} : vector<16x64xf32>, vector<64x16xf32>, vector<16x16xf32> -> vector<16x16xf32>
    %c2_206 = arith.constant 2 : index
    %c0_207 = arith.constant 0 : index
    %c0_208 = arith.constant 0 : index
    %442 = vector.load %arg14[%c2_206, %c0_207, %c0_208] : memref<6x1x16xf32, #tpu.memory_space<vmem>>, vector<1x1x16xf32>
    %443 = vector.shape_cast %442 : vector<1x1x16xf32> to vector<1x16xf32>
    %444 = vector.broadcast %443 : vector<1x16xf32> to vector<16x16xf32>
    %445 = arith.addf %441, %444 : vector<16x16xf32>
    %446 = arith.addf %445, %366 : vector<16x16xf32>
    %c3 = arith.constant 3 : index
    %c0_209 = arith.constant 0 : index
    %c0_210 = arith.constant 0 : index
    %447 = vector.load %arg3[%c3, %c0_209, %c0_210] : memref<6x1x16xf32, #tpu.memory_space<vmem>>, vector<1x1x16xf32>
    %448 = vector.shape_cast %447 : vector<1x1x16xf32> to vector<1x16xf32>
    %c3_211 = arith.constant 3 : index
    %c0_212 = arith.constant 0 : index
    %c0_213 = arith.constant 0 : index
    %449 = vector.load %arg4[%c3_211, %c0_212, %c0_213] : memref<6x1x16xf32, #tpu.memory_space<vmem>>, vector<1x1x16xf32>
    %450 = vector.shape_cast %449 : vector<1x1x16xf32> to vector<1x16xf32>
    %cst_214 = arith.constant dense<0.000000e+00> : vector<16xf32>
    %451 = vector.multi_reduction <add>, %446, %cst_214 [1] : vector<16x16xf32> to vector<16xf32>
    %452 = vector.shape_cast %451 : vector<16xf32> to vector<16x1xf32>
    %cst_215 = arith.constant 1.600000e+01 : f32
    %453 = vector.broadcast %cst_215 : f32 to vector<16x1xf32>
    %454 = arith.divf %452, %453 : vector<16x1xf32>
    %455 = vector.broadcast %454 : vector<16x1xf32> to vector<16x16xf32>
    %456 = arith.subf %446, %455 : vector<16x16xf32>
    %457 = arith.mulf %456, %456 : vector<16x16xf32>
    %cst_216 = arith.constant dense<0.000000e+00> : vector<16xf32>
    %458 = vector.multi_reduction <add>, %457, %cst_216 [1] : vector<16x16xf32> to vector<16xf32>
    %459 = vector.shape_cast %458 : vector<16xf32> to vector<16x1xf32>
    %cst_217 = arith.constant 1.600000e+01 : f32
    %460 = vector.broadcast %cst_217 : f32 to vector<16x1xf32>
    %461 = arith.divf %459, %460 : vector<16x1xf32>
    %462 = vector.broadcast %454 : vector<16x1xf32> to vector<16x16xf32>
    %463 = arith.subf %446, %462 : vector<16x16xf32>
    %cst_218 = arith.constant 9.99999997E-7 : f32
    %464 = vector.broadcast %cst_218 : f32 to vector<16x1xf32>
    %465 = arith.addf %461, %464 : vector<16x1xf32>
    %466 = math.rsqrt %465 : vector<16x1xf32>
    %467 = vector.broadcast %466 : vector<16x1xf32> to vector<16x16xf32>
    %468 = arith.mulf %463, %467 : vector<16x16xf32>
    %469 = vector.broadcast %448 : vector<1x16xf32> to vector<16x16xf32>
    %470 = arith.mulf %468, %469 : vector<16x16xf32>
    %471 = vector.broadcast %450 : vector<1x16xf32> to vector<16x16xf32>
    %472 = arith.addf %470, %471 : vector<16x16xf32>
    %c3_219 = arith.constant 3 : index
    %c0_220 = arith.constant 0 : index
    %c0_221 = arith.constant 0 : index
    %473 = vector.load %arg5[%c3_219, %c0_220, %c0_221] : memref<6x16x48xf32, #tpu.memory_space<vmem>>, vector<1x16x48xf32>
    %474 = vector.shape_cast %473 : vector<1x16x48xf32> to vector<16x48xf32>
    %cst_222 = arith.constant dense<0.000000e+00> : vector<16x48xf32>
    %475 = tpu.matmul %472, %474, %cst_222 {dimension_numbers = #tpu.dot_dimension_numbers<[1], [0], [0], [1], [0, 0, 1, 1], [], []>} : vector<16x16xf32>, vector<16x48xf32>, vector<16x48xf32> -> vector<16x48xf32>
    %c3_223 = arith.constant 3 : index
    %c0_224 = arith.constant 0 : index
    %c0_225 = arith.constant 0 : index
    %476 = vector.load %arg6[%c3_223, %c0_224, %c0_225] : memref<6x1x48xf32, #tpu.memory_space<vmem>>, vector<1x1x48xf32>
    %477 = vector.shape_cast %476 : vector<1x1x48xf32> to vector<1x48xf32>
    %478 = vector.broadcast %477 : vector<1x48xf32> to vector<16x48xf32>
    %479 = arith.addf %475, %478 : vector<16x48xf32>
    %480 = vector.extract_strided_slice %479 {offsets = [0, 0], sizes = [16, 12], strides = [1, 1]} : vector<16x48xf32> to vector<16x12xf32>
    %481 = vector.extract_strided_slice %479 {offsets = [0, 12], sizes = [16, 12], strides = [1, 1]} : vector<16x48xf32> to vector<16x12xf32>
    %482 = vector.extract_strided_slice %479 {offsets = [0, 24], sizes = [16, 12], strides = [1, 1]} : vector<16x48xf32> to vector<16x12xf32>
    %483 = vector.extract_strided_slice %479 {offsets = [0, 36], sizes = [16, 12], strides = [1, 1]} : vector<16x48xf32> to vector<16x12xf32>
    %484 = tpu.concatenate %480, %481, %482, %483 in 0 : vector<16x12xf32>, vector<16x12xf32>, vector<16x12xf32>, vector<16x12xf32> -> vector<64x12xf32>
    %485 = vector.extract_strided_slice %484 {offsets = [0, 0], sizes = [64, 4], strides = [1, 1]} : vector<64x12xf32> to vector<64x4xf32>
    %486 = vector.extract_strided_slice %484 {offsets = [0, 4], sizes = [64, 4], strides = [1, 1]} : vector<64x12xf32> to vector<64x4xf32>
    %487 = vector.extract_strided_slice %484 {offsets = [0, 8], sizes = [64, 4], strides = [1, 1]} : vector<64x12xf32> to vector<64x4xf32>
    %cst_226 = arith.constant dense<0.000000e+00> : vector<64x64xf32>
    %488 = tpu.matmul %485, %486, %cst_226 {dimension_numbers = #tpu.dot_dimension_numbers<[1], [1], [0], [0], [0, 0, 1, 0], [], []>} : vector<64x4xf32>, vector<64x4xf32>, vector<64x64xf32> -> vector<64x64xf32>
    %489 = arith.addf %488, %2 : vector<64x64xf32>
    %cst_227 = arith.constant dense<0xFF800000> : vector<64xf32>
    %490 = vector.multi_reduction <maximumf>, %489, %cst_227 [1] : vector<64x64xf32> to vector<64xf32>
    %491 = vector.shape_cast %490 : vector<64xf32> to vector<64x1xf32>
    %492 = vector.broadcast %491 : vector<64x1xf32> to vector<64x64xf32>
    %493 = arith.subf %489, %492 : vector<64x64xf32>
    %494 = math.exp %493 : vector<64x64xf32>
    %cst_228 = arith.constant dense<0.000000e+00> : vector<64xf32>
    %495 = vector.multi_reduction <add>, %494, %cst_228 [1] : vector<64x64xf32> to vector<64xf32>
    %496 = vector.shape_cast %495 : vector<64xf32> to vector<64x1xf32>
    %497 = tpu.reciprocal %496 : vector<64x1xf32> -> vector<64x1xf32>
    %498 = vector.broadcast %497 : vector<64x1xf32> to vector<64x64xf32>
    %499 = arith.mulf %494, %498 : vector<64x64xf32>
    %cst_229 = arith.constant dense<0.000000e+00> : vector<64x4xf32>
    %500 = tpu.matmul %499, %487, %cst_229 {dimension_numbers = #tpu.dot_dimension_numbers<[1], [0], [0], [1], [0, 0, 1, 1], [], []>} : vector<64x64xf32>, vector<64x4xf32>, vector<64x4xf32> -> vector<64x4xf32>
    %cst_230 = arith.constant dense<0.000000e+00> : vector<64x4xf32>
    %501 = tpu.matmul %1, %500, %cst_230 {dimension_numbers = #tpu.dot_dimension_numbers<[1], [0], [0], [1], [0, 0, 1, 1], [], []>} : vector<64x64xf32>, vector<64x4xf32>, vector<64x4xf32> -> vector<64x4xf32>
    %502 = vector.extract_strided_slice %501 {offsets = [0, 0], sizes = [16, 4], strides = [1, 1]} : vector<64x4xf32> to vector<16x4xf32>
    %503 = vector.extract_strided_slice %501 {offsets = [16, 0], sizes = [16, 4], strides = [1, 1]} : vector<64x4xf32> to vector<16x4xf32>
    %504 = vector.extract_strided_slice %501 {offsets = [32, 0], sizes = [16, 4], strides = [1, 1]} : vector<64x4xf32> to vector<16x4xf32>
    %505 = vector.extract_strided_slice %501 {offsets = [48, 0], sizes = [16, 4], strides = [1, 1]} : vector<64x4xf32> to vector<16x4xf32>
    %506 = tpu.concatenate %502, %503, %504, %505 in 1 : vector<16x4xf32>, vector<16x4xf32>, vector<16x4xf32>, vector<16x4xf32> -> vector<16x16xf32>
    %c3_231 = arith.constant 3 : index
    %c0_232 = arith.constant 0 : index
    %c0_233 = arith.constant 0 : index
    %507 = vector.load %arg7[%c3_231, %c0_232, %c0_233] : memref<6x16x16xf32, #tpu.memory_space<vmem>>, vector<1x16x16xf32>
    %508 = vector.shape_cast %507 : vector<1x16x16xf32> to vector<16x16xf32>
    %cst_234 = arith.constant dense<0.000000e+00> : vector<16x16xf32>
    %509 = tpu.matmul %506, %508, %cst_234 {dimension_numbers = #tpu.dot_dimension_numbers<[1], [0], [0], [1], [0, 0, 1, 1], [], []>} : vector<16x16xf32>, vector<16x16xf32>, vector<16x16xf32> -> vector<16x16xf32>
    %510 = arith.addf %446, %509 : vector<16x16xf32>
    %c3_235 = arith.constant 3 : index
    %c0_236 = arith.constant 0 : index
    %c0_237 = arith.constant 0 : index
    %511 = vector.load %arg8[%c3_235, %c0_236, %c0_237] : memref<6x1x16xf32, #tpu.memory_space<vmem>>, vector<1x1x16xf32>
    %512 = vector.shape_cast %511 : vector<1x1x16xf32> to vector<1x16xf32>
    %513 = vector.broadcast %512 : vector<1x16xf32> to vector<16x16xf32>
    %514 = arith.addf %510, %513 : vector<16x16xf32>
    %c3_238 = arith.constant 3 : index
    %c0_239 = arith.constant 0 : index
    %c0_240 = arith.constant 0 : index
    %515 = vector.load %arg9[%c3_238, %c0_239, %c0_240] : memref<6x1x16xf32, #tpu.memory_space<vmem>>, vector<1x1x16xf32>
    %516 = vector.shape_cast %515 : vector<1x1x16xf32> to vector<1x16xf32>
    %c3_241 = arith.constant 3 : index
    %c0_242 = arith.constant 0 : index
    %c0_243 = arith.constant 0 : index
    %517 = vector.load %arg10[%c3_241, %c0_242, %c0_243] : memref<6x1x16xf32, #tpu.memory_space<vmem>>, vector<1x1x16xf32>
    %518 = vector.shape_cast %517 : vector<1x1x16xf32> to vector<1x16xf32>
    %cst_244 = arith.constant dense<0.000000e+00> : vector<16xf32>
    %519 = vector.multi_reduction <add>, %514, %cst_244 [1] : vector<16x16xf32> to vector<16xf32>
    %520 = vector.shape_cast %519 : vector<16xf32> to vector<16x1xf32>
    %cst_245 = arith.constant 1.600000e+01 : f32
    %521 = vector.broadcast %cst_245 : f32 to vector<16x1xf32>
    %522 = arith.divf %520, %521 : vector<16x1xf32>
    %523 = vector.broadcast %522 : vector<16x1xf32> to vector<16x16xf32>
    %524 = arith.subf %514, %523 : vector<16x16xf32>
    %525 = arith.mulf %524, %524 : vector<16x16xf32>
    %cst_246 = arith.constant dense<0.000000e+00> : vector<16xf32>
    %526 = vector.multi_reduction <add>, %525, %cst_246 [1] : vector<16x16xf32> to vector<16xf32>
    %527 = vector.shape_cast %526 : vector<16xf32> to vector<16x1xf32>
    %cst_247 = arith.constant 1.600000e+01 : f32
    %528 = vector.broadcast %cst_247 : f32 to vector<16x1xf32>
    %529 = arith.divf %527, %528 : vector<16x1xf32>
    %530 = vector.broadcast %522 : vector<16x1xf32> to vector<16x16xf32>
    %531 = arith.subf %514, %530 : vector<16x16xf32>
    %cst_248 = arith.constant 9.99999997E-7 : f32
    %532 = vector.broadcast %cst_248 : f32 to vector<16x1xf32>
    %533 = arith.addf %529, %532 : vector<16x1xf32>
    %534 = math.rsqrt %533 : vector<16x1xf32>
    %535 = vector.broadcast %534 : vector<16x1xf32> to vector<16x16xf32>
    %536 = arith.mulf %531, %535 : vector<16x16xf32>
    %537 = vector.broadcast %516 : vector<1x16xf32> to vector<16x16xf32>
    %538 = arith.mulf %536, %537 : vector<16x16xf32>
    %539 = vector.broadcast %518 : vector<1x16xf32> to vector<16x16xf32>
    %540 = arith.addf %538, %539 : vector<16x16xf32>
    %c3_249 = arith.constant 3 : index
    %c0_250 = arith.constant 0 : index
    %c0_251 = arith.constant 0 : index
    %541 = vector.load %arg11[%c3_249, %c0_250, %c0_251] : memref<6x16x64xf32, #tpu.memory_space<vmem>>, vector<1x16x64xf32>
    %542 = vector.shape_cast %541 : vector<1x16x64xf32> to vector<16x64xf32>
    %cst_252 = arith.constant dense<0.000000e+00> : vector<16x64xf32>
    %543 = tpu.matmul %540, %542, %cst_252 {dimension_numbers = #tpu.dot_dimension_numbers<[1], [0], [0], [1], [0, 0, 1, 1], [], []>} : vector<16x16xf32>, vector<16x64xf32>, vector<16x64xf32> -> vector<16x64xf32>
    %c3_253 = arith.constant 3 : index
    %c0_254 = arith.constant 0 : index
    %c0_255 = arith.constant 0 : index
    %544 = vector.load %arg12[%c3_253, %c0_254, %c0_255] : memref<6x1x64xf32, #tpu.memory_space<vmem>>, vector<1x1x64xf32>
    %545 = vector.shape_cast %544 : vector<1x1x64xf32> to vector<1x64xf32>
    %546 = vector.broadcast %545 : vector<1x64xf32> to vector<16x64xf32>
    %547 = arith.addf %543, %546 : vector<16x64xf32>
    %cst_256 = arith.constant 5.000000e-01 : f32
    %548 = vector.broadcast %cst_256 : f32 to vector<16x64xf32>
    %549 = arith.mulf %548, %547 : vector<16x64xf32>
    %cst_257 = arith.constant 0.707106769 : f32
    %550 = vector.broadcast %cst_257 : f32 to vector<16x64xf32>
    %551 = arith.mulf %547, %550 : vector<16x64xf32>
    %552 = math.absf %551 : vector<16x64xf32>
    %cst_258 = arith.constant 0.327591091 : f32
    %553 = vector.broadcast %cst_258 : f32 to vector<16x64xf32>
    %554 = arith.mulf %553, %552 : vector<16x64xf32>
    %cst_259 = arith.constant 1.000000e+00 : f32
    %555 = vector.broadcast %cst_259 : f32 to vector<16x64xf32>
    %556 = arith.addf %555, %554 : vector<16x64xf32>
    %557 = tpu.reciprocal %556 : vector<16x64xf32> -> vector<16x64xf32>
    %cst_260 = arith.constant 1.06140542 : f32
    %558 = vector.broadcast %cst_260 : f32 to vector<16x64xf32>
    %559 = arith.mulf %558, %557 : vector<16x64xf32>
    %cst_261 = arith.constant -1.45315206 : f32
    %560 = vector.broadcast %cst_261 : f32 to vector<16x64xf32>
    %561 = arith.addf %559, %560 : vector<16x64xf32>
    %562 = arith.mulf %561, %557 : vector<16x64xf32>
    %cst_262 = arith.constant 1.42141378 : f32
    %563 = vector.broadcast %cst_262 : f32 to vector<16x64xf32>
    %564 = arith.addf %562, %563 : vector<16x64xf32>
    %565 = arith.mulf %564, %557 : vector<16x64xf32>
    %cst_263 = arith.constant -0.284496725 : f32
    %566 = vector.broadcast %cst_263 : f32 to vector<16x64xf32>
    %567 = arith.addf %565, %566 : vector<16x64xf32>
    %568 = arith.mulf %567, %557 : vector<16x64xf32>
    %cst_264 = arith.constant 0.254829586 : f32
    %569 = vector.broadcast %cst_264 : f32 to vector<16x64xf32>
    %570 = arith.addf %568, %569 : vector<16x64xf32>
    %571 = arith.mulf %570, %557 : vector<16x64xf32>
    %cst_265 = arith.constant 0.000000e+00 : f32
    %572 = vector.broadcast %cst_265 : f32 to vector<16x64xf32>
    %573 = arith.subf %572, %552 : vector<16x64xf32>
    %574 = arith.mulf %573, %552 : vector<16x64xf32>
    %575 = math.exp %574 : vector<16x64xf32>
    %576 = arith.mulf %571, %575 : vector<16x64xf32>
    %cst_266 = arith.constant 1.000000e+00 : f32
    %577 = vector.broadcast %cst_266 : f32 to vector<16x64xf32>
    %578 = arith.subf %577, %576 : vector<16x64xf32>
    %cst_267 = arith.constant 0.000000e+00 : f32
    %579 = vector.broadcast %cst_267 : f32 to vector<16x64xf32>
    %580 = arith.cmpf oge, %551, %579 : vector<16x64xf32>
    %cst_268 = arith.constant 0.000000e+00 : f32
    %581 = vector.broadcast %cst_268 : f32 to vector<16x64xf32>
    %582 = arith.subf %581, %578 : vector<16x64xf32>
    %583 = arith.select %580, %578, %582 : vector<16x64xi1>, vector<16x64xf32>
    %cst_269 = arith.constant 1.000000e+00 : f32
    %584 = vector.broadcast %cst_269 : f32 to vector<16x64xf32>
    %585 = arith.addf %584, %583 : vector<16x64xf32>
    %586 = arith.mulf %549, %585 : vector<16x64xf32>
    %c3_270 = arith.constant 3 : index
    %c0_271 = arith.constant 0 : index
    %c0_272 = arith.constant 0 : index
    %587 = vector.load %arg13[%c3_270, %c0_271, %c0_272] : memref<6x64x16xf32, #tpu.memory_space<vmem>>, vector<1x64x16xf32>
    %588 = vector.shape_cast %587 : vector<1x64x16xf32> to vector<64x16xf32>
    %cst_273 = arith.constant dense<0.000000e+00> : vector<16x16xf32>
    %589 = tpu.matmul %586, %588, %cst_273 {dimension_numbers = #tpu.dot_dimension_numbers<[1], [0], [0], [1], [0, 0, 1, 1], [], []>} : vector<16x64xf32>, vector<64x16xf32>, vector<16x16xf32> -> vector<16x16xf32>
    %c3_274 = arith.constant 3 : index
    %c0_275 = arith.constant 0 : index
    %c0_276 = arith.constant 0 : index
    %590 = vector.load %arg14[%c3_274, %c0_275, %c0_276] : memref<6x1x16xf32, #tpu.memory_space<vmem>>, vector<1x1x16xf32>
    %591 = vector.shape_cast %590 : vector<1x1x16xf32> to vector<1x16xf32>
    %592 = vector.broadcast %591 : vector<1x16xf32> to vector<16x16xf32>
    %593 = arith.addf %589, %592 : vector<16x16xf32>
    %594 = arith.addf %593, %514 : vector<16x16xf32>
    %c4 = arith.constant 4 : index
    %c0_277 = arith.constant 0 : index
    %c0_278 = arith.constant 0 : index
    %595 = vector.load %arg3[%c4, %c0_277, %c0_278] : memref<6x1x16xf32, #tpu.memory_space<vmem>>, vector<1x1x16xf32>
    %596 = vector.shape_cast %595 : vector<1x1x16xf32> to vector<1x16xf32>
    %c4_279 = arith.constant 4 : index
    %c0_280 = arith.constant 0 : index
    %c0_281 = arith.constant 0 : index
    %597 = vector.load %arg4[%c4_279, %c0_280, %c0_281] : memref<6x1x16xf32, #tpu.memory_space<vmem>>, vector<1x1x16xf32>
    %598 = vector.shape_cast %597 : vector<1x1x16xf32> to vector<1x16xf32>
    %cst_282 = arith.constant dense<0.000000e+00> : vector<16xf32>
    %599 = vector.multi_reduction <add>, %594, %cst_282 [1] : vector<16x16xf32> to vector<16xf32>
    %600 = vector.shape_cast %599 : vector<16xf32> to vector<16x1xf32>
    %cst_283 = arith.constant 1.600000e+01 : f32
    %601 = vector.broadcast %cst_283 : f32 to vector<16x1xf32>
    %602 = arith.divf %600, %601 : vector<16x1xf32>
    %603 = vector.broadcast %602 : vector<16x1xf32> to vector<16x16xf32>
    %604 = arith.subf %594, %603 : vector<16x16xf32>
    %605 = arith.mulf %604, %604 : vector<16x16xf32>
    %cst_284 = arith.constant dense<0.000000e+00> : vector<16xf32>
    %606 = vector.multi_reduction <add>, %605, %cst_284 [1] : vector<16x16xf32> to vector<16xf32>
    %607 = vector.shape_cast %606 : vector<16xf32> to vector<16x1xf32>
    %cst_285 = arith.constant 1.600000e+01 : f32
    %608 = vector.broadcast %cst_285 : f32 to vector<16x1xf32>
    %609 = arith.divf %607, %608 : vector<16x1xf32>
    %610 = vector.broadcast %602 : vector<16x1xf32> to vector<16x16xf32>
    %611 = arith.subf %594, %610 : vector<16x16xf32>
    %cst_286 = arith.constant 9.99999997E-7 : f32
    %612 = vector.broadcast %cst_286 : f32 to vector<16x1xf32>
    %613 = arith.addf %609, %612 : vector<16x1xf32>
    %614 = math.rsqrt %613 : vector<16x1xf32>
    %615 = vector.broadcast %614 : vector<16x1xf32> to vector<16x16xf32>
    %616 = arith.mulf %611, %615 : vector<16x16xf32>
    %617 = vector.broadcast %596 : vector<1x16xf32> to vector<16x16xf32>
    %618 = arith.mulf %616, %617 : vector<16x16xf32>
    %619 = vector.broadcast %598 : vector<1x16xf32> to vector<16x16xf32>
    %620 = arith.addf %618, %619 : vector<16x16xf32>
    %c4_287 = arith.constant 4 : index
    %c0_288 = arith.constant 0 : index
    %c0_289 = arith.constant 0 : index
    %621 = vector.load %arg5[%c4_287, %c0_288, %c0_289] : memref<6x16x48xf32, #tpu.memory_space<vmem>>, vector<1x16x48xf32>
    %622 = vector.shape_cast %621 : vector<1x16x48xf32> to vector<16x48xf32>
    %cst_290 = arith.constant dense<0.000000e+00> : vector<16x48xf32>
    %623 = tpu.matmul %620, %622, %cst_290 {dimension_numbers = #tpu.dot_dimension_numbers<[1], [0], [0], [1], [0, 0, 1, 1], [], []>} : vector<16x16xf32>, vector<16x48xf32>, vector<16x48xf32> -> vector<16x48xf32>
    %c4_291 = arith.constant 4 : index
    %c0_292 = arith.constant 0 : index
    %c0_293 = arith.constant 0 : index
    %624 = vector.load %arg6[%c4_291, %c0_292, %c0_293] : memref<6x1x48xf32, #tpu.memory_space<vmem>>, vector<1x1x48xf32>
    %625 = vector.shape_cast %624 : vector<1x1x48xf32> to vector<1x48xf32>
    %626 = vector.broadcast %625 : vector<1x48xf32> to vector<16x48xf32>
    %627 = arith.addf %623, %626 : vector<16x48xf32>
    %628 = vector.extract_strided_slice %627 {offsets = [0, 0], sizes = [16, 12], strides = [1, 1]} : vector<16x48xf32> to vector<16x12xf32>
    %629 = vector.extract_strided_slice %627 {offsets = [0, 12], sizes = [16, 12], strides = [1, 1]} : vector<16x48xf32> to vector<16x12xf32>
    %630 = vector.extract_strided_slice %627 {offsets = [0, 24], sizes = [16, 12], strides = [1, 1]} : vector<16x48xf32> to vector<16x12xf32>
    %631 = vector.extract_strided_slice %627 {offsets = [0, 36], sizes = [16, 12], strides = [1, 1]} : vector<16x48xf32> to vector<16x12xf32>
    %632 = tpu.concatenate %628, %629, %630, %631 in 0 : vector<16x12xf32>, vector<16x12xf32>, vector<16x12xf32>, vector<16x12xf32> -> vector<64x12xf32>
    %633 = vector.extract_strided_slice %632 {offsets = [0, 0], sizes = [64, 4], strides = [1, 1]} : vector<64x12xf32> to vector<64x4xf32>
    %634 = vector.extract_strided_slice %632 {offsets = [0, 4], sizes = [64, 4], strides = [1, 1]} : vector<64x12xf32> to vector<64x4xf32>
    %635 = vector.extract_strided_slice %632 {offsets = [0, 8], sizes = [64, 4], strides = [1, 1]} : vector<64x12xf32> to vector<64x4xf32>
    %cst_294 = arith.constant dense<0.000000e+00> : vector<64x64xf32>
    %636 = tpu.matmul %633, %634, %cst_294 {dimension_numbers = #tpu.dot_dimension_numbers<[1], [1], [0], [0], [0, 0, 1, 0], [], []>} : vector<64x4xf32>, vector<64x4xf32>, vector<64x64xf32> -> vector<64x64xf32>
    %637 = arith.addf %636, %2 : vector<64x64xf32>
    %cst_295 = arith.constant dense<0xFF800000> : vector<64xf32>
    %638 = vector.multi_reduction <maximumf>, %637, %cst_295 [1] : vector<64x64xf32> to vector<64xf32>
    %639 = vector.shape_cast %638 : vector<64xf32> to vector<64x1xf32>
    %640 = vector.broadcast %639 : vector<64x1xf32> to vector<64x64xf32>
    %641 = arith.subf %637, %640 : vector<64x64xf32>
    %642 = math.exp %641 : vector<64x64xf32>
    %cst_296 = arith.constant dense<0.000000e+00> : vector<64xf32>
    %643 = vector.multi_reduction <add>, %642, %cst_296 [1] : vector<64x64xf32> to vector<64xf32>
    %644 = vector.shape_cast %643 : vector<64xf32> to vector<64x1xf32>
    %645 = tpu.reciprocal %644 : vector<64x1xf32> -> vector<64x1xf32>
    %646 = vector.broadcast %645 : vector<64x1xf32> to vector<64x64xf32>
    %647 = arith.mulf %642, %646 : vector<64x64xf32>
    %cst_297 = arith.constant dense<0.000000e+00> : vector<64x4xf32>
    %648 = tpu.matmul %647, %635, %cst_297 {dimension_numbers = #tpu.dot_dimension_numbers<[1], [0], [0], [1], [0, 0, 1, 1], [], []>} : vector<64x64xf32>, vector<64x4xf32>, vector<64x4xf32> -> vector<64x4xf32>
    %cst_298 = arith.constant dense<0.000000e+00> : vector<64x4xf32>
    %649 = tpu.matmul %1, %648, %cst_298 {dimension_numbers = #tpu.dot_dimension_numbers<[1], [0], [0], [1], [0, 0, 1, 1], [], []>} : vector<64x64xf32>, vector<64x4xf32>, vector<64x4xf32> -> vector<64x4xf32>
    %650 = vector.extract_strided_slice %649 {offsets = [0, 0], sizes = [16, 4], strides = [1, 1]} : vector<64x4xf32> to vector<16x4xf32>
    %651 = vector.extract_strided_slice %649 {offsets = [16, 0], sizes = [16, 4], strides = [1, 1]} : vector<64x4xf32> to vector<16x4xf32>
    %652 = vector.extract_strided_slice %649 {offsets = [32, 0], sizes = [16, 4], strides = [1, 1]} : vector<64x4xf32> to vector<16x4xf32>
    %653 = vector.extract_strided_slice %649 {offsets = [48, 0], sizes = [16, 4], strides = [1, 1]} : vector<64x4xf32> to vector<16x4xf32>
    %654 = tpu.concatenate %650, %651, %652, %653 in 1 : vector<16x4xf32>, vector<16x4xf32>, vector<16x4xf32>, vector<16x4xf32> -> vector<16x16xf32>
    %c4_299 = arith.constant 4 : index
    %c0_300 = arith.constant 0 : index
    %c0_301 = arith.constant 0 : index
    %655 = vector.load %arg7[%c4_299, %c0_300, %c0_301] : memref<6x16x16xf32, #tpu.memory_space<vmem>>, vector<1x16x16xf32>
    %656 = vector.shape_cast %655 : vector<1x16x16xf32> to vector<16x16xf32>
    %cst_302 = arith.constant dense<0.000000e+00> : vector<16x16xf32>
    %657 = tpu.matmul %654, %656, %cst_302 {dimension_numbers = #tpu.dot_dimension_numbers<[1], [0], [0], [1], [0, 0, 1, 1], [], []>} : vector<16x16xf32>, vector<16x16xf32>, vector<16x16xf32> -> vector<16x16xf32>
    %658 = arith.addf %594, %657 : vector<16x16xf32>
    %c4_303 = arith.constant 4 : index
    %c0_304 = arith.constant 0 : index
    %c0_305 = arith.constant 0 : index
    %659 = vector.load %arg8[%c4_303, %c0_304, %c0_305] : memref<6x1x16xf32, #tpu.memory_space<vmem>>, vector<1x1x16xf32>
    %660 = vector.shape_cast %659 : vector<1x1x16xf32> to vector<1x16xf32>
    %661 = vector.broadcast %660 : vector<1x16xf32> to vector<16x16xf32>
    %662 = arith.addf %658, %661 : vector<16x16xf32>
    %c4_306 = arith.constant 4 : index
    %c0_307 = arith.constant 0 : index
    %c0_308 = arith.constant 0 : index
    %663 = vector.load %arg9[%c4_306, %c0_307, %c0_308] : memref<6x1x16xf32, #tpu.memory_space<vmem>>, vector<1x1x16xf32>
    %664 = vector.shape_cast %663 : vector<1x1x16xf32> to vector<1x16xf32>
    %c4_309 = arith.constant 4 : index
    %c0_310 = arith.constant 0 : index
    %c0_311 = arith.constant 0 : index
    %665 = vector.load %arg10[%c4_309, %c0_310, %c0_311] : memref<6x1x16xf32, #tpu.memory_space<vmem>>, vector<1x1x16xf32>
    %666 = vector.shape_cast %665 : vector<1x1x16xf32> to vector<1x16xf32>
    %cst_312 = arith.constant dense<0.000000e+00> : vector<16xf32>
    %667 = vector.multi_reduction <add>, %662, %cst_312 [1] : vector<16x16xf32> to vector<16xf32>
    %668 = vector.shape_cast %667 : vector<16xf32> to vector<16x1xf32>
    %cst_313 = arith.constant 1.600000e+01 : f32
    %669 = vector.broadcast %cst_313 : f32 to vector<16x1xf32>
    %670 = arith.divf %668, %669 : vector<16x1xf32>
    %671 = vector.broadcast %670 : vector<16x1xf32> to vector<16x16xf32>
    %672 = arith.subf %662, %671 : vector<16x16xf32>
    %673 = arith.mulf %672, %672 : vector<16x16xf32>
    %cst_314 = arith.constant dense<0.000000e+00> : vector<16xf32>
    %674 = vector.multi_reduction <add>, %673, %cst_314 [1] : vector<16x16xf32> to vector<16xf32>
    %675 = vector.shape_cast %674 : vector<16xf32> to vector<16x1xf32>
    %cst_315 = arith.constant 1.600000e+01 : f32
    %676 = vector.broadcast %cst_315 : f32 to vector<16x1xf32>
    %677 = arith.divf %675, %676 : vector<16x1xf32>
    %678 = vector.broadcast %670 : vector<16x1xf32> to vector<16x16xf32>
    %679 = arith.subf %662, %678 : vector<16x16xf32>
    %cst_316 = arith.constant 9.99999997E-7 : f32
    %680 = vector.broadcast %cst_316 : f32 to vector<16x1xf32>
    %681 = arith.addf %677, %680 : vector<16x1xf32>
    %682 = math.rsqrt %681 : vector<16x1xf32>
    %683 = vector.broadcast %682 : vector<16x1xf32> to vector<16x16xf32>
    %684 = arith.mulf %679, %683 : vector<16x16xf32>
    %685 = vector.broadcast %664 : vector<1x16xf32> to vector<16x16xf32>
    %686 = arith.mulf %684, %685 : vector<16x16xf32>
    %687 = vector.broadcast %666 : vector<1x16xf32> to vector<16x16xf32>
    %688 = arith.addf %686, %687 : vector<16x16xf32>
    %c4_317 = arith.constant 4 : index
    %c0_318 = arith.constant 0 : index
    %c0_319 = arith.constant 0 : index
    %689 = vector.load %arg11[%c4_317, %c0_318, %c0_319] : memref<6x16x64xf32, #tpu.memory_space<vmem>>, vector<1x16x64xf32>
    %690 = vector.shape_cast %689 : vector<1x16x64xf32> to vector<16x64xf32>
    %cst_320 = arith.constant dense<0.000000e+00> : vector<16x64xf32>
    %691 = tpu.matmul %688, %690, %cst_320 {dimension_numbers = #tpu.dot_dimension_numbers<[1], [0], [0], [1], [0, 0, 1, 1], [], []>} : vector<16x16xf32>, vector<16x64xf32>, vector<16x64xf32> -> vector<16x64xf32>
    %c4_321 = arith.constant 4 : index
    %c0_322 = arith.constant 0 : index
    %c0_323 = arith.constant 0 : index
    %692 = vector.load %arg12[%c4_321, %c0_322, %c0_323] : memref<6x1x64xf32, #tpu.memory_space<vmem>>, vector<1x1x64xf32>
    %693 = vector.shape_cast %692 : vector<1x1x64xf32> to vector<1x64xf32>
    %694 = vector.broadcast %693 : vector<1x64xf32> to vector<16x64xf32>
    %695 = arith.addf %691, %694 : vector<16x64xf32>
    %cst_324 = arith.constant 5.000000e-01 : f32
    %696 = vector.broadcast %cst_324 : f32 to vector<16x64xf32>
    %697 = arith.mulf %696, %695 : vector<16x64xf32>
    %cst_325 = arith.constant 0.707106769 : f32
    %698 = vector.broadcast %cst_325 : f32 to vector<16x64xf32>
    %699 = arith.mulf %695, %698 : vector<16x64xf32>
    %700 = math.absf %699 : vector<16x64xf32>
    %cst_326 = arith.constant 0.327591091 : f32
    %701 = vector.broadcast %cst_326 : f32 to vector<16x64xf32>
    %702 = arith.mulf %701, %700 : vector<16x64xf32>
    %cst_327 = arith.constant 1.000000e+00 : f32
    %703 = vector.broadcast %cst_327 : f32 to vector<16x64xf32>
    %704 = arith.addf %703, %702 : vector<16x64xf32>
    %705 = tpu.reciprocal %704 : vector<16x64xf32> -> vector<16x64xf32>
    %cst_328 = arith.constant 1.06140542 : f32
    %706 = vector.broadcast %cst_328 : f32 to vector<16x64xf32>
    %707 = arith.mulf %706, %705 : vector<16x64xf32>
    %cst_329 = arith.constant -1.45315206 : f32
    %708 = vector.broadcast %cst_329 : f32 to vector<16x64xf32>
    %709 = arith.addf %707, %708 : vector<16x64xf32>
    %710 = arith.mulf %709, %705 : vector<16x64xf32>
    %cst_330 = arith.constant 1.42141378 : f32
    %711 = vector.broadcast %cst_330 : f32 to vector<16x64xf32>
    %712 = arith.addf %710, %711 : vector<16x64xf32>
    %713 = arith.mulf %712, %705 : vector<16x64xf32>
    %cst_331 = arith.constant -0.284496725 : f32
    %714 = vector.broadcast %cst_331 : f32 to vector<16x64xf32>
    %715 = arith.addf %713, %714 : vector<16x64xf32>
    %716 = arith.mulf %715, %705 : vector<16x64xf32>
    %cst_332 = arith.constant 0.254829586 : f32
    %717 = vector.broadcast %cst_332 : f32 to vector<16x64xf32>
    %718 = arith.addf %716, %717 : vector<16x64xf32>
    %719 = arith.mulf %718, %705 : vector<16x64xf32>
    %cst_333 = arith.constant 0.000000e+00 : f32
    %720 = vector.broadcast %cst_333 : f32 to vector<16x64xf32>
    %721 = arith.subf %720, %700 : vector<16x64xf32>
    %722 = arith.mulf %721, %700 : vector<16x64xf32>
    %723 = math.exp %722 : vector<16x64xf32>
    %724 = arith.mulf %719, %723 : vector<16x64xf32>
    %cst_334 = arith.constant 1.000000e+00 : f32
    %725 = vector.broadcast %cst_334 : f32 to vector<16x64xf32>
    %726 = arith.subf %725, %724 : vector<16x64xf32>
    %cst_335 = arith.constant 0.000000e+00 : f32
    %727 = vector.broadcast %cst_335 : f32 to vector<16x64xf32>
    %728 = arith.cmpf oge, %699, %727 : vector<16x64xf32>
    %cst_336 = arith.constant 0.000000e+00 : f32
    %729 = vector.broadcast %cst_336 : f32 to vector<16x64xf32>
    %730 = arith.subf %729, %726 : vector<16x64xf32>
    %731 = arith.select %728, %726, %730 : vector<16x64xi1>, vector<16x64xf32>
    %cst_337 = arith.constant 1.000000e+00 : f32
    %732 = vector.broadcast %cst_337 : f32 to vector<16x64xf32>
    %733 = arith.addf %732, %731 : vector<16x64xf32>
    %734 = arith.mulf %697, %733 : vector<16x64xf32>
    %c4_338 = arith.constant 4 : index
    %c0_339 = arith.constant 0 : index
    %c0_340 = arith.constant 0 : index
    %735 = vector.load %arg13[%c4_338, %c0_339, %c0_340] : memref<6x64x16xf32, #tpu.memory_space<vmem>>, vector<1x64x16xf32>
    %736 = vector.shape_cast %735 : vector<1x64x16xf32> to vector<64x16xf32>
    %cst_341 = arith.constant dense<0.000000e+00> : vector<16x16xf32>
    %737 = tpu.matmul %734, %736, %cst_341 {dimension_numbers = #tpu.dot_dimension_numbers<[1], [0], [0], [1], [0, 0, 1, 1], [], []>} : vector<16x64xf32>, vector<64x16xf32>, vector<16x16xf32> -> vector<16x16xf32>
    %c4_342 = arith.constant 4 : index
    %c0_343 = arith.constant 0 : index
    %c0_344 = arith.constant 0 : index
    %738 = vector.load %arg14[%c4_342, %c0_343, %c0_344] : memref<6x1x16xf32, #tpu.memory_space<vmem>>, vector<1x1x16xf32>
    %739 = vector.shape_cast %738 : vector<1x1x16xf32> to vector<1x16xf32>
    %740 = vector.broadcast %739 : vector<1x16xf32> to vector<16x16xf32>
    %741 = arith.addf %737, %740 : vector<16x16xf32>
    %742 = arith.addf %741, %662 : vector<16x16xf32>
    %c5 = arith.constant 5 : index
    %c0_345 = arith.constant 0 : index
    %c0_346 = arith.constant 0 : index
    %743 = vector.load %arg3[%c5, %c0_345, %c0_346] : memref<6x1x16xf32, #tpu.memory_space<vmem>>, vector<1x1x16xf32>
    %744 = vector.shape_cast %743 : vector<1x1x16xf32> to vector<1x16xf32>
    %c5_347 = arith.constant 5 : index
    %c0_348 = arith.constant 0 : index
    %c0_349 = arith.constant 0 : index
    %745 = vector.load %arg4[%c5_347, %c0_348, %c0_349] : memref<6x1x16xf32, #tpu.memory_space<vmem>>, vector<1x1x16xf32>
    %746 = vector.shape_cast %745 : vector<1x1x16xf32> to vector<1x16xf32>
    %cst_350 = arith.constant dense<0.000000e+00> : vector<16xf32>
    %747 = vector.multi_reduction <add>, %742, %cst_350 [1] : vector<16x16xf32> to vector<16xf32>
    %748 = vector.shape_cast %747 : vector<16xf32> to vector<16x1xf32>
    %cst_351 = arith.constant 1.600000e+01 : f32
    %749 = vector.broadcast %cst_351 : f32 to vector<16x1xf32>
    %750 = arith.divf %748, %749 : vector<16x1xf32>
    %751 = vector.broadcast %750 : vector<16x1xf32> to vector<16x16xf32>
    %752 = arith.subf %742, %751 : vector<16x16xf32>
    %753 = arith.mulf %752, %752 : vector<16x16xf32>
    %cst_352 = arith.constant dense<0.000000e+00> : vector<16xf32>
    %754 = vector.multi_reduction <add>, %753, %cst_352 [1] : vector<16x16xf32> to vector<16xf32>
    %755 = vector.shape_cast %754 : vector<16xf32> to vector<16x1xf32>
    %cst_353 = arith.constant 1.600000e+01 : f32
    %756 = vector.broadcast %cst_353 : f32 to vector<16x1xf32>
    %757 = arith.divf %755, %756 : vector<16x1xf32>
    %758 = vector.broadcast %750 : vector<16x1xf32> to vector<16x16xf32>
    %759 = arith.subf %742, %758 : vector<16x16xf32>
    %cst_354 = arith.constant 9.99999997E-7 : f32
    %760 = vector.broadcast %cst_354 : f32 to vector<16x1xf32>
    %761 = arith.addf %757, %760 : vector<16x1xf32>
    %762 = math.rsqrt %761 : vector<16x1xf32>
    %763 = vector.broadcast %762 : vector<16x1xf32> to vector<16x16xf32>
    %764 = arith.mulf %759, %763 : vector<16x16xf32>
    %765 = vector.broadcast %744 : vector<1x16xf32> to vector<16x16xf32>
    %766 = arith.mulf %764, %765 : vector<16x16xf32>
    %767 = vector.broadcast %746 : vector<1x16xf32> to vector<16x16xf32>
    %768 = arith.addf %766, %767 : vector<16x16xf32>
    %c5_355 = arith.constant 5 : index
    %c0_356 = arith.constant 0 : index
    %c0_357 = arith.constant 0 : index
    %769 = vector.load %arg5[%c5_355, %c0_356, %c0_357] : memref<6x16x48xf32, #tpu.memory_space<vmem>>, vector<1x16x48xf32>
    %770 = vector.shape_cast %769 : vector<1x16x48xf32> to vector<16x48xf32>
    %cst_358 = arith.constant dense<0.000000e+00> : vector<16x48xf32>
    %771 = tpu.matmul %768, %770, %cst_358 {dimension_numbers = #tpu.dot_dimension_numbers<[1], [0], [0], [1], [0, 0, 1, 1], [], []>} : vector<16x16xf32>, vector<16x48xf32>, vector<16x48xf32> -> vector<16x48xf32>
    %c5_359 = arith.constant 5 : index
    %c0_360 = arith.constant 0 : index
    %c0_361 = arith.constant 0 : index
    %772 = vector.load %arg6[%c5_359, %c0_360, %c0_361] : memref<6x1x48xf32, #tpu.memory_space<vmem>>, vector<1x1x48xf32>
    %773 = vector.shape_cast %772 : vector<1x1x48xf32> to vector<1x48xf32>
    %774 = vector.broadcast %773 : vector<1x48xf32> to vector<16x48xf32>
    %775 = arith.addf %771, %774 : vector<16x48xf32>
    %776 = vector.extract_strided_slice %775 {offsets = [0, 0], sizes = [16, 12], strides = [1, 1]} : vector<16x48xf32> to vector<16x12xf32>
    %777 = vector.extract_strided_slice %775 {offsets = [0, 12], sizes = [16, 12], strides = [1, 1]} : vector<16x48xf32> to vector<16x12xf32>
    %778 = vector.extract_strided_slice %775 {offsets = [0, 24], sizes = [16, 12], strides = [1, 1]} : vector<16x48xf32> to vector<16x12xf32>
    %779 = vector.extract_strided_slice %775 {offsets = [0, 36], sizes = [16, 12], strides = [1, 1]} : vector<16x48xf32> to vector<16x12xf32>
    %780 = tpu.concatenate %776, %777, %778, %779 in 0 : vector<16x12xf32>, vector<16x12xf32>, vector<16x12xf32>, vector<16x12xf32> -> vector<64x12xf32>
    %781 = vector.extract_strided_slice %780 {offsets = [0, 0], sizes = [64, 4], strides = [1, 1]} : vector<64x12xf32> to vector<64x4xf32>
    %782 = vector.extract_strided_slice %780 {offsets = [0, 4], sizes = [64, 4], strides = [1, 1]} : vector<64x12xf32> to vector<64x4xf32>
    %783 = vector.extract_strided_slice %780 {offsets = [0, 8], sizes = [64, 4], strides = [1, 1]} : vector<64x12xf32> to vector<64x4xf32>
    %cst_362 = arith.constant dense<0.000000e+00> : vector<64x64xf32>
    %784 = tpu.matmul %781, %782, %cst_362 {dimension_numbers = #tpu.dot_dimension_numbers<[1], [1], [0], [0], [0, 0, 1, 0], [], []>} : vector<64x4xf32>, vector<64x4xf32>, vector<64x64xf32> -> vector<64x64xf32>
    %785 = arith.addf %784, %2 : vector<64x64xf32>
    %cst_363 = arith.constant dense<0xFF800000> : vector<64xf32>
    %786 = vector.multi_reduction <maximumf>, %785, %cst_363 [1] : vector<64x64xf32> to vector<64xf32>
    %787 = vector.shape_cast %786 : vector<64xf32> to vector<64x1xf32>
    %788 = vector.broadcast %787 : vector<64x1xf32> to vector<64x64xf32>
    %789 = arith.subf %785, %788 : vector<64x64xf32>
    %790 = math.exp %789 : vector<64x64xf32>
    %cst_364 = arith.constant dense<0.000000e+00> : vector<64xf32>
    %791 = vector.multi_reduction <add>, %790, %cst_364 [1] : vector<64x64xf32> to vector<64xf32>
    %792 = vector.shape_cast %791 : vector<64xf32> to vector<64x1xf32>
    %793 = tpu.reciprocal %792 : vector<64x1xf32> -> vector<64x1xf32>
    %794 = vector.broadcast %793 : vector<64x1xf32> to vector<64x64xf32>
    %795 = arith.mulf %790, %794 : vector<64x64xf32>
    %cst_365 = arith.constant dense<0.000000e+00> : vector<64x4xf32>
    %796 = tpu.matmul %795, %783, %cst_365 {dimension_numbers = #tpu.dot_dimension_numbers<[1], [0], [0], [1], [0, 0, 1, 1], [], []>} : vector<64x64xf32>, vector<64x4xf32>, vector<64x4xf32> -> vector<64x4xf32>
    %cst_366 = arith.constant dense<0.000000e+00> : vector<64x4xf32>
    %797 = tpu.matmul %1, %796, %cst_366 {dimension_numbers = #tpu.dot_dimension_numbers<[1], [0], [0], [1], [0, 0, 1, 1], [], []>} : vector<64x64xf32>, vector<64x4xf32>, vector<64x4xf32> -> vector<64x4xf32>
    %798 = vector.extract_strided_slice %797 {offsets = [0, 0], sizes = [16, 4], strides = [1, 1]} : vector<64x4xf32> to vector<16x4xf32>
    %799 = vector.extract_strided_slice %797 {offsets = [16, 0], sizes = [16, 4], strides = [1, 1]} : vector<64x4xf32> to vector<16x4xf32>
    %800 = vector.extract_strided_slice %797 {offsets = [32, 0], sizes = [16, 4], strides = [1, 1]} : vector<64x4xf32> to vector<16x4xf32>
    %801 = vector.extract_strided_slice %797 {offsets = [48, 0], sizes = [16, 4], strides = [1, 1]} : vector<64x4xf32> to vector<16x4xf32>
    %802 = tpu.concatenate %798, %799, %800, %801 in 1 : vector<16x4xf32>, vector<16x4xf32>, vector<16x4xf32>, vector<16x4xf32> -> vector<16x16xf32>
    %c5_367 = arith.constant 5 : index
    %c0_368 = arith.constant 0 : index
    %c0_369 = arith.constant 0 : index
    %803 = vector.load %arg7[%c5_367, %c0_368, %c0_369] : memref<6x16x16xf32, #tpu.memory_space<vmem>>, vector<1x16x16xf32>
    %804 = vector.shape_cast %803 : vector<1x16x16xf32> to vector<16x16xf32>
    %cst_370 = arith.constant dense<0.000000e+00> : vector<16x16xf32>
    %805 = tpu.matmul %802, %804, %cst_370 {dimension_numbers = #tpu.dot_dimension_numbers<[1], [0], [0], [1], [0, 0, 1, 1], [], []>} : vector<16x16xf32>, vector<16x16xf32>, vector<16x16xf32> -> vector<16x16xf32>
    %806 = arith.addf %742, %805 : vector<16x16xf32>
    %c5_371 = arith.constant 5 : index
    %c0_372 = arith.constant 0 : index
    %c0_373 = arith.constant 0 : index
    %807 = vector.load %arg8[%c5_371, %c0_372, %c0_373] : memref<6x1x16xf32, #tpu.memory_space<vmem>>, vector<1x1x16xf32>
    %808 = vector.shape_cast %807 : vector<1x1x16xf32> to vector<1x16xf32>
    %809 = vector.broadcast %808 : vector<1x16xf32> to vector<16x16xf32>
    %810 = arith.addf %806, %809 : vector<16x16xf32>
    %c5_374 = arith.constant 5 : index
    %c0_375 = arith.constant 0 : index
    %c0_376 = arith.constant 0 : index
    %811 = vector.load %arg9[%c5_374, %c0_375, %c0_376] : memref<6x1x16xf32, #tpu.memory_space<vmem>>, vector<1x1x16xf32>
    %812 = vector.shape_cast %811 : vector<1x1x16xf32> to vector<1x16xf32>
    %c5_377 = arith.constant 5 : index
    %c0_378 = arith.constant 0 : index
    %c0_379 = arith.constant 0 : index
    %813 = vector.load %arg10[%c5_377, %c0_378, %c0_379] : memref<6x1x16xf32, #tpu.memory_space<vmem>>, vector<1x1x16xf32>
    %814 = vector.shape_cast %813 : vector<1x1x16xf32> to vector<1x16xf32>
    %cst_380 = arith.constant dense<0.000000e+00> : vector<16xf32>
    %815 = vector.multi_reduction <add>, %810, %cst_380 [1] : vector<16x16xf32> to vector<16xf32>
    %816 = vector.shape_cast %815 : vector<16xf32> to vector<16x1xf32>
    %cst_381 = arith.constant 1.600000e+01 : f32
    %817 = vector.broadcast %cst_381 : f32 to vector<16x1xf32>
    %818 = arith.divf %816, %817 : vector<16x1xf32>
    %819 = vector.broadcast %818 : vector<16x1xf32> to vector<16x16xf32>
    %820 = arith.subf %810, %819 : vector<16x16xf32>
    %821 = arith.mulf %820, %820 : vector<16x16xf32>
    %cst_382 = arith.constant dense<0.000000e+00> : vector<16xf32>
    %822 = vector.multi_reduction <add>, %821, %cst_382 [1] : vector<16x16xf32> to vector<16xf32>
    %823 = vector.shape_cast %822 : vector<16xf32> to vector<16x1xf32>
    %cst_383 = arith.constant 1.600000e+01 : f32
    %824 = vector.broadcast %cst_383 : f32 to vector<16x1xf32>
    %825 = arith.divf %823, %824 : vector<16x1xf32>
    %826 = vector.broadcast %818 : vector<16x1xf32> to vector<16x16xf32>
    %827 = arith.subf %810, %826 : vector<16x16xf32>
    %cst_384 = arith.constant 9.99999997E-7 : f32
    %828 = vector.broadcast %cst_384 : f32 to vector<16x1xf32>
    %829 = arith.addf %825, %828 : vector<16x1xf32>
    %830 = math.rsqrt %829 : vector<16x1xf32>
    %831 = vector.broadcast %830 : vector<16x1xf32> to vector<16x16xf32>
    %832 = arith.mulf %827, %831 : vector<16x16xf32>
    %833 = vector.broadcast %812 : vector<1x16xf32> to vector<16x16xf32>
    %834 = arith.mulf %832, %833 : vector<16x16xf32>
    %835 = vector.broadcast %814 : vector<1x16xf32> to vector<16x16xf32>
    %836 = arith.addf %834, %835 : vector<16x16xf32>
    %c5_385 = arith.constant 5 : index
    %c0_386 = arith.constant 0 : index
    %c0_387 = arith.constant 0 : index
    %837 = vector.load %arg11[%c5_385, %c0_386, %c0_387] : memref<6x16x64xf32, #tpu.memory_space<vmem>>, vector<1x16x64xf32>
    %838 = vector.shape_cast %837 : vector<1x16x64xf32> to vector<16x64xf32>
    %cst_388 = arith.constant dense<0.000000e+00> : vector<16x64xf32>
    %839 = tpu.matmul %836, %838, %cst_388 {dimension_numbers = #tpu.dot_dimension_numbers<[1], [0], [0], [1], [0, 0, 1, 1], [], []>} : vector<16x16xf32>, vector<16x64xf32>, vector<16x64xf32> -> vector<16x64xf32>
    %c5_389 = arith.constant 5 : index
    %c0_390 = arith.constant 0 : index
    %c0_391 = arith.constant 0 : index
    %840 = vector.load %arg12[%c5_389, %c0_390, %c0_391] : memref<6x1x64xf32, #tpu.memory_space<vmem>>, vector<1x1x64xf32>
    %841 = vector.shape_cast %840 : vector<1x1x64xf32> to vector<1x64xf32>
    %842 = vector.broadcast %841 : vector<1x64xf32> to vector<16x64xf32>
    %843 = arith.addf %839, %842 : vector<16x64xf32>
    %cst_392 = arith.constant 5.000000e-01 : f32
    %844 = vector.broadcast %cst_392 : f32 to vector<16x64xf32>
    %845 = arith.mulf %844, %843 : vector<16x64xf32>
    %cst_393 = arith.constant 0.707106769 : f32
    %846 = vector.broadcast %cst_393 : f32 to vector<16x64xf32>
    %847 = arith.mulf %843, %846 : vector<16x64xf32>
    %848 = math.absf %847 : vector<16x64xf32>
    %cst_394 = arith.constant 0.327591091 : f32
    %849 = vector.broadcast %cst_394 : f32 to vector<16x64xf32>
    %850 = arith.mulf %849, %848 : vector<16x64xf32>
    %cst_395 = arith.constant 1.000000e+00 : f32
    %851 = vector.broadcast %cst_395 : f32 to vector<16x64xf32>
    %852 = arith.addf %851, %850 : vector<16x64xf32>
    %853 = tpu.reciprocal %852 : vector<16x64xf32> -> vector<16x64xf32>
    %cst_396 = arith.constant 1.06140542 : f32
    %854 = vector.broadcast %cst_396 : f32 to vector<16x64xf32>
    %855 = arith.mulf %854, %853 : vector<16x64xf32>
    %cst_397 = arith.constant -1.45315206 : f32
    %856 = vector.broadcast %cst_397 : f32 to vector<16x64xf32>
    %857 = arith.addf %855, %856 : vector<16x64xf32>
    %858 = arith.mulf %857, %853 : vector<16x64xf32>
    %cst_398 = arith.constant 1.42141378 : f32
    %859 = vector.broadcast %cst_398 : f32 to vector<16x64xf32>
    %860 = arith.addf %858, %859 : vector<16x64xf32>
    %861 = arith.mulf %860, %853 : vector<16x64xf32>
    %cst_399 = arith.constant -0.284496725 : f32
    %862 = vector.broadcast %cst_399 : f32 to vector<16x64xf32>
    %863 = arith.addf %861, %862 : vector<16x64xf32>
    %864 = arith.mulf %863, %853 : vector<16x64xf32>
    %cst_400 = arith.constant 0.254829586 : f32
    %865 = vector.broadcast %cst_400 : f32 to vector<16x64xf32>
    %866 = arith.addf %864, %865 : vector<16x64xf32>
    %867 = arith.mulf %866, %853 : vector<16x64xf32>
    %cst_401 = arith.constant 0.000000e+00 : f32
    %868 = vector.broadcast %cst_401 : f32 to vector<16x64xf32>
    %869 = arith.subf %868, %848 : vector<16x64xf32>
    %870 = arith.mulf %869, %848 : vector<16x64xf32>
    %871 = math.exp %870 : vector<16x64xf32>
    %872 = arith.mulf %867, %871 : vector<16x64xf32>
    %cst_402 = arith.constant 1.000000e+00 : f32
    %873 = vector.broadcast %cst_402 : f32 to vector<16x64xf32>
    %874 = arith.subf %873, %872 : vector<16x64xf32>
    %cst_403 = arith.constant 0.000000e+00 : f32
    %875 = vector.broadcast %cst_403 : f32 to vector<16x64xf32>
    %876 = arith.cmpf oge, %847, %875 : vector<16x64xf32>
    %cst_404 = arith.constant 0.000000e+00 : f32
    %877 = vector.broadcast %cst_404 : f32 to vector<16x64xf32>
    %878 = arith.subf %877, %874 : vector<16x64xf32>
    %879 = arith.select %876, %874, %878 : vector<16x64xi1>, vector<16x64xf32>
    %cst_405 = arith.constant 1.000000e+00 : f32
    %880 = vector.broadcast %cst_405 : f32 to vector<16x64xf32>
    %881 = arith.addf %880, %879 : vector<16x64xf32>
    %882 = arith.mulf %845, %881 : vector<16x64xf32>
    %c5_406 = arith.constant 5 : index
    %c0_407 = arith.constant 0 : index
    %c0_408 = arith.constant 0 : index
    %883 = vector.load %arg13[%c5_406, %c0_407, %c0_408] : memref<6x64x16xf32, #tpu.memory_space<vmem>>, vector<1x64x16xf32>
    %884 = vector.shape_cast %883 : vector<1x64x16xf32> to vector<64x16xf32>
    %cst_409 = arith.constant dense<0.000000e+00> : vector<16x16xf32>
    %885 = tpu.matmul %882, %884, %cst_409 {dimension_numbers = #tpu.dot_dimension_numbers<[1], [0], [0], [1], [0, 0, 1, 1], [], []>} : vector<16x64xf32>, vector<64x16xf32>, vector<16x16xf32> -> vector<16x16xf32>
    %c5_410 = arith.constant 5 : index
    %c0_411 = arith.constant 0 : index
    %c0_412 = arith.constant 0 : index
    %886 = vector.load %arg14[%c5_410, %c0_411, %c0_412] : memref<6x1x16xf32, #tpu.memory_space<vmem>>, vector<1x1x16xf32>
    %887 = vector.shape_cast %886 : vector<1x1x16xf32> to vector<1x16xf32>
    %888 = vector.broadcast %887 : vector<1x16xf32> to vector<16x16xf32>
    %889 = arith.addf %885, %888 : vector<16x16xf32>
    %890 = arith.addf %889, %810 : vector<16x16xf32>
    %c0_413 = arith.constant 0 : index
    %c0_414 = arith.constant 0 : index
    %891 = vector.load %arg15[%c0_413, %c0_414] : memref<16x16xf32, #tpu.memory_space<vmem>>, vector<16x16xf32>
    tpu.vector_store %arg15[%c0_413, %c0_414], %890 {strides = array<i32>} : memref<16x16xf32, #tpu.memory_space<vmem>>, vector<16x16xf32>,
    return
  }
}

</mosaic_0001>

<bundles_post_ra>
// kernel: n_encoders_forward.1
= control target key start
LH: loop header
LB: loop body
LE: loop exit
PB: predicated region body
PF: predicated region fallthrough
CT: control target
= control target key end

     0   :  { %vm71_vm0 = vcmask 130048   ;;  %s8002_s0 = inlined_call_operand.vmem [shape: f32[16,16], index: 0, kind: input, shape index: {}]   ;;  %s8003_s1 = inlined_call_operand.vmem [shape: f32[64,64], index: 1, kind: input, shape index: {}]   ;;  %s8004_s2 = inlined_call_operand.vmem [shape: f32[64,64], index: 2, kind: input, shape index: {}]   ;;  %s8005_s3 = inlined_call_operand.vmem [shape: f32[6,1,16], index: 3, kind: input, shape index: {}]   ;;  %s8006_s4 = inlined_call_operand.vmem [shape: f32[6,1,16], index: 4, kind: input, shape index: {}]   ;;  %s8007_s5 = inlined_call_operand.vmem [shape: f32[6,16,48], index: 5, kind: input, shape index: {}]   ;;  %s8008_s6 = inlined_call_operand.vmem [shape: f32[6,1,48], index: 6, kind: input, shape index: {}]   ;;  %s8009_s7 = inlined_call_operand.vmem [shape: f32[6,16,16], index: 7, kind: input, shape index: {}]   ;;  %s8010_s8 = inlined_call_operand.vmem [shape: f32[6,1,16], index: 8, kind: input, shape index: {}]   ;;  %s8011_s9 = inlined_call_operand.vmem [shape: f32[6,1,16], index: 9, kind: input, shape index: {}]   ;;  %s8012_s10 = inlined_call_operand.vmem [shape: f32[6,1,16], index: 10, kind: input, shape index: {}]   ;;  %s8013_s11 = inlined_call_operand.vmem [shape: f32[6,16,64], index: 11, kind: input, shape index: {}]   ;;  %s8014_s12 = inlined_call_operand.vmem [shape: f32[6,1,64], index: 12, kind: input, shape index: {}]   ;;  %s8015_s13 = inlined_call_operand.vmem [shape: f32[6,64,16], index: 13, kind: input, shape index: {}]   ;;  %s8016_s14 = inlined_call_operand.vmem [shape: f32[6,1,16], index: 14, kind: input, shape index: {}]   ;;  %s8017_s15 = inlined_call_operand.hbm [shape: f32[16,16], index: 15, kind: output, shape index: {}]  }
   0x1   :  { %v51_v0 = vld [vmem:[%s8002_s0] sm:$0xff]  ;;  %v52_v1 = vld [vmem:[%s8002_s0 + $0x8] sm:$0xff] }
   0x2   :  { %v72_v2 = vsel %vm71_vm0, %v51_v0, 0.0  ;;  %v75_v3 = vsel %vm71_vm0, %v52_v1, 0.0 }
   0x3   :  { %73 = vadd.xlane.f32.xlu0 %v72_v2 }
   0xb   :  { %76 = vadd.xlane.f32.xlu0 %v75_v3 }
   0xc   :  { %20 = vsyncpa [#allocation3], 0  ;;  %v5894_v4 = vmov 16.0   ;;  %v134_v21 = vld [vmem:[%s8007_s5 + $0x8] sm:$0xff]  ;;  %v133_v22 = vld [vmem:[%s8007_s5] sm:$0xff]  ;;  %s5895_s17 = smov 104  }
   0xd   :  { %5496 = vrcp.f32 %v5894_v4  ;;  %159 = vmatpush.msra.mxu0 %v134_v21  ;;  %v5448_v37 = vld [vmem:[%s8005_s3] ss:$0 sm:$0xff]  ;;  %s5896_s18 = smov 92   ;;  %s5897_s19 = smov 116   ;;  %vm198_vm8 = vcmask 31744   ;;  %vm272_vm9 = vcmask 523264  }
   0xe   :  { %v5449_v41 = vld [vmem:[%s8006_s4] ss:$0 sm:$0xff]  ;;  %s5898_s20 = smov 124   ;;  %s5899_s24 = smov 120  }
   0xf   :  { %160 = vmatpush.msra.mxu0 %v133_v22  ;;  %v5450_v51 = vld [vmem:[%s8008_s6] ss:$0 sm:$0xff]  ;;  %s5900_s22 = smov 4   ;;  %s5901_s23 = smov 8  }
  0x10   :  { %s5902_s25 = smov 12  }
  0x13   :  { %v5497_v5 = vpop.eup %5496 }
  0x14   :  { %v79_v6 = vmul.f32 16.0, %v5497_v5  ;;  %vm83_vm1 = vweird.f32 %v5497_v5 }
  0x16   :  { %v80_v7 = vsub.f32 1.0, %v79_v6  ;;  %v61_v6 = vld [vmem:[%s8004_s2] sm:$0xff] }
  0x18   :  { %v81_v8 = vmul.f32 %v5497_v5, %v80_v7 }
  0x1a   :  { %v82_v9 = vadd.f32 %v5497_v5, %v81_v8 }
  0x1c   :  { %v5993_v10 = vsel %vm83_vm1, %v5497_v5, %v82_v9 }
  0x76   :  { %v74_v11 = vpop.xlane.xlu0 %73 }
  0x77   :  { %v85_v12 = vmul.f32 %v5993_v10, %v74_v11  ;;  %v62_v11 = vld [vmem:[%s8004_s2 + $0x8] sm:$0xff] }
  0x79   :  { %v87_v13 = vsub.f32 %v51_v0, %v85_v12 }
  0x7b   :  { %v89_v14 = vmul.f32 %v87_v13, %v87_v13 }
  0x7d   :  { %v91_v15 = vsel %vm71_vm0, %v89_v14, 0.0 }
  0x7e   :  { %92 = vadd.xlane.f32.xlu1 %v91_v15  ;;  %v77_v16 = vpop.xlane.xlu0 %76  ;;  %v63_v15 = vld [vmem:[%s8004_s2 + $0x10] sm:$0xff] }
  0x7f   :  { %v86_v17 = vmul.f32 %v5993_v10, %v77_v16 }
  0x81   :  { %v88_v18 = vsub.f32 %v52_v1, %v86_v17 }
  0x83   :  { %v90_v19 = vmul.f32 %v88_v18, %v88_v18 }
  0x85   :  { %v94_v20 = vsel %vm71_vm0, %v90_v19, 0.0  ;;  %v64_v19 = vld [vmem:[%s8004_s2 + $0x18] sm:$0xff] }
  0x86   :  { %95 = vadd.xlane.f32.xlu1 %v94_v20 }
  0xf1   :  { %v93_v23 = vpop.xlane.xlu1 %92 }
  0xf2   :  { %v97_v24 = vmul.f32 %v93_v23, %v5993_v10  ;;  %v65_v23 = vld [vmem:[%s8004_s2 + $0x20] sm:$0xff] }
  0xf4   :  { %v99_v25 = vadd.f32 1e-06, %v97_v24 }
  0xf6   :  { %5498 = vrsqrt.f32 %v99_v25  ;;  %vm107_vm3 = vweird.f32 %v99_v25 }
  0xf9   :  { %v96_v26 = vpop.xlane.xlu1 %95 }
  0xfa   :  { %v98_v27 = vmul.f32 %v96_v26, %v5993_v10 }
  0xfc   :  { %v5499_v28 = vpop.eup %5498  ;;  %v100_v29 = vadd.f32 1e-06, %v98_v27  ;;  %v66_v27 = vld [vmem:[%s8004_s2 + $0x28] sm:$0xff] }
  0xfd   :  { %v102_v30 = vmul.f32 %v5499_v28, %v99_v25  ;;  %vm108_vm2 = vweird.f32 %v5499_v28 }
  0xfe   :  { %5500 = vrsqrt.f32 %v100_v29  ;;  %vm109_vm4 = vmor %vm107_vm3, %vm108_vm2  ;;  %vm117_vm6 = vweird.f32 %v100_v29 }
  0xff   :  { %v103_v31 = vmul.f32 %v5499_v28, %v102_v30 }
 0x101   :  { %v104_v32 = vmul.f32 0.5, %v103_v31  ;;  %v67_v31 = vld [vmem:[%s8004_s2 + $0x30] sm:$0xff] }
 0x103   :  { %v105_v33 = vsub.f32 1.5, %v104_v32 }
 0x104   :  { %v5501_v34 = vpop.eup %5500 }
 0x105   :  { %v106_v35 = vmul.f32 %v5499_v28, %v105_v33  ;;  %v112_v36 = vmul.f32 %v5501_v34, %v100_v29  ;;  %vm118_vm5 = vweird.f32 %v5501_v34 }
 0x106   :  { %vm119_vm7 = vmor %vm117_vm6, %vm118_vm5 }
 0x107   :  { %v113_v38 = vmul.f32 %v5501_v34, %v112_v36  ;;  %v110_v39 = vsel %vm109_vm4, %v5499_v28, %v106_v35 }
 0x108   :  { %v121_v40 = vmul.f32 %v110_v39, %v87_v13 }
 0x109   :  { %v114_v42 = vmul.f32 0.5, %v113_v38 }
 0x10a   :  { %v126_v43 = vmul.f32 %v5448_v37, %v121_v40 }
 0x10b   :  { %v115_v44 = vsub.f32 1.5, %v114_v42 }
 0x10c   :  { %v131_v45 = vadd.f32 %v5449_v41, %v126_v43 }
 0x10d   :  { %v116_v46 = vmul.f32 %v5501_v34, %v115_v44 }
 0x10e   :  { %4967 = vmatmul.msk.f32.vlgmr.msra.gmra.mxu0 %vm71_vm0, %v131_v45 }
 0x10f   :  { %v120_v47 = vsel %vm119_vm7, %v5501_v34, %v116_v46 }
 0x110   :  { %v122_v48 = vmul.f32 %v120_v47, %v88_v18 }
 0x112   :  { %v127_v49 = vmul.f32 %v5448_v37, %v122_v48  ;;  %v68_v37 = vld [vmem:[%s8004_s2 + $0x38] sm:$0xff] }
 0x114   :  { %v132_v50 = vadd.f32 %v5449_v41, %v127_v49 }
 0x116   :  { %4968 = vmatmul.msk.f32.gmra.mxu0 %vm71_vm0, %v132_v50 }
 0x18b   :  { %v162_v52 = vpop.f32.mrf.mxu0 }
 0x18c   :  { %v6018_v53 = vadd.f32 %v5450_v51, %v162_v52 }
 0x18e   :  { %174 = vrot.lane.b32.xlu1 %v6018_v53, %s5895_s17 }
 0x193   :  { %v165_v54 = vpop.f32.mrf.mxu0 }
 0x194   :  { %v6022_v55 = vadd.f32 %v5450_v51, %v165_v54 }
 0x196   :  { %176 = vrot.lane.b32.xlu0 %v6022_v55, %s5895_s17  ;;  %180 = vrot.lane.b32.xlu2 %v6022_v55, %s5896_s18  ;;  %v5343_v44 = vpack.i.bf16 %v6018_v53, %v6022_v55 }
 0x19e   :  { %178 = vrot.lane.b32.xlu2 %v6018_v53, %s5896_s18 }
 0x1a6   :  { %172 = vrot.lane.b32.xlu2 %v6022_v55, %s5897_s19 }
 0x1ae   :  { %170 = vrot.lane.b32.xlu2 %v6018_v53, %s5897_s19 }
 0x1f0   :  { %v6034_v56 = vpop.permute.xlu2 %180 }
 0x1f1   :  { %196 = vrot.lane.b32.xlu2 %v6034_v56, %s5898_s20 }
 0x1f8   :  { %v6038_v57 = vpop.permute.xlu2 %178 }
 0x1f9   :  { %194 = vrot.lane.b32.xlu0 %v6038_v57, %s5898_s20  ;;  %v5328_v36 = vpack.i.bf16 %v6038_v57, %v6034_v56 }
 0x200   :  { %v6042_v58 = vpop.permute.xlu2 %172  ;;  %v6044_v59 = vpop.permute.xlu1 %174 }
 0x201   :  { %188 = vrot.lane.b32.xlu0 %v6042_v58, %s5898_s20  ;;  %190 = vrot.lane.b32.xlu1 %v6044_v59, %s5898_s20 }
 0x208   :  { %v6050_v60 = vpop.permute.xlu0 %176  ;;  %v6058_v61 = vpop.permute.xlu2 %170 }
 0x209   :  { %192 = vrot.lane.b32.xlu2 %v6050_v60, %s5898_s20  ;;  %182 = vrot.lane.b32.xlu0 %v6018_v53, %s5898_s20  ;;  %v5333_v35 = vpack.i.bf16 %v6044_v59, %v6050_v60 }
 0x20a   :  { %184 = vrot.lane.b32.xlu1 %v6022_v55, %s5898_s20 }
 0x211   :  { %186 = vrot.lane.b32.xlu2 %v6058_v61, %s5898_s20 }
 0x24b   :  { %v197_v62 = vpop.permute.xlu2 %196 }
 0x24c   :  { %4969 = vmatpush.xpose.msk.msra.mxu1 %vm198_vm8, %v197_v62 }
 0x263   :  { %v193_v0 = vpop.permute.xlu2 %192 }
 0x26b   :  { %v195_v63 = vpop.permute.xlu0 %194  ;;  %v187_v3 = vpop.permute.xlu2 %186 }
 0x26c   :  { %4970 = vmatpush.xpose.msk.msra.mxu1 %vm198_vm8, %v195_v63 }
 0x270   :  { %4971 = vmatpush.xpose.msk.msra.mxu1 %vm198_vm8, %v193_v0 }
 0x273   :  { %v191_v1 = vpop.permute.xlu1 %190  ;;  %v189_v2 = vpop.permute.xlu0 %188 }
 0x274   :  { %4972 = vmatpush.xpose.msk.msra.mxu1 %vm198_vm8, %v191_v1  ;;  %v5338_v1 = vpack.i.bf16 %v6058_v61, %v6042_v58 }
 0x278   :  { %4973 = vmatpush.xpose.msk.msra.mxu1 %vm198_vm8, %v189_v2 }
 0x27b   :  { %v183_v5 = vpop.permute.xlu0 %182 }
 0x27c   :  { %4974 = vmatpush.xpose.msk.msra.mxu1 %vm198_vm8, %v187_v3  ;;  %v185_v4 = vpop.permute.xlu1 %184 }
 0x280   :  { %4975 = vmatpush.xpose.msk.msra.mxu1 %vm198_vm8, %v185_v4 }
 0x284   :  { %4976 = vmatpush.xpose.msk.msra.mxu1 %vm198_vm8, %v183_v5 }
 0x287   :  { %4977 = vmatmul.msk.f32.vlgmr.msra.gmra.mxu1 %vm198_vm8, %v6018_v53 }
 0x28f   :  { %4978 = vmatmul.msk.f32.gmra.mxu1 %vm198_vm8, %v6022_v55 }
 0x297   :  { %4979 = vmatmul.msk.f32.gmra.mxu1 %vm198_vm8, %v6058_v61 }
 0x29f   :  { %4980 = vmatmul.msk.f32.gmra.mxu1 %vm198_vm8, %v6042_v58 }
 0x2a7   :  { %4981 = vmatmul.msk.f32.gmra.mxu1 %vm198_vm8, %v6044_v59 }
 0x2af   :  { %4982 = vmatmul.msk.f32.gmra.mxu1 %vm198_vm8, %v6050_v60 }
 0x2b7   :  { %4983 = vmatmul.msk.f32.gmra.mxu1 %vm198_vm8, %v6038_v57 }
 0x2bf   :  { %4984 = vmatmul.msk.f32.gmra.mxu1 %vm198_vm8, %v6034_v56 }
 0x304   :  { %v248_v7 = vpop.f32.mrf.mxu1 }
 0x305   :  { %v249_v8 = vadd.f32 %v248_v7, %v61_v6 }
 0x307   :  { %v273_v9 = vsel %vm272_vm9, %v249_v8, -inf }
 0x308   :  { %274 = vmax.xlane.f32.xlu2 %v273_v9 }
 0x30c   :  { %v251_v12 = vpop.f32.mrf.mxu1 }
 0x30d   :  { %v252_v13 = vadd.f32 %v251_v12, %v62_v11 }
 0x30f   :  { %v276_v14 = vsel %vm272_vm9, %v252_v13, -inf }
 0x310   :  { %277 = vmax.xlane.f32.xlu1 %v276_v14 }
 0x314   :  { %v254_v16 = vpop.f32.mrf.mxu1 }
 0x315   :  { %v255_v17 = vadd.f32 %v254_v16, %v63_v15 }
 0x317   :  { %v279_v18 = vsel %vm272_vm9, %v255_v17, -inf }
 0x318   :  { %280 = vmax.xlane.f32.xlu0 %v279_v18 }
 0x31c   :  { %v257_v20 = vpop.f32.mrf.mxu1 }
 0x31d   :  { %v258_v21 = vadd.f32 %v257_v20, %v64_v19 }
 0x31f   :  { %v282_v22 = vsel %vm272_vm9, %v258_v21, -inf }
 0x320   :  { %283 = vmax.xlane.f32.xlu2 %v282_v22 }
 0x324   :  { %v260_v24 = vpop.f32.mrf.mxu1 }
 0x325   :  { %v6105_v25 = vadd.f32 %v260_v24, %v65_v23 }
 0x327   :  { %v285_v26 = vsel %vm272_vm9, %v6105_v25, -inf }
 0x328   :  { %286 = vmax.xlane.f32.xlu1 %v285_v26 }
 0x32c   :  { %v263_v28 = vpop.f32.mrf.mxu1 }
 0x32d   :  { %v264_v29 = vadd.f32 %v263_v28, %v66_v27 }
 0x32f   :  { %v288_v30 = vsel %vm272_vm9, %v264_v29, -inf }
 0x330   :  { %289 = vmax.xlane.f32.xlu0 %v288_v30 }
 0x334   :  { %v266_v32 = vpop.f32.mrf.mxu1 }
 0x335   :  { %v267_v33 = vadd.f32 %v266_v32, %v67_v31 }
 0x337   :  { %v291_v34 = vsel %vm272_vm9, %v267_v33, -inf }
 0x338   :  { %292 = vmax.xlane.f32.xlu2 %v291_v34 }
 0x33c   :  { %v269_v38 = vpop.f32.mrf.mxu1 }
 0x33d   :  { %v6126_v39 = vadd.f32 %v269_v38, %v68_v37 }
 0x33f   :  { %v294_v40 = vsel %vm272_vm9, %v6126_v39, -inf }
 0x344   :  { %5334 = vrot.lane.b32.xlu0 %v5333_v35, %s5899_s24 }
 0x350   :  { %5329 = vrot.lane.b32.xlu2 %v5328_v36, %s5899_s24 }
 0x36e   :  { %295 = vmax.xlane.f32.xlu0 %v294_v40 }
 0x37b   :  { %v275_v41 = vpop.xlane.xlu2 %274 }
 0x37c   :  { %v297_v42 = vsub.f32 %v249_v8, %v275_v41 }
 0x37e   :  { %v305_v43 = vmul.f32 1.442695, %v297_v42 }
 0x380   :  { %5502 = vpow2.f32 %v305_v43 }
 0x382   :  { %5344 = vrot.lane.b32.xlu0 %v5343_v44, %s5899_s24 }
 0x383   :  { %v278_v45 = vpop.xlane.xlu1 %277 }
 0x384   :  { %v298_v46 = vsub.f32 %v252_v13, %v278_v45 }
 0x386   :  { %v6133_v47 = vpop.eup %5502  ;;  %v307_v48 = vmul.f32 1.442695, %v298_v46 }
 0x387   :  { %v321_v49 = vsel %vm272_vm9, %v6133_v47, 0.0 }
 0x388   :  { %5504 = vpow2.f32 %v307_v48  ;;  %322 = vadd.xlane.f32.xlu1 %v321_v49 }
 0x38b   :  { %v281_v50 = vpop.xlane.xlu0 %280 }
 0x38c   :  { %v299_v51 = vsub.f32 %v255_v17, %v281_v50 }
 0x38e   :  { %v6137_v52 = vpop.eup %5504  ;;  %v309_v54 = vmul.f32 1.442695, %v299_v51 }
 0x38f   :  { %v324_v53 = vsel %vm272_vm9, %v6137_v52, 0.0 }
 0x390   :  { %5506 = vpow2.f32 %v309_v54  ;;  %325 = vadd.xlane.f32.xlu1 %v324_v53 }
 0x393   :  { %v284_v56 = vpop.xlane.xlu2 %283 }
 0x394   :  { %v300_v59 = vsub.f32 %v258_v21, %v284_v56 }
 0x396   :  { %v6141_v55 = vpop.eup %5506  ;;  %v311_v60 = vmul.f32 1.442695, %v300_v59 }
 0x397   :  { %v327_v57 = vsel %vm272_vm9, %v6141_v55, 0.0 }
 0x398   :  { %328 = vadd.xlane.f32.xlu2 %v327_v57  ;;  %5508 = vpow2.f32 %v311_v60 }
 0x39b   :  { %v287_v16 = vpop.xlane.xlu1 %286 }
 0x39c   :  { %v301_v17 = vsub.f32 %v6105_v25, %v287_v16 }
 0x39e   :  { %v6147_v2 = vpop.eup %5508  ;;  %v313_v18 = vmul.f32 1.442695, %v301_v17 }
 0x39f   :  { %v330_v4 = vsel %vm272_vm9, %v6147_v2, 0.0 }
 0x3a3   :  { %v290_v62 = vpop.xlane.xlu0 %289 }
 0x3a4   :  { %v302_v63 = vsub.f32 %v264_v29, %v290_v62 }
 0x3a6   :  { %v315_v0 = vmul.f32 1.442695, %v302_v63 }
 0x3a8   :  { %5510 = vpow2.f32 %v315_v0 }
 0x3a9   :  { %5339 = vrot.lane.b32.xlu1 %v5338_v1, %s5899_s24 }
 0x3ab   :  { %v293_v3 = vpop.xlane.xlu2 %292 }
 0x3ac   :  { %v303_v5 = vsub.f32 %v267_v33, %v293_v3  ;;  %331 = vadd.xlane.f32.xlu0 %v330_v4 }
 0x3ae   :  { %v6152_v6 = vpop.eup %5510  ;;  %v317_v7 = vmul.f32 1.442695, %v303_v5 }
 0x3af   :  { %v336_v8 = vsel %vm272_vm9, %v6152_v6, 0.0 }
 0x3b0   :  { %5512 = vpow2.f32 %v317_v7  ;;  %337 = vadd.xlane.f32.xlu2 %v336_v8 }
 0x3b1   :  { %5514 = vpow2.f32 %v313_v18 }
 0x3b3   :  { %v5330_v58 = vpop.permute.xlu2 %5329 }
 0x3b4   :  { %v5331_v61 = vunpack.i.l.bf16 %v5330_v58  ;;  %v5332_v12 = vunpack.i.h.bf16 %v5330_v58 }
 0x3b6   :  { %v6156_v9 = vpop.eup %5512  ;;  %v5335_v11 = vpop.permute.xlu0 %5334  ;;  %521 = vmatpush.msra.mxu2 %v5331_v61 }
 0x3b7   :  { %v339_v13 = vsel %vm272_vm9, %v6156_v9, 0.0  ;;  %v5336_v14 = vunpack.i.l.bf16 %v5335_v11  ;;  %v5337_v15 = vunpack.i.h.bf16 %v5335_v11  ;;  %v6161_v19 = vpop.eup %5514 }
 0x3b8   :  { %340 = vadd.xlane.f32.xlu2 %v339_v13  ;;  %522 = vmatpush.msra.mxu2 %v5332_v12  ;;  %v333_v20 = vsel %vm272_vm9, %v6161_v19, 0.0 }
 0x3ba   :  { %523 = vmatpush.msra.mxu2 %v5336_v14 }
 0x3bc   :  { %524 = vmatpush.msra.mxu2 %v5337_v15 }
 0x3d3   :  { %334 = vadd.xlane.f32.xlu1 %v333_v20 }
 0x3e1   :  { %v296_v21 = vpop.xlane.xlu0 %295 }
 0x3e2   :  { %v304_v22 = vsub.f32 %v6126_v39, %v296_v21 }
 0x3e4   :  { %v319_v23 = vmul.f32 1.442695, %v304_v22 }
 0x3e6   :  { %5516 = vpow2.f32 %v319_v23 }
 0x3ec   :  { %v6166_v24 = vpop.eup %5516 }
 0x3ed   :  { %v342_v26 = vsel %vm272_vm9, %v6166_v24, 0.0 }
 0x3ee   :  { %343 = vadd.xlane.f32.xlu0 %v342_v26 }
 0x3f4   :  { %v5345_v35 = vpop.permute.xlu0 %5344 }
 0x3f5   :  { %v5346_v50 = vunpack.i.l.bf16 %v5345_v35  ;;  %v5347_v56 = vunpack.i.h.bf16 %v5345_v35 }
 0x3fb   :  { %v323_v25 = vpop.xlane.xlu1 %322 }
 0x3fc   :  { %5518 = vrcp.f32 %v323_v25  ;;  %v356_v39 = vand.u32 2147483648, %v323_v25  ;;  %vm350_vm11 = vweird.f32 %v323_v25  ;;  %v354_v41 = vand.u32 2147483647, %v323_v25 }
 0x3fe   :  { %v357_v48 = vor.u32 1.1754944e-38, %v356_v39  ;;  %vm355_vm13 = vcmp.eq.f32.partialorder %v354_v41, 8.507059e+37 }
 0x402   :  { %v5519_v28 = vpop.eup %5518 }
 0x403   :  { %v326_v27 = vpop.xlane.xlu1 %325  ;;  %v346_v29 = vmul.f32 %v5519_v28, %v323_v25  ;;  %vm351_vm10 = vweird.f32 %v5519_v28 }
 0x404   :  { %5520 = vrcp.f32 %v326_v27  ;;  %vm352_vm12 = vmor %vm350_vm11, %vm351_vm10  ;;  %v370_v57 = vand.u32 2147483648, %v326_v27  ;;  %vm364_vm15 = vweird.f32 %v326_v27  ;;  %v368_v60 = vand.u32 2147483647, %v326_v27 }
 0x405   :  { %v347_v30 = vsub.f32 1.0, %v346_v29 }
 0x406   :  { %v371_v1 = vor.u32 1.1754944e-38, %v370_v57  ;;  %vm369_vm2 = vcmp.eq.f32.partialorder %v368_v60, 8.507059e+37 }
 0x407   :  { %v348_v34 = vmul.f32 %v5519_v28, %v347_v30 }
 0x409   :  { %v349_v37 = vadd.f32 %v5519_v28, %v348_v34 }
 0x40a   :  { %v5521_v32 = vpop.eup %5520 }
 0x40b   :  { %v329_v31 = vpop.xlane.xlu2 %328  ;;  %v360_v33 = vmul.f32 %v5521_v32, %v326_v27  ;;  %v353_v44 = vsel %vm352_vm12, %v5519_v28, %v349_v37  ;;  %vm365_vm14 = vweird.f32 %v5521_v32 }
 0x40c   :  { %5522 = vrcp.f32 %v329_v31  ;;  %v358_v51 = vsel %vm355_vm13, %v357_v48, %v353_v44  ;;  %vm366_vm1 = vmor %vm364_vm15, %vm365_vm14  ;;  %v384_v8 = vand.u32 2147483648, %v329_v31  ;;  %vm378_vm4 = vweird.f32 %v329_v31 }
 0x40d   :  { %v361_v36 = vsub.f32 1.0, %v360_v33  ;;  %v457_v59 = vmul.f32 %v6133_v47, %v358_v51  ;;  %v382_v47 = vand.u32 2147483647, %v329_v31 }
 0x40e   :  { %v385_v12 = vor.u32 1.1754944e-38, %v384_v8 }
 0x40f   :  { %v362_v45 = vmul.f32 %v5521_v32, %v361_v36  ;;  %vm383_vm6 = vcmp.eq.f32.partialorder %v382_v47, 8.507059e+37 }
 0x411   :  { %v363_v53 = vadd.f32 %v5521_v32, %v362_v45 }
 0x412   :  { %v5523_v38 = vpop.eup %5522 }
 0x413   :  { %v374_v43 = vmul.f32 %v5523_v38, %v329_v31  ;;  %v367_v62 = vsel %vm366_vm1, %v5521_v32, %v363_v53  ;;  %vm379_vm3 = vweird.f32 %v5523_v38 }
 0x414   :  { %v372_v4 = vsel %vm369_vm2, %v371_v1, %v367_v62  ;;  %vm380_vm5 = vmor %vm378_vm4, %vm379_vm3 }
 0x415   :  { %v375_v54 = vsub.f32 1.0, %v374_v43  ;;  %v458_v58 = vmul.f32 %v6137_v52, %v372_v4 }
 0x417   :  { %v376_v63 = vmul.f32 %v5523_v38, %v375_v54 }
 0x419   :  { %v377_v7 = vadd.f32 %v5523_v38, %v376_v63 }
 0x41b   :  { %v5340_v40 = vpop.permute.xlu1 %5339  ;;  %v381_v61 = vsel %vm380_vm5, %v5523_v38, %v377_v7 }
 0x41c   :  { %v5341_v42 = vunpack.i.l.bf16 %v5340_v40  ;;  %v5342_v46 = vunpack.i.h.bf16 %v5340_v40  ;;  %v386_v13 = vsel %vm383_vm6, %v385_v12, %v381_v61 }
 0x41d   :  { %v459_v16 = vmul.f32 %v6141_v55, %v386_v13 }
 0x41e   :  { %525 = vmatpush.msra.mxu2 %v5341_v42 }
 0x41f   :  { %v332_v49 = vpop.xlane.xlu0 %331 }
 0x420   :  { %5524 = vrcp.f32 %v332_v49  ;;  %526 = vmatpush.msra.mxu2 %v5342_v46  ;;  %v398_v15 = vand.u32 2147483648, %v332_v49  ;;  %vm392_vm10 = vweird.f32 %v332_v49  ;;  %v396_v17 = vand.u32 2147483647, %v332_v49 }
 0x422   :  { %527 = vmatpush.msra.mxu2 %v5346_v50  ;;  %v399_v18 = vor.u32 1.1754944e-38, %v398_v15  ;;  %vm397_vm12 = vcmp.eq.f32.partialorder %v396_v17, 8.507059e+37  ;;  %v55_v17 = vld [vmem:[%s8003_s1 + $0x10] sm:$0xff] }
 0x423   :  { %v338_v22 = vpop.xlane.xlu2 %337 }
 0x424   :  { %528 = vmatpush.msra.mxu2 %v5347_v56  ;;  %5526 = vrcp.f32 %v338_v22  ;;  %v426_v42 = vand.u32 2147483648, %v338_v22  ;;  %vm420_vm3 = vweird.f32 %v338_v22  ;;  %v424_v44 = vand.u32 2147483647, %v338_v22 }
 0x425   :  { %4985 = vmatmul.msk.f32.vlgmr.msra.gmra.mxu2 %vm272_vm9, %v457_v59 }
 0x426   :  { %v5525_v0 = vpop.eup %5524  ;;  %v427_v48 = vor.u32 1.1754944e-38, %v426_v42  ;;  %vm425_vm5 = vcmp.eq.f32.partialorder %v424_v44, 8.507059e+37  ;;  %v5451_v44 = vld [vmem:[%s8010_s8] ss:$0 sm:$0xff] }
 0x427   :  { %v388_v3 = vmul.f32 %v5525_v0, %v332_v49  ;;  %vm393_vm7 = vweird.f32 %v5525_v0 }
 0x428   :  { %vm394_vm11 = vmor %vm392_vm10, %vm393_vm7 }
 0x429   :  { %v389_v5 = vsub.f32 1.0, %v388_v3 }
 0x42a   :  { %v5527_v23 = vpop.eup %5526 }
 0x42b   :  { %v390_v11 = vmul.f32 %v5525_v0, %v389_v5  ;;  %v341_v26 = vpop.xlane.xlu2 %340  ;;  %v416_v55 = vmul.f32 %v5527_v23, %v338_v22  ;;  %vm421_vm1 = vweird.f32 %v5527_v23  ;;  %v60_v22 = vld [vmem:[%s8003_s1 + $0x38] sm:$0xff] }
 0x42c   :  { %vm422_vm4 = vmor %vm420_vm3, %vm421_vm1  ;;  %v440_v51 = vand.u32 2147483648, %v341_v26  ;;  %vm434_vm7 = vweird.f32 %v341_v26  ;;  %v438_v53 = vand.u32 2147483647, %v341_v26  ;;  %vm645_vm1 = vcmask 64512  }
 0x42d   :  { %4986 = vmatmul.msk.f32.gmra.mxu2 %vm272_vm9, %v458_v58  ;;  %v391_v14 = vadd.f32 %v5525_v0, %v390_v11  ;;  %v417_v28 = vsub.f32 1.0, %v416_v55 }
 0x42e   :  { %v441_v57 = vor.u32 1.1754944e-38, %v440_v51 }
 0x42f   :  { %v395_v52 = vsel %vm394_vm11, %v5525_v0, %v391_v14  ;;  %v418_v33 = vmul.f32 %v5527_v23, %v417_v28  ;;  %vm439_vm11 = vcmp.eq.f32.partialorder %v438_v53, 8.507059e+37 }
 0x430   :  { %v400_v20 = vsel %vm397_vm12, %v399_v18, %v395_v52  ;;  %v56_v52 = vld [vmem:[%s8003_s1 + $0x18] sm:$0xff]  ;;  %v57_v18 = vld [vmem:[%s8003_s1 + $0x20] sm:$0xff] }
 0x431   :  { %v460_v21 = vmul.f32 %v6147_v2, %v400_v20  ;;  %v419_v40 = vadd.f32 %v5527_v23, %v418_v33  ;;  %v58_v20 = vld [vmem:[%s8003_s1 + $0x28] sm:$0xff] }
 0x433   :  { %v423_v45 = vsel %vm422_vm4, %v5527_v23, %v419_v40 }
 0x434   :  { %v428_v49 = vsel %vm425_vm5, %v427_v48, %v423_v45 }
 0x435   :  { %4987 = vmatmul.msk.f32.gmra.mxu2 %vm272_vm9, %v459_v16  ;;  %v462_v54 = vmul.f32 %v6152_v6, %v428_v49  ;;  %v54_v16 = vld [vmem:[%s8003_s1 + $0x8] sm:$0xff] }
 0x43d   :  { %4988 = vmatmul.msk.f32.gmra.mxu2 %vm272_vm9, %v460_v21  ;;  %v59_v21 = vld [vmem:[%s8003_s1 + $0x30] sm:$0xff] }
 0x446   :  { %v335_v25 = vpop.xlane.xlu1 %334 }
 0x447   :  { %5528 = vrcp.f32 %v335_v25  ;;  %v412_v32 = vand.u32 2147483648, %v335_v25  ;;  %v410_v2 = vand.u32 2147483647, %v335_v25  ;;  %vm406_vm14 = vweird.f32 %v335_v25 }
 0x448   :  { %5530 = vrcp.f32 %v341_v26 }
 0x449   :  { %v413_v37 = vor.u32 1.1754944e-38, %v412_v32  ;;  %vm411_vm2 = vcmp.eq.f32.partialorder %v410_v2, 8.507059e+37  ;;  %v651_v32 = vld [vmem:[%s8009_s7] sm:$0xff] }
 0x44d   :  { %v5529_v27 = vpop.eup %5528 }
 0x44e   :  { %v402_v29 = vmul.f32 %v5529_v27, %v335_v25  ;;  %v5531_v30 = vpop.eup %5530  ;;  %vm407_vm13 = vweird.f32 %v5529_v27 }
 0x44f   :  { %v430_v34 = vmul.f32 %v5531_v30, %v341_v26  ;;  %vm408_vm15 = vmor %vm406_vm14, %vm407_vm13  ;;  %vm435_vm6 = vweird.f32 %v5531_v30 }
 0x450   :  { %v403_v31 = vsub.f32 1.0, %v402_v29  ;;  %vm436_vm10 = vmor %vm434_vm7, %vm435_vm6 }
 0x451   :  { %v431_v38 = vsub.f32 1.0, %v430_v34 }
 0x452   :  { %v404_v35 = vmul.f32 %v5529_v27, %v403_v31  ;;  %v652_v31 = vld [vmem:[%s8009_s7 + $0x8] sm:$0xff] }
 0x453   :  { %v432_v46 = vmul.f32 %v5531_v30, %v431_v38  ;;  %673 = vmatpush.msrb.mxu0 %v652_v31 }
 0x454   :  { %v405_v36 = vadd.f32 %v5529_v27, %v404_v35 }
 0x455   :  { %v433_v50 = vadd.f32 %v5531_v30, %v432_v46  ;;  %674 = vmatpush.msrb.mxu0 %v651_v32  ;;  %v5786_v46 = vld [vmem:[%s8002_s0] sm:$0xff] }
 0x456   :  { %v409_v39 = vsel %vm408_vm15, %v5529_v27, %v405_v36 }
 0x457   :  { %v414_v41 = vsel %vm411_vm2, %v413_v37, %v409_v39  ;;  %vm648_vm2 = vcmask 97280  }
 0x458   :  { %v461_v43 = vmul.f32 %v6161_v19, %v414_v41  ;;  %v437_v19 = vsel %vm436_vm10, %v5531_v30, %v433_v50 }
 0x459   :  { %v442_v59 = vsel %vm439_vm11, %v441_v57, %v437_v19 }
 0x45a   :  { %4989 = vmatmul.msk.f32.gmra.mxu2 %vm272_vm9, %v461_v43  ;;  %v463_v62 = vmul.f32 %v6156_v9, %v442_v59 }
 0x461   :  { %v344_v56 = vpop.xlane.xlu0 %343 }
 0x462   :  { %5532 = vrcp.f32 %v344_v56  ;;  %4990 = vmatmul.msk.f32.gmra.mxu2 %vm272_vm9, %v462_v54  ;;  %v454_v1 = vand.u32 2147483648, %v344_v56  ;;  %v452_v3 = vand.u32 2147483647, %v344_v56  ;;  %vm448_vm13 = vweird.f32 %v344_v56  ;;  %v5787_v54 = vld [vmem:[%s8002_s0 + $0x8] sm:$0xff] }
 0x464   :  { %v455_v5 = vor.u32 1.1754944e-38, %v454_v1  ;;  %vm453_vm15 = vcmp.eq.f32.partialorder %v452_v3, 8.507059e+37 }
 0x468   :  { %v5533_v60 = vpop.eup %5532 }
 0x469   :  { %v444_v63 = vmul.f32 %v5533_v60, %v344_v56  ;;  %vm449_vm12 = vweird.f32 %v5533_v60 }
 0x46a   :  { %4991 = vmatmul.msk.f32.gmra.mxu2 %vm272_vm9, %v463_v62  ;;  %vm450_vm14 = vmor %vm448_vm13, %vm449_vm12 }
 0x46b   :  { %v445_v0 = vsub.f32 1.0, %v444_v63 }
 0x46d   :  { %v446_v6 = vmul.f32 %v5533_v60, %v445_v0 }
 0x46f   :  { %v447_v4 = vadd.f32 %v5533_v60, %v446_v6 }
 0x471   :  { %v451_v7 = vsel %vm450_vm14, %v5533_v60, %v447_v4 }
 0x472   :  { %v456_v8 = vsel %vm453_vm15, %v455_v5, %v451_v7  ;;  %v747_v5 = vld [vmem:[%s8013_s11 + $0x8] sm:$0xff]  ;;  %v746_v7 = vld [vmem:[%s8013_s11] sm:$0xff] }
 0x473   :  { %v464_v58 = vmul.f32 %v6166_v24, %v456_v8  ;;  %v53_v24 = vld [vmem:[%s8003_s1] sm:$0xff]  ;;  %772 = vmatpush.msra.mxu0 %v747_v5 }
 0x475   :  { %4992 = vmatmul.msk.f32.gmra.mxu2 %vm272_vm9, %v464_v58  ;;  %773 = vmatpush.msra.mxu0 %v746_v7 }
 0x4a8   :  { %v530_v9 = vpop.f32.mrf.mxu2 }
 0x4b0   :  { %v533_v47 = vpop.f32.mrf.mxu2 }
 0x4b8   :  { %v536_v61 = vpop.f32.mrf.mxu2 }
 0x4c0   :  { %v539_v11 = vpop.f32.mrf.mxu2 }
 0x4dd   :  { %v542_v12 = vpop.f32.mrf.mxu2 }
 0x4e5   :  { %v545_v13 = vpop.f32.mrf.mxu2 }
 0x4ed   :  { %v548_v14 = vpop.f32.mrf.mxu2 }
 0x4f8   :  { %v551_v15 = vpop.f32.mrf.mxu2 }
 0x4f9   :  { %586 = vmatpush.msra.mxu3 %v551_v15 }
 0x4fb   :  { %587 = vmatpush.msra.mxu3 %v548_v14 }
 0x4fd   :  { %588 = vmatpush.msra.mxu3 %v545_v13 }
 0x4ff   :  { %589 = vmatpush.msra.mxu3 %v542_v12 }
 0x501   :  { %590 = vmatpush.msra.mxu3 %v539_v11 }
 0x503   :  { %591 = vmatpush.msra.mxu3 %v536_v61 }
 0x505   :  { %592 = vmatpush.msra.mxu3 %v533_v47 }
 0x507   :  { %593 = vmatpush.msra.mxu3 %v530_v9 }
 0x508   :  { %4993 = vmatmul.msk.f32.vlgmr.msra.gmra.mxu3 %vm272_vm9, %v53_v24 }
 0x510   :  { %4994 = vmatmul.msk.f32.gmra.mxu3 %vm272_vm9, %v54_v16 }
 0x518   :  { %4995 = vmatmul.msk.f32.gmra.mxu3 %vm272_vm9, %v55_v17 }
 0x520   :  { %4996 = vmatmul.msk.f32.gmra.mxu3 %vm272_vm9, %v56_v52  ;;  %v5452_v52 = vld [vmem:[%s8011_s9] ss:$0 sm:$0xff] }
 0x528   :  { %4997 = vmatmul.msk.f32.gmra.mxu3 %vm272_vm9, %v57_v18 }
 0x530   :  { %4998 = vmatmul.msk.f32.gmra.mxu3 %vm272_vm9, %v58_v20 }
 0x538   :  { %4999 = vmatmul.msk.f32.gmra.mxu3 %vm272_vm9, %v59_v21 }
 0x540   :  { %5000 = vmatmul.msk.f32.gmra.mxu3 %vm272_vm9, %v60_v22 }
 0x58b   :  { %v595_v23 = vpop.f32.mrf.mxu3 }
 0x593   :  { %v598_v26 = vpop.f32.mrf.mxu3 }
 0x59b   :  { %v601_v25 = vpop.f32.mrf.mxu3 }
 0x59c   :  { %621 = vrot.lane.b32.xlu1 %v601_v25, %s5900_s22 }
 0x5a3   :  { %v604_v55 = vpop.f32.mrf.mxu3 }
 0x5a4   :  { %623 = vrot.lane.b32.xlu1 %v604_v55, %s5900_s22 }
 0x5ab   :  { %v607_v27 = vpop.f32.mrf.mxu3 }
 0x5ac   :  { %629 = vrot.lane.b32.xlu2 %v607_v27, %s5901_s23 }
 0x5b3   :  { %v610_v28 = vpop.f32.mrf.mxu3 }
 0x5bb   :  { %v613_v29 = vpop.f32.mrf.mxu3 }
 0x5bc   :  { %637 = vrot.lane.b32.xlu0 %v613_v29, %s5902_s25 }
 0x5c3   :  { %v616_v30 = vpop.f32.mrf.mxu3 }
 0x5c4   :  { %631 = vrot.lane.b32.xlu0 %v610_v28, %s5901_s23  ;;  %639 = vrot.lane.b32.xlu2 %v616_v30, %s5902_s25 }
 0x606   :  { %v630_v35 = vpop.permute.xlu2 %629 }
 0x60e   :  { %v622_v33 = vpop.permute.xlu1 %621 }
 0x60f   :  { %v643_v34 = vsel %vm198_vm8, %v595_v23, %v622_v33  ;;  %v5453_v23 = vld [vmem:[%s8012_s10] ss:$0 sm:$0xff] }
 0x610   :  { %v646_v2 = vsel %vm645_vm1, %v643_v34, %v630_v35  ;;  %v5454_v33 = vld [vmem:[%s8014_s12] ss:$0 sm:$0xff] }
 0x616   :  { %v624_v38 = vpop.permute.xlu1 %623 }
 0x617   :  { %v644_v40 = vsel %vm198_vm8, %v598_v26, %v624_v38 }
 0x61e   :  { %v640_v39 = vpop.permute.xlu2 %639 }
 0x62e   :  { %v638_v36 = vpop.permute.xlu0 %637 }
 0x62f   :  { %v649_v37 = vsel %vm648_vm2, %v646_v2, %v638_v36 }
 0x630   :  { %5001 = vmatmul.msk.f32.vlgmr.msrb.gmra.mxu0 %vm71_vm0, %v649_v37 }
 0x636   :  { %v632_v41 = vpop.permute.xlu0 %631 }
 0x637   :  { %v647_v42 = vsel %vm645_vm1, %v644_v40, %v632_v41  ;;  %v866_v41 = vld [vmem:[%s8015_s13 + $0x38] sm:$0xff] }
 0x638   :  { %v650_v43 = vsel %vm648_vm2, %v647_v42, %v640_v39  ;;  %885 = vmatpush.msrb.mxu0 %v866_v41 }
 0x639   :  { %5002 = vmatmul.msk.f32.gmra.mxu0 %vm71_vm0, %v650_v43  ;;  %v865_v43 = vld [vmem:[%s8015_s13 + $0x30] sm:$0xff] }
 0x63a   :  { %886 = vmatpush.msrb.mxu0 %v865_v43 }
 0x6ad   :  { %v676_v45 = vpop.f32.mrf.mxu0 }
 0x6ae   :  { %v682_v48 = vadd.f32 %v5786_v46, %v676_v45  ;;  %v864_v45 = vld [vmem:[%s8015_s13 + $0x28] sm:$0xff] }
 0x6af   :  { %887 = vmatpush.msrb.mxu0 %v864_v45 }
 0x6b0   :  { %v6244_v49 = vadd.f32 %v5451_v44, %v682_v48  ;;  %v863_v48 = vld [vmem:[%s8015_s13 + $0x20] sm:$0xff] }
 0x6b1   :  { %888 = vmatpush.msrb.mxu0 %v863_v48 }
 0x6b2   :  { %v692_v50 = vsel %vm71_vm0, %v6244_v49, 0.0 }
 0x6b3   :  { %693 = vadd.xlane.f32.xlu1 %v692_v50 }
 0x6b6   :  { %v679_v51 = vpop.f32.mrf.mxu0 }
 0x6b7   :  { %v683_v53 = vadd.f32 %v5787_v54, %v679_v51 }
 0x6b9   :  { %v6251_v56 = vadd.f32 %v5451_v44, %v683_v53  ;;  %v862_v53 = vld [vmem:[%s8015_s13 + $0x18] sm:$0xff] }
 0x6ba   :  { %889 = vmatpush.msrb.mxu0 %v862_v53 }
 0x6bb   :  { %v695_v19 = vsel %vm71_vm0, %v6251_v56, 0.0 }
 0x6bc   :  { %696 = vadd.xlane.f32.xlu0 %v695_v19 }
 0x726   :  { %v694_v57 = vpop.xlane.xlu1 %693 }
 0x727   :  { %v698_v59 = vmul.f32 %v694_v57, %v5993_v10  ;;  %v861_v57 = vld [vmem:[%s8015_s13 + $0x10] sm:$0xff] }
 0x728   :  { %890 = vmatpush.msrb.mxu0 %v861_v57 }
 0x729   :  { %v700_v60 = vsub.f32 %v6244_v49, %v698_v59 }
 0x72b   :  { %v702_v62 = vmul.f32 %v700_v60, %v700_v60 }
 0x72d   :  { %v704_v63 = vsel %vm71_vm0, %v702_v62, 0.0 }
 0x72e   :  { %705 = vadd.xlane.f32.xlu2 %v704_v63  ;;  %v860_v63 = vld [vmem:[%s8015_s13 + $0x8] sm:$0xff] }
 0x72f   :  { %v697_v0 = vpop.xlane.xlu0 %696  ;;  %891 = vmatpush.msrb.mxu0 %v860_v63 }
 0x730   :  { %v699_v1 = vmul.f32 %v697_v0, %v5993_v10  ;;  %v859_v0 = vld [vmem:[%s8015_s13] sm:$0xff] }
 0x731   :  { %892 = vmatpush.msrb.mxu0 %v859_v0 }
 0x732   :  { %v701_v6 = vsub.f32 %v6251_v56, %v699_v1 }
 0x734   :  { %v703_v3 = vmul.f32 %v701_v6, %v701_v6 }
 0x736   :  { %v707_v4 = vsel %vm71_vm0, %v703_v3, 0.0 }
 0x737   :  { %708 = vadd.xlane.f32.xlu1 %v707_v4 }
 0x7a1   :  { %v706_v8 = vpop.xlane.xlu2 %705 }
 0x7a2   :  { %v710_v58 = vmul.f32 %v706_v8, %v5993_v10 }
 0x7a4   :  { %v712_v9 = vadd.f32 1e-06, %v710_v58 }
 0x7a6   :  { %5534 = vrsqrt.f32 %v712_v9  ;;  %vm720_vm4 = vweird.f32 %v712_v9 }
 0x7aa   :  { %v709_v47 = vpop.xlane.xlu1 %708 }
 0x7ab   :  { %v711_v61 = vmul.f32 %v709_v47, %v5993_v10 }
 0x7ac   :  { %v5535_v11 = vpop.eup %5534 }
 0x7ad   :  { %v715_v12 = vmul.f32 %v5535_v11, %v712_v9  ;;  %v713_v13 = vadd.f32 1e-06, %v711_v61  ;;  %vm721_vm3 = vweird.f32 %v5535_v11 }
 0x7ae   :  { %vm722_vm5 = vmor %vm720_vm4, %vm721_vm3 }
 0x7af   :  { %v716_v14 = vmul.f32 %v5535_v11, %v715_v12  ;;  %5536 = vrsqrt.f32 %v713_v13  ;;  %vm730_vm7 = vweird.f32 %v713_v13 }
 0x7b1   :  { %v717_v15 = vmul.f32 0.5, %v716_v14 }
 0x7b3   :  { %v718_v24 = vsub.f32 1.5, %v717_v15 }
 0x7b5   :  { %v5537_v16 = vpop.eup %5536  ;;  %v719_v17 = vmul.f32 %v5535_v11, %v718_v24 }
 0x7b6   :  { %v725_v18 = vmul.f32 %v5537_v16, %v713_v13  ;;  %vm731_vm6 = vweird.f32 %v5537_v16 }
 0x7b7   :  { %v723_v20 = vsel %vm722_vm5, %v5535_v11, %v719_v17  ;;  %vm732_vm10 = vmor %vm730_vm7, %vm731_vm6 }
 0x7b8   :  { %v734_v21 = vmul.f32 %v723_v20, %v700_v60  ;;  %v726_v22 = vmul.f32 %v5537_v16, %v725_v18 }
 0x7ba   :  { %v739_v26 = vmul.f32 %v5452_v52, %v734_v21  ;;  %v727_v25 = vmul.f32 0.5, %v726_v22 }
 0x7bc   :  { %v728_v55 = vsub.f32 1.5, %v727_v25  ;;  %v744_v27 = vadd.f32 %v5453_v23, %v739_v26 }
 0x7be   :  { %v729_v28 = vmul.f32 %v5537_v16, %v728_v55  ;;  %5003 = vmatmul.msk.f32.vlgmr.msra.gmra.mxu0 %vm71_vm0, %v744_v27 }
 0x7c0   :  { %v733_v29 = vsel %vm732_vm10, %v5537_v16, %v729_v28 }
 0x7c1   :  { %v735_v30 = vmul.f32 %v733_v29, %v701_v6 }
 0x7c3   :  { %v740_v31 = vmul.f32 %v5452_v52, %v735_v30 }
 0x7c5   :  { %v745_v32 = vadd.f32 %v5453_v23, %v740_v31 }
 0x7c7   :  { %5004 = vmatmul.msk.f32.gmra.mxu0 %vm71_vm0, %v745_v32 }
 0x83b   :  { %v775_v34 = vpop.f32.mrf.mxu0 }
 0x83c   :  { %v6280_v35 = vadd.f32 %v5454_v33, %v775_v34 }
 0x83e   :  { %v6283_v2 = vmul.f32 0.70710677, %v6280_v35  ;;  %v781_v45 = vmul.f32 0.5, %v6280_v35  ;;  %v5455_v35 = vld [vmem:[%s8016_s14] ss:$0 sm:$0xff] }
 0x840   :  { %v785_v36 = vand.u32 2147483647, %v6283_v2  ;;  %vm849_vm6 = vcmp.ge.f32.partialorder %v6283_v2, 0.0 }
 0x842   :  { %v787_v37 = vmul.f32 0.3275911, %v785_v36  ;;  %v837_v7 = vsub.f32 0.0, %v785_v36 }
 0x844   :  { %v789_v38 = vadd.f32 1.0, %v787_v37  ;;  %v778_v39 = vpop.f32.mrf.mxu0  ;;  %v839_v11 = vmul.f32 %v837_v7, %v785_v36 }
 0x845   :  { %v6286_v40 = vadd.f32 %v5454_v33, %v778_v39 }
 0x846   :  { %5538 = vrcp.f32 %v789_v38  ;;  %v802_v59 = vand.u32 2147483648, %v789_v38  ;;  %v800_v62 = vand.u32 2147483647, %v789_v38  ;;  %vm796_vm12 = vweird.f32 %v789_v38 }
 0x847   :  { %v6292_v42 = vmul.f32 0.70710677, %v6286_v40  ;;  %v841_v17 = vmul.f32 1.442695, %v839_v11  ;;  %v782_v57 = vmul.f32 0.5, %v6286_v40  ;;  %v5009_v11 = vld [vmem:[%s8007_s5 + $0x10] sm:$0xff] }
 0x848   :  { %v803_v6 = vor.u32 1.1754944e-38, %v802_v59  ;;  %vm801_vm14 = vcmp.eq.f32.partialorder %v800_v62, 8.507059e+37 }
 0x849   :  { %v786_v44 = vand.u32 2147483647, %v6292_v42  ;;  %vm850_vm7 = vcmp.ge.f32.partialorder %v6292_v42, 0.0 }
 0x84b   :  { %v788_v46 = vmul.f32 0.3275911, %v786_v44  ;;  %v838_v20 = vsub.f32 0.0, %v786_v44 }
 0x84c   :  { %v5539_v50 = vpop.eup %5538 }
 0x84d   :  { %v792_v51 = vmul.f32 %v5539_v50, %v789_v38  ;;  %v790_v54 = vadd.f32 1.0, %v788_v46  ;;  %vm797_vm11 = vweird.f32 %v5539_v50  ;;  %v840_v55 = vmul.f32 %v838_v20, %v786_v44 }
 0x84e   :  { %vm798_vm13 = vmor %vm796_vm12, %vm797_vm11 }
 0x84f   :  { %v793_v19 = vsub.f32 1.0, %v792_v51  ;;  %5540 = vrcp.f32 %v790_v54  ;;  %v816_v61 = vand.u32 2147483648, %v790_v54  ;;  %v814_v13 = vand.u32 2147483647, %v790_v54 }
 0x850   :  { %vm810_vm3 = vweird.f32 %v790_v54  ;;  %5542 = vpow2.f32 %v841_v17  ;;  %v843_v31 = vmul.f32 1.442695, %v840_v55 }
 0x851   :  { %v794_v60 = vmul.f32 %v5539_v50, %v793_v19  ;;  %v817_v16 = vor.u32 1.1754944e-38, %v816_v61  ;;  %vm815_vm5 = vcmp.eq.f32.partialorder %v814_v13, 8.507059e+37  ;;  %v5010_v61 = vld [vmem:[%s8007_s5 + $0x18] sm:$0xff] }
 0x852   :  { %5544 = vpow2.f32 %v843_v31  ;;  %988 = vmatpush.msra.mxu0 %v5010_v61 }
 0x853   :  { %v795_v1 = vadd.f32 %v5539_v50, %v794_v60 }
 0x854   :  { %989 = vmatpush.msra.mxu0 %v5009_v11 }
 0x855   :  { %v5541_v3 = vpop.eup %5540  ;;  %v799_v4 = vsel %vm798_vm13, %v5539_v50, %v795_v1 }
 0x856   :  { %v804_v5 = vsel %vm801_vm14, %v803_v6, %v799_v4  ;;  %v806_v8 = vmul.f32 %v5541_v3, %v790_v54  ;;  %vm811_vm15 = vweird.f32 %v5541_v3  ;;  %v5543_v32 = vpop.eup %5542 }
 0x857   :  { %v819_v58 = vmul.f32 1.0614054, %v804_v5  ;;  %vm812_vm4 = vmor %vm810_vm3, %vm811_vm15 }
 0x858   :  { %v807_v9 = vsub.f32 1.0, %v806_v8  ;;  %v5545_v48 = vpop.eup %5544 }
 0x859   :  { %v821_v47 = vadd.f32 -1.4531521, %v819_v58 }
 0x85a   :  { %v808_v12 = vmul.f32 %v5541_v3, %v807_v9 }
 0x85b   :  { %v823_v14 = vmul.f32 %v821_v47, %v804_v5 }
 0x85c   :  { %v809_v15 = vadd.f32 %v5541_v3, %v808_v12 }
 0x85d   :  { %v825_v24 = vadd.f32 1.4214138, %v823_v14 }
 0x85e   :  { %v813_v52 = vsel %vm812_vm4, %v5541_v3, %v809_v15 }
 0x85f   :  { %v827_v18 = vmul.f32 %v825_v24, %v804_v5  ;;  %v818_v21 = vsel %vm815_vm5, %v817_v16, %v813_v52 }
 0x860   :  { %v820_v22 = vmul.f32 1.0614054, %v818_v21 }
 0x861   :  { %v829_v23 = vadd.f32 -0.28449672, %v827_v18 }
 0x862   :  { %v822_v26 = vadd.f32 -1.4531521, %v820_v22 }
 0x863   :  { %v831_v25 = vmul.f32 %v829_v23, %v804_v5 }
 0x864   :  { %v824_v27 = vmul.f32 %v822_v26, %v818_v21  ;;  %v5456_v26 = vld [vmem:[%s8005_s3 + $0x1] ss:$0 sm:$0xff] }
 0x865   :  { %v833_v28 = vadd.f32 0.2548296, %v831_v25 }
 0x866   :  { %v826_v29 = vadd.f32 1.4214138, %v824_v27 }
 0x867   :  { %v835_v30 = vmul.f32 %v833_v28, %v804_v5 }
 0x868   :  { %v828_v33 = vmul.f32 %v826_v29, %v818_v21  ;;  %v5457_v29 = vld [vmem:[%s8006_s4 + $0x1] ss:$0 sm:$0xff] }
 0x869   :  { %v845_v34 = vmul.f32 %v5543_v32, %v835_v30 }
 0x86a   :  { %v830_v36 = vadd.f32 -0.28449672, %v828_v33 }
 0x86b   :  { %v847_v37 = vsub.f32 1.0, %v845_v34 }
 0x86c   :  { %v832_v38 = vmul.f32 %v830_v36, %v818_v21 }
 0x86d   :  { %v851_v39 = vsub.f32 0.0, %v847_v37 }
 0x86e   :  { %v834_v41 = vadd.f32 0.2548296, %v832_v38 }
 0x86f   :  { %v853_v43 = vsel %vm849_vm6, %v847_v37, %v851_v39 }
 0x870   :  { %v855_v44 = vadd.f32 1.0, %v853_v43  ;;  %v836_v46 = vmul.f32 %v834_v41, %v818_v21  ;;  %v5458_v41 = vld [vmem:[%s8008_s6 + $0x1] ss:$0 sm:$0xff] }
 0x872   :  { %v857_v50 = vmul.f32 %v855_v44, %v781_v45  ;;  %v846_v51 = vmul.f32 %v5545_v48, %v836_v46 }
 0x874   :  { %5005 = vmatmul.msk.f32.vlgmr.msrb.gmra.mxu0 %vm272_vm9, %v857_v50  ;;  %v848_v54 = vsub.f32 1.0, %v846_v51 }
 0x876   :  { %v852_v53 = vsub.f32 0.0, %v848_v54 }
 0x878   :  { %v854_v19 = vsel %vm850_vm7, %v848_v54, %v852_v53 }
 0x879   :  { %v856_v59 = vadd.f32 1.0, %v854_v19 }
 0x87b   :  { %v858_v2 = vmul.f32 %v856_v59, %v782_v57 }
 0x87d   :  { %5006 = vmatmul.msk.f32.gmra.mxu0 %vm272_vm9, %v858_v2 }
 0x8f1   :  { %v894_v60 = vpop.f32.mrf.mxu0 }
 0x8f2   :  { %v895_v62 = vadd.f32 %v5455_v35, %v894_v60 }
 0x8f4   :  { %v6326_v63 = vadd.f32 %v895_v62, %v6244_v49 }
 0x8f6   :  { %v906_v0 = vsel %vm71_vm0, %v6326_v63, 0.0 }
 0x8f7   :  { %907 = vadd.xlane.f32.xlu0 %v906_v0 }
 0x8fa   :  { %v897_v42 = vpop.f32.mrf.mxu0 }
 0x8fb   :  { %v898_v1 = vadd.f32 %v5455_v35, %v897_v42 }
 0x8fd   :  { %v6331_v40 = vadd.f32 %v898_v1, %v6251_v56 }
 0x8ff   :  { %v909_v6 = vsel %vm71_vm0, %v6331_v40, 0.0 }
 0x900   :  { %910 = vadd.xlane.f32.xlu2 %v909_v6  ;;  %v5788_v6 = vld [vmem:[%s8004_s2] sm:$0xff] }
 0x96a   :  { %v908_v3 = vpop.xlane.xlu0 %907 }
 0x96b   :  { %v912_v4 = vmul.f32 %v908_v3, %v5993_v10 }
 0x96d   :  { %v914_v5 = vsub.f32 %v6326_v63, %v912_v4 }
 0x96f   :  { %v916_v49 = vmul.f32 %v914_v5, %v914_v5 }
 0x971   :  { %v918_v7 = vsel %vm71_vm0, %v916_v49, 0.0  ;;  %v5789_v49 = vld [vmem:[%s8004_s2 + $0x8] sm:$0xff] }
 0x972   :  { %919 = vadd.xlane.f32.xlu1 %v918_v7 }
 0x973   :  { %v911_v8 = vpop.xlane.xlu2 %910 }
 0x974   :  { %v913_v58 = vmul.f32 %v911_v8, %v5993_v10 }
 0x976   :  { %v915_v9 = vsub.f32 %v6331_v40, %v913_v58 }
 0x978   :  { %v917_v56 = vmul.f32 %v915_v9, %v915_v9 }
 0x97a   :  { %v921_v47 = vsel %vm71_vm0, %v917_v56, 0.0 }
 0x97b   :  { %922 = vadd.xlane.f32.xlu0 %v921_v47 }
 0x9e5   :  { %v920_v12 = vpop.xlane.xlu1 %919 }
 0x9e6   :  { %v924_v13 = vmul.f32 %v920_v12, %v5993_v10 }
 0x9e8   :  { %v926_v14 = vadd.f32 1e-06, %v924_v13  ;;  %v5791_v13 = vld [vmem:[%s8004_s2 + $0x20] sm:$0xff] }
 0x9ea   :  { %5546 = vrsqrt.f32 %v926_v14  ;;  %vm934_vm11 = vweird.f32 %v926_v14 }
 0x9ee   :  { %v923_v15 = vpop.xlane.xlu0 %922 }
 0x9ef   :  { %v925_v24 = vmul.f32 %v923_v15, %v5993_v10 }
 0x9f0   :  { %v5547_v16 = vpop.eup %5546 }
 0x9f1   :  { %v929_v17 = vmul.f32 %v5547_v16, %v926_v14  ;;  %v927_v52 = vadd.f32 1e-06, %v925_v24  ;;  %vm935_vm10 = vweird.f32 %v5547_v16 }
 0x9f2   :  { %vm936_vm12 = vmor %vm934_vm11, %vm935_vm10 }
 0x9f3   :  { %v930_v18 = vmul.f32 %v5547_v16, %v929_v17  ;;  %5548 = vrsqrt.f32 %v927_v52  ;;  %vm944_vm14 = vweird.f32 %v927_v52 }
 0x9f5   :  { %v931_v20 = vmul.f32 0.5, %v930_v18 }
 0x9f7   :  { %v932_v21 = vsub.f32 1.5, %v931_v20 }
 0x9f9   :  { %v5549_v22 = vpop.eup %5548  ;;  %v933_v23 = vmul.f32 %v5547_v16, %v932_v21  ;;  %v5793_v21 = vld [vmem:[%s8004_s2 + $0x38] sm:$0xff] }
 0x9fa   :  { %v939_v25 = vmul.f32 %v5549_v22, %v927_v52  ;;  %vm945_vm13 = vweird.f32 %v5549_v22 }
 0x9fb   :  { %v937_v55 = vsel %vm936_vm12, %v5547_v16, %v933_v23  ;;  %vm946_vm15 = vmor %vm944_vm14, %vm945_vm13  ;;  %v5792_v16 = vld [vmem:[%s8004_s2 + $0x28] sm:$0xff] }
 0x9fc   :  { %v948_v27 = vmul.f32 %v937_v55, %v914_v5  ;;  %v940_v28 = vmul.f32 %v5549_v22, %v939_v25 }
 0x9fe   :  { %v953_v30 = vmul.f32 %v5456_v26, %v948_v27  ;;  %v941_v31 = vmul.f32 0.5, %v940_v28  ;;  %v5795_v27 = vld [vmem:[%s8004_s2 + $0x30] sm:$0xff] }
 0xa00   :  { %v942_v32 = vsub.f32 1.5, %v941_v31  ;;  %v958_v33 = vadd.f32 %v5457_v29, %v953_v30 }
 0xa02   :  { %v943_v34 = vmul.f32 %v5549_v22, %v942_v32  ;;  %5012 = vmatmul.msk.f32.vlgmr.msra.gmra.mxu0 %vm71_vm0, %v958_v33 }
 0xa04   :  { %v947_v36 = vsel %vm946_vm15, %v5549_v22, %v943_v34 }
 0xa05   :  { %v949_v37 = vmul.f32 %v947_v36, %v915_v9  ;;  %v5790_v9 = vld [vmem:[%s8004_s2 + $0x10] sm:$0xff] }
 0xa07   :  { %v954_v38 = vmul.f32 %v5456_v26, %v949_v37  ;;  %v5794_v26 = vld [vmem:[%s8004_s2 + $0x18] sm:$0xff] }
 0xa09   :  { %v959_v39 = vadd.f32 %v5457_v29, %v954_v38 }
 0xa0b   :  { %5013 = vmatmul.msk.f32.gmra.mxu0 %vm71_vm0, %v959_v39 }
 0xa7f   :  { %v991_v43 = vpop.f32.mrf.mxu0 }
 0xa80   :  { %v6360_v45 = vadd.f32 %v5458_v41, %v991_v43 }
 0xa82   :  { %1007 = vrot.lane.b32.xlu1 %v6360_v45, %s5896_s18 }
 0xa88   :  { %v994_v44 = vpop.f32.mrf.mxu0 }
 0xa89   :  { %v6364_v46 = vadd.f32 %v5458_v41, %v994_v44 }
 0xa8a   :  { %999 = vrot.lane.b32.xlu1 %v6360_v45, %s5897_s19 }
 0xa8b   :  { %1005 = vrot.lane.b32.xlu0 %v6364_v46, %s5895_s17  ;;  %1009 = vrot.lane.b32.xlu2 %v6364_v46, %s5896_s18  ;;  %v5363_v31 = vpack.i.bf16 %v6360_v45, %v6364_v46 }
 0xa93   :  { %1001 = vrot.lane.b32.xlu0 %v6364_v46, %s5897_s19  ;;  %1003 = vrot.lane.b32.xlu2 %v6360_v45, %s5895_s17 }
 0xae5   :  { %v1010_v48 = vpop.permute.xlu2 %1009 }
 0xae6   :  { %1025 = vrot.lane.b32.xlu2 %v1010_v48, %s5898_s20 }
 0xaed   :  { %v6377_v50 = vpop.permute.xlu2 %1003 }
 0xaee   :  { %1019 = vrot.lane.b32.xlu2 %v6377_v50, %s5898_s20 }
 0xaf4   :  { %v1008_v51 = vpop.permute.xlu1 %1007 }
 0xaf5   :  { %1023 = vrot.lane.b32.xlu0 %v1008_v51, %s5898_s20  ;;  %v5348_v11 = vpack.i.bf16 %v1008_v51, %v1010_v48 }
 0xaf6   :  { %1013 = vrot.lane.b32.xlu2 %v6364_v46, %s5898_s20 }
 0xafc   :  { %v6388_v53 = vpop.permute.xlu1 %999 }
 0xafd   :  { %v6384_v54 = vpop.permute.xlu0 %1005 }
 0xafe   :  { %1021 = vrot.lane.b32.xlu1 %v6384_v54, %s5898_s20  ;;  %v5353_v30 = vpack.i.bf16 %v6377_v50, %v6384_v54 }
 0xb05   :  { %v6390_v19 = vpop.permute.xlu0 %1001 }
 0xb06   :  { %1015 = vrot.lane.b32.xlu1 %v6388_v53, %s5898_s20  ;;  %1017 = vrot.lane.b32.xlu0 %v6390_v19, %s5898_s20 }
 0xb0e   :  { %1011 = vrot.lane.b32.xlu0 %v6360_v45, %s5898_s20 }
 0xb40   :  { %v1026_v57 = vpop.permute.xlu2 %1025 }
 0xb41   :  { %5014 = vmatpush.xpose.msk.msrb.mxu2 %vm198_vm8, %v1026_v57 }
 0xb48   :  { %v1020_v35 = vpop.permute.xlu2 %1019 }
 0xb50   :  { %v1014_v0 = vpop.permute.xlu2 %1013 }
 0xb67   :  { %v1024_v59 = vpop.permute.xlu0 %1023 }
 0xb68   :  { %5015 = vmatpush.xpose.msk.msrb.mxu2 %vm198_vm8, %v1024_v59 }
 0xb70   :  { %v1022_v2 = vpop.permute.xlu1 %1021 }
 0xb71   :  { %5016 = vmatpush.xpose.msk.msrb.mxu2 %vm198_vm8, %v1022_v2 }
 0xb75   :  { %5017 = vmatpush.xpose.msk.msrb.mxu2 %vm198_vm8, %v1020_v35 }
 0xb78   :  { %v1018_v60 = vpop.permute.xlu0 %1017  ;;  %v1016_v62 = vpop.permute.xlu1 %1015 }
 0xb79   :  { %5018 = vmatpush.xpose.msk.msrb.mxu2 %vm198_vm8, %v1018_v60 }
 0xb7d   :  { %5019 = vmatpush.xpose.msk.msrb.mxu2 %vm198_vm8, %v1016_v62 }
 0xb80   :  { %v1012_v42 = vpop.permute.xlu0 %1011 }
 0xb81   :  { %5020 = vmatpush.xpose.msk.msrb.mxu2 %vm198_vm8, %v1014_v0 }
 0xb85   :  { %5021 = vmatpush.xpose.msk.msrb.mxu2 %vm198_vm8, %v1012_v42 }
 0xb88   :  { %5022 = vmatmul.msk.f32.vlgmr.msrb.gmra.mxu2 %vm198_vm8, %v6360_v45 }
 0xb90   :  { %5023 = vmatmul.msk.f32.gmra.mxu2 %vm198_vm8, %v6364_v46 }
 0xb98   :  { %5024 = vmatmul.msk.f32.gmra.mxu2 %vm198_vm8, %v6388_v53 }
 0xba0   :  { %5025 = vmatmul.msk.f32.gmra.mxu2 %vm198_vm8, %v6390_v19 }
 0xba8   :  { %5026 = vmatmul.msk.f32.gmra.mxu2 %vm198_vm8, %v6377_v50 }
 0xbb0   :  { %5027 = vmatmul.msk.f32.gmra.mxu2 %vm198_vm8, %v6384_v54 }
 0xbb8   :  { %5028 = vmatmul.msk.f32.gmra.mxu2 %vm198_vm8, %v1008_v51 }
 0xbc0   :  { %5029 = vmatmul.msk.f32.gmra.mxu2 %vm198_vm8, %v1010_v48 }
 0xc0b   :  { %v1076_v1 = vpop.f32.mrf.mxu2 }
 0xc0c   :  { %v1077_v3 = vadd.f32 %v5788_v6, %v1076_v1  ;;  %v5358_v6 = vpack.i.bf16 %v6388_v53, %v6390_v19 }
 0xc0e   :  { %v1100_v4 = vsel %vm272_vm9, %v1077_v3, -inf }
 0xc0f   :  { %1101 = vmax.xlane.f32.xlu1 %v1100_v4 }
 0xc13   :  { %v1079_v5 = vpop.f32.mrf.mxu2 }
 0xc14   :  { %v1080_v7 = vadd.f32 %v5789_v49, %v1079_v5 }
 0xc16   :  { %v1103_v8 = vsel %vm272_vm9, %v1080_v7, -inf }
 0xc17   :  { %1104 = vmax.xlane.f32.xlu2 %v1103_v8 }
 0xc1b   :  { %v1082_v58 = vpop.f32.mrf.mxu2 }
 0xc1c   :  { %v1083_v56 = vadd.f32 %v5790_v9, %v1082_v58 }
 0xc1e   :  { %v1106_v47 = vsel %vm272_vm9, %v1083_v56, -inf }
 0xc1f   :  { %1107 = vmax.xlane.f32.xlu0 %v1106_v47 }
 0xc23   :  { %v1085_v61 = vpop.f32.mrf.mxu2 }
 0xc24   :  { %v1086_v25 = vadd.f32 %v5794_v26, %v1085_v61 }
 0xc26   :  { %v1109_v55 = vsel %vm272_vm9, %v1086_v25, -inf }
 0xc28   :  { %5349 = vrot.lane.b32.xlu1 %v5348_v11, %s5899_s24 }
 0xc2b   :  { %v1088_v12 = vpop.f32.mrf.mxu2 }
 0xc2c   :  { %v1089_v14 = vadd.f32 %v5791_v13, %v1088_v12 }
 0xc2e   :  { %v1112_v15 = vsel %vm272_vm9, %v1089_v14, -inf }
 0xc2f   :  { %1113 = vmax.xlane.f32.xlu2 %v1112_v15 }
 0xc33   :  { %v1091_v24 = vpop.f32.mrf.mxu2 }
 0xc34   :  { %v1092_v17 = vadd.f32 %v5792_v16, %v1091_v24 }
 0xc36   :  { %v1115_v52 = vsel %vm272_vm9, %v1092_v17, -inf }
 0xc37   :  { %1116 = vmax.xlane.f32.xlu0 %v1115_v52 }
 0xc3b   :  { %v1094_v18 = vpop.f32.mrf.mxu2 }
 0xc3c   :  { %v6452_v28 = vadd.f32 %v5795_v27, %v1094_v18 }
 0xc3e   :  { %v1118_v29 = vsel %vm272_vm9, %v6452_v28, -inf }
 0xc43   :  { %v1097_v20 = vpop.f32.mrf.mxu2 }
 0xc44   :  { %v1098_v22 = vadd.f32 %v5793_v21, %v1097_v20 }
 0xc46   :  { %v1121_v23 = vsel %vm272_vm9, %v1098_v22, -inf }
 0xc47   :  { %1122 = vmax.xlane.f32.xlu0 %v1121_v23 }
 0xc52   :  { %1110 = vmax.xlane.f32.xlu1 %v1109_v55 }
 0xc5a   :  { %1119 = vmax.xlane.f32.xlu1 %v1118_v29 }
 0xc5b   :  { %5354 = vrot.lane.b32.xlu0 %v5353_v30, %s5899_s24 }
 0xc73   :  { %5364 = vrot.lane.b32.xlu1 %v5363_v31, %s5899_s24 }
 0xc82   :  { %v1102_v32 = vpop.xlane.xlu1 %1101 }
 0xc83   :  { %v1124_v33 = vsub.f32 %v1077_v3, %v1102_v32 }
 0xc85   :  { %v1132_v34 = vmul.f32 1.442695, %v1124_v33 }
 0xc87   :  { %5550 = vpow2.f32 %v1132_v34 }
 0xc8a   :  { %v1105_v36 = vpop.xlane.xlu2 %1104 }
 0xc8b   :  { %v1125_v37 = vsub.f32 %v1080_v7, %v1105_v36 }
 0xc8d   :  { %v6462_v38 = vpop.eup %5550  ;;  %v1134_v39 = vmul.f32 1.442695, %v1125_v37 }
 0xc8e   :  { %v1148_v41 = vsel %vm272_vm9, %v6462_v38, 0.0 }
 0xc8f   :  { %5552 = vpow2.f32 %v1134_v39  ;;  %1149 = vadd.xlane.f32.xlu2 %v1148_v41 }
 0xc92   :  { %v1108_v43 = vpop.xlane.xlu0 %1107 }
 0xc93   :  { %v1126_v44 = vsub.f32 %v1083_v56, %v1108_v43 }
 0xc95   :  { %v6466_v48 = vpop.eup %5552  ;;  %v1136_v45 = vmul.f32 1.442695, %v1126_v44 }
 0xc96   :  { %v1151_v46 = vsel %vm272_vm9, %v6466_v48, 0.0 }
 0xc97   :  { %5554 = vpow2.f32 %v1136_v45  ;;  %1152 = vadd.xlane.f32.xlu2 %v1151_v46 }
 0xc9a   :  { %v5350_v50 = vpop.permute.xlu1 %5349 }
 0xc9b   :  { %v5351_v51 = vunpack.i.l.bf16 %v5350_v50  ;;  %v5352_v57 = vunpack.i.h.bf16 %v5350_v50 }
 0xc9d   :  { %v6470_v54 = vpop.eup %5554  ;;  %1348 = vmatpush.msrb.mxu3 %v5351_v51 }
 0xc9e   :  { %v1154_v59 = vsel %vm272_vm9, %v6470_v54, 0.0 }
 0xc9f   :  { %1155 = vadd.xlane.f32.xlu0 %v1154_v59  ;;  %1349 = vmatpush.msrb.mxu3 %v5352_v57 }
 0xca2   :  { %v1114_v2 = vpop.xlane.xlu2 %1113 }
 0xca3   :  { %v1128_v35 = vsub.f32 %v1089_v14, %v1114_v2 }
 0xca5   :  { %v1140_v60 = vmul.f32 1.442695, %v1128_v35 }
 0xca7   :  { %5556 = vpow2.f32 %v1140_v60 }
 0xcaa   :  { %v1117_v62 = vpop.xlane.xlu0 %1116 }
 0xcab   :  { %v1129_v0 = vsub.f32 %v1092_v17, %v1117_v62 }
 0xcad   :  { %v6474_v42 = vpop.eup %5556  ;;  %v1142_v1 = vmul.f32 1.442695, %v1129_v0 }
 0xcae   :  { %v1160_v3 = vsel %vm272_vm9, %v6474_v42, 0.0 }
 0xcaf   :  { %5558 = vpow2.f32 %v1142_v1  ;;  %1161 = vadd.xlane.f32.xlu1 %v1160_v3  ;;  %5359 = vrot.lane.b32.xlu2 %v5358_v6, %s5899_s24 }
 0xcb5   :  { %v6481_v4 = vpop.eup %5558 }
 0xcb6   :  { %v1163_v5 = vsel %vm272_vm9, %v6481_v4, 0.0 }
 0xcb7   :  { %1164 = vadd.xlane.f32.xlu0 %v1163_v5 }
 0xcba   :  { %v1123_v49 = vpop.xlane.xlu0 %1122 }
 0xcbb   :  { %v1131_v7 = vsub.f32 %v1098_v22, %v1123_v49 }
 0xcbd   :  { %v1146_v8 = vmul.f32 1.442695, %v1131_v7 }
 0xcbf   :  { %5560 = vpow2.f32 %v1146_v8 }
 0xcc5   :  { %v6485_v58 = vpop.eup %5560  ;;  %v1111_v53 = vpop.xlane.xlu1 %1110 }
 0xcc6   :  { %v1127_v19 = vsub.f32 %v1086_v25, %v1111_v53  ;;  %v1169_v9 = vsel %vm272_vm9, %v6485_v58, 0.0 }
 0xcc7   :  { %1170 = vadd.xlane.f32.xlu0 %v1169_v9 }
 0xcc8   :  { %v1138_v56 = vmul.f32 1.442695, %v1127_v19 }
 0xcca   :  { %5562 = vpow2.f32 %v1138_v56 }
 0xccd   :  { %v5355_v47 = vpop.permute.xlu0 %5354  ;;  %v1120_v61 = vpop.xlane.xlu1 %1119 }
 0xcce   :  { %v1130_v11 = vsub.f32 %v6452_v28, %v1120_v61  ;;  %v5356_v12 = vunpack.i.l.bf16 %v5355_v47  ;;  %v5357_v13 = vunpack.i.h.bf16 %v5355_v47 }
 0xcd0   :  { %1350 = vmatpush.msrb.mxu3 %v5356_v12  ;;  %v1144_v14 = vmul.f32 1.442695, %v1130_v11  ;;  %v6490_v15 = vpop.eup %5562 }
 0xcd1   :  { %v1157_v24 = vsel %vm272_vm9, %v6490_v15, 0.0 }
 0xcd2   :  { %1351 = vmatpush.msrb.mxu3 %v5357_v13  ;;  %5564 = vpow2.f32 %v1144_v14 }
 0xcd8   :  { %1158 = vadd.xlane.f32.xlu2 %v1157_v24  ;;  %v6494_v16 = vpop.eup %5564 }
 0xcd9   :  { %v1166_v17 = vsel %vm272_vm9, %v6494_v16, 0.0 }
 0xce0   :  { %1167 = vadd.xlane.f32.xlu2 %v1166_v17 }
 0xce5   :  { %v5365_v32 = vpop.permute.xlu1 %5364 }
 0xce6   :  { %v5366_v41 = vunpack.i.l.bf16 %v5365_v32  ;;  %v5367_v46 = vunpack.i.h.bf16 %v5365_v32 }
 0xd02   :  { %v1150_v52 = vpop.xlane.xlu2 %1149 }
 0xd03   :  { %5566 = vrcp.f32 %v1150_v52  ;;  %v1183_v55 = vand.u32 2147483648, %v1150_v52  ;;  %vm1177_vm4 = vweird.f32 %v1150_v52  ;;  %v1181_v30 = vand.u32 2147483647, %v1150_v52 }
 0xd05   :  { %v1184_v36 = vor.u32 1.1754944e-38, %v1183_v55  ;;  %vm1182_vm6 = vcmp.eq.f32.partialorder %v1181_v30, 8.507059e+37 }
 0xd09   :  { %v5567_v18 = vpop.eup %5566 }
 0xd0a   :  { %v1173_v20 = vmul.f32 %v5567_v18, %v1150_v52  ;;  %v1153_v21 = vpop.xlane.xlu2 %1152  ;;  %vm1178_vm3 = vweird.f32 %v5567_v18 }
 0xd0b   :  { %5568 = vrcp.f32 %v1153_v21  ;;  %vm1179_vm5 = vmor %vm1177_vm4, %vm1178_vm3  ;;  %v1197_v50 = vand.u32 2147483648, %v1153_v21  ;;  %vm1191_vm10 = vweird.f32 %v1153_v21  ;;  %v1195_v59 = vand.u32 2147483647, %v1153_v21 }
 0xd0c   :  { %v1174_v22 = vsub.f32 1.0, %v1173_v20 }
 0xd0d   :  { %v1198_v60 = vor.u32 1.1754944e-38, %v1197_v50  ;;  %vm1196_vm12 = vcmp.eq.f32.partialorder %v1195_v59, 8.507059e+37 }
 0xd0e   :  { %v1175_v23 = vmul.f32 %v5567_v18, %v1174_v22 }
 0xd10   :  { %v1176_v26 = vadd.f32 %v5567_v18, %v1175_v23 }
 0xd11   :  { %v5569_v25 = vpop.eup %5568 }
 0xd12   :  { %v1187_v27 = vmul.f32 %v5569_v25, %v1153_v21  ;;  %v1156_v28 = vpop.xlane.xlu0 %1155  ;;  %v5360_v29 = vpop.permute.xlu2 %5359  ;;  %v1180_v34 = vsel %vm1179_vm5, %v5567_v18, %v1176_v26  ;;  %vm1192_vm7 = vweird.f32 %v5569_v25 }
 0xd13   :  { %5570 = vrcp.f32 %v1156_v28  ;;  %v5361_v31 = vunpack.i.l.bf16 %v5360_v29  ;;  %v5362_v37 = vunpack.i.h.bf16 %v5360_v29  ;;  %v1185_v43 = vsel %vm1182_vm6, %v1184_v36, %v1180_v34  ;;  %vm1193_vm11 = vmor %vm1191_vm10, %vm1192_vm7 }
 0xd14   :  { %v1188_v33 = vsub.f32 1.0, %v1187_v27  ;;  %v1284_v57 = vmul.f32 %v6462_v38, %v1185_v43  ;;  %v1211_v6 = vand.u32 2147483648, %v1156_v28  ;;  %vm1205_vm14 = vweird.f32 %v1156_v28 }
 0xd15   :  { %1352 = vmatpush.msrb.mxu3 %v5361_v31  ;;  %v1209_v5 = vand.u32 2147483647, %v1156_v28 }
 0xd16   :  { %v1189_v39 = vmul.f32 %v5569_v25, %v1188_v33  ;;  %v1212_v49 = vor.u32 1.1754944e-38, %v1211_v6 }
 0xd17   :  { %1353 = vmatpush.msrb.mxu3 %v5362_v37  ;;  %vm1210_vm3 = vcmp.eq.f32.partialorder %v1209_v5, 8.507059e+37 }
 0xd18   :  { %v1190_v44 = vadd.f32 %v5569_v25, %v1189_v39 }
 0xd19   :  { %v5571_v45 = vpop.eup %5570  ;;  %1354 = vmatpush.msrb.mxu3 %v5366_v41 }
 0xd1a   :  { %v1201_v51 = vmul.f32 %v5571_v45, %v1156_v28  ;;  %v1194_v35 = vsel %vm1193_vm11, %v5569_v25, %v1190_v44  ;;  %vm1206_vm13 = vweird.f32 %v5571_v45 }
 0xd1b   :  { %1355 = vmatpush.msrb.mxu3 %v5367_v46  ;;  %v1199_v0 = vsel %vm1196_vm12, %v1198_v60, %v1194_v35  ;;  %vm1207_vm15 = vmor %vm1205_vm14, %vm1206_vm13 }
 0xd1c   :  { %v1202_v2 = vsub.f32 1.0, %v1201_v51  ;;  %5030 = vmatmul.msk.f32.vlgmr.msrb.gmra.mxu3 %vm272_vm9, %v1284_v57  ;;  %v1285_v3 = vmul.f32 %v6466_v48, %v1199_v0 }
 0xd1e   :  { %v1203_v62 = vmul.f32 %v5571_v45, %v1202_v2 }
 0xd20   :  { %v1204_v1 = vadd.f32 %v5571_v45, %v1203_v62 }
 0xd22   :  { %v1208_v38 = vsel %vm1207_vm15, %v5571_v45, %v1204_v1  ;;  %v1162_v53 = vpop.xlane.xlu1 %1161 }
 0xd23   :  { %v1213_v7 = vsel %vm1210_vm3, %v1212_v49, %v1208_v38  ;;  %5572 = vrcp.f32 %v1162_v53  ;;  %v1239_v28 = vand.u32 2147483648, %v1162_v53  ;;  %vm1233_vm11 = vweird.f32 %v1162_v53 }
 0xd24   :  { %5031 = vmatmul.msk.f32.gmra.mxu3 %vm272_vm9, %v1285_v3  ;;  %v1286_v8 = vmul.f32 %v6470_v54, %v1213_v7  ;;  %v1237_v30 = vand.u32 2147483647, %v1162_v53 }
 0xd25   :  { %v1240_v34 = vor.u32 1.1754944e-38, %v1239_v28  ;;  %v5046_v28 = vld [vmem:[%s8009_s7 + $0x10] sm:$0xff] }
 0xd26   :  { %vm1238_vm13 = vcmp.eq.f32.partialorder %v1237_v30, 8.507059e+37 }
 0xd29   :  { %v5573_v19 = vpop.eup %5572 }
 0xd2a   :  { %v1165_v9 = vpop.xlane.xlu0 %1164  ;;  %v1229_v48 = vmul.f32 %v5573_v19, %v1162_v53  ;;  %vm1234_vm7 = vweird.f32 %v5573_v19 }
 0xd2b   :  { %vm1235_vm12 = vmor %vm1233_vm11, %vm1234_vm7  ;;  %v1253_v43 = vand.u32 2147483648, %v1165_v9  ;;  %vm1247_vm15 = vweird.f32 %v1165_v9  ;;  %v1251_v44 = vand.u32 2147483647, %v1165_v9 }
 0xd2c   :  { %5032 = vmatmul.msk.f32.gmra.mxu3 %vm272_vm9, %v1286_v8  ;;  %v1230_v61 = vsub.f32 1.0, %v1229_v48 }
 0xd2d   :  { %v1254_v51 = vor.u32 1.1754944e-38, %v1253_v43 }
 0xd2e   :  { %v1231_v24 = vmul.f32 %v5573_v19, %v1230_v61 }
 0xd30   :  { %v1232_v25 = vadd.f32 %v5573_v19, %v1231_v24  ;;  %v5801_v24 = vld [vmem:[%s8003_s1 + $0x28] sm:$0xff] }
 0xd32   :  { %v1236_v32 = vsel %vm1235_vm12, %v5573_v19, %v1232_v25 }
 0xd33   :  { %v1241_v36 = vsel %vm1238_vm13, %v1240_v34, %v1236_v32 }
 0xd3a   :  { %v1171_v23 = vpop.xlane.xlu0 %1170 }
 0xd3b   :  { %v1281_v5 = vand.u32 2147483648, %v1171_v23  ;;  %vm1275_vm12 = vweird.f32 %v1171_v23  ;;  %v1279_v49 = vand.u32 2147483647, %v1171_v23 }
 0xd3d   :  { %v1282_v7 = vor.u32 1.1754944e-38, %v1281_v5 }
 0xd4b   :  { %v1159_v56 = vpop.xlane.xlu2 %1158 }
 0xd4c   :  { %5574 = vrcp.f32 %v1159_v56  ;;  %v1225_v54 = vand.u32 2147483648, %v1159_v56  ;;  %v1223_v18 = vand.u32 2147483647, %v1159_v56  ;;  %vm1219_vm5 = vweird.f32 %v1159_v56 }
 0xd4d   :  { %5576 = vrcp.f32 %v1165_v9 }
 0xd4e   :  { %v1226_v21 = vor.u32 1.1754944e-38, %v1225_v54  ;;  %vm1224_vm10 = vcmp.eq.f32.partialorder %v1223_v18, 8.507059e+37  ;;  %v5800_v54 = vld [vmem:[%s8003_s1 + $0x20] sm:$0xff] }
 0xd52   :  { %v5575_v47 = vpop.eup %5574 }
 0xd53   :  { %v1215_v11 = vmul.f32 %v5575_v47, %v1159_v56  ;;  %v6504_v12 = vpop.xlane.xlu2 %1167  ;;  %v5577_v13 = vpop.eup %5576  ;;  %vm1220_vm4 = vweird.f32 %v5575_v47 }
 0xd54   :  { %5578 = vrcp.f32 %v6504_v12  ;;  %v1243_v17 = vmul.f32 %v5577_v13, %v1165_v9  ;;  %vm1221_vm6 = vmor %vm1219_vm5, %vm1220_vm4  ;;  %vm1248_vm14 = vweird.f32 %v5577_v13  ;;  %vm1252_vm4 = vcmp.eq.f32.partialorder %v1251_v44, 8.507059e+37  ;;  %v5459_v44 = vld [vmem:[%s8010_s8 + $0x1] ss:$0 sm:$0xff] }
 0xd55   :  { %v1216_v14 = vsub.f32 1.0, %v1215_v11  ;;  %5580 = vrcp.f32 %v1171_v23  ;;  %vm1249_vm3 = vmor %vm1247_vm15, %vm1248_vm14  ;;  %v1267_v35 = vand.u32 2147483648, %v6504_v12  ;;  %vm1280_vm14 = vcmp.eq.f32.partialorder %v1279_v49, 8.507059e+37  ;;  %v5053_v49 = vld [vmem:[%s8013_s11 + $0x10] sm:$0xff] }
 0xd56   :  { %v1244_v22 = vsub.f32 1.0, %v1243_v17  ;;  %v5802_v17 = vld [vmem:[%s8003_s1 + $0x30] sm:$0xff] }
 0xd57   :  { %v1217_v52 = vmul.f32 %v5575_v47, %v1216_v14  ;;  %v1268_v1 = vor.u32 1.1754944e-38, %v1267_v35  ;;  %v5799_v14 = vld [vmem:[%s8003_s1 + $0x18] sm:$0xff] }
 0xd58   :  { %v1245_v33 = vmul.f32 %v5577_v13, %v1244_v22 }
 0xd59   :  { %v1218_v20 = vadd.f32 %v5575_v47, %v1217_v52  ;;  %v5803_v52 = vld [vmem:[%s8003_s1 + $0x38] sm:$0xff] }
 0xd5a   :  { %v5579_v55 = vpop.eup %5578  ;;  %v1246_v39 = vadd.f32 %v5577_v13, %v1245_v33 }
 0xd5b   :  { %v1222_v26 = vsel %vm1221_vm6, %v5575_v47, %v1218_v20  ;;  %v1257_v31 = vmul.f32 %v5579_v55, %v6504_v12  ;;  %v5581_v41 = vpop.eup %5580  ;;  %vm1262_vm5 = vweird.f32 %v5579_v55  ;;  %vm1261_vm6 = vweird.f32 %v6504_v12 }
 0xd5c   :  { %v1227_v27 = vsel %vm1224_vm10, %v1226_v21, %v1222_v26  ;;  %v1271_v45 = vmul.f32 %v5581_v41, %v1171_v23  ;;  %v1250_v46 = vsel %vm1249_vm3, %v5577_v13, %v1246_v39  ;;  %vm1263_vm7 = vmor %vm1261_vm6, %vm1262_vm5  ;;  %vm1276_vm11 = vweird.f32 %v5581_v41  ;;  %v5798_v13 = vld [vmem:[%s8003_s1 + $0x10] sm:$0xff] }
 0xd5d   :  { %v1287_v29 = vmul.f32 %v6490_v15, %v1227_v27  ;;  %v1258_v37 = vsub.f32 1.0, %v1257_v31  ;;  %v1288_v15 = vmul.f32 %v6474_v42, %v1241_v36  ;;  %v1255_v57 = vsel %vm1252_vm4, %v1254_v51, %v1250_v46  ;;  %vm1277_vm13 = vmor %vm1275_vm12, %vm1276_vm11  ;;  %v5047_v27 = vld [vmem:[%s8009_s7 + $0x18] sm:$0xff] }
 0xd5e   :  { %v1272_v59 = vsub.f32 1.0, %v1271_v45  ;;  %v1289_v60 = vmul.f32 %v6481_v4, %v1255_v57  ;;  %v1265_v42 = vand.u32 2147483647, %v6504_v12  ;;  %v5797_v12 = vld [vmem:[%s8003_s1 + $0x8] sm:$0xff]  ;;  %1475 = vmatpush.msrb.mxu1 %v5047_v27  ;;  %v5462_v27 = vld [vmem:[%s8014_s12 + $0x1] ss:$0 sm:$0xff] }
 0xd5f   :  { %5033 = vmatmul.msk.f32.gmra.mxu3 %vm272_vm9, %v1287_v29  ;;  %v1259_v50 = vmul.f32 %v5579_v55, %v1258_v37 }
 0xd60   :  { %v1273_v0 = vmul.f32 %v5581_v41, %v1272_v59  ;;  %vm1266_vm10 = vcmp.eq.f32.partialorder %v1265_v42, 8.507059e+37  ;;  %1476 = vmatpush.msrb.mxu1 %v5046_v28 }
 0xd61   :  { %v1260_v2 = vadd.f32 %v5579_v55, %v1259_v50 }
 0xd62   :  { %v1274_v3 = vadd.f32 %v5581_v41, %v1273_v0 }
 0xd63   :  { %v1264_v62 = vsel %vm1263_vm7, %v5579_v55, %v1260_v2 }
 0xd64   :  { %v1269_v6 = vsel %vm1266_vm10, %v1268_v1, %v1264_v62  ;;  %v1278_v4 = vsel %vm1277_vm13, %v5581_v41, %v1274_v3 }
 0xd65   :  { %v1290_v38 = vmul.f32 %v6494_v16, %v1269_v6  ;;  %v1283_v8 = vsel %vm1280_vm14, %v1282_v7, %v1278_v4 }
 0xd66   :  { %v1291_v53 = vmul.f32 %v6485_v58, %v1283_v8  ;;  %v5796_v58 = vld [vmem:[%s8003_s1] sm:$0xff] }
 0xd67   :  { %5034 = vmatmul.msk.f32.gmra.mxu3 %vm272_vm9, %v1288_v15 }
 0xd6f   :  { %5035 = vmatmul.msk.f32.gmra.mxu3 %vm272_vm9, %v1289_v60 }
 0xd77   :  { %5036 = vmatmul.msk.f32.gmra.mxu3 %vm272_vm9, %v1290_v38  ;;  %v5054_v38 = vld [vmem:[%s8013_s11 + $0x18] sm:$0xff] }
 0xd78   :  { %1579 = vmatpush.msra.mxu1 %v5054_v38 }
 0xd7a   :  { %1580 = vmatpush.msra.mxu1 %v5053_v49 }
 0xd7f   :  { %5037 = vmatmul.msk.f32.gmra.mxu3 %vm272_vm9, %v1291_v53 }
 0xd9f   :  { %v1357_v19 = vpop.f32.mrf.mxu3 }
 0xda7   :  { %v1360_v9 = vpop.f32.mrf.mxu3 }
 0xdaf   :  { %v1363_v56 = vpop.f32.mrf.mxu3 }
 0xde2   :  { %v1366_v48 = vpop.f32.mrf.mxu3 }
 0xdea   :  { %v1369_v47 = vpop.f32.mrf.mxu3 }
 0xdf2   :  { %v1372_v61 = vpop.f32.mrf.mxu3 }
 0xdfa   :  { %v1375_v16 = vpop.f32.mrf.mxu3 }
 0xe02   :  { %v1378_v11 = vpop.f32.mrf.mxu3 }
 0xe03   :  { %1389 = vmatpush.msrb.mxu0 %v1378_v11 }
 0xe05   :  { %1390 = vmatpush.msrb.mxu0 %v1375_v16 }
 0xe07   :  { %1391 = vmatpush.msrb.mxu0 %v1372_v61 }
 0xe09   :  { %1392 = vmatpush.msrb.mxu0 %v1369_v47 }
 0xe0b   :  { %1393 = vmatpush.msrb.mxu0 %v1366_v48 }
 0xe0d   :  { %1394 = vmatpush.msrb.mxu0 %v1363_v56 }
 0xe0f   :  { %1395 = vmatpush.msrb.mxu0 %v1360_v9 }
 0xe11   :  { %1396 = vmatpush.msrb.mxu0 %v1357_v19 }
 0xe12   :  { %5038 = vmatmul.msk.f32.vlgmr.msrb.gmra.mxu0 %vm272_vm9, %v5796_v58 }
 0xe1a   :  { %5039 = vmatmul.msk.f32.gmra.mxu0 %vm272_vm9, %v5797_v12  ;;  %v5460_v12 = vld [vmem:[%s8011_s9 + $0x1] ss:$0 sm:$0xff] }
 0xe22   :  { %5040 = vmatmul.msk.f32.gmra.mxu0 %vm272_vm9, %v5798_v13 }
 0xe2a   :  { %5041 = vmatmul.msk.f32.gmra.mxu0 %vm272_vm9, %v5799_v14 }
 0xe32   :  { %5042 = vmatmul.msk.f32.gmra.mxu0 %vm272_vm9, %v5800_v54 }
 0xe3a   :  { %5043 = vmatmul.msk.f32.gmra.mxu0 %vm272_vm9, %v5801_v24 }
 0xe42   :  { %5044 = vmatmul.msk.f32.gmra.mxu0 %vm272_vm9, %v5802_v17  ;;  %v5461_v17 = vld [vmem:[%s8012_s10 + $0x1] ss:$0 sm:$0xff] }
 0xe4a   :  { %5045 = vmatmul.msk.f32.gmra.mxu0 %vm272_vm9, %v5803_v52 }
 0xe8f   :  { %v1398_v18 = vpop.f32.mrf.mxu0 }
 0xe97   :  { %v1401_v20 = vpop.f32.mrf.mxu0 }
 0xe9f   :  { %v1404_v21 = vpop.f32.mrf.mxu0 }
 0xea0   :  { %1424 = vrot.lane.b32.xlu1 %v1404_v21, %s5900_s22 }
 0xea7   :  { %v1407_v22 = vpop.f32.mrf.mxu0 }
 0xea8   :  { %1426 = vrot.lane.b32.xlu1 %v1407_v22, %s5900_s22 }
 0xeaf   :  { %v1410_v23 = vpop.f32.mrf.mxu0 }
 0xeb0   :  { %1432 = vrot.lane.b32.xlu2 %v1410_v23, %s5901_s23 }
 0xeb7   :  { %v1413_v26 = vpop.f32.mrf.mxu0 }
 0xebf   :  { %v1416_v25 = vpop.f32.mrf.mxu0 }
 0xec0   :  { %1440 = vrot.lane.b32.xlu0 %v1416_v25, %s5902_s25 }
 0xec7   :  { %v1419_v55 = vpop.f32.mrf.mxu0 }
 0xec8   :  { %1434 = vrot.lane.b32.xlu0 %v1413_v26, %s5901_s23  ;;  %1442 = vrot.lane.b32.xlu2 %v1419_v55, %s5902_s25 }
 0xf0a   :  { %v1433_v31 = vpop.permute.xlu2 %1432 }
 0xf12   :  { %v1425_v29 = vpop.permute.xlu1 %1424 }
 0xf13   :  { %v1446_v30 = vsel %vm198_vm8, %v1398_v18, %v1425_v29 }
 0xf14   :  { %v1448_v32 = vsel %vm645_vm1, %v1446_v30, %v1433_v31 }
 0xf1a   :  { %v1427_v36 = vpop.permute.xlu1 %1426 }
 0xf1b   :  { %v1447_v39 = vsel %vm198_vm8, %v1401_v20, %v1427_v36 }
 0xf22   :  { %v1443_v37 = vpop.permute.xlu2 %1442 }
 0xf32   :  { %v1441_v33 = vpop.permute.xlu0 %1440 }
 0xf33   :  { %v1450_v34 = vsel %vm648_vm2, %v1448_v32, %v1441_v33 }
 0xf34   :  { %5048 = vmatmul.msk.f32.vlgmr.msrb.gmra.mxu1 %vm71_vm0, %v1450_v34 }
 0xf3a   :  { %v1435_v41 = vpop.permute.xlu0 %1434 }
 0xf3b   :  { %v1449_v43 = vsel %vm645_vm1, %v1447_v39, %v1435_v41  ;;  %v5064_v41 = vld [vmem:[%s8015_s13 + $0x70] sm:$0xff] }
 0xf3c   :  { %v1451_v15 = vsel %vm648_vm2, %v1449_v43, %v1443_v37  ;;  %v5065_v37 = vld [vmem:[%s8015_s13 + $0x78] sm:$0xff] }
 0xf3d   :  { %5049 = vmatmul.msk.f32.gmra.mxu1 %vm71_vm0, %v1451_v15  ;;  %v5063_v15 = vld [vmem:[%s8015_s13 + $0x68] sm:$0xff] }
 0xf3e   :  { %1694 = vmatpush.msrb.mxu1 %v5065_v37 }
 0xf40   :  { %1695 = vmatpush.msrb.mxu1 %v5064_v41 }
 0xf42   :  { %1696 = vmatpush.msrb.mxu1 %v5063_v15 }
 0xfb1   :  { %v1478_v45 = vpop.f32.mrf.mxu1 }
 0xfb2   :  { %v1484_v46 = vadd.f32 %v1478_v45, %v6326_v63 }
 0xfb4   :  { %v6577_v50 = vadd.f32 %v5459_v44, %v1484_v46  ;;  %v5062_v46 = vld [vmem:[%s8015_s13 + $0x60] sm:$0xff] }
 0xfb5   :  { %1697 = vmatpush.msrb.mxu1 %v5062_v46 }
 0xfb6   :  { %v1497_v51 = vsel %vm71_vm0, %v6577_v50, 0.0 }
 0xfb7   :  { %1498 = vadd.xlane.f32.xlu1 %v1497_v51 }
 0xfba   :  { %v1481_v57 = vpop.f32.mrf.mxu1 }
 0xfbb   :  { %v1485_v59 = vadd.f32 %v1481_v57, %v6331_v40 }
 0xfbd   :  { %v6582_v2 = vadd.f32 %v5459_v44, %v1485_v59  ;;  %v5061_v59 = vld [vmem:[%s8015_s13 + $0x58] sm:$0xff] }
 0xfbe   :  { %1698 = vmatpush.msrb.mxu1 %v5061_v59 }
 0xfbf   :  { %v1500_v35 = vsel %vm71_vm0, %v6582_v2, 0.0 }
 0xfc0   :  { %1501 = vadd.xlane.f32.xlu0 %v1500_v35 }
0x102a   :  { %v1499_v60 = vpop.xlane.xlu1 %1498 }
0x102b   :  { %v1503_v42 = vmul.f32 %v1499_v60, %v5993_v10 }
0x102d   :  { %v1505_v63 = vsub.f32 %v6577_v50, %v1503_v42  ;;  %v5060_v42 = vld [vmem:[%s8015_s13 + $0x50] sm:$0xff] }
0x102e   :  { %1699 = vmatpush.msrb.mxu1 %v5060_v42 }
0x102f   :  { %v1507_v62 = vmul.f32 %v1505_v63, %v1505_v63 }
0x1031   :  { %v1509_v0 = vsel %vm71_vm0, %v1507_v62, 0.0 }
0x1032   :  { %1510 = vadd.xlane.f32.xlu2 %v1509_v0  ;;  %v5059_v0 = vld [vmem:[%s8015_s13 + $0x48] sm:$0xff] }
0x1033   :  { %v1502_v1 = vpop.xlane.xlu0 %1501  ;;  %1700 = vmatpush.msrb.mxu1 %v5059_v0 }
0x1034   :  { %v1504_v6 = vmul.f32 %v1502_v1, %v5993_v10  ;;  %v5058_v1 = vld [vmem:[%s8015_s13 + $0x40] sm:$0xff] }
0x1035   :  { %1701 = vmatpush.msrb.mxu1 %v5058_v1 }
0x1036   :  { %v1506_v40 = vsub.f32 %v6582_v2, %v1504_v6 }
0x1038   :  { %v1508_v3 = vmul.f32 %v1506_v40, %v1506_v40 }
0x103a   :  { %v1512_v5 = vsel %vm71_vm0, %v1508_v3, 0.0 }
0x103b   :  { %1513 = vadd.xlane.f32.xlu1 %v1512_v5 }
0x10a5   :  { %v1511_v4 = vpop.xlane.xlu2 %1510 }
0x10a6   :  { %v1515_v7 = vmul.f32 %v1511_v4, %v5993_v10 }
0x10a8   :  { %v1517_v8 = vadd.f32 1e-06, %v1515_v7 }
0x10aa   :  { %5582 = vrsqrt.f32 %v1517_v8  ;;  %vm1525_vm3 = vweird.f32 %v1517_v8 }
0x10ae   :  { %v1514_v53 = vpop.xlane.xlu1 %1513 }
0x10af   :  { %v1516_v19 = vmul.f32 %v1514_v53, %v5993_v10 }
0x10b0   :  { %v5583_v9 = vpop.eup %5582 }
0x10b1   :  { %v1520_v56 = vmul.f32 %v5583_v9, %v1517_v8  ;;  %v1518_v48 = vadd.f32 1e-06, %v1516_v19  ;;  %vm1526_vm15 = vweird.f32 %v5583_v9 }
0x10b2   :  { %vm1527_vm4 = vmor %vm1525_vm3, %vm1526_vm15 }
0x10b3   :  { %v1521_v47 = vmul.f32 %v5583_v9, %v1520_v56  ;;  %5584 = vrsqrt.f32 %v1518_v48  ;;  %vm1535_vm6 = vweird.f32 %v1518_v48 }
0x10b5   :  { %v1522_v61 = vmul.f32 0.5, %v1521_v47 }
0x10b7   :  { %v1523_v16 = vsub.f32 1.5, %v1522_v61 }
0x10b9   :  { %v5585_v11 = vpop.eup %5584  ;;  %v1524_v58 = vmul.f32 %v5583_v9, %v1523_v16 }
0x10ba   :  { %v1530_v13 = vmul.f32 %v5585_v11, %v1518_v48  ;;  %vm1536_vm5 = vweird.f32 %v5585_v11 }
0x10bb   :  { %v1528_v14 = vsel %vm1527_vm4, %v5583_v9, %v1524_v58  ;;  %vm1537_vm7 = vmor %vm1535_vm6, %vm1536_vm5 }
0x10bc   :  { %v1539_v54 = vmul.f32 %v1528_v14, %v1505_v63  ;;  %v1531_v24 = vmul.f32 %v5585_v11, %v1530_v13 }
0x10be   :  { %v1544_v52 = vmul.f32 %v5460_v12, %v1539_v54  ;;  %v1532_v18 = vmul.f32 0.5, %v1531_v24 }
0x10c0   :  { %v1533_v20 = vsub.f32 1.5, %v1532_v18  ;;  %v1549_v21 = vadd.f32 %v5461_v17, %v1544_v52 }
0x10c2   :  { %v1534_v22 = vmul.f32 %v5585_v11, %v1533_v20  ;;  %5056 = vmatmul.msk.f32.vlgmr.msra.gmra.mxu1 %vm71_vm0, %v1549_v21 }
0x10c4   :  { %v1538_v23 = vsel %vm1537_vm7, %v5585_v11, %v1534_v22 }
0x10c5   :  { %v1540_v26 = vmul.f32 %v1538_v23, %v1506_v40 }
0x10c7   :  { %v1545_v25 = vmul.f32 %v5460_v12, %v1540_v26 }
0x10c9   :  { %v1550_v55 = vadd.f32 %v5461_v17, %v1545_v25 }
0x10cb   :  { %5057 = vmatmul.msk.f32.gmra.mxu1 %vm71_vm0, %v1550_v55 }
0x113f   :  { %v1582_v28 = vpop.f32.mrf.mxu1 }
0x1140   :  { %v6611_v29 = vadd.f32 %v5462_v27, %v1582_v28 }
0x1142   :  { %v6614_v30 = vmul.f32 0.70710677, %v6611_v29  ;;  %v1588_v15 = vmul.f32 0.5, %v6611_v29  ;;  %v5463_v29 = vld [vmem:[%s8016_s14 + $0x1] ss:$0 sm:$0xff] }
0x1144   :  { %v1592_v31 = vand.u32 2147483647, %v6614_v30  ;;  %vm1656_vm5 = vcmp.ge.f32.partialorder %v6614_v30, 0.0 }
0x1146   :  { %v1594_v32 = vmul.f32 0.3275911, %v1592_v31  ;;  %v1644_v49 = vsub.f32 0.0, %v1592_v31 }
0x1148   :  { %v1596_v33 = vadd.f32 1.0, %v1594_v32  ;;  %v1585_v34 = vpop.f32.mrf.mxu1  ;;  %v1646_v9 = vmul.f32 %v1644_v49, %v1592_v31 }
0x1149   :  { %v6617_v36 = vadd.f32 %v5462_v27, %v1585_v34 }
0x114a   :  { %5586 = vrcp.f32 %v1596_v33  ;;  %v1609_v60 = vand.u32 2147483648, %v1596_v33  ;;  %v1607_v62 = vand.u32 2147483647, %v1596_v33  ;;  %vm1603_vm11 = vweird.f32 %v1596_v33 }
0x114b   :  { %v6623_v39 = vmul.f32 0.70710677, %v6617_v36  ;;  %v1648_v58 = vmul.f32 1.442695, %v1646_v9  ;;  %v5071_v9 = vld [vmem:[%s8007_s5 + $0x20] sm:$0xff] }
0x114c   :  { %v1610_v40 = vor.u32 1.1754944e-38, %v1609_v60  ;;  %vm1608_vm13 = vcmp.eq.f32.partialorder %v1607_v62, 8.507059e+37  ;;  %v1589_v60 = vmul.f32 0.5, %v6617_v36 }
0x114d   :  { %v1593_v43 = vand.u32 2147483647, %v6623_v39  ;;  %vm1657_vm6 = vcmp.ge.f32.partialorder %v6623_v39, 0.0 }
0x114f   :  { %v1595_v44 = vmul.f32 0.3275911, %v1593_v43  ;;  %v1645_v14 = vsub.f32 0.0, %v1593_v43 }
0x1150   :  { %v5587_v45 = vpop.eup %5586 }
0x1151   :  { %v1599_v51 = vmul.f32 %v5587_v45, %v1596_v33  ;;  %v1597_v57 = vadd.f32 1.0, %v1595_v44  ;;  %vm1604_vm10 = vweird.f32 %v5587_v45  ;;  %v1647_v20 = vmul.f32 %v1645_v14, %v1593_v43 }
0x1152   :  { %vm1605_vm12 = vmor %vm1603_vm11, %vm1604_vm10 }
0x1153   :  { %v1600_v35 = vsub.f32 1.0, %v1599_v51  ;;  %5588 = vrcp.f32 %v1597_v57  ;;  %v1623_v19 = vand.u32 2147483648, %v1597_v57  ;;  %v1621_v48 = vand.u32 2147483647, %v1597_v57 }
0x1154   :  { %vm1617_vm15 = vweird.f32 %v1597_v57  ;;  %5590 = vpow2.f32 %v1648_v58  ;;  %v1650_v25 = vmul.f32 1.442695, %v1647_v20 }
0x1155   :  { %v1601_v63 = vmul.f32 %v5587_v45, %v1600_v35  ;;  %v1624_v11 = vor.u32 1.1754944e-38, %v1623_v19  ;;  %vm1622_vm4 = vcmp.eq.f32.partialorder %v1621_v48, 8.507059e+37  ;;  %v5072_v19 = vld [vmem:[%s8007_s5 + $0x28] sm:$0xff] }
0x1156   :  { %5592 = vpow2.f32 %v1650_v25  ;;  %1797 = vmatpush.msra.mxu1 %v5072_v19 }
0x1157   :  { %v1602_v6 = vadd.f32 %v5587_v45, %v1601_v63 }
0x1158   :  { %1798 = vmatpush.msra.mxu1 %v5071_v9  ;;  %v5806_v9 = vld [vmem:[%s8004_s2 + $0x10] sm:$0xff] }
0x1159   :  { %v5589_v3 = vpop.eup %5588  ;;  %v1606_v5 = vsel %vm1605_vm12, %v5587_v45, %v1602_v6 }
0x115a   :  { %v1611_v38 = vsel %vm1608_vm13, %v1610_v40, %v1606_v5  ;;  %v1613_v4 = vmul.f32 %v5589_v3, %v1597_v57  ;;  %vm1618_vm14 = vweird.f32 %v5589_v3  ;;  %v5591_v55 = vpop.eup %5590 }
0x115b   :  { %v1626_v7 = vmul.f32 1.0614054, %v1611_v38  ;;  %vm1619_vm3 = vmor %vm1617_vm15, %vm1618_vm14 }
0x115c   :  { %v1614_v8 = vsub.f32 1.0, %v1613_v4  ;;  %v5593_v45 = vpop.eup %5592 }
0x115d   :  { %v1628_v53 = vadd.f32 -1.4531521, %v1626_v7 }
0x115e   :  { %v1615_v56 = vmul.f32 %v5589_v3, %v1614_v8 }
0x115f   :  { %v1630_v47 = vmul.f32 %v1628_v53, %v1611_v38 }
0x1160   :  { %v1616_v61 = vadd.f32 %v5589_v3, %v1615_v56 }
0x1161   :  { %v1632_v16 = vadd.f32 1.4214138, %v1630_v47 }
0x1162   :  { %v1620_v12 = vsel %vm1619_vm3, %v5589_v3, %v1616_v61 }
0x1163   :  { %v1634_v13 = vmul.f32 %v1632_v16, %v1611_v38  ;;  %v1625_v54 = vsel %vm1622_vm4, %v1624_v11, %v1620_v12 }
0x1164   :  { %v1627_v24 = vmul.f32 1.0614054, %v1625_v54 }
0x1165   :  { %v1636_v17 = vadd.f32 -0.28449672, %v1634_v13 }
0x1166   :  { %v1629_v52 = vadd.f32 -1.4531521, %v1627_v24 }
0x1167   :  { %v1638_v18 = vmul.f32 %v1636_v17, %v1611_v38 }
0x1168   :  { %v1631_v21 = vmul.f32 %v1629_v52, %v1625_v54  ;;  %v5464_v52 = vld [vmem:[%s8005_s3 + $0x2] ss:$0 sm:$0xff] }
0x1169   :  { %v1640_v22 = vadd.f32 0.2548296, %v1638_v18 }
0x116a   :  { %v1633_v23 = vadd.f32 1.4214138, %v1631_v21 }
0x116b   :  { %v1642_v26 = vmul.f32 %v1640_v22, %v1611_v38 }
0x116c   :  { %v1635_v27 = vmul.f32 %v1633_v23, %v1625_v54  ;;  %v5465_v23 = vld [vmem:[%s8006_s4 + $0x2] ss:$0 sm:$0xff] }
0x116d   :  { %v1652_v28 = vmul.f32 %v5591_v55, %v1642_v26 }
0x116e   :  { %v1637_v31 = vadd.f32 -0.28449672, %v1635_v27 }
0x116f   :  { %v1654_v32 = vsub.f32 1.0, %v1652_v28 }
0x1170   :  { %v1639_v33 = vmul.f32 %v1637_v31, %v1625_v54 }
0x1171   :  { %v1658_v34 = vsub.f32 0.0, %v1654_v32 }
0x1172   :  { %v1641_v37 = vadd.f32 0.2548296, %v1639_v33 }
0x1173   :  { %v1660_v41 = vsel %vm1656_vm5, %v1654_v32, %v1658_v34 }
0x1174   :  { %v1662_v43 = vadd.f32 1.0, %v1660_v41  ;;  %v1643_v44 = vmul.f32 %v1641_v37, %v1625_v54  ;;  %v5466_v37 = vld [vmem:[%s8008_s6 + $0x2] ss:$0 sm:$0xff] }
0x1176   :  { %v1664_v46 = vmul.f32 %v1662_v43, %v1588_v15  ;;  %v1653_v51 = vmul.f32 %v5593_v45, %v1643_v44 }
0x1178   :  { %5067 = vmatmul.msk.f32.vlgmr.msrb.gmra.mxu1 %vm272_vm9, %v1664_v46  ;;  %v1655_v57 = vsub.f32 1.0, %v1653_v51 }
0x117a   :  { %v1659_v59 = vsub.f32 0.0, %v1655_v57 }
0x117c   :  { %v1661_v35 = vsel %vm1657_vm6, %v1655_v57, %v1659_v59 }
0x117d   :  { %v1663_v42 = vadd.f32 1.0, %v1661_v35 }
0x117f   :  { %v1665_v30 = vmul.f32 %v1663_v42, %v1589_v60 }
0x1181   :  { %5068 = vmatmul.msk.f32.gmra.mxu1 %vm272_vm9, %v1665_v30 }
0x11f5   :  { %v1703_v63 = vpop.f32.mrf.mxu1 }
0x11f6   :  { %v1704_v62 = vadd.f32 %v5463_v29, %v1703_v63 }
0x11f8   :  { %v6657_v0 = vadd.f32 %v1704_v62, %v6577_v50 }
0x11fa   :  { %v1715_v1 = vsel %vm71_vm0, %v6657_v0, 0.0 }
0x11fb   :  { %1716 = vadd.xlane.f32.xlu0 %v1715_v1 }
0x11fe   :  { %v1706_v39 = vpop.f32.mrf.mxu1 }
0x11ff   :  { %v1707_v6 = vadd.f32 %v5463_v29, %v1706_v39 }
0x1201   :  { %v6662_v36 = vadd.f32 %v1707_v6, %v6582_v2 }
0x1203   :  { %v1718_v40 = vsel %vm71_vm0, %v6662_v36, 0.0 }
0x1204   :  { %1719 = vadd.xlane.f32.xlu2 %v1718_v40 }
0x126e   :  { %v1717_v3 = vpop.xlane.xlu0 %1716 }
0x126f   :  { %v1721_v5 = vmul.f32 %v1717_v3, %v5993_v10 }
0x1271   :  { %v1723_v38 = vsub.f32 %v6657_v0, %v1721_v5 }
0x1273   :  { %v1725_v50 = vmul.f32 %v1723_v38, %v1723_v38 }
0x1275   :  { %v1727_v49 = vsel %vm71_vm0, %v1725_v50, 0.0  ;;  %v5804_v50 = vld [vmem:[%s8004_s2] sm:$0xff] }
0x1276   :  { %1728 = vadd.xlane.f32.xlu1 %v1727_v49 }
0x1277   :  { %v1720_v4 = vpop.xlane.xlu2 %1719 }
0x1278   :  { %v1722_v7 = vmul.f32 %v1720_v4, %v5993_v10 }
0x127a   :  { %v1724_v8 = vsub.f32 %v6662_v36, %v1722_v7 }
0x127c   :  { %v1726_v2 = vmul.f32 %v1724_v8, %v1724_v8 }
0x127e   :  { %v1730_v53 = vsel %vm71_vm0, %v1726_v2, 0.0 }
0x127f   :  { %1731 = vadd.xlane.f32.xlu0 %v1730_v53 }
0x12e9   :  { %v1729_v56 = vpop.xlane.xlu1 %1728 }
0x12ea   :  { %v1733_v48 = vmul.f32 %v1729_v56, %v5993_v10 }
0x12ec   :  { %v1735_v47 = vadd.f32 1e-06, %v1733_v48 }
0x12ee   :  { %5594 = vrsqrt.f32 %v1735_v47  ;;  %vm1743_vm10 = vweird.f32 %v1735_v47 }
0x12f2   :  { %v1732_v61 = vpop.xlane.xlu0 %1731 }
0x12f3   :  { %v1734_v16 = vmul.f32 %v1732_v61, %v5993_v10  ;;  %v5807_v61 = vld [vmem:[%s8004_s2 + $0x18] sm:$0xff] }
0x12f4   :  { %v5595_v11 = vpop.eup %5594 }
0x12f5   :  { %v1738_v58 = vmul.f32 %v5595_v11, %v1735_v47  ;;  %v1736_v12 = vadd.f32 1e-06, %v1734_v16  ;;  %vm1744_vm7 = vweird.f32 %v5595_v11 }
0x12f6   :  { %vm1745_vm11 = vmor %vm1743_vm10, %vm1744_vm7 }
0x12f7   :  { %v1739_v13 = vmul.f32 %v5595_v11, %v1738_v58  ;;  %5596 = vrsqrt.f32 %v1736_v12  ;;  %vm1753_vm13 = vweird.f32 %v1736_v12 }
0x12f9   :  { %v1740_v14 = vmul.f32 0.5, %v1739_v13 }
0x12fb   :  { %v1741_v54 = vsub.f32 1.5, %v1740_v14 }
0x12fd   :  { %v5597_v24 = vpop.eup %5596  ;;  %v1742_v17 = vmul.f32 %v5595_v11, %v1741_v54 }
0x12fe   :  { %v1748_v18 = vmul.f32 %v5597_v24, %v1736_v12  ;;  %vm1754_vm12 = vweird.f32 %v5597_v24  ;;  %v5808_v12 = vld [vmem:[%s8004_s2 + $0x20] sm:$0xff] }
0x12ff   :  { %v1746_v20 = vsel %vm1745_vm11, %v5595_v11, %v1742_v17  ;;  %vm1755_vm14 = vmor %vm1753_vm13, %vm1754_vm12 }
0x1300   :  { %v1757_v21 = vmul.f32 %v1746_v20, %v1723_v38  ;;  %v1749_v22 = vmul.f32 %v5597_v24, %v1748_v18  ;;  %v5810_v20 = vld [vmem:[%s8004_s2 + $0x30] sm:$0xff] }
0x1302   :  { %v1762_v26 = vmul.f32 %v5464_v52, %v1757_v21  ;;  %v1750_v25 = vmul.f32 0.5, %v1749_v22 }
0x1304   :  { %v1751_v55 = vsub.f32 1.5, %v1750_v25  ;;  %v1767_v27 = vadd.f32 %v5465_v23, %v1762_v26  ;;  %v5811_v26 = vld [vmem:[%s8004_s2 + $0x38] sm:$0xff] }
0x1306   :  { %v1752_v28 = vmul.f32 %v5597_v24, %v1751_v55  ;;  %5074 = vmatmul.msk.f32.vlgmr.msra.gmra.mxu1 %vm71_vm0, %v1767_v27 }
0x1308   :  { %v1756_v31 = vsel %vm1755_vm14, %v5597_v24, %v1752_v28  ;;  %v5809_v24 = vld [vmem:[%s8004_s2 + $0x28] sm:$0xff] }
0x1309   :  { %v1758_v32 = vmul.f32 %v1756_v31, %v1724_v8  ;;  %v5805_v8 = vld [vmem:[%s8004_s2 + $0x8] sm:$0xff] }
0x130b   :  { %v1763_v33 = vmul.f32 %v5464_v52, %v1758_v32 }
0x130d   :  { %v1768_v34 = vadd.f32 %v5465_v23, %v1763_v33 }
0x130f   :  { %5075 = vmatmul.msk.f32.gmra.mxu1 %vm71_vm0, %v1768_v34 }
0x1383   :  { %v1800_v41 = vpop.f32.mrf.mxu1 }
0x1384   :  { %v6691_v15 = vadd.f32 %v5466_v37, %v1800_v41 }
0x1386   :  { %1816 = vrot.lane.b32.xlu1 %v6691_v15, %s5896_s18 }
0x138c   :  { %v1803_v43 = vpop.f32.mrf.mxu1 }
0x138d   :  { %v6695_v44 = vadd.f32 %v5466_v37, %v1803_v43 }
0x138e   :  { %1808 = vrot.lane.b32.xlu1 %v6691_v15, %s5897_s19 }
0x138f   :  { %1814 = vrot.lane.b32.xlu0 %v6695_v44, %s5895_s17  ;;  %1818 = vrot.lane.b32.xlu2 %v6695_v44, %s5896_s18  ;;  %v5383_v27 = vpack.i.bf16 %v6691_v15, %v6695_v44 }
0x1397   :  { %1810 = vrot.lane.b32.xlu0 %v6695_v44, %s5897_s19  ;;  %1812 = vrot.lane.b32.xlu2 %v6691_v15, %s5895_s17 }
0x13e9   :  { %v1819_v45 = vpop.permute.xlu2 %1818 }
0x13ea   :  { %1834 = vrot.lane.b32.xlu2 %v1819_v45, %s5898_s20 }
0x13f1   :  { %v6708_v46 = vpop.permute.xlu2 %1812 }
0x13f2   :  { %1828 = vrot.lane.b32.xlu2 %v6708_v46, %s5898_s20 }
0x13f8   :  { %v1817_v51 = vpop.permute.xlu1 %1816 }
0x13f9   :  { %1832 = vrot.lane.b32.xlu0 %v1817_v51, %s5898_s20  ;;  %v5368_v60 = vpack.i.bf16 %v1817_v51, %v1819_v45 }
0x13fa   :  { %1822 = vrot.lane.b32.xlu2 %v6695_v44, %s5898_s20 }
0x1400   :  { %v6719_v59 = vpop.permute.xlu1 %1808 }
0x1401   :  { %v6715_v57 = vpop.permute.xlu0 %1814 }
0x1402   :  { %1830 = vrot.lane.b32.xlu1 %v6715_v57, %s5898_s20  ;;  %v5373_v28 = vpack.i.bf16 %v6708_v46, %v6715_v57 }
0x1409   :  { %v6721_v35 = vpop.permute.xlu0 %1810 }
0x140a   :  { %1824 = vrot.lane.b32.xlu1 %v6719_v59, %s5898_s20  ;;  %1826 = vrot.lane.b32.xlu0 %v6721_v35, %s5898_s20 }
0x1412   :  { %1820 = vrot.lane.b32.xlu0 %v6691_v15, %s5898_s20  ;;  %5369 = vrot.lane.b32.xlu1 %v5368_v60, %s5899_s24 }
0x1444   :  { %v1835_v42 = vpop.permute.xlu2 %1834 }
0x1445   :  { %5076 = vmatpush.xpose.msk.msra.mxu2 %vm198_vm8, %v1835_v42 }
0x144c   :  { %v1829_v63 = vpop.permute.xlu2 %1828 }
0x1454   :  { %v1823_v39 = vpop.permute.xlu2 %1822 }
0x146b   :  { %v1833_v30 = vpop.permute.xlu0 %1832 }
0x146c   :  { %5077 = vmatpush.xpose.msk.msra.mxu2 %vm198_vm8, %v1833_v30 }
0x1474   :  { %v1831_v29 = vpop.permute.xlu1 %1830 }
0x1475   :  { %5078 = vmatpush.xpose.msk.msra.mxu2 %vm198_vm8, %v1831_v29 }
0x1479   :  { %5079 = vmatpush.xpose.msk.msra.mxu2 %vm198_vm8, %v1829_v63 }
0x147c   :  { %v1825_v62 = vpop.permute.xlu1 %1824  ;;  %v1827_v1 = vpop.permute.xlu0 %1826 }
0x147d   :  { %5080 = vmatpush.xpose.msk.msra.mxu2 %vm198_vm8, %v1827_v1 }
0x1481   :  { %5081 = vmatpush.xpose.msk.msra.mxu2 %vm198_vm8, %v1825_v62 }
0x1484   :  { %v5370_v6 = vpop.permute.xlu1 %5369  ;;  %v1821_v5 = vpop.permute.xlu0 %1820 }
0x1485   :  { %v5371_v40 = vunpack.i.l.bf16 %v5370_v6  ;;  %5082 = vmatpush.xpose.msk.msra.mxu2 %vm198_vm8, %v1823_v39  ;;  %v5372_v3 = vunpack.i.h.bf16 %v5370_v6 }
0x1487   :  { %2157 = vmatpush.msra.mxu3 %v5371_v40 }
0x1489   :  { %5083 = vmatpush.xpose.msk.msra.mxu2 %vm198_vm8, %v1821_v5  ;;  %2158 = vmatpush.msra.mxu3 %v5372_v3  ;;  %v5378_v3 = vpack.i.bf16 %v6719_v59, %v6721_v35 }
0x148c   :  { %5084 = vmatmul.msk.f32.vlgmr.msra.gmra.mxu2 %vm198_vm8, %v6691_v15 }
0x1494   :  { %5085 = vmatmul.msk.f32.gmra.mxu2 %vm198_vm8, %v6695_v44 }
0x149c   :  { %5086 = vmatmul.msk.f32.gmra.mxu2 %vm198_vm8, %v6719_v59 }
0x14a4   :  { %5087 = vmatmul.msk.f32.gmra.mxu2 %vm198_vm8, %v6721_v35 }
0x14ac   :  { %5088 = vmatmul.msk.f32.gmra.mxu2 %vm198_vm8, %v6708_v46 }
0x14b4   :  { %5089 = vmatmul.msk.f32.gmra.mxu2 %vm198_vm8, %v6715_v57 }
0x14bc   :  { %5090 = vmatmul.msk.f32.gmra.mxu2 %vm198_vm8, %v1817_v51 }
0x14c4   :  { %5091 = vmatmul.msk.f32.gmra.mxu2 %vm198_vm8, %v1819_v45 }
0x150f   :  { %v1885_v38 = vpop.f32.mrf.mxu2 }
0x1510   :  { %v1886_v49 = vadd.f32 %v5804_v50, %v1885_v38 }
0x1512   :  { %v1909_v4 = vsel %vm272_vm9, %v1886_v49, -inf }
0x1513   :  { %1910 = vmax.xlane.f32.xlu1 %v1909_v4 }
0x1517   :  { %v1888_v7 = vpop.f32.mrf.mxu2 }
0x1518   :  { %v1889_v2 = vadd.f32 %v5805_v8, %v1888_v7 }
0x151a   :  { %v1912_v53 = vsel %vm272_vm9, %v1889_v2, -inf }
0x151b   :  { %1913 = vmax.xlane.f32.xlu2 %v1912_v53 }
0x151f   :  { %v1891_v19 = vpop.f32.mrf.mxu2 }
0x1520   :  { %v1892_v56 = vadd.f32 %v5806_v9, %v1891_v19 }
0x1522   :  { %v1915_v48 = vsel %vm272_vm9, %v1892_v56, -inf }
0x1523   :  { %1916 = vmax.xlane.f32.xlu0 %v1915_v48 }
0x1527   :  { %v1894_v47 = vpop.f32.mrf.mxu2 }
0x1528   :  { %v1895_v16 = vadd.f32 %v5807_v61, %v1894_v47 }
0x152a   :  { %v1918_v11 = vsel %vm272_vm9, %v1895_v16, -inf }
0x152b   :  { %1919 = vmax.xlane.f32.xlu1 %v1918_v11 }
0x152f   :  { %v1897_v58 = vpop.f32.mrf.mxu2 }
0x1530   :  { %v6771_v13 = vadd.f32 %v5808_v12, %v1897_v58 }
0x1532   :  { %v1921_v14 = vsel %vm272_vm9, %v6771_v13, -inf }
0x1533   :  { %1922 = vmax.xlane.f32.xlu2 %v1921_v14 }
0x1537   :  { %v1900_v54 = vpop.f32.mrf.mxu2 }
0x1538   :  { %v1901_v17 = vadd.f32 %v5809_v24, %v1900_v54 }
0x153a   :  { %v1924_v52 = vsel %vm272_vm9, %v1901_v17, -inf }
0x153b   :  { %1925 = vmax.xlane.f32.xlu0 %v1924_v52 }
0x153f   :  { %v1903_v18 = vpop.f32.mrf.mxu2 }
0x1540   :  { %v1904_v21 = vadd.f32 %v5810_v20, %v1903_v18 }
0x1542   :  { %v1927_v22 = vsel %vm272_vm9, %v1904_v21, -inf }
0x1543   :  { %1928 = vmax.xlane.f32.xlu1 %v1927_v22 }
0x1547   :  { %v1906_v23 = vpop.f32.mrf.mxu2 }
0x1548   :  { %v1907_v25 = vadd.f32 %v5811_v26, %v1906_v23 }
0x154a   :  { %v1930_v55 = vsel %vm272_vm9, %v1907_v25, -inf }
0x154b   :  { %1931 = vmax.xlane.f32.xlu0 %v1930_v55 }
0x155c   :  { %5384 = vrot.lane.b32.xlu1 %v5383_v27, %s5899_s24 }
0x155f   :  { %5374 = vrot.lane.b32.xlu0 %v5373_v28, %s5899_s24 }
0x1586   :  { %v1911_v31 = vpop.xlane.xlu1 %1910 }
0x1587   :  { %v1933_v32 = vsub.f32 %v1886_v49, %v1911_v31 }
0x1589   :  { %v1941_v33 = vmul.f32 1.442695, %v1933_v32 }
0x158b   :  { %5598 = vpow2.f32 %v1941_v33 }
0x158e   :  { %v1914_v34 = vpop.xlane.xlu2 %1913 }
0x158f   :  { %v1934_v37 = vsub.f32 %v1889_v2, %v1914_v34 }
0x1591   :  { %v6793_v41 = vpop.eup %5598  ;;  %v1943_v43 = vmul.f32 1.442695, %v1934_v37 }
0x1592   :  { %v1957_v45 = vsel %vm272_vm9, %v6793_v41, 0.0 }
0x1593   :  { %5600 = vpow2.f32 %v1943_v43  ;;  %1958 = vadd.xlane.f32.xlu2 %v1957_v45 }
0x1596   :  { %v1917_v15 = vpop.xlane.xlu0 %1916 }
0x1597   :  { %v1935_v44 = vsub.f32 %v1892_v56, %v1917_v15 }
0x1599   :  { %v6797_v51 = vpop.eup %5600  ;;  %v1945_v46 = vmul.f32 1.442695, %v1935_v44 }
0x159a   :  { %v1960_v57 = vsel %vm272_vm9, %v6797_v51, 0.0 }
0x159b   :  { %5602 = vpow2.f32 %v1945_v46  ;;  %1961 = vadd.xlane.f32.xlu2 %v1960_v57 }
0x159e   :  { %v1920_v60 = vpop.xlane.xlu1 %1919 }
0x159f   :  { %v1936_v42 = vsub.f32 %v1895_v16, %v1920_v60 }
0x15a1   :  { %v6801_v30 = vpop.eup %5602  ;;  %v1947_v29 = vmul.f32 1.442695, %v1936_v42 }
0x15a2   :  { %v1963_v63 = vsel %vm272_vm9, %v6801_v30, 0.0 }
0x15a3   :  { %5604 = vpow2.f32 %v1947_v29  ;;  %1964 = vadd.xlane.f32.xlu0 %v1963_v63 }
0x15a6   :  { %v1923_v35 = vpop.xlane.xlu2 %1922 }
0x15a7   :  { %v1937_v9 = vsub.f32 %v6771_v13, %v1923_v35 }
0x15a9   :  { %v6805_v62 = vpop.eup %5604  ;;  %v1949_v48 = vmul.f32 1.442695, %v1937_v9 }
0x15aa   :  { %v1966_v1 = vsel %vm272_vm9, %v6805_v62, 0.0 }
0x15ab   :  { %1967 = vadd.xlane.f32.xlu1 %v1966_v1 }
0x15ae   :  { %v1926_v39 = vpop.xlane.xlu0 %1925 }
0x15af   :  { %v1938_v6 = vsub.f32 %v1901_v17, %v1926_v39 }
0x15b1   :  { %v1951_v40 = vmul.f32 1.442695, %v1938_v6 }
0x15b3   :  { %5606 = vpow2.f32 %v1951_v40  ;;  %5379 = vrot.lane.b32.xlu2 %v5378_v3, %s5899_s24 }
0x15b6   :  { %v1929_v5 = vpop.xlane.xlu1 %1928 }
0x15b7   :  { %v1939_v38 = vsub.f32 %v1904_v21, %v1929_v5 }
0x15b9   :  { %v6812_v50 = vpop.eup %5606  ;;  %v1953_v49 = vmul.f32 1.442695, %v1939_v38 }
0x15ba   :  { %v1972_v4 = vsel %vm272_vm9, %v6812_v50, 0.0 }
0x15bb   :  { %5608 = vpow2.f32 %v1953_v49  ;;  %1973 = vadd.xlane.f32.xlu0 %v1972_v4 }
0x15be   :  { %v1932_v7 = vpop.xlane.xlu0 %1931 }
0x15bf   :  { %v1940_v8 = vsub.f32 %v1907_v25, %v1932_v7 }
0x15c1   :  { %v6816_v2 = vpop.eup %5608  ;;  %v1955_v53 = vmul.f32 1.442695, %v1940_v8 }
0x15c2   :  { %v1975_v59 = vsel %vm272_vm9, %v6816_v2, 0.0 }
0x15c3   :  { %5610 = vpow2.f32 %v1955_v53  ;;  %1976 = vadd.xlane.f32.xlu0 %v1975_v59 }
0x15c4   :  { %5612 = vpow2.f32 %v1949_v48 }
0x15c9   :  { %v6820_v19 = vpop.eup %5610 }
0x15ca   :  { %v1978_v56 = vsel %vm272_vm9, %v6820_v19, 0.0  ;;  %v6825_v11 = vpop.eup %5612 }
0x15cb   :  { %1979 = vadd.xlane.f32.xlu1 %v1978_v56  ;;  %v1969_v58 = vsel %vm272_vm9, %v6825_v11, 0.0 }
0x15ce   :  { %v5385_v20 = vpop.permute.xlu1 %5384 }
0x15cf   :  { %v5386_v34 = vunpack.i.l.bf16 %v5385_v20  ;;  %v5387_v15 = vunpack.i.h.bf16 %v5385_v20 }
0x15d1   :  { %v5375_v47 = vpop.permute.xlu0 %5374 }
0x15d2   :  { %v5376_v61 = vunpack.i.l.bf16 %v5375_v47  ;;  %v5377_v16 = vunpack.i.h.bf16 %v5375_v47 }
0x15d4   :  { %2159 = vmatpush.msra.mxu3 %v5376_v61 }
0x15d6   :  { %2160 = vmatpush.msra.mxu3 %v5377_v16 }
0x15dc   :  { %1970 = vadd.xlane.f32.xlu2 %v1969_v58 }
0x1606   :  { %v1959_v12 = vpop.xlane.xlu2 %1958 }
0x1607   :  { %5614 = vrcp.f32 %v1959_v12  ;;  %v1992_v21 = vand.u32 2147483648, %v1959_v12  ;;  %vm1986_vm3 = vweird.f32 %v1959_v12  ;;  %v1990_v22 = vand.u32 2147483647, %v1959_v12 }
0x1609   :  { %v1993_v31 = vor.u32 1.1754944e-38, %v1992_v21  ;;  %vm1991_vm5 = vcmp.eq.f32.partialorder %v1990_v22, 8.507059e+37 }
0x160d   :  { %v5615_v13 = vpop.eup %5614 }
0x160e   :  { %v1982_v14 = vmul.f32 %v5615_v13, %v1959_v12  ;;  %v1962_v54 = vpop.xlane.xlu2 %1961  ;;  %vm1987_vm15 = vweird.f32 %v5615_v13 }
0x160f   :  { %5616 = vrcp.f32 %v1962_v54  ;;  %vm1988_vm4 = vmor %vm1986_vm3, %vm1987_vm15  ;;  %v2006_v44 = vand.u32 2147483648, %v1962_v54  ;;  %vm2000_vm7 = vweird.f32 %v1962_v54  ;;  %v2004_v42 = vand.u32 2147483647, %v1962_v54 }
0x1610   :  { %v1983_v24 = vsub.f32 1.0, %v1982_v14 }
0x1611   :  { %v2007_v1 = vor.u32 1.1754944e-38, %v2006_v44  ;;  %vm2005_vm11 = vcmp.eq.f32.partialorder %v2004_v42, 8.507059e+37 }
0x1612   :  { %v1984_v17 = vmul.f32 %v5615_v13, %v1983_v24 }
0x1614   :  { %v1985_v52 = vadd.f32 %v5615_v13, %v1984_v17 }
0x1615   :  { %v5617_v18 = vpop.eup %5616 }
0x1616   :  { %v1996_v23 = vmul.f32 %v5617_v18, %v1962_v54  ;;  %v1965_v26 = vpop.xlane.xlu0 %1964  ;;  %v5380_v25 = vpop.permute.xlu2 %5379  ;;  %v1989_v27 = vsel %vm1988_vm4, %v5615_v13, %v1985_v52  ;;  %vm2001_vm6 = vweird.f32 %v5617_v18 }
0x1617   :  { %5618 = vrcp.f32 %v1965_v26  ;;  %v5381_v55 = vunpack.i.l.bf16 %v5380_v25  ;;  %v5382_v32 = vunpack.i.h.bf16 %v5380_v25  ;;  %v1994_v37 = vsel %vm1991_vm5, %v1993_v31, %v1989_v27  ;;  %vm2002_vm10 = vmor %vm2000_vm7, %vm2001_vm6 }
0x1618   :  { %v1997_v28 = vsub.f32 1.0, %v1996_v23  ;;  %v2093_v60 = vmul.f32 %v6793_v41, %v1994_v37  ;;  %v2020_v5 = vand.u32 2147483648, %v1965_v26  ;;  %vm2014_vm13 = vweird.f32 %v1965_v26 }
0x1619   :  { %2161 = vmatpush.msra.mxu3 %v5381_v55  ;;  %v2018_v49 = vand.u32 2147483647, %v1965_v26 }
0x161a   :  { %v1998_v33 = vmul.f32 %v5617_v18, %v1997_v28  ;;  %v2021_v8 = vor.u32 1.1754944e-38, %v2020_v5 }
0x161b   :  { %2162 = vmatpush.msra.mxu3 %v5382_v32  ;;  %vm2019_vm15 = vcmp.eq.f32.partialorder %v2018_v49, 8.507059e+37 }
0x161c   :  { %v1999_v43 = vadd.f32 %v5617_v18, %v1998_v33 }
0x161d   :  { %v5619_v45 = vpop.eup %5618  ;;  %2163 = vmatpush.msra.mxu3 %v5386_v34 }
0x161e   :  { %v2010_v46 = vmul.f32 %v5619_v45, %v1965_v26  ;;  %v1968_v57 = vpop.xlane.xlu1 %1967  ;;  %v2003_v63 = vsel %vm2002_vm10, %v5617_v18, %v1999_v43  ;;  %vm2015_vm12 = vweird.f32 %v5619_v45 }
0x161f   :  { %5620 = vrcp.f32 %v1968_v57  ;;  %2164 = vmatpush.msra.mxu3 %v5387_v15  ;;  %v2008_v6 = vsel %vm2005_vm11, %v2007_v1, %v2003_v63  ;;  %vm2016_vm14 = vmor %vm2014_vm13, %vm2015_vm12  ;;  %v2034_v9 = vand.u32 2147483648, %v1968_v57  ;;  %vm2028_vm4 = vweird.f32 %v1968_v57 }
0x1620   :  { %v2011_v29 = vsub.f32 1.0, %v2010_v46  ;;  %5092 = vmatmul.msk.f32.vlgmr.msra.gmra.mxu3 %vm272_vm9, %v2093_v60  ;;  %v2094_v41 = vmul.f32 %v6797_v51, %v2008_v6  ;;  %v2032_v48 = vand.u32 2147483647, %v1968_v57 }
0x1621   :  { %v2035_v47 = vor.u32 1.1754944e-38, %v2034_v9 }
0x1622   :  { %v2012_v39 = vmul.f32 %v5619_v45, %v2011_v29  ;;  %vm2033_vm6 = vcmp.eq.f32.partialorder %v2032_v48, 8.507059e+37 }
0x1624   :  { %v2013_v40 = vadd.f32 %v5619_v45, %v2012_v39 }
0x1625   :  { %v5621_v3 = vpop.eup %5620 }
0x1626   :  { %v2024_v38 = vmul.f32 %v5621_v3, %v1968_v57  ;;  %v2017_v7 = vsel %vm2016_vm14, %v5619_v45, %v2013_v40  ;;  %vm2029_vm3 = vweird.f32 %v5621_v3 }
0x1627   :  { %v2022_v59 = vsel %vm2019_vm15, %v2021_v8, %v2017_v7  ;;  %vm2030_vm5 = vmor %vm2028_vm4, %vm2029_vm3 }
0x1628   :  { %v2025_v4 = vsub.f32 1.0, %v2024_v38  ;;  %5093 = vmatmul.msk.f32.gmra.mxu3 %vm272_vm9, %v2094_v41  ;;  %v2095_v56 = vmul.f32 %v6801_v30, %v2022_v59 }
0x162a   :  { %v2026_v53 = vmul.f32 %v5621_v3, %v2025_v4 }
0x162c   :  { %v2027_v35 = vadd.f32 %v5621_v3, %v2026_v53 }
0x162e   :  { %v2031_v51 = vsel %vm2030_vm5, %v5621_v3, %v2027_v35  ;;  %v1974_v58 = vpop.xlane.xlu0 %1973 }
0x162f   :  { %v2036_v61 = vsel %vm2033_vm6, %v2035_v47, %v2031_v51  ;;  %5622 = vrcp.f32 %v1974_v58  ;;  %v2062_v34 = vand.u32 2147483648, %v1974_v58  ;;  %vm2056_vm14 = vweird.f32 %v1974_v58  ;;  %v5813_v51 = vld [vmem:[%s8003_s1 + $0x8] sm:$0xff]  ;;  %v5814_v47 = vld [vmem:[%s8003_s1 + $0x10] sm:$0xff] }
0x1630   :  { %5094 = vmatmul.msk.f32.gmra.mxu3 %vm272_vm9, %v2095_v56  ;;  %v2096_v16 = vmul.f32 %v6805_v62, %v2036_v61  ;;  %v2060_v43 = vand.u32 2147483647, %v1974_v58  ;;  %v5815_v61 = vld [vmem:[%s8003_s1 + $0x18] sm:$0xff] }
0x1631   :  { %v2063_v46 = vor.u32 1.1754944e-38, %v2062_v34 }
0x1632   :  { %vm2061_vm3 = vcmp.eq.f32.partialorder %v2060_v43, 8.507059e+37  ;;  %v5467_v43 = vld [vmem:[%s8010_s8 + $0x2] ss:$0 sm:$0xff] }
0x1635   :  { %v5623_v12 = vpop.eup %5622 }
0x1636   :  { %v1977_v13 = vpop.xlane.xlu0 %1976  ;;  %v2052_v30 = vmul.f32 %v5623_v12, %v1974_v58  ;;  %vm2057_vm12 = vweird.f32 %v5623_v12  ;;  %v5817_v58 = vld [vmem:[%s8003_s1 + $0x28] sm:$0xff] }
0x1637   :  { %vm2058_vm15 = vmor %vm2056_vm14, %vm2057_vm12  ;;  %v2076_v29 = vand.u32 2147483648, %v1977_v13  ;;  %vm2070_vm5 = vweird.f32 %v1977_v13  ;;  %v2074_v1 = vand.u32 2147483647, %v1977_v13 }
0x1638   :  { %5095 = vmatmul.msk.f32.gmra.mxu3 %vm272_vm9, %v2096_v16  ;;  %v2053_v24 = vsub.f32 1.0, %v2052_v30  ;;  %v5816_v16 = vld [vmem:[%s8003_s1 + $0x20] sm:$0xff] }
0x1639   :  { %v2077_v6 = vor.u32 1.1754944e-38, %v2076_v29 }
0x163a   :  { %v2054_v22 = vmul.f32 %v5623_v12, %v2053_v24 }
0x163c   :  { %v2055_v31 = vadd.f32 %v5623_v12, %v2054_v22  ;;  %v5108_v22 = vld [vmem:[%s8009_s7 + $0x20] sm:$0xff] }
0x163e   :  { %v1980_v17 = vpop.xlane.xlu1 %1979  ;;  %v2059_v15 = vsel %vm2058_vm15, %v5623_v12, %v2055_v31  ;;  %v5818_v12 = vld [vmem:[%s8003_s1 + $0x30] sm:$0xff] }
0x163f   :  { %v2064_v57 = vsel %vm2061_vm3, %v2063_v46, %v2059_v15  ;;  %v2090_v5 = vand.u32 2147483648, %v1980_v17  ;;  %v2088_v41 = vand.u32 2147483647, %v1980_v17 }
0x1640   :  { %v2098_v63 = vmul.f32 %v6812_v50, %v2064_v57 }
0x1641   :  { %v2091_v49 = vor.u32 1.1754944e-38, %v2090_v5 }
0x164f   :  { %v1971_v14 = vpop.xlane.xlu2 %1970 }
0x1650   :  { %5624 = vrcp.f32 %v1971_v14  ;;  %v2048_v21 = vand.u32 2147483648, %v1971_v14  ;;  %v2046_v26 = vand.u32 2147483647, %v1971_v14  ;;  %vm2042_vm10 = vweird.f32 %v1971_v14 }
0x1651   :  { %5626 = vrcp.f32 %v1977_v13 }
0x1652   :  { %5628 = vrcp.f32 %v1980_v17  ;;  %v2049_v55 = vor.u32 1.1754944e-38, %v2048_v21  ;;  %vm2047_vm13 = vcmp.eq.f32.partialorder %v2046_v26, 8.507059e+37  ;;  %v5109_v21 = vld [vmem:[%s8009_s7 + $0x28] sm:$0xff] }
0x1653   :  { %2284 = vmatpush.msrb.mxu1 %v5109_v21  ;;  %v5470_v21 = vld [vmem:[%s8014_s12 + $0x2] ss:$0 sm:$0xff] }
0x1655   :  { %2285 = vmatpush.msrb.mxu1 %v5108_v22 }
0x1656   :  { %v5625_v54 = vpop.eup %5624 }
0x1657   :  { %v2038_v52 = vmul.f32 %v5625_v54, %v1971_v14  ;;  %v5627_v18 = vpop.eup %5626  ;;  %vm2043_vm7 = vweird.f32 %v5625_v54 }
0x1658   :  { %v2066_v62 = vmul.f32 %v5627_v18, %v1977_v13  ;;  %vm2044_vm11 = vmor %vm2042_vm10, %vm2043_vm7  ;;  %v5629_v32 = vpop.eup %5628  ;;  %vm2071_vm4 = vweird.f32 %v5627_v18  ;;  %vm2075_vm7 = vcmp.eq.f32.partialorder %v2074_v1, 8.507059e+37  ;;  %v5819_v13 = vld [vmem:[%s8003_s1 + $0x38] sm:$0xff] }
0x1659   :  { %v2039_v20 = vsub.f32 1.0, %v2038_v52  ;;  %v2080_v45 = vmul.f32 %v5629_v32, %v1980_v17  ;;  %vm2072_vm6 = vmor %vm2070_vm5, %vm2071_vm4  ;;  %vm2085_vm10 = vweird.f32 %v5629_v32 }
0x165a   :  { %v2067_v27 = vsub.f32 1.0, %v2066_v62 }
0x165b   :  { %v2040_v23 = vmul.f32 %v5625_v54, %v2039_v20  ;;  %v2081_v60 = vsub.f32 1.0, %v2080_v45 }
0x165c   :  { %v2068_v44 = vmul.f32 %v5627_v18, %v2067_v27 }
0x165d   :  { %v2041_v25 = vadd.f32 %v5625_v54, %v2040_v23 }
0x165e   :  { %v2069_v42 = vadd.f32 %v5627_v18, %v2068_v44 }
0x165f   :  { %v2045_v28 = vsel %vm2044_vm11, %v5625_v54, %v2041_v25  ;;  %vm2084_vm11 = vweird.f32 %v1980_v17 }
0x1660   :  { %v2050_v33 = vsel %vm2047_vm13, %v2049_v55, %v2045_v28  ;;  %v2073_v39 = vsel %vm2072_vm6, %v5627_v18, %v2069_v42  ;;  %vm2086_vm12 = vmor %vm2084_vm11, %vm2085_vm10  ;;  %vm2089_vm13 = vcmp.eq.f32.partialorder %v2088_v41, 8.507059e+37  ;;  %v5115_v41 = vld [vmem:[%s8013_s11 + $0x20] sm:$0xff] }
0x1661   :  { %v2097_v37 = vmul.f32 %v6825_v11, %v2050_v33  ;;  %v2082_v11 = vmul.f32 %v5629_v32, %v2081_v60  ;;  %v2078_v40 = vsel %vm2075_vm7, %v2077_v6, %v2073_v39 }
0x1662   :  { %v2099_v38 = vmul.f32 %v6816_v2, %v2078_v40 }
0x1663   :  { %5096 = vmatmul.msk.f32.gmra.mxu3 %vm272_vm9, %v2097_v37  ;;  %v2083_v3 = vadd.f32 %v5629_v32, %v2082_v11 }
0x1665   :  { %v2087_v50 = vsel %vm2086_vm12, %v5629_v32, %v2083_v3 }
0x1666   :  { %v2092_v4 = vsel %vm2089_vm13, %v2091_v49, %v2087_v50 }
0x1667   :  { %v2100_v7 = vmul.f32 %v6820_v19, %v2092_v4  ;;  %v5812_v19 = vld [vmem:[%s8003_s1] sm:$0xff] }
0x166b   :  { %5097 = vmatmul.msk.f32.gmra.mxu3 %vm272_vm9, %v2098_v63 }
0x1673   :  { %5098 = vmatmul.msk.f32.gmra.mxu3 %vm272_vm9, %v2099_v38  ;;  %v5116_v38 = vld [vmem:[%s8013_s11 + $0x28] sm:$0xff] }
0x1674   :  { %2388 = vmatpush.msra.mxu1 %v5116_v38 }
0x1676   :  { %2389 = vmatpush.msra.mxu1 %v5115_v41 }
0x167b   :  { %5099 = vmatmul.msk.f32.gmra.mxu3 %vm272_vm9, %v2100_v7 }
0x16a3   :  { %v2166_v8 = vpop.f32.mrf.mxu3 }
0x16ab   :  { %v2169_v53 = vpop.f32.mrf.mxu3 }
0x16b3   :  { %v2172_v59 = vpop.f32.mrf.mxu3 }
0x16bb   :  { %v2175_v35 = vpop.f32.mrf.mxu3 }
0x16e6   :  { %v2178_v9 = vpop.f32.mrf.mxu3 }
0x16ee   :  { %v2181_v56 = vpop.f32.mrf.mxu3 }
0x16f6   :  { %v2184_v48 = vpop.f32.mrf.mxu3 }
0x16fe   :  { %v2187_v2 = vpop.f32.mrf.mxu3 }
0x16ff   :  { %2198 = vmatpush.msra.mxu0 %v2187_v2 }
0x1701   :  { %2199 = vmatpush.msra.mxu0 %v2184_v48 }
0x1703   :  { %2200 = vmatpush.msra.mxu0 %v2181_v56 }
0x1705   :  { %2201 = vmatpush.msra.mxu0 %v2178_v9 }
0x1707   :  { %2202 = vmatpush.msra.mxu0 %v2175_v35 }
0x1709   :  { %2203 = vmatpush.msra.mxu0 %v2172_v59 }
0x170b   :  { %2204 = vmatpush.msra.mxu0 %v2169_v53 }
0x170d   :  { %2205 = vmatpush.msra.mxu0 %v2166_v8 }
0x170e   :  { %5100 = vmatmul.msk.f32.vlgmr.msra.gmra.mxu0 %vm272_vm9, %v5812_v19 }
0x1716   :  { %5101 = vmatmul.msk.f32.gmra.mxu0 %vm272_vm9, %v5813_v51 }
0x171e   :  { %5102 = vmatmul.msk.f32.gmra.mxu0 %vm272_vm9, %v5814_v47  ;;  %v5468_v47 = vld [vmem:[%s8011_s9 + $0x2] ss:$0 sm:$0xff] }
0x1726   :  { %5103 = vmatmul.msk.f32.gmra.mxu0 %vm272_vm9, %v5815_v61 }
0x172e   :  { %5104 = vmatmul.msk.f32.gmra.mxu0 %vm272_vm9, %v5816_v16 }
0x1736   :  { %5105 = vmatmul.msk.f32.gmra.mxu0 %vm272_vm9, %v5817_v58 }
0x173e   :  { %5106 = vmatmul.msk.f32.gmra.mxu0 %vm272_vm9, %v5818_v12  ;;  %v5469_v12 = vld [vmem:[%s8012_s10 + $0x2] ss:$0 sm:$0xff] }
0x1746   :  { %5107 = vmatmul.msk.f32.gmra.mxu0 %vm272_vm9, %v5819_v13 }
0x178b   :  { %v2207_v14 = vpop.f32.mrf.mxu0 }
0x1793   :  { %v2210_v30 = vpop.f32.mrf.mxu0 }
0x179b   :  { %v2213_v54 = vpop.f32.mrf.mxu0 }
0x179c   :  { %2233 = vrot.lane.b32.xlu2 %v2213_v54, %s5900_s22 }
0x17a3   :  { %v2216_v24 = vpop.f32.mrf.mxu0 }
0x17a4   :  { %2235 = vrot.lane.b32.xlu2 %v2216_v24, %s5900_s22 }
0x17ab   :  { %v2219_v17 = vpop.f32.mrf.mxu0 }
0x17ac   :  { %2241 = vrot.lane.b32.xlu0 %v2219_v17, %s5901_s23 }
0x17b3   :  { %v2222_v52 = vpop.f32.mrf.mxu0 }
0x17b4   :  { %2243 = vrot.lane.b32.xlu0 %v2222_v52, %s5901_s23 }
0x17bb   :  { %v2225_v18 = vpop.f32.mrf.mxu0 }
0x17bc   :  { %2249 = vrot.lane.b32.xlu1 %v2225_v18, %s5902_s25 }
0x17c3   :  { %v2228_v20 = vpop.f32.mrf.mxu0 }
0x17c4   :  { %2251 = vrot.lane.b32.xlu2 %v2228_v20, %s5902_s25 }
0x17f6   :  { %v2234_v62 = vpop.permute.xlu2 %2233 }
0x17f7   :  { %v2255_v25 = vsel %vm198_vm8, %v2207_v14, %v2234_v62 }
0x17fe   :  { %v2236_v26 = vpop.permute.xlu2 %2235 }
0x17ff   :  { %v2256_v32 = vsel %vm198_vm8, %v2210_v30, %v2236_v26 }
0x181e   :  { %v2242_v23 = vpop.permute.xlu0 %2241  ;;  %v2252_v34 = vpop.permute.xlu2 %2251 }
0x181f   :  { %v2257_v55 = vsel %vm645_vm1, %v2255_v25, %v2242_v23 }
0x1826   :  { %v2244_v31 = vpop.permute.xlu0 %2243 }
0x1827   :  { %v2258_v33 = vsel %vm645_vm1, %v2256_v32, %v2244_v31  ;;  %v5127_v31 = vld [vmem:[%s8015_s13 + $0xb8] sm:$0xff] }
0x1828   :  { %v2260_v37 = vsel %vm648_vm2, %v2258_v33, %v2252_v34  ;;  %v5126_v33 = vld [vmem:[%s8015_s13 + $0xb0] sm:$0xff] }
0x182e   :  { %v2250_v27 = vpop.permute.xlu1 %2249 }
0x182f   :  { %v2259_v28 = vsel %vm648_vm2, %v2257_v55, %v2250_v27 }
0x1830   :  { %5110 = vmatmul.msk.f32.vlgmr.msrb.gmra.mxu1 %vm71_vm0, %v2259_v28 }
0x1831   :  { %2503 = vmatpush.msrb.mxu1 %v5127_v31 }
0x1833   :  { %2504 = vmatpush.msrb.mxu1 %v5126_v33 }
0x1838   :  { %5111 = vmatmul.msk.f32.gmra.mxu1 %vm71_vm0, %v2260_v37  ;;  %v5125_v37 = vld [vmem:[%s8015_s13 + $0xa8] sm:$0xff] }
0x1839   :  { %2505 = vmatpush.msrb.mxu1 %v5125_v37 }
0x18ad   :  { %v2287_v45 = vpop.f32.mrf.mxu1 }
0x18ae   :  { %v2293_v15 = vadd.f32 %v2287_v45, %v6657_v0 }
0x18b0   :  { %v6901_v44 = vadd.f32 %v5467_v43, %v2293_v15  ;;  %v5124_v15 = vld [vmem:[%s8015_s13 + $0xa0] sm:$0xff] }
0x18b1   :  { %2506 = vmatpush.msrb.mxu1 %v5124_v15 }
0x18b2   :  { %v2306_v46 = vsel %vm71_vm0, %v6901_v44, 0.0 }
0x18b3   :  { %2307 = vadd.xlane.f32.xlu1 %v2306_v46 }
0x18b5   :  { %v2290_v57 = vpop.f32.mrf.mxu1 }
0x18b6   :  { %v2294_v60 = vadd.f32 %v2290_v57, %v6662_v36 }
0x18b8   :  { %v6906_v42 = vadd.f32 %v5467_v43, %v2294_v60  ;;  %v5123_v60 = vld [vmem:[%s8015_s13 + $0x98] sm:$0xff] }
0x18b9   :  { %2507 = vmatpush.msrb.mxu1 %v5123_v60 }
0x18ba   :  { %v2309_v29 = vsel %vm71_vm0, %v6906_v42, 0.0 }
0x18bb   :  { %2310 = vadd.xlane.f32.xlu0 %v2309_v29 }
0x1926   :  { %v2308_v63 = vpop.xlane.xlu1 %2307 }
0x1927   :  { %v2312_v1 = vmul.f32 %v2308_v63, %v5993_v10 }
0x1929   :  { %v2314_v0 = vsub.f32 %v6901_v44, %v2312_v1  ;;  %v5122_v1 = vld [vmem:[%s8015_s13 + $0x90] sm:$0xff] }
0x192a   :  { %2508 = vmatpush.msrb.mxu1 %v5122_v1 }
0x192b   :  { %v2316_v11 = vmul.f32 %v2314_v0, %v2314_v0 }
0x192d   :  { %v2318_v39 = vsel %vm71_vm0, %v2316_v11, 0.0 }
0x192e   :  { %2319 = vadd.xlane.f32.xlu2 %v2318_v39  ;;  %v2311_v6 = vpop.xlane.xlu0 %2310  ;;  %v5121_v39 = vld [vmem:[%s8015_s13 + $0x88] sm:$0xff] }
0x192f   :  { %v2313_v40 = vmul.f32 %v2311_v6, %v5993_v10  ;;  %v5120_v6 = vld [vmem:[%s8015_s13 + $0x80] sm:$0xff]  ;;  %2509 = vmatpush.msrb.mxu1 %v5121_v39 }
0x1931   :  { %v2315_v36 = vsub.f32 %v6906_v42, %v2313_v40  ;;  %2510 = vmatpush.msrb.mxu1 %v5120_v6 }
0x1933   :  { %v2317_v3 = vmul.f32 %v2315_v36, %v2315_v36 }
0x1935   :  { %v2321_v5 = vsel %vm71_vm0, %v2317_v3, 0.0 }
0x1936   :  { %2322 = vadd.xlane.f32.xlu1 %v2321_v5 }
0x19a1   :  { %v2320_v50 = vpop.xlane.xlu2 %2319 }
0x19a2   :  { %v2324_v49 = vmul.f32 %v2320_v50, %v5993_v10 }
0x19a4   :  { %v2326_v4 = vadd.f32 1e-06, %v2324_v49 }
0x19a6   :  { %5630 = vrsqrt.f32 %v2326_v4  ;;  %vm2334_vm15 = vweird.f32 %v2326_v4 }
0x19a9   :  { %v2323_v7 = vpop.xlane.xlu1 %2322 }
0x19aa   :  { %v2325_v8 = vmul.f32 %v2323_v7, %v5993_v10 }
0x19ac   :  { %v5631_v53 = vpop.eup %5630  ;;  %v2327_v59 = vadd.f32 1e-06, %v2325_v8 }
0x19ad   :  { %v2329_v35 = vmul.f32 %v5631_v53, %v2326_v4  ;;  %vm2335_vm14 = vweird.f32 %v5631_v53 }
0x19ae   :  { %5632 = vrsqrt.f32 %v2327_v59  ;;  %vm2336_vm3 = vmor %vm2334_vm15, %vm2335_vm14  ;;  %vm2344_vm5 = vweird.f32 %v2327_v59 }
0x19af   :  { %v2330_v9 = vmul.f32 %v5631_v53, %v2329_v35 }
0x19b1   :  { %v2331_v56 = vmul.f32 0.5, %v2330_v9 }
0x19b3   :  { %v2332_v48 = vsub.f32 1.5, %v2331_v56 }
0x19b4   :  { %v5633_v2 = vpop.eup %5632 }
0x19b5   :  { %v2333_v19 = vmul.f32 %v5631_v53, %v2332_v48  ;;  %v2339_v51 = vmul.f32 %v5633_v2, %v2327_v59  ;;  %vm2345_vm4 = vweird.f32 %v5633_v2 }
0x19b6   :  { %vm2346_vm6 = vmor %vm2344_vm5, %vm2345_vm4 }
0x19b7   :  { %v2337_v61 = vsel %vm2336_vm3, %v5631_v53, %v2333_v19  ;;  %v2340_v16 = vmul.f32 %v5633_v2, %v2339_v51 }
0x19b8   :  { %v2348_v58 = vmul.f32 %v2337_v61, %v2314_v0 }
0x19b9   :  { %v2341_v13 = vmul.f32 0.5, %v2340_v16 }
0x19ba   :  { %v2353_v14 = vmul.f32 %v5468_v47, %v2348_v58 }
0x19bb   :  { %v2342_v30 = vsub.f32 1.5, %v2341_v13 }
0x19bc   :  { %v2358_v54 = vadd.f32 %v5469_v12, %v2353_v14 }
0x19bd   :  { %v2343_v24 = vmul.f32 %v5633_v2, %v2342_v30 }
0x19be   :  { %5118 = vmatmul.msk.f32.vlgmr.msra.gmra.mxu1 %vm71_vm0, %v2358_v54 }
0x19bf   :  { %v2347_v17 = vsel %vm2346_vm6, %v5633_v2, %v2343_v24 }
0x19c0   :  { %v2349_v52 = vmul.f32 %v2347_v17, %v2315_v36 }
0x19c2   :  { %v2354_v18 = vmul.f32 %v5468_v47, %v2349_v52 }
0x19c4   :  { %v2359_v20 = vadd.f32 %v5469_v12, %v2354_v18 }
0x19c6   :  { %5119 = vmatmul.msk.f32.gmra.mxu1 %vm71_vm0, %v2359_v20 }
0x1a3b   :  { %v2391_v22 = vpop.f32.mrf.mxu1 }
0x1a3c   :  { %v6935_v62 = vadd.f32 %v5470_v21, %v2391_v22 }
0x1a3e   :  { %v6938_v23 = vmul.f32 0.70710677, %v6935_v62  ;;  %v2397_v37 = vmul.f32 0.5, %v6935_v62  ;;  %v5471_v62 = vld [vmem:[%s8016_s14 + $0x2] ss:$0 sm:$0xff] }
0x1a40   :  { %v2401_v26 = vand.u32 2147483647, %v6938_v23  ;;  %vm2465_vm4 = vcmp.ge.f32.partialorder %v6938_v23, 0.0 }
0x1a42   :  { %v2403_v25 = vmul.f32 0.3275911, %v2401_v26  ;;  %v2453_v41 = vsub.f32 0.0, %v2401_v26 }
0x1a43   :  { %v2394_v55 = vpop.f32.mrf.mxu1 }
0x1a44   :  { %v2405_v27 = vadd.f32 1.0, %v2403_v25  ;;  %v6941_v28 = vadd.f32 %v5470_v21, %v2394_v55  ;;  %v2455_v53 = vmul.f32 %v2453_v41, %v2401_v26 }
0x1a46   :  { %5634 = vrcp.f32 %v2405_v27  ;;  %v6947_v32 = vmul.f32 0.70710677, %v6941_v28  ;;  %v2418_v63 = vand.u32 2147483648, %v2405_v27  ;;  %v2416_v11 = vand.u32 2147483647, %v2405_v27 }
0x1a47   :  { %vm2412_vm10 = vweird.f32 %v2405_v27  ;;  %v2457_v19 = vmul.f32 1.442695, %v2455_v53  ;;  %v5133_v53 = vld [vmem:[%s8007_s5 + $0x30] sm:$0xff] }
0x1a48   :  { %v2402_v34 = vand.u32 2147483647, %v6947_v32  ;;  %v2419_v36 = vor.u32 1.1754944e-38, %v2418_v63  ;;  %vm2417_vm12 = vcmp.eq.f32.partialorder %v2416_v11, 8.507059e+37  ;;  %vm2466_vm5 = vcmp.ge.f32.partialorder %v6947_v32, 0.0 }
0x1a49   :  { %v2398_v63 = vmul.f32 0.5, %v6941_v28 }
0x1a4a   :  { %v2404_v43 = vmul.f32 0.3275911, %v2402_v34  ;;  %v2454_v61 = vsub.f32 0.0, %v2402_v34 }
0x1a4c   :  { %v5635_v45 = vpop.eup %5634  ;;  %v2406_v57 = vadd.f32 1.0, %v2404_v43  ;;  %v2456_v30 = vmul.f32 %v2454_v61, %v2402_v34 }
0x1a4d   :  { %v2408_v46 = vmul.f32 %v5635_v45, %v2405_v27  ;;  %vm2413_vm7 = vweird.f32 %v5635_v45 }
0x1a4e   :  { %5636 = vrcp.f32 %v2406_v57  ;;  %vm2414_vm11 = vmor %vm2412_vm10, %vm2413_vm7  ;;  %v2432_v8 = vand.u32 2147483648, %v2406_v57  ;;  %v2430_v35 = vand.u32 2147483647, %v2406_v57  ;;  %vm2426_vm14 = vweird.f32 %v2406_v57 }
0x1a4f   :  { %v2409_v29 = vsub.f32 1.0, %v2408_v46  ;;  %5638 = vpow2.f32 %v2457_v19  ;;  %v2459_v18 = vmul.f32 1.442695, %v2456_v30 }
0x1a50   :  { %v2433_v2 = vor.u32 1.1754944e-38, %v2432_v8  ;;  %vm2431_vm3 = vcmp.eq.f32.partialorder %v2430_v35, 8.507059e+37  ;;  %v5134_v8 = vld [vmem:[%s8007_s5 + $0x38] sm:$0xff] }
0x1a51   :  { %v2410_v0 = vmul.f32 %v5635_v45, %v2409_v29  ;;  %5640 = vpow2.f32 %v2459_v18  ;;  %2606 = vmatpush.msra.mxu1 %v5134_v8 }
0x1a53   :  { %v2411_v40 = vadd.f32 %v5635_v45, %v2410_v0  ;;  %2607 = vmatpush.msra.mxu1 %v5133_v53  ;;  %v5823_v53 = vld [vmem:[%s8004_s2 + $0x18] sm:$0xff] }
0x1a54   :  { %v5637_v3 = vpop.eup %5636 }
0x1a55   :  { %v2415_v5 = vsel %vm2414_vm11, %v5635_v45, %v2411_v40  ;;  %v2422_v50 = vmul.f32 %v5637_v3, %v2406_v57  ;;  %vm2427_vm13 = vweird.f32 %v5637_v3  ;;  %v5639_v20 = vpop.eup %5638 }
0x1a56   :  { %v2420_v38 = vsel %vm2417_vm12, %v2419_v36, %v2415_v5  ;;  %vm2428_vm15 = vmor %vm2426_vm14, %vm2427_vm13 }
0x1a57   :  { %v2435_v49 = vmul.f32 1.0614054, %v2420_v38  ;;  %v2423_v4 = vsub.f32 1.0, %v2422_v50  ;;  %v5641_v45 = vpop.eup %5640 }
0x1a59   :  { %v2437_v7 = vadd.f32 -1.4531521, %v2435_v49  ;;  %v2424_v59 = vmul.f32 %v5637_v3, %v2423_v4 }
0x1a5b   :  { %v2439_v9 = vmul.f32 %v2437_v7, %v2420_v38  ;;  %v2425_v56 = vadd.f32 %v5637_v3, %v2424_v59 }
0x1a5d   :  { %v2441_v48 = vadd.f32 1.4214138, %v2439_v9  ;;  %v2429_v51 = vsel %vm2428_vm15, %v5637_v3, %v2425_v56 }
0x1a5e   :  { %v2434_v16 = vsel %vm2431_vm3, %v2433_v2, %v2429_v51 }
0x1a5f   :  { %v2443_v47 = vmul.f32 %v2441_v48, %v2420_v38  ;;  %v2436_v58 = vmul.f32 1.0614054, %v2434_v16 }
0x1a61   :  { %v2445_v12 = vadd.f32 -0.28449672, %v2443_v47  ;;  %v2438_v13 = vadd.f32 -1.4531521, %v2436_v58 }
0x1a63   :  { %v2447_v14 = vmul.f32 %v2445_v12, %v2420_v38  ;;  %v2440_v54 = vmul.f32 %v2438_v13, %v2434_v16  ;;  %v5472_v13 = vld [vmem:[%s8005_s3 + $0x3] ss:$0 sm:$0xff] }
0x1a65   :  { %v2449_v24 = vadd.f32 0.2548296, %v2447_v14  ;;  %v2442_v17 = vadd.f32 1.4214138, %v2440_v54 }
0x1a67   :  { %v2451_v52 = vmul.f32 %v2449_v24, %v2420_v38  ;;  %v2444_v21 = vmul.f32 %v2442_v17, %v2434_v16  ;;  %v5473_v17 = vld [vmem:[%s8006_s4 + $0x3] ss:$0 sm:$0xff] }
0x1a69   :  { %v2461_v22 = vmul.f32 %v5639_v20, %v2451_v52  ;;  %v2446_v26 = vadd.f32 -0.28449672, %v2444_v21 }
0x1a6b   :  { %v2463_v25 = vsub.f32 1.0, %v2461_v22  ;;  %v2448_v55 = vmul.f32 %v2446_v26, %v2434_v16 }
0x1a6d   :  { %v2467_v27 = vsub.f32 0.0, %v2463_v25  ;;  %v2450_v31 = vadd.f32 0.2548296, %v2448_v55 }
0x1a6f   :  { %v2469_v33 = vsel %vm2465_vm4, %v2463_v25, %v2467_v27  ;;  %v2452_v43 = vmul.f32 %v2450_v31, %v2434_v16  ;;  %v5474_v31 = vld [vmem:[%s8008_s6 + $0x3] ss:$0 sm:$0xff] }
0x1a70   :  { %v2471_v34 = vadd.f32 1.0, %v2469_v33 }
0x1a71   :  { %v2462_v46 = vmul.f32 %v5641_v45, %v2452_v43 }
0x1a72   :  { %v2473_v15 = vmul.f32 %v2471_v34, %v2397_v37 }
0x1a73   :  { %v2464_v57 = vsub.f32 1.0, %v2462_v46 }
0x1a74   :  { %5129 = vmatmul.msk.f32.vlgmr.msrb.gmra.mxu1 %vm272_vm9, %v2473_v15 }
0x1a75   :  { %v2468_v60 = vsub.f32 0.0, %v2464_v57 }
0x1a77   :  { %v2470_v29 = vsel %vm2466_vm5, %v2464_v57, %v2468_v60 }
0x1a78   :  { %v2472_v1 = vadd.f32 1.0, %v2470_v29 }
0x1a7a   :  { %v2474_v23 = vmul.f32 %v2472_v1, %v2398_v63 }
0x1a7c   :  { %5130 = vmatmul.msk.f32.gmra.mxu1 %vm272_vm9, %v2474_v23 }
0x1af1   :  { %v2512_v0 = vpop.f32.mrf.mxu1 }
0x1af2   :  { %v2513_v11 = vadd.f32 %v5471_v62, %v2512_v0 }
0x1af4   :  { %v6981_v39 = vadd.f32 %v2513_v11, %v6901_v44 }
0x1af6   :  { %v2524_v6 = vsel %vm71_vm0, %v6981_v39, 0.0 }
0x1af7   :  { %2525 = vadd.xlane.f32.xlu0 %v2524_v6 }
0x1af9   :  { %v2515_v32 = vpop.f32.mrf.mxu1 }
0x1afa   :  { %v2516_v40 = vadd.f32 %v5471_v62, %v2515_v32 }
0x1afc   :  { %v6986_v28 = vadd.f32 %v2516_v40, %v6906_v42 }
0x1afe   :  { %v2527_v36 = vsel %vm71_vm0, %v6986_v28, 0.0 }
0x1aff   :  { %2528 = vadd.xlane.f32.xlu2 %v2527_v36  ;;  %v5820_v36 = vld [vmem:[%s8004_s2] sm:$0xff] }
0x1b6a   :  { %v2526_v3 = vpop.xlane.xlu0 %2525 }
0x1b6b   :  { %v2530_v5 = vmul.f32 %v2526_v3, %v5993_v10 }
0x1b6d   :  { %v2532_v38 = vsub.f32 %v6981_v39, %v2530_v5 }
0x1b6f   :  { %v2534_v44 = vmul.f32 %v2532_v38, %v2532_v38 }
0x1b71   :  { %v2536_v41 = vsel %vm71_vm0, %v2534_v44, 0.0  ;;  %v5821_v44 = vld [vmem:[%s8004_s2 + $0x8] sm:$0xff] }
0x1b72   :  { %2537 = vadd.xlane.f32.xlu1 %v2536_v41  ;;  %v2529_v50 = vpop.xlane.xlu2 %2528 }
0x1b73   :  { %v2531_v49 = vmul.f32 %v2529_v50, %v5993_v10 }
0x1b75   :  { %v2533_v4 = vsub.f32 %v6986_v28, %v2531_v49 }
0x1b77   :  { %v2535_v42 = vmul.f32 %v2533_v4, %v2533_v4 }
0x1b79   :  { %v2539_v7 = vsel %vm71_vm0, %v2535_v42, 0.0 }
0x1b7a   :  { %2540 = vadd.xlane.f32.xlu0 %v2539_v7 }
0x1be5   :  { %v2538_v59 = vpop.xlane.xlu1 %2537 }
0x1be6   :  { %v2542_v35 = vmul.f32 %v2538_v59, %v5993_v10 }
0x1be8   :  { %v2544_v9 = vadd.f32 1e-06, %v2542_v35 }
0x1bea   :  { %5642 = vrsqrt.f32 %v2544_v9  ;;  %vm2552_vm7 = vweird.f32 %v2544_v9 }
0x1bed   :  { %v2541_v56 = vpop.xlane.xlu0 %2540 }
0x1bee   :  { %v2543_v48 = vmul.f32 %v2541_v56, %v5993_v10  ;;  %v5824_v56 = vld [vmem:[%s8004_s2 + $0x20] sm:$0xff] }
0x1bf0   :  { %v5643_v2 = vpop.eup %5642  ;;  %v2545_v51 = vadd.f32 1e-06, %v2543_v48 }
0x1bf1   :  { %v2547_v19 = vmul.f32 %v5643_v2, %v2544_v9  ;;  %vm2553_vm6 = vweird.f32 %v5643_v2 }
0x1bf2   :  { %5644 = vrsqrt.f32 %v2545_v51  ;;  %vm2554_vm10 = vmor %vm2552_vm7, %vm2553_vm6  ;;  %vm2562_vm12 = vweird.f32 %v2545_v51 }
0x1bf3   :  { %v2548_v47 = vmul.f32 %v5643_v2, %v2547_v19 }
0x1bf5   :  { %v2549_v61 = vmul.f32 0.5, %v2548_v47 }
0x1bf7   :  { %v2550_v16 = vsub.f32 1.5, %v2549_v61 }
0x1bf8   :  { %v5645_v58 = vpop.eup %5644 }
0x1bf9   :  { %v2551_v12 = vmul.f32 %v5643_v2, %v2550_v16  ;;  %v2557_v14 = vmul.f32 %v5645_v58, %v2545_v51  ;;  %vm2563_vm11 = vweird.f32 %v5645_v58  ;;  %v5825_v51 = vld [vmem:[%s8004_s2 + $0x28] sm:$0xff] }
0x1bfa   :  { %vm2564_vm13 = vmor %vm2562_vm12, %vm2563_vm11 }
0x1bfb   :  { %v2555_v30 = vsel %vm2554_vm10, %v5643_v2, %v2551_v12  ;;  %v2558_v24 = vmul.f32 %v5645_v58, %v2557_v14 }
0x1bfc   :  { %v2566_v54 = vmul.f32 %v2555_v30, %v2532_v38 }
0x1bfd   :  { %v2559_v18 = vmul.f32 0.5, %v2558_v24  ;;  %v5827_v24 = vld [vmem:[%s8004_s2 + $0x38] sm:$0xff] }
0x1bfe   :  { %v2571_v52 = vmul.f32 %v5472_v13, %v2566_v54 }
0x1bff   :  { %v2560_v20 = vsub.f32 1.5, %v2559_v18 }
0x1c00   :  { %v2576_v21 = vadd.f32 %v5473_v17, %v2571_v52 }
0x1c01   :  { %v2561_v22 = vmul.f32 %v5645_v58, %v2560_v20 }
0x1c02   :  { %5136 = vmatmul.msk.f32.vlgmr.msra.gmra.mxu1 %vm71_vm0, %v2576_v21 }
0x1c03   :  { %v2565_v26 = vsel %vm2564_vm13, %v5645_v58, %v2561_v22  ;;  %v5826_v58 = vld [vmem:[%s8004_s2 + $0x30] sm:$0xff] }
0x1c04   :  { %v2567_v25 = vmul.f32 %v2565_v26, %v2533_v4  ;;  %v5822_v4 = vld [vmem:[%s8004_s2 + $0x10] sm:$0xff] }
0x1c06   :  { %v2572_v55 = vmul.f32 %v5472_v13, %v2567_v25 }
0x1c08   :  { %v2577_v27 = vadd.f32 %v5473_v17, %v2572_v55 }
0x1c0a   :  { %5137 = vmatmul.msk.f32.gmra.mxu1 %vm71_vm0, %v2577_v27 }
0x1c7f   :  { %v2609_v33 = vpop.f32.mrf.mxu1 }
0x1c80   :  { %v7015_v37 = vadd.f32 %v5474_v31, %v2609_v33 }
0x1c82   :  { %2625 = vrot.lane.b32.xlu1 %v7015_v37, %s5896_s18 }
0x1c87   :  { %v2612_v34 = vpop.f32.mrf.mxu1 }
0x1c88   :  { %v7019_v43 = vadd.f32 %v5474_v31, %v2612_v34 }
0x1c8a   :  { %2617 = vrot.lane.b32.xlu1 %v7015_v37, %s5897_s19  ;;  %2623 = vrot.lane.b32.xlu0 %v7019_v43, %s5895_s17  ;;  %v5403_v22 = vpack.i.bf16 %v7015_v37, %v7019_v43 }
0x1c8b   :  { %2627 = vrot.lane.b32.xlu2 %v7019_v43, %s5896_s18 }
0x1c92   :  { %2619 = vrot.lane.b32.xlu0 %v7019_v43, %s5897_s19 }
0x1c93   :  { %2621 = vrot.lane.b32.xlu2 %v7015_v37, %s5895_s17 }
0x1ce5   :  { %v7031_v45 = vpop.permute.xlu2 %2627 }
0x1ce6   :  { %2643 = vrot.lane.b32.xlu2 %v7031_v45, %s5898_s20 }
0x1ced   :  { %v7035_v15 = vpop.permute.xlu2 %2621 }
0x1cee   :  { %2637 = vrot.lane.b32.xlu2 %v7035_v15, %s5898_s20 }
0x1cf4   :  { %v7039_v46 = vpop.permute.xlu1 %2625 }
0x1cf5   :  { %2641 = vrot.lane.b32.xlu0 %v7039_v46, %s5898_s20  ;;  %v5388_v30 = vpack.i.bf16 %v7039_v46, %v7031_v45 }
0x1cf6   :  { %2631 = vrot.lane.b32.xlu2 %v7019_v43, %s5898_s20 }
0x1cfc   :  { %v7045_v57 = vpop.permute.xlu0 %2623  ;;  %v7049_v60 = vpop.permute.xlu1 %2617 }
0x1cfd   :  { %2639 = vrot.lane.b32.xlu1 %v7045_v57, %s5898_s20  ;;  %v5393_v14 = vpack.i.bf16 %v7035_v15, %v7045_v57 }
0x1d04   :  { %v7051_v29 = vpop.permute.xlu0 %2619 }
0x1d05   :  { %2633 = vrot.lane.b32.xlu1 %v7049_v60, %s5898_s20  ;;  %2635 = vrot.lane.b32.xlu0 %v7051_v29, %s5898_s20 }
0x1d0d   :  { %2629 = vrot.lane.b32.xlu0 %v7015_v37, %s5898_s20 }
0x1d40   :  { %v2644_v63 = vpop.permute.xlu2 %2643 }
0x1d41   :  { %5138 = vmatpush.xpose.msk.msrb.mxu2 %vm198_vm8, %v2644_v63 }
0x1d48   :  { %v2638_v62 = vpop.permute.xlu2 %2637 }
0x1d50   :  { %v2632_v6 = vpop.permute.xlu2 %2631 }
0x1d67   :  { %v2642_v1 = vpop.permute.xlu0 %2641 }
0x1d68   :  { %5139 = vmatpush.xpose.msk.msrb.mxu2 %vm198_vm8, %v2642_v1 }
0x1d6f   :  { %v2640_v23 = vpop.permute.xlu1 %2639 }
0x1d70   :  { %5140 = vmatpush.xpose.msk.msrb.mxu2 %vm198_vm8, %v2640_v23 }
0x1d74   :  { %5141 = vmatpush.xpose.msk.msrb.mxu2 %vm198_vm8, %v2638_v62 }
0x1d77   :  { %v2636_v0 = vpop.permute.xlu0 %2635  ;;  %v2634_v11 = vpop.permute.xlu1 %2633 }
0x1d78   :  { %5142 = vmatpush.xpose.msk.msrb.mxu2 %vm198_vm8, %v2636_v0  ;;  %v5398_v0 = vpack.i.bf16 %v7049_v60, %v7051_v29 }
0x1d7c   :  { %5143 = vmatpush.xpose.msk.msrb.mxu2 %vm198_vm8, %v2634_v11 }
0x1d7f   :  { %v2630_v32 = vpop.permute.xlu0 %2629 }
0x1d80   :  { %5144 = vmatpush.xpose.msk.msrb.mxu2 %vm198_vm8, %v2632_v6 }
0x1d84   :  { %5145 = vmatpush.xpose.msk.msrb.mxu2 %vm198_vm8, %v2630_v32 }
0x1d87   :  { %5146 = vmatmul.msk.f32.vlgmr.msrb.gmra.mxu2 %vm198_vm8, %v7015_v37 }
0x1d8f   :  { %5147 = vmatmul.msk.f32.gmra.mxu2 %vm198_vm8, %v7019_v43 }
0x1d97   :  { %5148 = vmatmul.msk.f32.gmra.mxu2 %vm198_vm8, %v7049_v60 }
0x1d9f   :  { %5149 = vmatmul.msk.f32.gmra.mxu2 %vm198_vm8, %v7051_v29 }
0x1da7   :  { %5150 = vmatmul.msk.f32.gmra.mxu2 %vm198_vm8, %v7035_v15 }
0x1daf   :  { %5151 = vmatmul.msk.f32.gmra.mxu2 %vm198_vm8, %v7045_v57 }
0x1db7   :  { %5152 = vmatmul.msk.f32.gmra.mxu2 %vm198_vm8, %v7039_v46 }
0x1dbf   :  { %5153 = vmatmul.msk.f32.gmra.mxu2 %vm198_vm8, %v7031_v45 }
0x1e0a   :  { %v2694_v40 = vpop.f32.mrf.mxu2 }
0x1e0b   :  { %v2695_v3 = vadd.f32 %v5820_v36, %v2694_v40 }
0x1e0d   :  { %v2718_v5 = vsel %vm272_vm9, %v2695_v3, -inf }
0x1e0e   :  { %2719 = vmax.xlane.f32.xlu1 %v2718_v5 }
0x1e12   :  { %v2697_v38 = vpop.f32.mrf.mxu2 }
0x1e13   :  { %v2698_v41 = vadd.f32 %v5821_v44, %v2697_v38 }
0x1e15   :  { %v2721_v50 = vsel %vm272_vm9, %v2698_v41, -inf }
0x1e16   :  { %2722 = vmax.xlane.f32.xlu2 %v2721_v50 }
0x1e1a   :  { %v2700_v49 = vpop.f32.mrf.mxu2 }
0x1e1b   :  { %v2701_v42 = vadd.f32 %v5822_v4, %v2700_v49 }
0x1e1d   :  { %v2724_v7 = vsel %vm272_vm9, %v2701_v42, -inf }
0x1e1e   :  { %2725 = vmax.xlane.f32.xlu0 %v2724_v7 }
0x1e22   :  { %v2703_v8 = vpop.f32.mrf.mxu2 }
0x1e23   :  { %v2704_v59 = vadd.f32 %v5823_v53, %v2703_v8 }
0x1e25   :  { %v2727_v35 = vsel %vm272_vm9, %v2704_v59, -inf }
0x1e26   :  { %2728 = vmax.xlane.f32.xlu1 %v2727_v35 }
0x1e2a   :  { %v2706_v9 = vpop.f32.mrf.mxu2 }
0x1e2b   :  { %v7102_v48 = vadd.f32 %v5824_v56, %v2706_v9 }
0x1e2d   :  { %v2730_v2 = vsel %vm272_vm9, %v7102_v48, -inf }
0x1e2e   :  { %2731 = vmax.xlane.f32.xlu2 %v2730_v2 }
0x1e32   :  { %v2709_v19 = vpop.f32.mrf.mxu2 }
0x1e33   :  { %v2710_v47 = vadd.f32 %v5825_v51, %v2709_v19 }
0x1e35   :  { %v2733_v61 = vsel %vm272_vm9, %v2710_v47, -inf }
0x1e36   :  { %2734 = vmax.xlane.f32.xlu0 %v2733_v61 }
0x1e3a   :  { %v2712_v16 = vpop.f32.mrf.mxu2 }
0x1e3b   :  { %v2713_v12 = vadd.f32 %v5826_v58, %v2712_v16 }
0x1e3d   :  { %v2736_v13 = vsel %vm272_vm9, %v2713_v12, -inf }
0x1e3e   :  { %2737 = vmax.xlane.f32.xlu1 %v2736_v13 }
0x1e42   :  { %v2715_v54 = vpop.f32.mrf.mxu2 }
0x1e43   :  { %v7123_v17 = vadd.f32 %v5827_v24, %v2715_v54 }
0x1e45   :  { %v2739_v52 = vsel %vm272_vm9, %v7123_v17, -inf }
0x1e4a   :  { %5394 = vrot.lane.b32.xlu0 %v5393_v14, %s5899_s24 }
0x1e57   :  { %5389 = vrot.lane.b32.xlu1 %v5388_v30, %s5899_s24 }
0x1e74   :  { %2740 = vmax.xlane.f32.xlu0 %v2739_v52 }
0x1e81   :  { %v2720_v18 = vpop.xlane.xlu1 %2719 }
0x1e82   :  { %v2742_v20 = vsub.f32 %v2695_v3, %v2720_v18 }
0x1e84   :  { %v2750_v21 = vmul.f32 1.442695, %v2742_v20 }
0x1e86   :  { %5646 = vpow2.f32 %v2750_v21 }
0x1e88   :  { %5404 = vrot.lane.b32.xlu0 %v5403_v22, %s5899_s24 }
0x1e89   :  { %v2723_v26 = vpop.xlane.xlu2 %2722 }
0x1e8a   :  { %v2743_v25 = vsub.f32 %v2698_v41, %v2723_v26 }
0x1e8c   :  { %v7130_v55 = vpop.eup %5646  ;;  %v2752_v27 = vmul.f32 1.442695, %v2743_v25 }
0x1e8d   :  { %v2766_v31 = vsel %vm272_vm9, %v7130_v55, 0.0 }
0x1e8e   :  { %5648 = vpow2.f32 %v2752_v27  ;;  %2767 = vadd.xlane.f32.xlu2 %v2766_v31 }
0x1e91   :  { %v2726_v33 = vpop.xlane.xlu0 %2725 }
0x1e92   :  { %v2744_v34 = vsub.f32 %v2701_v42, %v2726_v33 }
0x1e94   :  { %v7134_v45 = vpop.eup %5648  ;;  %v2754_v15 = vmul.f32 1.442695, %v2744_v34 }
0x1e95   :  { %v2769_v37 = vsel %vm272_vm9, %v7134_v45, 0.0 }
0x1e96   :  { %5650 = vpow2.f32 %v2754_v15  ;;  %2770 = vadd.xlane.f32.xlu2 %v2769_v37 }
0x1e99   :  { %v2729_v46 = vpop.xlane.xlu1 %2728 }
0x1e9a   :  { %v2745_v63 = vsub.f32 %v2704_v59, %v2729_v46 }
0x1e9c   :  { %v7138_v43 = vpop.eup %5650  ;;  %v2756_v1 = vmul.f32 1.442695, %v2745_v63 }
0x1e9d   :  { %v2772_v57 = vsel %vm272_vm9, %v7138_v43, 0.0 }
0x1e9e   :  { %2773 = vadd.xlane.f32.xlu1 %v2772_v57  ;;  %5652 = vpow2.f32 %v2756_v1 }
0x1ea1   :  { %v2732_v44 = vpop.xlane.xlu2 %2731 }
0x1ea2   :  { %v2746_v41 = vsub.f32 %v7102_v48, %v2732_v44 }
0x1ea4   :  { %v7144_v6 = vpop.eup %5652  ;;  %v2758_v50 = vmul.f32 1.442695, %v2746_v41 }
0x1ea5   :  { %v2775_v40 = vsel %vm272_vm9, %v7144_v6, 0.0 }
0x1ea9   :  { %v2735_v23 = vpop.xlane.xlu0 %2734 }
0x1eaa   :  { %v2747_v62 = vsub.f32 %v2710_v47, %v2735_v23 }
0x1eac   :  { %v2760_v11 = vmul.f32 1.442695, %v2747_v62 }
0x1eae   :  { %5654 = vpow2.f32 %v2760_v11  ;;  %5399 = vrot.lane.b32.xlu2 %v5398_v0, %s5899_s24 }
0x1eb1   :  { %v2738_v32 = vpop.xlane.xlu1 %2737 }
0x1eb2   :  { %v2748_v36 = vsub.f32 %v2713_v12, %v2738_v32  ;;  %2776 = vadd.xlane.f32.xlu0 %v2775_v40 }
0x1eb4   :  { %v7149_v3 = vpop.eup %5654  ;;  %v2762_v5 = vmul.f32 1.442695, %v2748_v36 }
0x1eb5   :  { %v2781_v38 = vsel %vm272_vm9, %v7149_v3, 0.0 }
0x1eb6   :  { %5656 = vpow2.f32 %v2762_v5  ;;  %2782 = vadd.xlane.f32.xlu1 %v2781_v38 }
0x1eb7   :  { %5658 = vpow2.f32 %v2758_v50 }
0x1ebc   :  { %v7153_v60 = vpop.eup %5656  ;;  %v5395_v42 = vpop.permute.xlu0 %5394 }
0x1ebd   :  { %v2784_v29 = vsel %vm272_vm9, %v7153_v60, 0.0  ;;  %v5396_v8 = vunpack.i.l.bf16 %v5395_v42  ;;  %v5397_v53 = vunpack.i.h.bf16 %v5395_v42  ;;  %v7158_v59 = vpop.eup %5658 }
0x1ebe   :  { %2785 = vadd.xlane.f32.xlu1 %v2784_v29  ;;  %v2778_v35 = vsel %vm272_vm9, %v7158_v59, 0.0 }
0x1ec9   :  { %v5390_v49 = vpop.permute.xlu1 %5389 }
0x1eca   :  { %v5391_v4 = vunpack.i.l.bf16 %v5390_v49  ;;  %v5392_v7 = vunpack.i.h.bf16 %v5390_v49 }
0x1ecc   :  { %2966 = vmatpush.msrb.mxu3 %v5391_v4 }
0x1ece   :  { %2967 = vmatpush.msrb.mxu3 %v5392_v7 }
0x1ed0   :  { %2968 = vmatpush.msrb.mxu3 %v5396_v8 }
0x1ed2   :  { %2969 = vmatpush.msrb.mxu3 %v5397_v53 }
0x1ed7   :  { %2779 = vadd.xlane.f32.xlu2 %v2778_v35 }
0x1ee7   :  { %v2741_v9 = vpop.xlane.xlu0 %2740 }
0x1ee8   :  { %v2749_v56 = vsub.f32 %v7123_v17, %v2741_v9 }
0x1eea   :  { %v2764_v48 = vmul.f32 1.442695, %v2749_v56 }
0x1eec   :  { %5660 = vpow2.f32 %v2764_v48 }
0x1ef2   :  { %v7163_v2 = vpop.eup %5660 }
0x1ef3   :  { %v2787_v19 = vsel %vm272_vm9, %v7163_v2, 0.0 }
0x1ef4   :  { %2788 = vadd.xlane.f32.xlu0 %v2787_v19 }
0x1efa   :  { %v5405_v20 = vpop.permute.xlu0 %5404 }
0x1efb   :  { %v5406_v31 = vunpack.i.l.bf16 %v5405_v20  ;;  %v5407_v37 = vunpack.i.h.bf16 %v5405_v20 }
0x1f01   :  { %v2768_v51 = vpop.xlane.xlu2 %2767 }
0x1f02   :  { %5662 = vrcp.f32 %v2768_v51  ;;  %v2801_v30 = vand.u32 2147483648, %v2768_v51  ;;  %vm2795_vm15 = vweird.f32 %v2768_v51  ;;  %v2799_v54 = vand.u32 2147483647, %v2768_v51 }
0x1f04   :  { %v2802_v26 = vor.u32 1.1754944e-38, %v2801_v30  ;;  %vm2800_vm4 = vcmp.eq.f32.partialorder %v2799_v54, 8.507059e+37 }
0x1f08   :  { %v5663_v47 = vpop.eup %5662 }
0x1f09   :  { %v2791_v61 = vmul.f32 %v5663_v47, %v2768_v51  ;;  %v2771_v16 = vpop.xlane.xlu2 %2770  ;;  %vm2796_vm14 = vweird.f32 %v5663_v47 }
0x1f0a   :  { %5664 = vrcp.f32 %v2771_v16  ;;  %vm2797_vm3 = vmor %vm2795_vm15, %vm2796_vm14  ;;  %v2815_v46 = vand.u32 2147483648, %v2771_v16  ;;  %vm2809_vm6 = vweird.f32 %v2771_v16  ;;  %v2813_v63 = vand.u32 2147483647, %v2771_v16 }
0x1f0b   :  { %v2792_v58 = vsub.f32 1.0, %v2791_v61 }
0x1f0c   :  { %v2816_v0 = vor.u32 1.1754944e-38, %v2815_v46  ;;  %vm2814_vm10 = vcmp.eq.f32.partialorder %v2813_v63, 8.507059e+37 }
0x1f0d   :  { %v2793_v12 = vmul.f32 %v5663_v47, %v2792_v58 }
0x1f0f   :  { %v2794_v13 = vadd.f32 %v5663_v47, %v2793_v12 }
0x1f10   :  { %v5665_v14 = vpop.eup %5664 }
0x1f11   :  { %v2805_v24 = vmul.f32 %v5665_v14, %v2771_v16  ;;  %v5400_v17 = vpop.permute.xlu2 %5399  ;;  %v2774_v52 = vpop.xlane.xlu1 %2773  ;;  %v2798_v21 = vsel %vm2797_vm3, %v5663_v47, %v2794_v13  ;;  %vm2810_vm5 = vweird.f32 %v5665_v14 }
0x1f12   :  { %v5401_v18 = vunpack.i.l.bf16 %v5400_v17  ;;  %5666 = vrcp.f32 %v2774_v52  ;;  %v5402_v25 = vunpack.i.h.bf16 %v5400_v17  ;;  %v2803_v33 = vsel %vm2800_vm4, %v2802_v26, %v2798_v21  ;;  %vm2811_vm7 = vmor %vm2809_vm6, %vm2810_vm5 }
0x1f13   :  { %v2806_v22 = vsub.f32 1.0, %v2805_v24  ;;  %v2902_v57 = vmul.f32 %v7130_v55, %v2803_v33  ;;  %v2829_v36 = vand.u32 2147483648, %v2774_v52  ;;  %vm2823_vm12 = vweird.f32 %v2774_v52 }
0x1f14   :  { %2970 = vmatpush.msrb.mxu3 %v5401_v18  ;;  %v2827_v5 = vand.u32 2147483647, %v2774_v52 }
0x1f15   :  { %v2807_v27 = vmul.f32 %v5665_v14, %v2806_v22  ;;  %v2830_v29 = vor.u32 1.1754944e-38, %v2829_v36 }
0x1f16   :  { %2971 = vmatpush.msrb.mxu3 %v5402_v25  ;;  %vm2828_vm14 = vcmp.eq.f32.partialorder %v2827_v5, 8.507059e+37 }
0x1f17   :  { %v2808_v34 = vadd.f32 %v5665_v14, %v2807_v27 }
0x1f18   :  { %v5667_v15 = vpop.eup %5666  ;;  %2972 = vmatpush.msrb.mxu3 %v5406_v31 }
0x1f19   :  { %v2819_v1 = vmul.f32 %v5667_v15, %v2774_v52  ;;  %v2812_v62 = vsel %vm2811_vm7, %v5665_v14, %v2808_v34  ;;  %vm2824_vm11 = vweird.f32 %v5667_v15 }
0x1f1a   :  { %2973 = vmatpush.msrb.mxu3 %v5407_v37  ;;  %v2817_v32 = vsel %vm2814_vm10, %v2816_v0, %v2812_v62  ;;  %vm2825_vm13 = vmor %vm2823_vm12, %vm2824_vm11 }
0x1f1b   :  { %v2820_v23 = vsub.f32 1.0, %v2819_v1  ;;  %5154 = vmatmul.msk.f32.vlgmr.msrb.gmra.mxu3 %vm272_vm9, %v2902_v57  ;;  %v2903_v55 = vmul.f32 %v7134_v45, %v2817_v32 }
0x1f1d   :  { %v2821_v11 = vmul.f32 %v5667_v15, %v2820_v23 }
0x1f1f   :  { %v2822_v40 = vadd.f32 %v5667_v15, %v2821_v11 }
0x1f21   :  { %v2826_v38 = vsel %vm2825_vm13, %v5667_v15, %v2822_v40 }
0x1f22   :  { %v2831_v41 = vsel %vm2828_vm14, %v2830_v29, %v2826_v38 }
0x1f23   :  { %5155 = vmatmul.msk.f32.gmra.mxu3 %vm272_vm9, %v2903_v55  ;;  %v2904_v50 = vmul.f32 %v7138_v43, %v2831_v41 }
0x1f25   :  { %v2777_v44 = vpop.xlane.xlu0 %2776 }
0x1f26   :  { %5668 = vrcp.f32 %v2777_v44  ;;  %v2843_v7 = vand.u32 2147483648, %v2777_v44  ;;  %v2841_v45 = vand.u32 2147483647, %v2777_v44  ;;  %vm2837_vm3 = vweird.f32 %v2777_v44 }
0x1f28   :  { %v2844_v35 = vor.u32 1.1754944e-38, %v2843_v7  ;;  %vm2842_vm5 = vcmp.eq.f32.partialorder %v2841_v45, 8.507059e+37 }
0x1f29   :  { %v2783_v43 = vpop.xlane.xlu1 %2782 }
0x1f2a   :  { %5670 = vrcp.f32 %v2783_v43  ;;  %v2871_v26 = vand.u32 2147483648, %v2783_v43  ;;  %vm2865_vm13 = vweird.f32 %v2783_v43  ;;  %v2869_v27 = vand.u32 2147483647, %v2783_v43 }
0x1f2b   :  { %5156 = vmatmul.msk.f32.gmra.mxu3 %vm272_vm9, %v2904_v50 }
0x1f2c   :  { %v5669_v49 = vpop.eup %5668  ;;  %v2872_v15 = vor.u32 1.1754944e-38, %v2871_v26 }
0x1f2d   :  { %v2833_v4 = vmul.f32 %v5669_v49, %v2777_v44  ;;  %vm2838_vm15 = vweird.f32 %v5669_v49 }
0x1f2e   :  { %vm2839_vm4 = vmor %vm2837_vm3, %vm2838_vm15  ;;  %vm2870_vm15 = vcmp.eq.f32.partialorder %v2869_v27, 8.507059e+37 }
0x1f2f   :  { %v2834_v42 = vsub.f32 1.0, %v2833_v4 }
0x1f30   :  { %v5671_v19 = vpop.eup %5670 }
0x1f31   :  { %v2835_v8 = vmul.f32 %v5669_v49, %v2834_v42  ;;  %v2786_v51 = vpop.xlane.xlu1 %2785  ;;  %v2861_v61 = vmul.f32 %v5671_v19, %v2783_v43  ;;  %vm2866_vm10 = vweird.f32 %v5671_v19  ;;  %v5833_v43 = vld [vmem:[%s8003_s1 + $0x28] sm:$0xff] }
0x1f32   :  { %vm2867_vm14 = vmor %vm2865_vm13, %vm2866_vm10  ;;  %v2885_v57 = vand.u32 2147483648, %v2786_v51  ;;  %v2883_v63 = vand.u32 2147483647, %v2786_v51 }
0x1f33   :  { %v2836_v53 = vadd.f32 %v5669_v49, %v2835_v8  ;;  %v2862_v58 = vsub.f32 1.0, %v2861_v61 }
0x1f35   :  { %v2840_v9 = vsel %vm2839_vm4, %v5669_v49, %v2836_v53  ;;  %v2863_v30 = vmul.f32 %v5671_v19, %v2862_v58  ;;  %vm2879_vm4 = vweird.f32 %v2786_v51 }
0x1f36   :  { %v2845_v56 = vsel %vm2842_vm5, %v2844_v35, %v2840_v9  ;;  %v5829_v35 = vld [vmem:[%s8003_s1 + $0x8] sm:$0xff]  ;;  %v5830_v9 = vld [vmem:[%s8003_s1 + $0x10] sm:$0xff] }
0x1f37   :  { %v2905_v48 = vmul.f32 %v7144_v6, %v2845_v56  ;;  %v2864_v20 = vadd.f32 %v5671_v19, %v2863_v30  ;;  %v5831_v56 = vld [vmem:[%s8003_s1 + $0x18] sm:$0xff] }
0x1f39   :  { %5157 = vmatmul.msk.f32.gmra.mxu3 %vm272_vm9, %v2905_v48  ;;  %v2868_v34 = vsel %vm2867_vm14, %v5671_v19, %v2864_v20  ;;  %v5832_v48 = vld [vmem:[%s8003_s1 + $0x20] sm:$0xff]  ;;  %v5834_v19 = vld [vmem:[%s8003_s1 + $0x30] sm:$0xff] }
0x1f3a   :  { %v2873_v37 = vsel %vm2870_vm15, %v2872_v15, %v2868_v34  ;;  %v5475_v34 = vld [vmem:[%s8010_s8 + $0x3] ss:$0 sm:$0xff] }
0x1f3b   :  { %v2907_v1 = vmul.f32 %v7149_v3, %v2873_v37 }
0x1f4a   :  { %v2780_v47 = vpop.xlane.xlu2 %2779 }
0x1f4b   :  { %5672 = vrcp.f32 %v2780_v47  ;;  %v2857_v54 = vand.u32 2147483648, %v2780_v47  ;;  %v2855_v6 = vand.u32 2147483647, %v2780_v47  ;;  %vm2851_vm7 = vweird.f32 %v2780_v47 }
0x1f4c   :  { %5674 = vrcp.f32 %v2786_v51 }
0x1f4d   :  { %v2858_v18 = vor.u32 1.1754944e-38, %v2857_v54  ;;  %vm2856_vm12 = vcmp.eq.f32.partialorder %v2855_v6, 8.507059e+37  ;;  %v5171_v54 = vld [vmem:[%s8009_s7 + $0x38] sm:$0xff] }
0x1f4e   :  { %3093 = vmatpush.msrb.mxu1 %v5171_v54  ;;  %v5478_v54 = vld [vmem:[%s8014_s12 + $0x3] ss:$0 sm:$0xff] }
0x1f51   :  { %v5673_v16 = vpop.eup %5672 }
0x1f52   :  { %v2847_v12 = vmul.f32 %v5673_v16, %v2780_v47  ;;  %v5675_v13 = vpop.eup %5674  ;;  %vm2852_vm6 = vweird.f32 %v5673_v16 }
0x1f53   :  { %v2875_v24 = vmul.f32 %v5675_v13, %v2786_v51  ;;  %vm2853_vm11 = vmor %vm2851_vm7, %vm2852_vm6  ;;  %vm2880_vm3 = vweird.f32 %v5675_v13  ;;  %vm2884_vm6 = vcmp.eq.f32.partialorder %v2883_v63, 8.507059e+37  ;;  %v5835_v51 = vld [vmem:[%s8003_s1 + $0x38] sm:$0xff] }
0x1f54   :  { %v2848_v14 = vsub.f32 1.0, %v2847_v12  ;;  %vm2881_vm5 = vmor %vm2879_vm4, %vm2880_vm3 }
0x1f55   :  { %v2876_v21 = vsub.f32 1.0, %v2875_v24  ;;  %v5170_v24 = vld [vmem:[%s8009_s7 + $0x30] sm:$0xff] }
0x1f56   :  { %v2849_v17 = vmul.f32 %v5673_v16, %v2848_v14  ;;  %3094 = vmatpush.msrb.mxu1 %v5170_v24 }
0x1f57   :  { %v2877_v33 = vmul.f32 %v5675_v13, %v2876_v21 }
0x1f58   :  { %v2850_v52 = vadd.f32 %v5673_v16, %v2849_v17 }
0x1f59   :  { %v2878_v46 = vadd.f32 %v5675_v13, %v2877_v33 }
0x1f5a   :  { %v2854_v22 = vsel %vm2853_vm11, %v5673_v16, %v2850_v52 }
0x1f5b   :  { %v2859_v25 = vsel %vm2856_vm12, %v2858_v18, %v2854_v22  ;;  %v2882_v23 = vsel %vm2881_vm5, %v5675_v13, %v2878_v46 }
0x1f5c   :  { %v2906_v31 = vmul.f32 %v7158_v59, %v2859_v25  ;;  %v2886_v59 = vor.u32 1.1754944e-38, %v2885_v57 }
0x1f5e   :  { %5158 = vmatmul.msk.f32.gmra.mxu3 %vm272_vm9, %v2906_v31  ;;  %v2887_v0 = vsel %vm2884_vm6, %v2886_v59, %v2882_v23 }
0x1f5f   :  { %v2908_v11 = vmul.f32 %v7153_v60, %v2887_v0 }
0x1f66   :  { %5159 = vmatmul.msk.f32.gmra.mxu3 %vm272_vm9, %v2907_v1 }
0x1f67   :  { %v2789_v62 = vpop.xlane.xlu0 %2788 }
0x1f68   :  { %5676 = vrcp.f32 %v2789_v62  ;;  %v2899_v5 = vand.u32 2147483648, %v2789_v62  ;;  %v2897_v3 = vand.u32 2147483647, %v2789_v62  ;;  %vm2893_vm10 = vweird.f32 %v2789_v62 }
0x1f6a   :  { %v2900_v29 = vor.u32 1.1754944e-38, %v2899_v5  ;;  %vm2898_vm12 = vcmp.eq.f32.partialorder %v2897_v3, 8.507059e+37  ;;  %v5178_v3 = vld [vmem:[%s8013_s11 + $0x38] sm:$0xff] }
0x1f6b   :  { %3197 = vmatpush.msra.mxu1 %v5178_v3 }
0x1f6e   :  { %v5677_v32 = vpop.eup %5676  ;;  %5160 = vmatmul.msk.f32.gmra.mxu3 %vm272_vm9, %v2908_v11 }
0x1f6f   :  { %v2889_v40 = vmul.f32 %v5677_v32, %v2789_v62  ;;  %vm2894_vm7 = vweird.f32 %v5677_v32 }
0x1f70   :  { %vm2895_vm11 = vmor %vm2893_vm10, %vm2894_vm7 }
0x1f71   :  { %v2890_v36 = vsub.f32 1.0, %v2889_v40 }
0x1f73   :  { %v2891_v55 = vmul.f32 %v5677_v32, %v2890_v36 }
0x1f75   :  { %v2892_v38 = vadd.f32 %v5677_v32, %v2891_v55 }
0x1f77   :  { %v2896_v44 = vsel %vm2895_vm11, %v5677_v32, %v2892_v38  ;;  %v5177_v38 = vld [vmem:[%s8013_s11 + $0x30] sm:$0xff] }
0x1f78   :  { %v2901_v41 = vsel %vm2898_vm12, %v2900_v29, %v2896_v44  ;;  %3198 = vmatpush.msra.mxu1 %v5177_v38 }
0x1f79   :  { %v2909_v50 = vmul.f32 %v7163_v2, %v2901_v41  ;;  %v5828_v2 = vld [vmem:[%s8003_s1] sm:$0xff] }
0x1f7b   :  { %5161 = vmatmul.msk.f32.gmra.mxu3 %vm272_vm9, %v2909_v50 }
0x1f9e   :  { %v2975_v60 = vpop.f32.mrf.mxu3 }
0x1fa6   :  { %v2978_v49 = vpop.f32.mrf.mxu3 }
0x1fae   :  { %v2981_v4 = vpop.f32.mrf.mxu3 }
0x1fbc   :  { %v2984_v42 = vpop.f32.mrf.mxu3 }
0x1fe1   :  { %v2987_v7 = vpop.f32.mrf.mxu3 }
0x1fe9   :  { %v2990_v8 = vpop.f32.mrf.mxu3 }
0x1ff1   :  { %v2993_v45 = vpop.f32.mrf.mxu3 }
0x1ffe   :  { %v2996_v53 = vpop.f32.mrf.mxu3 }
0x1fff   :  { %3007 = vmatpush.msrb.mxu0 %v2996_v53 }
0x2001   :  { %3008 = vmatpush.msrb.mxu0 %v2993_v45 }
0x2003   :  { %3009 = vmatpush.msrb.mxu0 %v2990_v8 }
0x2005   :  { %3010 = vmatpush.msrb.mxu0 %v2987_v7 }
0x2007   :  { %3011 = vmatpush.msrb.mxu0 %v2984_v42 }
0x2009   :  { %3012 = vmatpush.msrb.mxu0 %v2981_v4 }
0x200b   :  { %3013 = vmatpush.msrb.mxu0 %v2978_v49 }
0x200d   :  { %3014 = vmatpush.msrb.mxu0 %v2975_v60 }
0x200e   :  { %5162 = vmatmul.msk.f32.vlgmr.msrb.gmra.mxu0 %vm272_vm9, %v5828_v2 }
0x2016   :  { %5163 = vmatmul.msk.f32.gmra.mxu0 %vm272_vm9, %v5829_v35  ;;  %v5476_v35 = vld [vmem:[%s8011_s9 + $0x3] ss:$0 sm:$0xff] }
0x201e   :  { %5164 = vmatmul.msk.f32.gmra.mxu0 %vm272_vm9, %v5830_v9 }
0x2026   :  { %5165 = vmatmul.msk.f32.gmra.mxu0 %vm272_vm9, %v5831_v56 }
0x202e   :  { %5166 = vmatmul.msk.f32.gmra.mxu0 %vm272_vm9, %v5832_v48  ;;  %v5477_v48 = vld [vmem:[%s8012_s10 + $0x3] ss:$0 sm:$0xff] }
0x2036   :  { %5167 = vmatmul.msk.f32.gmra.mxu0 %vm272_vm9, %v5833_v43 }
0x203e   :  { %5168 = vmatmul.msk.f32.gmra.mxu0 %vm272_vm9, %v5834_v19 }
0x2046   :  { %5169 = vmatmul.msk.f32.gmra.mxu0 %vm272_vm9, %v5835_v51 }
0x208b   :  { %v3016_v47 = vpop.f32.mrf.mxu0 }
0x2093   :  { %v3019_v61 = vpop.f32.mrf.mxu0 }
0x209b   :  { %v3022_v16 = vpop.f32.mrf.mxu0 }
0x209c   :  { %3042 = vrot.lane.b32.xlu2 %v3022_v16, %s5900_s22 }
0x20a3   :  { %v3025_v58 = vpop.f32.mrf.mxu0 }
0x20a4   :  { %3044 = vrot.lane.b32.xlu2 %v3025_v58, %s5900_s22 }
0x20ab   :  { %v3028_v12 = vpop.f32.mrf.mxu0 }
0x20ac   :  { %3050 = vrot.lane.b32.xlu1 %v3028_v12, %s5901_s23 }
0x20b3   :  { %v3031_v13 = vpop.f32.mrf.mxu0 }
0x20bb   :  { %v3034_v14 = vpop.f32.mrf.mxu0 }
0x20bc   :  { %3058 = vrot.lane.b32.xlu0 %v3034_v14, %s5902_s25 }
0x20c3   :  { %v3037_v30 = vpop.f32.mrf.mxu0 }
0x20c4   :  { %3052 = vrot.lane.b32.xlu0 %v3031_v13, %s5901_s23  ;;  %3060 = vrot.lane.b32.xlu1 %v3037_v30, %s5902_s25 }
0x20f6   :  { %v3043_v17 = vpop.permute.xlu2 %3042 }
0x20f7   :  { %v3064_v52 = vsel %vm198_vm8, %v3016_v47, %v3043_v17 }
0x20fe   :  { %v3045_v22 = vpop.permute.xlu2 %3044 }
0x20ff   :  { %v3065_v26 = vsel %vm198_vm8, %v3019_v61, %v3045_v22 }
0x211e   :  { %v3051_v6 = vpop.permute.xlu1 %3050 }
0x211f   :  { %v3066_v18 = vsel %vm645_vm1, %v3064_v52, %v3051_v6 }
0x212e   :  { %v3059_v20 = vpop.permute.xlu0 %3058 }
0x212f   :  { %v3068_v21 = vsel %vm648_vm2, %v3066_v18, %v3059_v20 }
0x2130   :  { %5172 = vmatmul.msk.f32.vlgmr.msrb.gmra.mxu1 %vm71_vm0, %v3068_v21 }
0x2136   :  { %v3053_v25 = vpop.permute.xlu0 %3052  ;;  %v3061_v27 = vpop.permute.xlu1 %3060 }
0x2137   :  { %v3067_v31 = vsel %vm645_vm1, %v3065_v26, %v3053_v25  ;;  %v5189_v26 = vld [vmem:[%s8015_s13 + $0xf8] sm:$0xff] }
0x2138   :  { %v3069_v33 = vsel %vm648_vm2, %v3067_v31, %v3061_v27  ;;  %3312 = vmatpush.msrb.mxu1 %v5189_v26  ;;  %v5188_v27 = vld [vmem:[%s8015_s13 + $0xf0] sm:$0xff] }
0x2139   :  { %5173 = vmatmul.msk.f32.gmra.mxu1 %vm71_vm0, %v3069_v33  ;;  %v5187_v33 = vld [vmem:[%s8015_s13 + $0xe8] sm:$0xff] }
0x213a   :  { %3313 = vmatpush.msrb.mxu1 %v5188_v27 }
0x213c   :  { %3314 = vmatpush.msrb.mxu1 %v5187_v33 }
0x21ad   :  { %v3096_v15 = vpop.f32.mrf.mxu1 }
0x21ae   :  { %v3102_v37 = vadd.f32 %v3096_v15, %v6981_v39 }
0x21b0   :  { %v7239_v46 = vadd.f32 %v5475_v34, %v3102_v37  ;;  %v5186_v37 = vld [vmem:[%s8015_s13 + $0xe0] sm:$0xff] }
0x21b1   :  { %3315 = vmatpush.msrb.mxu1 %v5186_v37 }
0x21b2   :  { %v3115_v57 = vsel %vm71_vm0, %v7239_v46, 0.0 }
0x21b3   :  { %3116 = vadd.xlane.f32.xlu2 %v3115_v57 }
0x21b6   :  { %v3099_v63 = vpop.f32.mrf.mxu1 }
0x21b7   :  { %v3103_v1 = vadd.f32 %v3099_v63, %v6986_v28 }
0x21b9   :  { %v7244_v23 = vadd.f32 %v5475_v34, %v3103_v1  ;;  %v5185_v1 = vld [vmem:[%s8015_s13 + $0xd8] sm:$0xff] }
0x21ba   :  { %3316 = vmatpush.msrb.mxu1 %v5185_v1 }
0x21bb   :  { %v3118_v59 = vsel %vm71_vm0, %v7244_v23, 0.0 }
0x21bc   :  { %3119 = vadd.xlane.f32.xlu0 %v3118_v59 }
0x2226   :  { %v3117_v62 = vpop.xlane.xlu2 %3116 }
0x2227   :  { %v3121_v0 = vmul.f32 %v3117_v62, %v5993_v10 }
0x2229   :  { %v3123_v39 = vsub.f32 %v7239_v46, %v3121_v0  ;;  %v5184_v0 = vld [vmem:[%s8015_s13 + $0xd0] sm:$0xff] }
0x222a   :  { %3317 = vmatpush.msrb.mxu1 %v5184_v0 }
0x222b   :  { %v3125_v11 = vmul.f32 %v3123_v39, %v3123_v39 }
0x222d   :  { %v3127_v32 = vsel %vm71_vm0, %v3125_v11, 0.0 }
0x222e   :  { %3128 = vadd.xlane.f32.xlu1 %v3127_v32  ;;  %v5183_v32 = vld [vmem:[%s8015_s13 + $0xc8] sm:$0xff] }
0x222f   :  { %v3120_v40 = vpop.xlane.xlu0 %3119  ;;  %3318 = vmatpush.msrb.mxu1 %v5183_v32 }
0x2230   :  { %v3122_v36 = vmul.f32 %v3120_v40, %v5993_v10 }
0x2232   :  { %v3124_v28 = vsub.f32 %v7244_v23, %v3122_v36 }
0x2234   :  { %v3126_v5 = vmul.f32 %v3124_v28, %v3124_v28 }
0x2236   :  { %v3130_v55 = vsel %vm71_vm0, %v3126_v5, 0.0 }
0x2237   :  { %3131 = vadd.xlane.f32.xlu2 %v3130_v55 }
0x22a1   :  { %v3129_v29 = vpop.xlane.xlu1 %3128 }
0x22a2   :  { %v3133_v44 = vmul.f32 %v3129_v29, %v5993_v10 }
0x22a4   :  { %v3135_v41 = vadd.f32 1e-06, %v3133_v44 }
0x22a6   :  { %5678 = vrsqrt.f32 %v3135_v41  ;;  %vm3143_vm14 = vweird.f32 %v3135_v41 }
0x22aa   :  { %v3132_v50 = vpop.xlane.xlu2 %3131 }
0x22ab   :  { %v3134_v60 = vmul.f32 %v3132_v50, %v5993_v10 }
0x22ac   :  { %v5679_v49 = vpop.eup %5678 }
0x22ad   :  { %v3138_v4 = vmul.f32 %v5679_v49, %v3135_v41  ;;  %v3136_v42 = vadd.f32 1e-06, %v3134_v60  ;;  %vm3144_vm13 = vweird.f32 %v5679_v49 }
0x22ae   :  { %vm3145_vm15 = vmor %vm3143_vm14, %vm3144_vm13 }
0x22af   :  { %v3139_v7 = vmul.f32 %v5679_v49, %v3138_v4  ;;  %5680 = vrsqrt.f32 %v3136_v42  ;;  %vm3153_vm4 = vweird.f32 %v3136_v42 }
0x22b1   :  { %v3140_v8 = vmul.f32 0.5, %v3139_v7 }
0x22b3   :  { %v3141_v45 = vsub.f32 1.5, %v3140_v8 }
0x22b5   :  { %v5681_v53 = vpop.eup %5680  ;;  %v3142_v2 = vmul.f32 %v5679_v49, %v3141_v45 }
0x22b6   :  { %v3148_v9 = vmul.f32 %v5681_v53, %v3136_v42  ;;  %vm3154_vm3 = vweird.f32 %v5681_v53 }
0x22b7   :  { %v3146_v56 = vsel %vm3145_vm15, %v5679_v49, %v3142_v2  ;;  %vm3155_vm5 = vmor %vm3153_vm4, %vm3154_vm3 }
0x22b8   :  { %v3157_v43 = vmul.f32 %v3146_v56, %v3123_v39  ;;  %v3149_v19 = vmul.f32 %v5681_v53, %v3148_v9 }
0x22ba   :  { %v3162_v51 = vmul.f32 %v5476_v35, %v3157_v43  ;;  %v3150_v47 = vmul.f32 0.5, %v3149_v19 }
0x22bc   :  { %v3167_v61 = vadd.f32 %v5477_v48, %v3162_v51  ;;  %v3151_v16 = vsub.f32 1.5, %v3150_v47 }
0x22be   :  { %v3152_v58 = vmul.f32 %v5681_v53, %v3151_v16  ;;  %5180 = vmatmul.msk.f32.vlgmr.msra.gmra.mxu1 %vm71_vm0, %v3167_v61 }
0x22c0   :  { %v3156_v12 = vsel %vm3155_vm5, %v5681_v53, %v3152_v58 }
0x22c1   :  { %v3158_v13 = vmul.f32 %v3156_v12, %v3124_v28  ;;  %v5182_v28 = vld [vmem:[%s8015_s13 + $0xc0] sm:$0xff] }
0x22c2   :  { %3319 = vmatpush.msrb.mxu1 %v5182_v28 }
0x22c3   :  { %v3163_v14 = vmul.f32 %v5476_v35, %v3158_v13 }
0x22c5   :  { %v3168_v30 = vadd.f32 %v5477_v48, %v3163_v14 }
0x22c7   :  { %5181 = vmatmul.msk.f32.gmra.mxu1 %vm71_vm0, %v3168_v30 }
0x233b   :  { %v3200_v24 = vpop.f32.mrf.mxu1 }
0x233c   :  { %v7273_v17 = vadd.f32 %v5478_v54, %v3200_v24 }
0x233e   :  { %v7276_v6 = vmul.f32 0.70710677, %v7273_v17  ;;  %v3206_v33 = vmul.f32 0.5, %v7273_v17  ;;  %v5479_v17 = vld [vmem:[%s8016_s14 + $0x3] ss:$0 sm:$0xff] }
0x2340   :  { %v3210_v52 = vand.u32 2147483647, %v7276_v6  ;;  %vm3274_vm3 = vcmp.ge.f32.partialorder %v7276_v6, 0.0 }
0x2342   :  { %v3212_v18 = vmul.f32 0.3275911, %v3210_v52  ;;  %v3262_v38 = vsub.f32 0.0, %v3210_v52 }
0x2344   :  { %v3214_v20 = vadd.f32 1.0, %v3212_v18  ;;  %v3203_v21 = vpop.f32.mrf.mxu1  ;;  %v3264_v49 = vmul.f32 %v3262_v38, %v3210_v52 }
0x2345   :  { %v7279_v22 = vadd.f32 %v5478_v54, %v3203_v21 }
0x2346   :  { %5682 = vrcp.f32 %v3214_v20  ;;  %v3227_v62 = vand.u32 2147483648, %v3214_v20  ;;  %v3225_v11 = vand.u32 2147483647, %v3214_v20  ;;  %vm3221_vm7 = vweird.f32 %v3214_v20 }
0x2347   :  { %v7285_v25 = vmul.f32 0.70710677, %v7279_v22  ;;  %v3266_v2 = vmul.f32 1.442695, %v3264_v49  ;;  %v5195_v49 = vld [vmem:[%s8007_s5 + $0x40] sm:$0xff] }
0x2348   :  { %v3228_v36 = vor.u32 1.1754944e-38, %v3227_v62  ;;  %vm3226_vm11 = vcmp.eq.f32.partialorder %v3225_v11, 8.507059e+37  ;;  %v3207_v62 = vmul.f32 0.5, %v7279_v22 }
0x2349   :  { %v3211_v31 = vand.u32 2147483647, %v7285_v25  ;;  %vm3275_vm4 = vcmp.ge.f32.partialorder %v7285_v25, 0.0 }
0x234b   :  { %v3213_v34 = vmul.f32 0.3275911, %v3211_v31  ;;  %v3263_v48 = vsub.f32 0.0, %v3211_v31 }
0x234c   :  { %v5683_v15 = vpop.eup %5682 }
0x234d   :  { %v3217_v57 = vmul.f32 %v5683_v15, %v3214_v20  ;;  %v3215_v63 = vadd.f32 1.0, %v3213_v34  ;;  %vm3222_vm6 = vweird.f32 %v5683_v15  ;;  %v3265_v61 = vmul.f32 %v3263_v48, %v3211_v31 }
0x234e   :  { %vm3223_vm10 = vmor %vm3221_vm7, %vm3222_vm6 }
0x234f   :  { %v3218_v59 = vsub.f32 1.0, %v3217_v57  ;;  %5684 = vrcp.f32 %v3215_v63  ;;  %v3241_v60 = vand.u32 2147483648, %v3215_v63  ;;  %v3239_v42 = vand.u32 2147483647, %v3215_v63 }
0x2350   :  { %vm3235_vm13 = vweird.f32 %v3215_v63  ;;  %5686 = vpow2.f32 %v3266_v2  ;;  %v3268_v14 = vmul.f32 1.442695, %v3265_v61 }
0x2351   :  { %v3219_v39 = vmul.f32 %v5683_v15, %v3218_v59  ;;  %v3242_v53 = vor.u32 1.1754944e-38, %v3241_v60  ;;  %vm3240_vm15 = vcmp.eq.f32.partialorder %v3239_v42, 8.507059e+37  ;;  %v5196_v60 = vld [vmem:[%s8007_s5 + $0x48] sm:$0xff] }
0x2352   :  { %5688 = vpow2.f32 %v3268_v14  ;;  %3415 = vmatpush.msra.mxu1 %v5196_v60 }
0x2353   :  { %v3220_v40 = vadd.f32 %v5683_v15, %v3219_v39 }
0x2354   :  { %3416 = vmatpush.msra.mxu1 %v5195_v49  ;;  %v5839_v49 = vld [vmem:[%s8004_s2 + $0x18] sm:$0xff] }
0x2355   :  { %v5685_v5 = vpop.eup %5684  ;;  %v3224_v55 = vsel %vm3223_vm10, %v5683_v15, %v3220_v40 }
0x2356   :  { %v3229_v3 = vsel %vm3226_vm11, %v3228_v36, %v3224_v55  ;;  %v3231_v29 = vmul.f32 %v5685_v5, %v3215_v63  ;;  %vm3236_vm12 = vweird.f32 %v5685_v5  ;;  %v5687_v30 = vpop.eup %5686 }
0x2357   :  { %v3244_v44 = vmul.f32 1.0614054, %v3229_v3  ;;  %vm3237_vm14 = vmor %vm3235_vm13, %vm3236_vm12 }
0x2358   :  { %v3232_v41 = vsub.f32 1.0, %v3231_v29  ;;  %v5689_v15 = vpop.eup %5688 }
0x2359   :  { %v3246_v50 = vadd.f32 -1.4531521, %v3244_v44 }
0x235a   :  { %v3233_v4 = vmul.f32 %v5685_v5, %v3232_v41 }
0x235b   :  { %v3248_v7 = vmul.f32 %v3246_v50, %v3229_v3 }
0x235c   :  { %v3234_v8 = vadd.f32 %v5685_v5, %v3233_v4 }
0x235d   :  { %v3250_v45 = vadd.f32 1.4214138, %v3248_v7 }
0x235e   :  { %v3238_v35 = vsel %vm3237_vm14, %v5685_v5, %v3234_v8 }
0x235f   :  { %v3252_v9 = vmul.f32 %v3250_v45, %v3229_v3  ;;  %v3243_v56 = vsel %vm3240_vm15, %v3242_v53, %v3238_v35 }
0x2360   :  { %v3245_v43 = vmul.f32 1.0614054, %v3243_v56 }
0x2361   :  { %v3254_v19 = vadd.f32 -0.28449672, %v3252_v9 }
0x2362   :  { %v3247_v51 = vadd.f32 -1.4531521, %v3245_v43 }
0x2363   :  { %v3256_v47 = vmul.f32 %v3254_v19, %v3229_v3 }
0x2364   :  { %v3249_v16 = vmul.f32 %v3247_v51, %v3243_v56  ;;  %v5480_v51 = vld [vmem:[%s8005_s3 + $0x4] ss:$0 sm:$0xff] }
0x2365   :  { %v3258_v58 = vadd.f32 0.2548296, %v3256_v47 }
0x2366   :  { %v3251_v12 = vadd.f32 1.4214138, %v3249_v16  ;;  %v5481_v16 = vld [vmem:[%s8006_s4 + $0x4] ss:$0 sm:$0xff] }
0x2367   :  { %v3260_v13 = vmul.f32 %v3258_v58, %v3229_v3 }
0x2368   :  { %v3253_v54 = vmul.f32 %v3251_v12, %v3243_v56 }
0x2369   :  { %v3270_v24 = vmul.f32 %v5687_v30, %v3260_v13 }
0x236a   :  { %v3255_v52 = vadd.f32 -0.28449672, %v3253_v54 }
0x236b   :  { %v3272_v18 = vsub.f32 1.0, %v3270_v24 }
0x236c   :  { %v3257_v20 = vmul.f32 %v3255_v52, %v3243_v56 }
0x236d   :  { %v3276_v21 = vsub.f32 0.0, %v3272_v18 }
0x236e   :  { %v3259_v26 = vadd.f32 0.2548296, %v3257_v20 }
0x236f   :  { %v3278_v27 = vsel %vm3274_vm3, %v3272_v18, %v3276_v21 }
0x2370   :  { %v3280_v31 = vadd.f32 1.0, %v3278_v27  ;;  %v3261_v34 = vmul.f32 %v3259_v26, %v3243_v56  ;;  %v5482_v26 = vld [vmem:[%s8008_s6 + $0x4] ss:$0 sm:$0xff] }
0x2372   :  { %v3282_v37 = vmul.f32 %v3280_v31, %v3206_v33  ;;  %v3271_v57 = vmul.f32 %v5689_v15, %v3261_v34 }
0x2374   :  { %v3273_v63 = vsub.f32 1.0, %v3271_v57  ;;  %5191 = vmatmul.msk.f32.vlgmr.msrb.gmra.mxu1 %vm272_vm9, %v3282_v37 }
0x2376   :  { %v3277_v1 = vsub.f32 0.0, %v3273_v63 }
0x2378   :  { %v3279_v59 = vsel %vm3275_vm4, %v3273_v63, %v3277_v1 }
0x2379   :  { %v3281_v0 = vadd.f32 1.0, %v3279_v59 }
0x237b   :  { %v3283_v6 = vmul.f32 %v3281_v0, %v3207_v62 }
0x237d   :  { %5192 = vmatmul.msk.f32.gmra.mxu1 %vm272_vm9, %v3283_v6 }
0x23f1   :  { %v3321_v39 = vpop.f32.mrf.mxu1 }
0x23f2   :  { %v3322_v11 = vadd.f32 %v5479_v17, %v3321_v39 }
0x23f4   :  { %v7319_v32 = vadd.f32 %v3322_v11, %v7239_v46 }
0x23f6   :  { %v3333_v40 = vsel %vm71_vm0, %v7319_v32, 0.0 }
0x23f7   :  { %3334 = vadd.xlane.f32.xlu0 %v3333_v40 }
0x23fa   :  { %v3324_v25 = vpop.f32.mrf.mxu1 }
0x23fb   :  { %v3325_v36 = vadd.f32 %v5479_v17, %v3324_v25 }
0x23fd   :  { %v7324_v22 = vadd.f32 %v3325_v36, %v7244_v23 }
0x23ff   :  { %v3336_v28 = vsel %vm71_vm0, %v7324_v22, 0.0 }
0x2400   :  { %3337 = vadd.xlane.f32.xlu1 %v3336_v28  ;;  %v5836_v28 = vld [vmem:[%s8004_s2] sm:$0xff] }
0x246a   :  { %v3335_v5 = vpop.xlane.xlu0 %3334 }
0x246b   :  { %v3339_v55 = vmul.f32 %v3335_v5, %v5993_v10 }
0x246d   :  { %v3341_v3 = vsub.f32 %v7319_v32, %v3339_v55 }
0x246f   :  { %v3343_v46 = vmul.f32 %v3341_v3, %v3341_v3 }
0x2471   :  { %v3345_v38 = vsel %vm71_vm0, %v3343_v46, 0.0  ;;  %v5837_v46 = vld [vmem:[%s8004_s2 + $0x8] sm:$0xff] }
0x2472   :  { %3346 = vadd.xlane.f32.xlu2 %v3345_v38 }
0x2473   :  { %v3338_v29 = vpop.xlane.xlu1 %3337 }
0x2474   :  { %v3340_v44 = vmul.f32 %v3338_v29, %v5993_v10 }
0x2476   :  { %v3342_v41 = vsub.f32 %v7324_v22, %v3340_v44 }
0x2478   :  { %v3344_v23 = vmul.f32 %v3342_v41, %v3342_v41 }
0x247a   :  { %v3348_v50 = vsel %vm71_vm0, %v3344_v23, 0.0 }
0x247b   :  { %3349 = vadd.xlane.f32.xlu0 %v3348_v50 }
0x24e5   :  { %v3347_v4 = vpop.xlane.xlu2 %3346 }
0x24e6   :  { %v3351_v42 = vmul.f32 %v3347_v4, %v5993_v10 }
0x24e8   :  { %v3353_v7 = vadd.f32 1e-06, %v3351_v42 }
0x24ea   :  { %5690 = vrsqrt.f32 %v3353_v7  ;;  %vm3361_vm6 = vweird.f32 %v3353_v7 }
0x24ee   :  { %v3350_v8 = vpop.xlane.xlu0 %3349 }
0x24ef   :  { %v3352_v45 = vmul.f32 %v3350_v8, %v5993_v10  ;;  %v5840_v8 = vld [vmem:[%s8004_s2 + $0x20] sm:$0xff] }
0x24f0   :  { %v5691_v53 = vpop.eup %5690 }
0x24f1   :  { %v3356_v2 = vmul.f32 %v5691_v53, %v3353_v7  ;;  %v3354_v35 = vadd.f32 1e-06, %v3352_v45  ;;  %vm3362_vm5 = vweird.f32 %v5691_v53 }
0x24f2   :  { %vm3363_vm7 = vmor %vm3361_vm6, %vm3362_vm5 }
0x24f3   :  { %v3357_v9 = vmul.f32 %v5691_v53, %v3356_v2  ;;  %5692 = vrsqrt.f32 %v3354_v35  ;;  %vm3371_vm11 = vweird.f32 %v3354_v35 }
0x24f5   :  { %v3358_v56 = vmul.f32 0.5, %v3357_v9 }
0x24f7   :  { %v3359_v48 = vsub.f32 1.5, %v3358_v56 }
0x24f9   :  { %v5693_v43 = vpop.eup %5692  ;;  %v3360_v19 = vmul.f32 %v5691_v53, %v3359_v48 }
0x24fa   :  { %v3366_v47 = vmul.f32 %v5693_v43, %v3354_v35  ;;  %vm3372_vm10 = vweird.f32 %v5693_v43  ;;  %v5841_v35 = vld [vmem:[%s8004_s2 + $0x28] sm:$0xff] }
0x24fb   :  { %v3364_v61 = vsel %vm3363_vm7, %v5691_v53, %v3360_v19  ;;  %vm3373_vm12 = vmor %vm3371_vm11, %vm3372_vm10 }
0x24fc   :  { %v3375_v58 = vmul.f32 %v3364_v61, %v3341_v3  ;;  %v3367_v12 = vmul.f32 %v5693_v43, %v3366_v47 }
0x24fe   :  { %v3380_v13 = vmul.f32 %v5480_v51, %v3375_v58  ;;  %v3368_v14 = vmul.f32 0.5, %v3367_v12  ;;  %v5843_v58 = vld [vmem:[%s8004_s2 + $0x38] sm:$0xff] }
0x2500   :  { %v3385_v30 = vadd.f32 %v5481_v16, %v3380_v13  ;;  %v3369_v54 = vsub.f32 1.5, %v3368_v14 }
0x2502   :  { %v3370_v24 = vmul.f32 %v5693_v43, %v3369_v54  ;;  %5198 = vmatmul.msk.f32.vlgmr.msra.gmra.mxu1 %vm71_vm0, %v3385_v30 }
0x2504   :  { %v3374_v52 = vsel %vm3373_vm12, %v5693_v43, %v3370_v24  ;;  %v5842_v43 = vld [vmem:[%s8004_s2 + $0x30] sm:$0xff] }
0x2505   :  { %v3376_v18 = vmul.f32 %v3374_v52, %v3342_v41  ;;  %v5838_v41 = vld [vmem:[%s8004_s2 + $0x10] sm:$0xff] }
0x2507   :  { %v3381_v20 = vmul.f32 %v5480_v51, %v3376_v18 }
0x2509   :  { %v3386_v21 = vadd.f32 %v5481_v16, %v3381_v20 }
0x250b   :  { %5199 = vmatmul.msk.f32.gmra.mxu1 %vm71_vm0, %v3386_v21 }
0x257f   :  { %v3418_v27 = vpop.f32.mrf.mxu1 }
0x2580   :  { %v7353_v33 = vadd.f32 %v5482_v26, %v3418_v27 }
0x2582   :  { %3434 = vrot.lane.b32.xlu2 %v7353_v33, %s5896_s18 }
0x2588   :  { %v3421_v31 = vpop.f32.mrf.mxu1 }
0x2589   :  { %v7357_v34 = vadd.f32 %v5482_v26, %v3421_v31 }
0x258b   :  { %3428 = vrot.lane.b32.xlu2 %v7357_v34, %s5897_s19  ;;  %3432 = vrot.lane.b32.xlu0 %v7357_v34, %s5895_s17  ;;  %v5423_v24 = vpack.i.bf16 %v7353_v33, %v7357_v34 }
0x258c   :  { %3436 = vrot.lane.b32.xlu1 %v7357_v34, %s5896_s18 }
0x2593   :  { %3430 = vrot.lane.b32.xlu0 %v7353_v33, %s5895_s17 }
0x2594   :  { %3426 = vrot.lane.b32.xlu1 %v7353_v33, %s5897_s19 }
0x25dc   :  { %v7369_v15 = vpop.permute.xlu2 %3434 }
0x25dd   :  { %3450 = vrot.lane.b32.xlu2 %v7369_v15, %s5898_s20 }
0x25e5   :  { %v7373_v37 = vpop.permute.xlu2 %3428 }
0x25e6   :  { %3444 = vrot.lane.b32.xlu2 %v7373_v37, %s5898_s20 }
0x25ee   :  { %3438 = vrot.lane.b32.xlu2 %v7353_v33, %s5898_s20 }
0x25fd   :  { %v7379_v57 = vpop.permute.xlu0 %3432 }
0x25fe   :  { %v7381_v63 = vpop.permute.xlu1 %3436  ;;  %3448 = vrot.lane.b32.xlu1 %v7379_v57, %s5898_s20 }
0x25ff   :  { %3452 = vrot.lane.b32.xlu0 %v7381_v63, %s5898_s20  ;;  %v5408_v61 = vpack.i.bf16 %v7369_v15, %v7381_v63 }
0x2605   :  { %v7387_v1 = vpop.permute.xlu0 %3430 }
0x2606   :  { %v7389_v59 = vpop.permute.xlu1 %3426  ;;  %v5413_v47 = vpack.i.bf16 %v7387_v1, %v7379_v57 }
0x2607   :  { %3446 = vrot.lane.b32.xlu0 %v7387_v1, %s5898_s20  ;;  %3442 = vrot.lane.b32.xlu1 %v7389_v59, %s5898_s20 }
0x260f   :  { %3440 = vrot.lane.b32.xlu0 %v7357_v34, %s5898_s20 }
0x2637   :  { %v3451_v0 = vpop.permute.xlu2 %3450 }
0x2640   :  { %v3445_v39 = vpop.permute.xlu2 %3444 }
0x2648   :  { %v3439_v25 = vpop.permute.xlu2 %3438 }
0x2670   :  { %v3449_v6 = vpop.permute.xlu1 %3448 }
0x2671   :  { %v3453_v62 = vpop.permute.xlu0 %3452 }
0x2672   :  { %5200 = vmatpush.xpose.msk.msra.mxu2 %vm198_vm8, %v3453_v62 }
0x2676   :  { %5201 = vmatpush.xpose.msk.msra.mxu2 %vm198_vm8, %v3451_v0 }
0x2679   :  { %v3447_v17 = vpop.permute.xlu0 %3446  ;;  %v3443_v11 = vpop.permute.xlu1 %3442 }
0x267a   :  { %5202 = vmatpush.xpose.msk.msra.mxu2 %vm198_vm8, %v3449_v6 }
0x267e   :  { %5203 = vmatpush.xpose.msk.msra.mxu2 %vm198_vm8, %v3447_v17 }
0x2681   :  { %v3441_v40 = vpop.permute.xlu0 %3440 }
0x2682   :  { %5204 = vmatpush.xpose.msk.msra.mxu2 %vm198_vm8, %v3445_v39  ;;  %v5418_v39 = vpack.i.bf16 %v7389_v59, %v7373_v37 }
0x2686   :  { %5205 = vmatpush.xpose.msk.msra.mxu2 %vm198_vm8, %v3443_v11 }
0x268a   :  { %5206 = vmatpush.xpose.msk.msra.mxu2 %vm198_vm8, %v3441_v40 }
0x268e   :  { %5207 = vmatpush.xpose.msk.msra.mxu2 %vm198_vm8, %v3439_v25 }
0x2691   :  { %5208 = vmatmul.msk.f32.vlgmr.msra.gmra.mxu2 %vm198_vm8, %v7353_v33 }
0x2699   :  { %5209 = vmatmul.msk.f32.gmra.mxu2 %vm198_vm8, %v7357_v34 }
0x26a1   :  { %5210 = vmatmul.msk.f32.gmra.mxu2 %vm198_vm8, %v7389_v59 }
0x26a9   :  { %5211 = vmatmul.msk.f32.gmra.mxu2 %vm198_vm8, %v7373_v37 }
0x26b1   :  { %5212 = vmatmul.msk.f32.gmra.mxu2 %vm198_vm8, %v7387_v1 }
0x26b9   :  { %5213 = vmatmul.msk.f32.gmra.mxu2 %vm198_vm8, %v7379_v57 }
0x26c1   :  { %5214 = vmatmul.msk.f32.gmra.mxu2 %vm198_vm8, %v7369_v15 }
0x26c9   :  { %5215 = vmatmul.msk.f32.gmra.mxu2 %vm198_vm8, %v7381_v63 }
0x2714   :  { %v3503_v36 = vpop.f32.mrf.mxu2 }
0x2715   :  { %v3504_v5 = vadd.f32 %v5836_v28, %v3503_v36 }
0x2717   :  { %v3527_v55 = vsel %vm272_vm9, %v3504_v5, -inf }
0x2718   :  { %3528 = vmax.xlane.f32.xlu1 %v3527_v55 }
0x271c   :  { %v3506_v3 = vpop.f32.mrf.mxu2 }
0x271d   :  { %v3507_v38 = vadd.f32 %v5837_v46, %v3506_v3 }
0x271f   :  { %v3530_v29 = vsel %vm272_vm9, %v3507_v38, -inf }
0x2720   :  { %3531 = vmax.xlane.f32.xlu0 %v3530_v29 }
0x2724   :  { %v3509_v44 = vpop.f32.mrf.mxu2 }
0x2725   :  { %v3510_v23 = vadd.f32 %v5838_v41, %v3509_v44 }
0x2727   :  { %v3533_v50 = vsel %vm272_vm9, %v3510_v23, -inf }
0x2728   :  { %3534 = vmax.xlane.f32.xlu2 %v3533_v50 }
0x272c   :  { %v3512_v60 = vpop.f32.mrf.mxu2 }
0x272d   :  { %v3513_v4 = vadd.f32 %v5839_v49, %v3512_v60 }
0x272f   :  { %v3536_v42 = vsel %vm272_vm9, %v3513_v4, -inf }
0x2730   :  { %3537 = vmax.xlane.f32.xlu1 %v3536_v42 }
0x2734   :  { %v3515_v7 = vpop.f32.mrf.mxu2 }
0x2735   :  { %v7440_v45 = vadd.f32 %v5840_v8, %v3515_v7 }
0x2737   :  { %v3539_v53 = vsel %vm272_vm9, %v7440_v45, -inf }
0x2738   :  { %3540 = vmax.xlane.f32.xlu2 %v3539_v53 }
0x273c   :  { %v3518_v2 = vpop.f32.mrf.mxu2 }
0x273d   :  { %v3519_v9 = vadd.f32 %v5841_v35, %v3518_v2 }
0x273f   :  { %v3542_v56 = vsel %vm272_vm9, %v3519_v9, -inf }
0x2740   :  { %3543 = vmax.xlane.f32.xlu0 %v3542_v56 }
0x2744   :  { %v3521_v48 = vpop.f32.mrf.mxu2 }
0x2745   :  { %v3522_v19 = vadd.f32 %v5842_v43, %v3521_v48 }
0x2747   :  { %v3545_v51 = vsel %vm272_vm9, %v3522_v19, -inf }
0x2748   :  { %3546 = vmax.xlane.f32.xlu1 %v3545_v51 }
0x274c   :  { %v3524_v16 = vpop.f32.mrf.mxu2 }
0x274d   :  { %v7461_v12 = vadd.f32 %v5843_v58, %v3524_v16 }
0x274f   :  { %v3548_v13 = vsel %vm272_vm9, %v7461_v12, -inf }
0x2754   :  { %5414 = vrot.lane.b32.xlu0 %v5413_v47, %s5899_s24 }
0x2761   :  { %5409 = vrot.lane.b32.xlu1 %v5408_v61, %s5899_s24 }
0x277e   :  { %3549 = vmax.xlane.f32.xlu0 %v3548_v13 }
0x278b   :  { %v3529_v14 = vpop.xlane.xlu1 %3528 }
0x278c   :  { %v3551_v30 = vsub.f32 %v3504_v5, %v3529_v14 }
0x278e   :  { %v3559_v54 = vmul.f32 1.442695, %v3551_v30 }
0x2790   :  { %5694 = vpow2.f32 %v3559_v54 }
0x2792   :  { %5424 = vrot.lane.b32.xlu0 %v5423_v24, %s5899_s24 }
0x2793   :  { %v3532_v52 = vpop.xlane.xlu0 %3531 }
0x2794   :  { %v3552_v18 = vsub.f32 %v3507_v38, %v3532_v52 }
0x2796   :  { %v7468_v20 = vpop.eup %5694  ;;  %v3561_v21 = vmul.f32 1.442695, %v3552_v18 }
0x2797   :  { %v3575_v26 = vsel %vm272_vm9, %v7468_v20, 0.0 }
0x2798   :  { %5696 = vpow2.f32 %v3561_v21  ;;  %3576 = vadd.xlane.f32.xlu2 %v3575_v26 }
0x279b   :  { %v3535_v27 = vpop.xlane.xlu2 %3534 }
0x279c   :  { %v3553_v31 = vsub.f32 %v3510_v23, %v3535_v27 }
0x279e   :  { %v7472_v15 = vpop.eup %5696  ;;  %v3563_v57 = vmul.f32 1.442695, %v3553_v31 }
0x279f   :  { %v3578_v33 = vsel %vm272_vm9, %v7472_v15, 0.0 }
0x27a0   :  { %5698 = vpow2.f32 %v3563_v57  ;;  %3579 = vadd.xlane.f32.xlu2 %v3578_v33 }
0x27a3   :  { %v3538_v63 = vpop.xlane.xlu1 %3537 }
0x27a4   :  { %v3554_v62 = vsub.f32 %v3513_v4, %v3538_v63 }
0x27a6   :  { %v7476_v34 = vpop.eup %5698  ;;  %v3565_v0 = vmul.f32 1.442695, %v3554_v62 }
0x27a7   :  { %v3581_v1 = vsel %vm272_vm9, %v7476_v34, 0.0 }
0x27a8   :  { %3582 = vadd.xlane.f32.xlu1 %v3581_v1  ;;  %5700 = vpow2.f32 %v3565_v0 }
0x27ab   :  { %v3541_v46 = vpop.xlane.xlu2 %3540 }
0x27ac   :  { %v3555_v38 = vsub.f32 %v7440_v45, %v3541_v46 }
0x27ae   :  { %v7482_v40 = vpop.eup %5700  ;;  %v3567_v29 = vmul.f32 1.442695, %v3555_v38 }
0x27af   :  { %v3584_v36 = vsel %vm272_vm9, %v7482_v40, 0.0 }
0x27b3   :  { %v3544_v6 = vpop.xlane.xlu0 %3543 }
0x27b4   :  { %v3556_v17 = vsub.f32 %v3519_v9, %v3544_v6 }
0x27b6   :  { %v3569_v11 = vmul.f32 1.442695, %v3556_v17 }
0x27b8   :  { %5702 = vpow2.f32 %v3569_v11  ;;  %5419 = vrot.lane.b32.xlu2 %v5418_v39, %s5899_s24 }
0x27bb   :  { %v3547_v25 = vpop.xlane.xlu1 %3546 }
0x27bc   :  { %v3557_v28 = vsub.f32 %v3522_v19, %v3547_v25  ;;  %3585 = vadd.xlane.f32.xlu0 %v3584_v36 }
0x27be   :  { %v7487_v5 = vpop.eup %5702  ;;  %v3571_v55 = vmul.f32 1.442695, %v3557_v28 }
0x27bf   :  { %v3590_v3 = vsel %vm272_vm9, %v7487_v5, 0.0 }
0x27c0   :  { %5704 = vpow2.f32 %v3571_v55  ;;  %3591 = vadd.xlane.f32.xlu1 %v3590_v3 }
0x27c1   :  { %5706 = vpow2.f32 %v3567_v29 }
0x27c6   :  { %v7491_v37 = vpop.eup %5704  ;;  %v5415_v23 = vpop.permute.xlu0 %5414 }
0x27c7   :  { %v3593_v59 = vsel %vm272_vm9, %v7491_v37, 0.0  ;;  %v5416_v60 = vunpack.i.l.bf16 %v5415_v23  ;;  %v5417_v49 = vunpack.i.h.bf16 %v5415_v23  ;;  %v7496_v4 = vpop.eup %5706 }
0x27c8   :  { %3594 = vadd.xlane.f32.xlu1 %v3593_v59  ;;  %v3587_v42 = vsel %vm272_vm9, %v7496_v4, 0.0 }
0x27d3   :  { %v5410_v44 = vpop.permute.xlu1 %5409 }
0x27d4   :  { %v5411_v41 = vunpack.i.l.bf16 %v5410_v44  ;;  %v5412_v50 = vunpack.i.h.bf16 %v5410_v44 }
0x27d6   :  { %3775 = vmatpush.msra.mxu3 %v5411_v41 }
0x27d8   :  { %3776 = vmatpush.msra.mxu3 %v5412_v50 }
0x27da   :  { %3777 = vmatpush.msra.mxu3 %v5416_v60 }
0x27dc   :  { %3778 = vmatpush.msra.mxu3 %v5417_v49 }
0x27e1   :  { %3588 = vadd.xlane.f32.xlu2 %v3587_v42 }
0x27f1   :  { %v3550_v7 = vpop.xlane.xlu0 %3549 }
0x27f2   :  { %v3558_v8 = vsub.f32 %v7461_v12, %v3550_v7 }
0x27f4   :  { %v3573_v45 = vmul.f32 1.442695, %v3558_v8 }
0x27f6   :  { %5708 = vpow2.f32 %v3573_v45 }
0x27fc   :  { %v7501_v53 = vpop.eup %5708 }
0x27fd   :  { %v3596_v2 = vsel %vm272_vm9, %v7501_v53, 0.0 }
0x27fe   :  { %3597 = vadd.xlane.f32.xlu0 %v3596_v2 }
0x2804   :  { %v5425_v30 = vpop.permute.xlu0 %5424 }
0x2805   :  { %v5426_v26 = vunpack.i.l.bf16 %v5425_v30  ;;  %v5427_v33 = vunpack.i.h.bf16 %v5425_v30 }
0x280b   :  { %v3577_v35 = vpop.xlane.xlu2 %3576 }
0x280c   :  { %5710 = vrcp.f32 %v3577_v35  ;;  %v3610_v61 = vand.u32 2147483648, %v3577_v35  ;;  %vm3604_vm14 = vweird.f32 %v3577_v35  ;;  %v3608_v16 = vand.u32 2147483647, %v3577_v35 }
0x280e   :  { %v3611_v52 = vor.u32 1.1754944e-38, %v3610_v61  ;;  %vm3609_vm3 = vcmp.eq.f32.partialorder %v3608_v16, 8.507059e+37 }
0x2812   :  { %v5711_v9 = vpop.eup %5710 }
0x2813   :  { %v3600_v56 = vmul.f32 %v5711_v9, %v3577_v35  ;;  %v3580_v48 = vpop.xlane.xlu2 %3579  ;;  %vm3605_vm13 = vweird.f32 %v5711_v9 }
0x2814   :  { %5712 = vrcp.f32 %v3580_v48  ;;  %vm3606_vm15 = vmor %vm3604_vm14, %vm3605_vm13  ;;  %v3624_v63 = vand.u32 2147483648, %v3580_v48  ;;  %vm3618_vm5 = vweird.f32 %v3580_v48  ;;  %v3622_v62 = vand.u32 2147483647, %v3580_v48 }
0x2815   :  { %v3601_v43 = vsub.f32 1.0, %v3600_v56 }
0x2816   :  { %v3625_v39 = vor.u32 1.1754944e-38, %v3624_v63  ;;  %vm3623_vm7 = vcmp.eq.f32.partialorder %v3622_v62, 8.507059e+37 }
0x2817   :  { %v3602_v19 = vmul.f32 %v5711_v9, %v3601_v43 }
0x2819   :  { %v3603_v51 = vadd.f32 %v5711_v9, %v3602_v19 }
0x281a   :  { %v5713_v47 = vpop.eup %5712 }
0x281b   :  { %v3614_v58 = vmul.f32 %v5713_v47, %v3580_v48  ;;  %v5420_v12 = vpop.permute.xlu2 %5419  ;;  %v3583_v13 = vpop.xlane.xlu1 %3582  ;;  %v3607_v54 = vsel %vm3606_vm15, %v5711_v9, %v3603_v51  ;;  %vm3619_vm4 = vweird.f32 %v5713_v47 }
0x281c   :  { %v5421_v14 = vunpack.i.l.bf16 %v5420_v12  ;;  %5714 = vrcp.f32 %v3583_v13  ;;  %v5422_v18 = vunpack.i.h.bf16 %v5420_v12  ;;  %v3612_v27 = vsel %vm3609_vm3, %v3611_v52, %v3607_v54  ;;  %vm3620_vm6 = vmor %vm3618_vm5, %vm3619_vm4 }
0x281d   :  { %v3615_v24 = vsub.f32 1.0, %v3614_v58  ;;  %v3711_v1 = vmul.f32 %v7468_v20, %v3612_v27  ;;  %v3638_v28 = vand.u32 2147483648, %v3583_v13  ;;  %vm3632_vm11 = vweird.f32 %v3583_v13 }
0x281e   :  { %3779 = vmatpush.msra.mxu3 %v5421_v14  ;;  %v3636_v55 = vand.u32 2147483647, %v3583_v13 }
0x281f   :  { %v3616_v21 = vmul.f32 %v5713_v47, %v3615_v24  ;;  %v3639_v59 = vor.u32 1.1754944e-38, %v3638_v28 }
0x2820   :  { %3780 = vmatpush.msra.mxu3 %v5422_v18  ;;  %vm3637_vm13 = vcmp.eq.f32.partialorder %v3636_v55, 8.507059e+37 }
0x2821   :  { %v3617_v31 = vadd.f32 %v5713_v47, %v3616_v21 }
0x2822   :  { %v5715_v57 = vpop.eup %5714  ;;  %3781 = vmatpush.msra.mxu3 %v5426_v26 }
0x2823   :  { %v3628_v0 = vmul.f32 %v5715_v57, %v3583_v13  ;;  %v3621_v17 = vsel %vm3620_vm6, %v5713_v47, %v3617_v31  ;;  %vm3633_vm10 = vweird.f32 %v5715_v57 }
0x2824   :  { %3782 = vmatpush.msra.mxu3 %v5427_v33  ;;  %v3626_v25 = vsel %vm3623_vm7, %v3625_v39, %v3621_v17  ;;  %vm3634_vm12 = vmor %vm3632_vm11, %vm3633_vm10 }
0x2825   :  { %v3629_v6 = vsub.f32 1.0, %v3628_v0  ;;  %5216 = vmatmul.msk.f32.vlgmr.msra.gmra.mxu3 %vm272_vm9, %v3711_v1  ;;  %v3712_v20 = vmul.f32 %v7472_v15, %v3626_v25 }
0x2827   :  { %v3630_v11 = vmul.f32 %v5715_v57, %v3629_v6 }
0x2829   :  { %v3631_v36 = vadd.f32 %v5715_v57, %v3630_v11 }
0x282b   :  { %v3635_v3 = vsel %vm3634_vm12, %v5715_v57, %v3631_v36 }
0x282c   :  { %v3640_v38 = vsel %vm3637_vm13, %v3639_v59, %v3635_v3 }
0x282d   :  { %5217 = vmatmul.msk.f32.gmra.mxu3 %vm272_vm9, %v3712_v20  ;;  %v3713_v29 = vmul.f32 %v7476_v34, %v3640_v38 }
0x282f   :  { %v3586_v46 = vpop.xlane.xlu0 %3585 }
0x2830   :  { %5716 = vrcp.f32 %v3586_v46  ;;  %v3652_v50 = vand.u32 2147483648, %v3586_v46  ;;  %v3650_v15 = vand.u32 2147483647, %v3586_v46  ;;  %vm3646_vm15 = vweird.f32 %v3586_v46 }
0x2832   :  { %v3653_v42 = vor.u32 1.1754944e-38, %v3652_v50  ;;  %vm3651_vm4 = vcmp.eq.f32.partialorder %v3650_v15, 8.507059e+37 }
0x2833   :  { %v3592_v34 = vpop.xlane.xlu1 %3591 }
0x2834   :  { %5718 = vrcp.f32 %v3592_v34  ;;  %v3680_v52 = vand.u32 2147483648, %v3592_v34  ;;  %vm3674_vm12 = vweird.f32 %v3592_v34  ;;  %v3678_v21 = vand.u32 2147483647, %v3592_v34 }
0x2835   :  { %5218 = vmatmul.msk.f32.gmra.mxu3 %vm272_vm9, %v3713_v29 }
0x2836   :  { %v5717_v44 = vpop.eup %5716  ;;  %v3681_v57 = vor.u32 1.1754944e-38, %v3680_v52 }
0x2837   :  { %v3642_v41 = vmul.f32 %v5717_v44, %v3586_v46  ;;  %vm3647_vm14 = vweird.f32 %v5717_v44 }
0x2838   :  { %vm3648_vm3 = vmor %vm3646_vm15, %vm3647_vm14  ;;  %vm3679_vm14 = vcmp.eq.f32.partialorder %v3678_v21, 8.507059e+37 }
0x2839   :  { %v3643_v23 = vsub.f32 1.0, %v3642_v41 }
0x283a   :  { %v5719_v2 = vpop.eup %5718 }
0x283b   :  { %v3644_v60 = vmul.f32 %v5717_v44, %v3643_v23  ;;  %v3595_v35 = vpop.xlane.xlu1 %3594  ;;  %v3670_v56 = vmul.f32 %v5719_v2, %v3592_v34  ;;  %vm3675_vm7 = vweird.f32 %v5719_v2  ;;  %v5849_v34 = vld [vmem:[%s8003_s1 + $0x28] sm:$0xff] }
0x283c   :  { %vm3676_vm13 = vmor %vm3674_vm12, %vm3675_vm7  ;;  %v3694_v1 = vand.u32 2147483648, %v3595_v35  ;;  %v3692_v62 = vand.u32 2147483647, %v3595_v35 }
0x283d   :  { %v3645_v49 = vadd.f32 %v5717_v44, %v3644_v60  ;;  %v3671_v43 = vsub.f32 1.0, %v3670_v56 }
0x283f   :  { %v3649_v7 = vsel %vm3648_vm3, %v5717_v44, %v3645_v49  ;;  %v3672_v61 = vmul.f32 %v5719_v2, %v3671_v43  ;;  %vm3688_vm3 = vweird.f32 %v3595_v35 }
0x2840   :  { %v3654_v8 = vsel %vm3651_vm4, %v3653_v42, %v3649_v7  ;;  %v5845_v42 = vld [vmem:[%s8003_s1 + $0x8] sm:$0xff]  ;;  %v5846_v7 = vld [vmem:[%s8003_s1 + $0x10] sm:$0xff] }
0x2841   :  { %v3714_v45 = vmul.f32 %v7482_v40, %v3654_v8  ;;  %v3673_v30 = vadd.f32 %v5719_v2, %v3672_v61  ;;  %v5847_v8 = vld [vmem:[%s8003_s1 + $0x18] sm:$0xff] }
0x2843   :  { %5219 = vmatmul.msk.f32.gmra.mxu3 %vm272_vm9, %v3714_v45  ;;  %v3677_v31 = vsel %vm3676_vm13, %v5719_v2, %v3673_v30  ;;  %v5848_v45 = vld [vmem:[%s8003_s1 + $0x20] sm:$0xff]  ;;  %v5850_v2 = vld [vmem:[%s8003_s1 + $0x30] sm:$0xff] }
0x2844   :  { %v3682_v33 = vsel %vm3679_vm14, %v3681_v57, %v3677_v31  ;;  %v5483_v31 = vld [vmem:[%s8010_s8 + $0x4] ss:$0 sm:$0xff] }
0x2845   :  { %v3716_v0 = vmul.f32 %v7487_v5, %v3682_v33 }
0x2854   :  { %v3589_v9 = vpop.xlane.xlu2 %3588 }
0x2855   :  { %5720 = vrcp.f32 %v3589_v9  ;;  %v3666_v16 = vand.u32 2147483648, %v3589_v9  ;;  %v3664_v40 = vand.u32 2147483647, %v3589_v9  ;;  %vm3660_vm6 = vweird.f32 %v3589_v9 }
0x2856   :  { %5722 = vrcp.f32 %v3595_v35 }
0x2857   :  { %v3667_v14 = vor.u32 1.1754944e-38, %v3666_v16  ;;  %vm3665_vm11 = vcmp.eq.f32.partialorder %v3664_v40, 8.507059e+37  ;;  %v5233_v16 = vld [vmem:[%s8009_s7 + $0x48] sm:$0xff] }
0x2858   :  { %3902 = vmatpush.msrb.mxu1 %v5233_v16  ;;  %v5486_v16 = vld [vmem:[%s8014_s12 + $0x4] ss:$0 sm:$0xff] }
0x285b   :  { %v5721_v48 = vpop.eup %5720 }
0x285c   :  { %v3656_v19 = vmul.f32 %v5721_v48, %v3589_v9  ;;  %v5723_v51 = vpop.eup %5722  ;;  %vm3661_vm5 = vweird.f32 %v5721_v48 }
0x285d   :  { %v3684_v58 = vmul.f32 %v5723_v51, %v3595_v35  ;;  %vm3662_vm10 = vmor %vm3660_vm6, %vm3661_vm5  ;;  %vm3689_vm15 = vweird.f32 %v5723_v51  ;;  %vm3693_vm5 = vcmp.eq.f32.partialorder %v3692_v62, 8.507059e+37  ;;  %v5851_v35 = vld [vmem:[%s8003_s1 + $0x38] sm:$0xff] }
0x285e   :  { %v3657_v47 = vsub.f32 1.0, %v3656_v19  ;;  %vm3690_vm4 = vmor %vm3688_vm3, %vm3689_vm15 }
0x285f   :  { %v3685_v54 = vsub.f32 1.0, %v3684_v58  ;;  %v5232_v58 = vld [vmem:[%s8009_s7 + $0x40] sm:$0xff] }
0x2860   :  { %v3658_v12 = vmul.f32 %v5721_v48, %v3657_v47  ;;  %3903 = vmatpush.msrb.mxu1 %v5232_v58 }
0x2861   :  { %v3686_v27 = vmul.f32 %v5723_v51, %v3685_v54 }
0x2862   :  { %v3659_v13 = vadd.f32 %v5721_v48, %v3658_v12 }
0x2863   :  { %v3687_v63 = vadd.f32 %v5723_v51, %v3686_v27 }
0x2864   :  { %v3663_v24 = vsel %vm3662_vm10, %v5721_v48, %v3659_v13 }
0x2865   :  { %v3668_v18 = vsel %vm3665_vm11, %v3667_v14, %v3663_v24  ;;  %v3691_v6 = vsel %vm3690_vm4, %v5723_v51, %v3687_v63 }
0x2866   :  { %v3715_v26 = vmul.f32 %v7496_v4, %v3668_v18  ;;  %v3695_v4 = vor.u32 1.1754944e-38, %v3694_v1 }
0x2868   :  { %5220 = vmatmul.msk.f32.gmra.mxu3 %vm272_vm9, %v3715_v26  ;;  %v3696_v39 = vsel %vm3693_vm5, %v3695_v4, %v3691_v6 }
0x2869   :  { %v3717_v11 = vmul.f32 %v7491_v37, %v3696_v39 }
0x2870   :  { %5221 = vmatmul.msk.f32.gmra.mxu3 %vm272_vm9, %v3716_v0 }
0x2871   :  { %v3598_v17 = vpop.xlane.xlu0 %3597 }
0x2872   :  { %5724 = vrcp.f32 %v3598_v17  ;;  %v3708_v55 = vand.u32 2147483648, %v3598_v17  ;;  %v3706_v5 = vand.u32 2147483647, %v3598_v17  ;;  %vm3702_vm7 = vweird.f32 %v3598_v17 }
0x2874   :  { %v3709_v59 = vor.u32 1.1754944e-38, %v3708_v55  ;;  %vm3707_vm11 = vcmp.eq.f32.partialorder %v3706_v5, 8.507059e+37  ;;  %v5240_v5 = vld [vmem:[%s8013_s11 + $0x48] sm:$0xff] }
0x2875   :  { %4006 = vmatpush.msra.mxu1 %v5240_v5 }
0x2878   :  { %v5725_v25 = vpop.eup %5724  ;;  %5222 = vmatmul.msk.f32.gmra.mxu3 %vm272_vm9, %v3717_v11 }
0x2879   :  { %v3698_v36 = vmul.f32 %v5725_v25, %v3598_v17  ;;  %vm3703_vm6 = vweird.f32 %v5725_v25 }
0x287a   :  { %vm3704_vm10 = vmor %vm3702_vm7, %vm3703_vm6 }
0x287b   :  { %v3699_v28 = vsub.f32 1.0, %v3698_v36 }
0x287d   :  { %v3700_v20 = vmul.f32 %v5725_v25, %v3699_v28 }
0x287f   :  { %v3701_v3 = vadd.f32 %v5725_v25, %v3700_v20 }
0x2881   :  { %v3705_v46 = vsel %vm3704_vm10, %v5725_v25, %v3701_v3  ;;  %v5239_v3 = vld [vmem:[%s8013_s11 + $0x40] sm:$0xff] }
0x2882   :  { %v3710_v38 = vsel %vm3707_vm11, %v3709_v59, %v3705_v46  ;;  %4007 = vmatpush.msra.mxu1 %v5239_v3 }
0x2883   :  { %v3718_v29 = vmul.f32 %v7501_v53, %v3710_v38  ;;  %v5844_v53 = vld [vmem:[%s8003_s1] sm:$0xff] }
0x2885   :  { %5223 = vmatmul.msk.f32.gmra.mxu3 %vm272_vm9, %v3718_v29 }
0x28a8   :  { %v3784_v37 = vpop.f32.mrf.mxu3 }
0x28b0   :  { %v3787_v44 = vpop.f32.mrf.mxu3 }
0x28b8   :  { %v3790_v41 = vpop.f32.mrf.mxu3 }
0x28c6   :  { %v3793_v23 = vpop.f32.mrf.mxu3 }
0x28eb   :  { %v3796_v50 = vpop.f32.mrf.mxu3 }
0x28f3   :  { %v3799_v60 = vpop.f32.mrf.mxu3 }
0x28fb   :  { %v3802_v15 = vpop.f32.mrf.mxu3 }
0x2908   :  { %v3805_v49 = vpop.f32.mrf.mxu3 }
0x2909   :  { %3816 = vmatpush.msra.mxu0 %v3805_v49 }
0x290b   :  { %3817 = vmatpush.msra.mxu0 %v3802_v15 }
0x290d   :  { %3818 = vmatpush.msra.mxu0 %v3799_v60 }
0x290f   :  { %3819 = vmatpush.msra.mxu0 %v3796_v50 }
0x2911   :  { %3820 = vmatpush.msra.mxu0 %v3793_v23 }
0x2913   :  { %3821 = vmatpush.msra.mxu0 %v3790_v41 }
0x2915   :  { %3822 = vmatpush.msra.mxu0 %v3787_v44 }
0x2917   :  { %3823 = vmatpush.msra.mxu0 %v3784_v37 }
0x2918   :  { %5224 = vmatmul.msk.f32.vlgmr.msra.gmra.mxu0 %vm272_vm9, %v5844_v53 }
0x2920   :  { %5225 = vmatmul.msk.f32.gmra.mxu0 %vm272_vm9, %v5845_v42  ;;  %v5484_v42 = vld [vmem:[%s8011_s9 + $0x4] ss:$0 sm:$0xff] }
0x2928   :  { %5226 = vmatmul.msk.f32.gmra.mxu0 %vm272_vm9, %v5846_v7 }
0x2930   :  { %5227 = vmatmul.msk.f32.gmra.mxu0 %vm272_vm9, %v5847_v8 }
0x2938   :  { %5228 = vmatmul.msk.f32.gmra.mxu0 %vm272_vm9, %v5848_v45  ;;  %v5485_v45 = vld [vmem:[%s8012_s10 + $0x4] ss:$0 sm:$0xff] }
0x2940   :  { %5229 = vmatmul.msk.f32.gmra.mxu0 %vm272_vm9, %v5849_v34 }
0x2948   :  { %5230 = vmatmul.msk.f32.gmra.mxu0 %vm272_vm9, %v5850_v2 }
0x2950   :  { %5231 = vmatmul.msk.f32.gmra.mxu0 %vm272_vm9, %v5851_v35 }
0x2995   :  { %v3825_v9 = vpop.f32.mrf.mxu0 }
0x299d   :  { %v3828_v56 = vpop.f32.mrf.mxu0 }
0x29a5   :  { %v3831_v48 = vpop.f32.mrf.mxu0 }
0x29a6   :  { %3851 = vrot.lane.b32.xlu2 %v3831_v48, %s5900_s22 }
0x29ad   :  { %v3834_v43 = vpop.f32.mrf.mxu0 }
0x29ae   :  { %3853 = vrot.lane.b32.xlu2 %v3834_v43, %s5900_s22 }
0x29b5   :  { %v3837_v19 = vpop.f32.mrf.mxu0 }
0x29b6   :  { %3859 = vrot.lane.b32.xlu1 %v3837_v19, %s5901_s23 }
0x29bd   :  { %v3840_v51 = vpop.f32.mrf.mxu0 }
0x29c5   :  { %v3843_v47 = vpop.f32.mrf.mxu0 }
0x29c6   :  { %3867 = vrot.lane.b32.xlu0 %v3843_v47, %s5902_s25 }
0x29cd   :  { %v3846_v61 = vpop.f32.mrf.mxu0 }
0x29ce   :  { %3861 = vrot.lane.b32.xlu0 %v3840_v51, %s5901_s23  ;;  %3869 = vrot.lane.b32.xlu1 %v3846_v61, %s5902_s25 }
0x2a00   :  { %v3852_v12 = vpop.permute.xlu2 %3851 }
0x2a01   :  { %v3873_v13 = vsel %vm198_vm8, %v3825_v9, %v3852_v12 }
0x2a08   :  { %v3854_v24 = vpop.permute.xlu2 %3853 }
0x2a09   :  { %v3874_v52 = vsel %vm198_vm8, %v3828_v56, %v3854_v24 }
0x2a28   :  { %v3860_v40 = vpop.permute.xlu1 %3859 }
0x2a29   :  { %v3875_v14 = vsel %vm645_vm1, %v3873_v13, %v3860_v40 }
0x2a38   :  { %v3868_v30 = vpop.permute.xlu0 %3867 }
0x2a39   :  { %v3877_v54 = vsel %vm648_vm2, %v3875_v14, %v3868_v30 }
0x2a3a   :  { %5234 = vmatmul.msk.f32.vlgmr.msrb.gmra.mxu1 %vm71_vm0, %v3877_v54 }
0x2a40   :  { %v3862_v18 = vpop.permute.xlu0 %3861  ;;  %v3870_v21 = vpop.permute.xlu1 %3869 }
0x2a41   :  { %v3876_v26 = vsel %vm645_vm1, %v3874_v52, %v3862_v18  ;;  %v5251_v52 = vld [vmem:[%s8015_s13 + $0x138] sm:$0xff] }
0x2a42   :  { %v3878_v27 = vsel %vm648_vm2, %v3876_v26, %v3870_v21  ;;  %4121 = vmatpush.msrb.mxu1 %v5251_v52  ;;  %v5250_v21 = vld [vmem:[%s8015_s13 + $0x130] sm:$0xff] }
0x2a43   :  { %5235 = vmatmul.msk.f32.gmra.mxu1 %vm71_vm0, %v3878_v27  ;;  %v5249_v27 = vld [vmem:[%s8015_s13 + $0x128] sm:$0xff] }
0x2a44   :  { %4122 = vmatpush.msrb.mxu1 %v5250_v21 }
0x2a46   :  { %4123 = vmatpush.msrb.mxu1 %v5249_v27 }
0x2ab7   :  { %v3905_v57 = vpop.f32.mrf.mxu1 }
0x2ab8   :  { %v3911_v33 = vadd.f32 %v3905_v57, %v7319_v32 }
0x2aba   :  { %v7577_v63 = vadd.f32 %v5483_v31, %v3911_v33  ;;  %v5248_v33 = vld [vmem:[%s8015_s13 + $0x120] sm:$0xff] }
0x2abb   :  { %4124 = vmatpush.msrb.mxu1 %v5248_v33 }
0x2abc   :  { %v3924_v1 = vsel %vm71_vm0, %v7577_v63, 0.0 }
0x2abd   :  { %3925 = vadd.xlane.f32.xlu2 %v3924_v1 }
0x2ac0   :  { %v3908_v62 = vpop.f32.mrf.mxu1 }
0x2ac1   :  { %v3912_v0 = vadd.f32 %v3908_v62, %v7324_v22 }
0x2ac3   :  { %v7582_v6 = vadd.f32 %v5483_v31, %v3912_v0  ;;  %v5247_v0 = vld [vmem:[%s8015_s13 + $0x118] sm:$0xff] }
0x2ac4   :  { %4125 = vmatpush.msrb.mxu1 %v5247_v0 }
0x2ac5   :  { %v3927_v4 = vsel %vm71_vm0, %v7582_v6, 0.0 }
0x2ac6   :  { %3928 = vadd.xlane.f32.xlu0 %v3927_v4 }
0x2b30   :  { %v3926_v17 = vpop.xlane.xlu2 %3925 }
0x2b31   :  { %v3930_v39 = vmul.f32 %v3926_v17, %v5993_v10 }
0x2b33   :  { %v3932_v32 = vsub.f32 %v7577_v63, %v3930_v39  ;;  %v5246_v39 = vld [vmem:[%s8015_s13 + $0x110] sm:$0xff] }
0x2b34   :  { %4126 = vmatpush.msrb.mxu1 %v5246_v39 }
0x2b35   :  { %v3934_v11 = vmul.f32 %v3932_v32, %v3932_v32 }
0x2b37   :  { %v3936_v25 = vsel %vm71_vm0, %v3934_v11, 0.0 }
0x2b38   :  { %3937 = vadd.xlane.f32.xlu1 %v3936_v25  ;;  %v5245_v25 = vld [vmem:[%s8015_s13 + $0x108] sm:$0xff] }
0x2b39   :  { %v3929_v36 = vpop.xlane.xlu0 %3928  ;;  %4127 = vmatpush.msrb.mxu1 %v5245_v25 }
0x2b3a   :  { %v3931_v28 = vmul.f32 %v3929_v36, %v5993_v10 }
0x2b3c   :  { %v3933_v22 = vsub.f32 %v7582_v6, %v3931_v28 }
0x2b3e   :  { %v3935_v55 = vmul.f32 %v3933_v22, %v3933_v22 }
0x2b40   :  { %v3939_v20 = vsel %vm71_vm0, %v3935_v55, 0.0 }
0x2b41   :  { %3940 = vadd.xlane.f32.xlu2 %v3939_v20 }
0x2bab   :  { %v3938_v59 = vpop.xlane.xlu1 %3937 }
0x2bac   :  { %v3942_v46 = vmul.f32 %v3938_v59, %v5993_v10 }
0x2bae   :  { %v3944_v38 = vadd.f32 1e-06, %v3942_v46 }
0x2bb0   :  { %5726 = vrsqrt.f32 %v3944_v38  ;;  %vm3952_vm13 = vweird.f32 %v3944_v38 }
0x2bb4   :  { %v3941_v29 = vpop.xlane.xlu2 %3940 }
0x2bb5   :  { %v3943_v37 = vmul.f32 %v3941_v29, %v5993_v10 }
0x2bb6   :  { %v5727_v44 = vpop.eup %5726 }
0x2bb7   :  { %v3947_v41 = vmul.f32 %v5727_v44, %v3944_v38  ;;  %v3945_v23 = vadd.f32 1e-06, %v3943_v37  ;;  %vm3953_vm12 = vweird.f32 %v5727_v44 }
0x2bb8   :  { %vm3954_vm14 = vmor %vm3952_vm13, %vm3953_vm12 }
0x2bb9   :  { %v3948_v50 = vmul.f32 %v5727_v44, %v3947_v41  ;;  %5728 = vrsqrt.f32 %v3945_v23  ;;  %vm3962_vm3 = vweird.f32 %v3945_v23 }
0x2bbb   :  { %v3949_v60 = vmul.f32 0.5, %v3948_v50 }
0x2bbd   :  { %v3950_v15 = vsub.f32 1.5, %v3949_v60 }
0x2bbf   :  { %v5729_v49 = vpop.eup %5728  ;;  %v3951_v53 = vmul.f32 %v5727_v44, %v3950_v15 }
0x2bc0   :  { %v3957_v7 = vmul.f32 %v5729_v49, %v3945_v23  ;;  %vm3963_vm15 = vweird.f32 %v5729_v49 }
0x2bc1   :  { %v3955_v8 = vsel %vm3954_vm14, %v5727_v44, %v3951_v53  ;;  %vm3964_vm4 = vmor %vm3962_vm3, %vm3963_vm15 }
0x2bc2   :  { %v3966_v34 = vmul.f32 %v3955_v8, %v3932_v32  ;;  %v3958_v2 = vmul.f32 %v5729_v49, %v3957_v7 }
0x2bc4   :  { %v3971_v35 = vmul.f32 %v5484_v42, %v3966_v34  ;;  %v3959_v9 = vmul.f32 0.5, %v3958_v2 }
0x2bc6   :  { %v3976_v56 = vadd.f32 %v5485_v45, %v3971_v35  ;;  %v3960_v48 = vsub.f32 1.5, %v3959_v9 }
0x2bc8   :  { %v3961_v43 = vmul.f32 %v5729_v49, %v3960_v48  ;;  %5242 = vmatmul.msk.f32.vlgmr.msra.gmra.mxu1 %vm71_vm0, %v3976_v56 }
0x2bca   :  { %v3965_v19 = vsel %vm3964_vm4, %v5729_v49, %v3961_v43 }
0x2bcb   :  { %v3967_v51 = vmul.f32 %v3965_v19, %v3933_v22  ;;  %v5244_v22 = vld [vmem:[%s8015_s13 + $0x100] sm:$0xff] }
0x2bcc   :  { %4128 = vmatpush.msrb.mxu1 %v5244_v22 }
0x2bcd   :  { %v3972_v47 = vmul.f32 %v5484_v42, %v3967_v51 }
0x2bcf   :  { %v3977_v61 = vadd.f32 %v5485_v45, %v3972_v47 }
0x2bd1   :  { %5243 = vmatmul.msk.f32.gmra.mxu1 %vm71_vm0, %v3977_v61 }
0x2c45   :  { %v4009_v58 = vpop.f32.mrf.mxu1 }
0x2c46   :  { %v7611_v12 = vadd.f32 %v5486_v16, %v4009_v58 }
0x2c48   :  { %v7614_v40 = vmul.f32 0.70710677, %v7611_v12  ;;  %v4015_v27 = vmul.f32 0.5, %v7611_v12  ;;  %v5487_v12 = vld [vmem:[%s8016_s14 + $0x4] ss:$0 sm:$0xff] }
0x2c4a   :  { %v4019_v13 = vand.u32 2147483647, %v7614_v40  ;;  %vm4083_vm15 = vcmp.ge.f32.partialorder %v7614_v40, 0.0 }
0x2c4c   :  { %v4021_v14 = vmul.f32 0.3275911, %v4019_v13  ;;  %v4071_v3 = vsub.f32 0.0, %v4019_v13 }
0x2c4e   :  { %v4023_v30 = vadd.f32 1.0, %v4021_v14  ;;  %v4012_v54 = vpop.f32.mrf.mxu1  ;;  %v4073_v44 = vmul.f32 %v4071_v3, %v4019_v13 }
0x2c4f   :  { %v7617_v24 = vadd.f32 %v5486_v16, %v4012_v54 }
0x2c50   :  { %5730 = vrcp.f32 %v4023_v30  ;;  %v4036_v17 = vand.u32 2147483648, %v4023_v30  ;;  %v4034_v11 = vand.u32 2147483647, %v4023_v30  ;;  %vm4030_vm6 = vweird.f32 %v4023_v30 }
0x2c51   :  { %v7623_v18 = vmul.f32 0.70710677, %v7617_v24  ;;  %v4075_v53 = vmul.f32 1.442695, %v4073_v44  ;;  %v5257_v44 = vld [vmem:[%s8007_s5 + $0x50] sm:$0xff] }
0x2c52   :  { %v4037_v28 = vor.u32 1.1754944e-38, %v4036_v17  ;;  %vm4035_vm10 = vcmp.eq.f32.partialorder %v4034_v11, 8.507059e+37  ;;  %v4016_v17 = vmul.f32 0.5, %v7617_v24 }
0x2c53   :  { %v4020_v26 = vand.u32 2147483647, %v7623_v18  ;;  %vm4084_vm3 = vcmp.ge.f32.partialorder %v7623_v18, 0.0 }
0x2c55   :  { %v4022_v31 = vmul.f32 0.3275911, %v4020_v26  ;;  %v4072_v45 = vsub.f32 0.0, %v4020_v26 }
0x2c56   :  { %v5731_v57 = vpop.eup %5730 }
0x2c57   :  { %v4026_v1 = vmul.f32 %v5731_v57, %v4023_v30  ;;  %v4024_v62 = vadd.f32 1.0, %v4022_v31  ;;  %vm4031_vm5 = vweird.f32 %v5731_v57  ;;  %v4074_v56 = vmul.f32 %v4072_v45, %v4020_v26 }
0x2c58   :  { %vm4032_vm7 = vmor %vm4030_vm6, %vm4031_vm5 }
0x2c59   :  { %v4027_v4 = vsub.f32 1.0, %v4026_v1  ;;  %5732 = vrcp.f32 %v4024_v62  ;;  %v4050_v37 = vand.u32 2147483648, %v4024_v62  ;;  %v4048_v23 = vand.u32 2147483647, %v4024_v62 }
0x2c5a   :  { %vm4044_vm12 = vweird.f32 %v4024_v62  ;;  %5734 = vpow2.f32 %v4075_v53  ;;  %v4077_v47 = vmul.f32 1.442695, %v4074_v56 }
0x2c5b   :  { %v4028_v32 = vmul.f32 %v5731_v57, %v4027_v4  ;;  %v4051_v49 = vor.u32 1.1754944e-38, %v4050_v37  ;;  %vm4049_vm14 = vcmp.eq.f32.partialorder %v4048_v23, 8.507059e+37  ;;  %v5258_v37 = vld [vmem:[%s8007_s5 + $0x58] sm:$0xff] }
0x2c5c   :  { %5736 = vpow2.f32 %v4077_v47  ;;  %4224 = vmatpush.msra.mxu1 %v5258_v37 }
0x2c5d   :  { %v4029_v36 = vadd.f32 %v5731_v57, %v4028_v32 }
0x2c5e   :  { %4225 = vmatpush.msra.mxu1 %v5257_v44  ;;  %v5855_v44 = vld [vmem:[%s8004_s2 + $0x18] sm:$0xff] }
0x2c5f   :  { %v5733_v55 = vpop.eup %5732  ;;  %v4033_v20 = vsel %vm4032_vm7, %v5731_v57, %v4029_v36 }
0x2c60   :  { %v4038_v5 = vsel %vm4035_vm10, %v4037_v28, %v4033_v20  ;;  %v4040_v59 = vmul.f32 %v5733_v55, %v4024_v62  ;;  %vm4045_vm11 = vweird.f32 %v5733_v55  ;;  %v5735_v61 = vpop.eup %5734 }
0x2c61   :  { %v4053_v46 = vmul.f32 1.0614054, %v4038_v5  ;;  %vm4046_vm13 = vmor %vm4044_vm12, %vm4045_vm11 }
0x2c62   :  { %v4041_v38 = vsub.f32 1.0, %v4040_v59  ;;  %v5737_v57 = vpop.eup %5736 }
0x2c63   :  { %v4055_v29 = vadd.f32 -1.4531521, %v4053_v46 }
0x2c64   :  { %v4042_v41 = vmul.f32 %v5733_v55, %v4041_v38 }
0x2c65   :  { %v4057_v50 = vmul.f32 %v4055_v29, %v4038_v5 }
0x2c66   :  { %v4043_v60 = vadd.f32 %v5733_v55, %v4042_v41 }
0x2c67   :  { %v4059_v15 = vadd.f32 1.4214138, %v4057_v50 }
0x2c68   :  { %v4047_v42 = vsel %vm4046_vm13, %v5733_v55, %v4043_v60 }
0x2c69   :  { %v4061_v7 = vmul.f32 %v4059_v15, %v4038_v5  ;;  %v4052_v8 = vsel %vm4049_vm14, %v4051_v49, %v4047_v42 }
0x2c6a   :  { %v4054_v34 = vmul.f32 1.0614054, %v4052_v8 }
0x2c6b   :  { %v4063_v2 = vadd.f32 -0.28449672, %v4061_v7 }
0x2c6c   :  { %v4056_v35 = vadd.f32 -1.4531521, %v4054_v34 }
0x2c6d   :  { %v4065_v9 = vmul.f32 %v4063_v2, %v4038_v5 }
0x2c6e   :  { %v4058_v48 = vmul.f32 %v4056_v35, %v4052_v8  ;;  %v5488_v35 = vld [vmem:[%s8005_s3 + $0x5] ss:$0 sm:$0xff] }
0x2c6f   :  { %v4067_v43 = vadd.f32 0.2548296, %v4065_v9 }
0x2c70   :  { %v4060_v19 = vadd.f32 1.4214138, %v4058_v48  ;;  %v5489_v48 = vld [vmem:[%s8006_s4 + $0x5] ss:$0 sm:$0xff] }
0x2c71   :  { %v4069_v51 = vmul.f32 %v4067_v43, %v4038_v5 }
0x2c72   :  { %v4062_v16 = vmul.f32 %v4060_v19, %v4052_v8 }
0x2c73   :  { %v4079_v58 = vmul.f32 %v5735_v61, %v4069_v51 }
0x2c74   :  { %v4064_v13 = vadd.f32 -0.28449672, %v4062_v16 }
0x2c75   :  { %v4081_v14 = vsub.f32 1.0, %v4079_v58 }
0x2c76   :  { %v4066_v30 = vmul.f32 %v4064_v13, %v4052_v8 }
0x2c77   :  { %v4085_v54 = vsub.f32 0.0, %v4081_v14 }
0x2c78   :  { %v4068_v52 = vadd.f32 0.2548296, %v4066_v30 }
0x2c79   :  { %v4087_v21 = vsel %vm4083_vm15, %v4081_v14, %v4085_v54 }
0x2c7a   :  { %v4089_v26 = vadd.f32 1.0, %v4087_v21  ;;  %v4070_v31 = vmul.f32 %v4068_v52, %v4052_v8  ;;  %v5490_v52 = vld [vmem:[%s8008_s6 + $0x5] ss:$0 sm:$0xff]  ;;  %s5903_s6 = smov [#allocation2]  }
0x2c7c   :  { %v4091_v33 = vmul.f32 %v4089_v26, %v4015_v27  ;;  %v4080_v1 = vmul.f32 %v5737_v57, %v4070_v31 }
0x2c7e   :  { %v4082_v62 = vsub.f32 1.0, %v4080_v1  ;;  %5253 = vmatmul.msk.f32.vlgmr.msrb.gmra.mxu1 %vm272_vm9, %v4091_v33 }
0x2c80   :  { %v4086_v0 = vsub.f32 0.0, %v4082_v62 }
0x2c82   :  { %v4088_v4 = vsel %vm4084_vm3, %v4082_v62, %v4086_v0 }
0x2c83   :  { %v4090_v39 = vadd.f32 1.0, %v4088_v4 }
0x2c85   :  { %v4092_v40 = vmul.f32 %v4090_v39, %v4016_v17 }
0x2c87   :  { %5254 = vmatmul.msk.f32.gmra.mxu1 %vm272_vm9, %v4092_v40 }
0x2cfb   :  { %v4130_v32 = vpop.f32.mrf.mxu1 }
0x2cfc   :  { %v4131_v11 = vadd.f32 %v5487_v12, %v4130_v32 }
0x2cfe   :  { %v7657_v25 = vadd.f32 %v4131_v11, %v7577_v63 }
0x2d00   :  { %v4142_v36 = vsel %vm71_vm0, %v7657_v25, 0.0 }
0x2d01   :  { %4143 = vadd.xlane.f32.xlu0 %v4142_v36 }
0x2d04   :  { %v4133_v18 = vpop.f32.mrf.mxu1 }
0x2d05   :  { %v4134_v28 = vadd.f32 %v5487_v12, %v4133_v18 }
0x2d07   :  { %v7662_v24 = vadd.f32 %v4134_v28, %v7582_v6 }
0x2d09   :  { %v4145_v22 = vsel %vm71_vm0, %v7662_v24, 0.0 }
0x2d0a   :  { %4146 = vadd.xlane.f32.xlu1 %v4145_v22  ;;  %v5852_v22 = vld [vmem:[%s8004_s2] sm:$0xff] }
0x2d74   :  { %v4144_v55 = vpop.xlane.xlu0 %4143 }
0x2d75   :  { %v4148_v20 = vmul.f32 %v4144_v55, %v5993_v10 }
0x2d77   :  { %v4150_v5 = vsub.f32 %v7657_v25, %v4148_v20 }
0x2d79   :  { %v4152_v63 = vmul.f32 %v4150_v5, %v4150_v5 }
0x2d7b   :  { %v4154_v3 = vsel %vm71_vm0, %v4152_v63, 0.0  ;;  %v5853_v63 = vld [vmem:[%s8004_s2 + $0x8] sm:$0xff] }
0x2d7c   :  { %4155 = vadd.xlane.f32.xlu2 %v4154_v3 }
0x2d7d   :  { %v4147_v59 = vpop.xlane.xlu1 %4146 }
0x2d7e   :  { %v4149_v46 = vmul.f32 %v4147_v59, %v5993_v10 }
0x2d80   :  { %v4151_v38 = vsub.f32 %v7662_v24, %v4149_v46 }
0x2d82   :  { %v4153_v6 = vmul.f32 %v4151_v38, %v4151_v38 }
0x2d84   :  { %v4157_v29 = vsel %vm71_vm0, %v4153_v6, 0.0 }
0x2d85   :  { %4158 = vadd.xlane.f32.xlu0 %v4157_v29 }
0x2def   :  { %v4156_v41 = vpop.xlane.xlu2 %4155 }
0x2df0   :  { %v4160_v23 = vmul.f32 %v4156_v41, %v5993_v10 }
0x2df2   :  { %v4162_v50 = vadd.f32 1e-06, %v4160_v23 }
0x2df4   :  { %5738 = vrsqrt.f32 %v4162_v50  ;;  %vm4170_vm5 = vweird.f32 %v4162_v50 }
0x2df8   :  { %v4159_v60 = vpop.xlane.xlu0 %4158 }
0x2df9   :  { %v4161_v15 = vmul.f32 %v4159_v60, %v5993_v10  ;;  %v5856_v60 = vld [vmem:[%s8004_s2 + $0x20] sm:$0xff] }
0x2dfa   :  { %v5739_v49 = vpop.eup %5738 }
0x2dfb   :  { %v4165_v53 = vmul.f32 %v5739_v49, %v4162_v50  ;;  %v4163_v42 = vadd.f32 1e-06, %v4161_v15  ;;  %vm4171_vm4 = vweird.f32 %v5739_v49 }
0x2dfc   :  { %vm4172_vm6 = vmor %vm4170_vm5, %vm4171_vm4 }
0x2dfd   :  { %v4166_v7 = vmul.f32 %v5739_v49, %v4165_v53  ;;  %5740 = vrsqrt.f32 %v4163_v42  ;;  %vm4180_vm10 = vweird.f32 %v4163_v42 }
0x2dff   :  { %v4167_v8 = vmul.f32 0.5, %v4166_v7 }
0x2e01   :  { %v4168_v45 = vsub.f32 1.5, %v4167_v8 }
0x2e03   :  { %v5741_v34 = vpop.eup %5740  ;;  %v4169_v2 = vmul.f32 %v5739_v49, %v4168_v45 }
0x2e04   :  { %v4175_v9 = vmul.f32 %v5741_v34, %v4163_v42  ;;  %vm4181_vm7 = vweird.f32 %v5741_v34  ;;  %v5857_v42 = vld [vmem:[%s8004_s2 + $0x28] sm:$0xff] }
0x2e05   :  { %v4173_v56 = vsel %vm4172_vm6, %v5739_v49, %v4169_v2  ;;  %vm4182_vm11 = vmor %vm4180_vm10, %vm4181_vm7 }
0x2e06   :  { %v4184_v43 = vmul.f32 %v4173_v56, %v4150_v5  ;;  %v4176_v19 = vmul.f32 %v5741_v34, %v4175_v9 }
0x2e08   :  { %v4189_v51 = vmul.f32 %v5488_v35, %v4184_v43  ;;  %v4177_v47 = vmul.f32 0.5, %v4176_v19  ;;  %v5859_v43 = vld [vmem:[%s8004_s2 + $0x38] sm:$0xff] }
0x2e0a   :  { %v4194_v61 = vadd.f32 %v5489_v48, %v4189_v51  ;;  %v4178_v16 = vsub.f32 1.5, %v4177_v47 }
0x2e0c   :  { %v4179_v58 = vmul.f32 %v5741_v34, %v4178_v16  ;;  %5260 = vmatmul.msk.f32.vlgmr.msra.gmra.mxu1 %vm71_vm0, %v4194_v61 }
0x2e0e   :  { %v4183_v13 = vsel %vm4182_vm11, %v5741_v34, %v4179_v58  ;;  %v5858_v34 = vld [vmem:[%s8004_s2 + $0x30] sm:$0xff] }
0x2e0f   :  { %v4185_v14 = vmul.f32 %v4183_v13, %v4151_v38  ;;  %v5854_v38 = vld [vmem:[%s8004_s2 + $0x10] sm:$0xff] }
0x2e11   :  { %v4190_v30 = vmul.f32 %v5488_v35, %v4185_v14 }
0x2e13   :  { %v4195_v54 = vadd.f32 %v5489_v48, %v4190_v30 }
0x2e15   :  { %5261 = vmatmul.msk.f32.gmra.mxu1 %vm71_vm0, %v4195_v54 }
0x2e89   :  { %v4227_v21 = vpop.f32.mrf.mxu1 }
0x2e8a   :  { %v7691_v27 = vadd.f32 %v5490_v52, %v4227_v21 }
0x2e8c   :  { %4243 = vrot.lane.b32.xlu2 %v7691_v27, %s5896_s18 }
0x2e92   :  { %v4230_v26 = vpop.f32.mrf.mxu1 }
0x2e93   :  { %v7695_v31 = vadd.f32 %v5490_v52, %v4230_v26 }
0x2e94   :  { %4235 = vrot.lane.b32.xlu2 %v7691_v27, %s5897_s19 }
0x2e95   :  { %4241 = vrot.lane.b32.xlu0 %v7695_v31, %s5895_s17  ;;  %4245 = vrot.lane.b32.xlu1 %v7695_v31, %s5896_s18  ;;  %v5443_v52 = vpack.i.bf16 %v7691_v27, %v7695_v31 }
0x2e9d   :  { %4239 = vrot.lane.b32.xlu0 %v7691_v27, %s5895_s17  ;;  %4237 = vrot.lane.b32.xlu1 %v7695_v31, %s5897_s19 }
0x2ee6   :  { %v7707_v57 = vpop.permute.xlu2 %4243 }
0x2ee7   :  { %4259 = vrot.lane.b32.xlu1 %v7707_v57, %s5898_s20 }
0x2eee   :  { %v7719_v62 = vpop.permute.xlu2 %4235 }
0x2f07   :  { %v7711_v33 = vpop.permute.xlu0 %4241  ;;  %v7713_v1 = vpop.permute.xlu1 %4245 }
0x2f08   :  { %4257 = vrot.lane.b32.xlu2 %v7711_v33, %s5898_s20  ;;  %4261 = vrot.lane.b32.xlu0 %v7713_v1, %s5898_s20  ;;  %v5428_v56 = vpack.i.bf16 %v7707_v57, %v7713_v1 }
0x2f0f   :  { %v7721_v0 = vpop.permute.xlu0 %4239  ;;  %v7723_v4 = vpop.permute.xlu1 %4237 }
0x2f10   :  { %4251 = vrot.lane.b32.xlu2 %v7719_v62, %s5898_s20  ;;  %4255 = vrot.lane.b32.xlu0 %v7721_v0, %s5898_s20  ;;  %v5433_v9 = vpack.i.bf16 %v7721_v0, %v7711_v33 }
0x2f11   :  { %4253 = vrot.lane.b32.xlu1 %v7723_v4, %s5898_s20 }
0x2f18   :  { %4249 = vrot.lane.b32.xlu0 %v7695_v31, %s5898_s20 }
0x2f19   :  { %4247 = vrot.lane.b32.xlu1 %v7691_v27, %s5898_s20 }
0x2f59   :  { %v4260_v39 = vpop.permute.xlu1 %4259 }
0x2f62   :  { %v4258_v40 = vpop.permute.xlu2 %4257 }
0x2f6a   :  { %v4252_v11 = vpop.permute.xlu2 %4251 }
0x2f7a   :  { %v4262_v17 = vpop.permute.xlu0 %4261 }
0x2f7b   :  { %5262 = vmatpush.xpose.msk.msrb.mxu2 %vm198_vm8, %v4262_v17 }
0x2f7f   :  { %5263 = vmatpush.xpose.msk.msrb.mxu2 %vm198_vm8, %v4260_v39 }
0x2f82   :  { %v4256_v12 = vpop.permute.xlu0 %4255 }
0x2f83   :  { %5264 = vmatpush.xpose.msk.msrb.mxu2 %vm198_vm8, %v4258_v40  ;;  %v4254_v32 = vpop.permute.xlu1 %4253 }
0x2f87   :  { %5265 = vmatpush.xpose.msk.msrb.mxu2 %vm198_vm8, %v4256_v12 }
0x2f8a   :  { %v4250_v36 = vpop.permute.xlu0 %4249 }
0x2f8b   :  { %5266 = vmatpush.xpose.msk.msrb.mxu2 %vm198_vm8, %v4254_v32  ;;  %v4248_v18 = vpop.permute.xlu1 %4247 }
0x2f8f   :  { %5267 = vmatpush.xpose.msk.msrb.mxu2 %vm198_vm8, %v4252_v11 }
0x2f93   :  { %5268 = vmatpush.xpose.msk.msrb.mxu2 %vm198_vm8, %v4250_v36 }
0x2f97   :  { %5269 = vmatpush.xpose.msk.msrb.mxu2 %vm198_vm8, %v4248_v18 }
0x2f9a   :  { %5270 = vmatmul.msk.f32.vlgmr.msrb.gmra.mxu2 %vm198_vm8, %v7691_v27  ;;  %v5438_v27 = vpack.i.bf16 %v7719_v62, %v7723_v4 }
0x2fa2   :  { %5271 = vmatmul.msk.f32.gmra.mxu2 %vm198_vm8, %v7695_v31 }
0x2faa   :  { %5272 = vmatmul.msk.f32.gmra.mxu2 %vm198_vm8, %v7719_v62 }
0x2fb2   :  { %5273 = vmatmul.msk.f32.gmra.mxu2 %vm198_vm8, %v7723_v4 }
0x2fba   :  { %5274 = vmatmul.msk.f32.gmra.mxu2 %vm198_vm8, %v7721_v0 }
0x2fc2   :  { %5275 = vmatmul.msk.f32.gmra.mxu2 %vm198_vm8, %v7711_v33 }
0x2fca   :  { %5276 = vmatmul.msk.f32.gmra.mxu2 %vm198_vm8, %v7707_v57 }
0x2fd2   :  { %5277 = vmatmul.msk.f32.gmra.mxu2 %vm198_vm8, %v7713_v1 }
0x301d   :  { %v4312_v28 = vpop.f32.mrf.mxu2 }
0x301e   :  { %v4313_v55 = vadd.f32 %v5852_v22, %v4312_v28 }
0x3020   :  { %v4336_v20 = vsel %vm272_vm9, %v4313_v55, -inf }
0x3021   :  { %4337 = vmax.xlane.f32.xlu2 %v4336_v20 }
0x3025   :  { %v4315_v5 = vpop.f32.mrf.mxu2 }
0x3026   :  { %v4316_v3 = vadd.f32 %v5853_v63, %v4315_v5 }
0x3028   :  { %v4339_v59 = vsel %vm272_vm9, %v4316_v3, -inf }
0x3029   :  { %4340 = vmax.xlane.f32.xlu0 %v4339_v59 }
0x302d   :  { %v4318_v46 = vpop.f32.mrf.mxu2 }
0x302e   :  { %v4319_v6 = vadd.f32 %v5854_v38, %v4318_v46 }
0x3030   :  { %v4342_v29 = vsel %vm272_vm9, %v4319_v6, -inf }
0x3031   :  { %4343 = vmax.xlane.f32.xlu1 %v4342_v29 }
0x3035   :  { %v4321_v37 = vpop.f32.mrf.mxu2 }
0x3036   :  { %v7774_v41 = vadd.f32 %v5855_v44, %v4321_v37 }
0x3038   :  { %v4345_v23 = vsel %vm272_vm9, %v7774_v41, -inf }
0x3039   :  { %4346 = vmax.xlane.f32.xlu2 %v4345_v23 }
0x303d   :  { %v4324_v50 = vpop.f32.mrf.mxu2 }
0x303e   :  { %v4325_v15 = vadd.f32 %v5856_v60, %v4324_v50 }
0x3040   :  { %v4348_v49 = vsel %vm272_vm9, %v4325_v15, -inf }
0x3041   :  { %4349 = vmax.xlane.f32.xlu0 %v4348_v49 }
0x3045   :  { %v4327_v53 = vpop.f32.mrf.mxu2 }
0x3046   :  { %v4328_v7 = vadd.f32 %v5857_v42, %v4327_v53 }
0x3048   :  { %v4351_v8 = vsel %vm272_vm9, %v4328_v7, -inf }
0x3049   :  { %4352 = vmax.xlane.f32.xlu1 %v4351_v8 }
0x304d   :  { %v4330_v45 = vpop.f32.mrf.mxu2 }
0x304e   :  { %v4331_v2 = vadd.f32 %v5858_v34, %v4330_v45 }
0x3050   :  { %v4354_v35 = vsel %vm272_vm9, %v4331_v2, -inf }
0x3051   :  { %4355 = vmax.xlane.f32.xlu2 %v4354_v35 }
0x3055   :  { %v4333_v48 = vpop.f32.mrf.mxu2 }
0x3056   :  { %v7799_v19 = vadd.f32 %v5859_v43, %v4333_v48 }
0x3058   :  { %v4357_v51 = vsel %vm272_vm9, %v7799_v19, -inf }
0x3062   :  { %5434 = vrot.lane.b32.xlu1 %v5433_v9, %s5899_s24 }
0x3069   :  { %5429 = vrot.lane.b32.xlu2 %v5428_v56, %s5899_s24 }
0x308c   :  { %4358 = vmax.xlane.f32.xlu1 %v4357_v51 }
0x3094   :  { %v4338_v47 = vpop.xlane.xlu2 %4337 }
0x3095   :  { %v4360_v61 = vsub.f32 %v4313_v55, %v4338_v47 }
0x3097   :  { %v4368_v16 = vmul.f32 1.442695, %v4360_v61 }
0x3099   :  { %5742 = vpow2.f32 %v4368_v16 }
0x309c   :  { %v4341_v58 = vpop.xlane.xlu0 %4340 }
0x309d   :  { %v4361_v13 = vsub.f32 %v4316_v3, %v4341_v58 }
0x309f   :  { %v7803_v14 = vpop.eup %5742  ;;  %v4370_v30 = vmul.f32 1.442695, %v4361_v13 }
0x30a0   :  { %v4384_v54 = vsel %vm272_vm9, %v7803_v14, 0.0 }
0x30a1   :  { %5744 = vpow2.f32 %v4370_v30  ;;  %4385 = vadd.xlane.f32.xlu0 %v4384_v54 }
0x30a4   :  { %v4344_v21 = vpop.xlane.xlu1 %4343 }
0x30a5   :  { %v4362_v26 = vsub.f32 %v4319_v6, %v4344_v21  ;;  %5444 = vrot.lane.b32.xlu1 %v5443_v52, %s5899_s24 }
0x30a7   :  { %v7810_v57 = vpop.eup %5744  ;;  %v4372_v33 = vmul.f32 1.442695, %v4362_v26 }
0x30a8   :  { %v4387_v1 = vsel %vm272_vm9, %v7810_v57, 0.0 }
0x30a9   :  { %5746 = vpow2.f32 %v4372_v33  ;;  %4388 = vadd.xlane.f32.xlu0 %v4387_v1 }
0x30ac   :  { %v4347_v31 = vpop.xlane.xlu2 %4346 }
0x30ad   :  { %v4363_v6 = vsub.f32 %v7774_v41, %v4347_v31 }
0x30af   :  { %v7814_v0 = vpop.eup %5746  ;;  %v4374_v44 = vmul.f32 1.442695, %v4363_v6 }
0x30b0   :  { %v4390_v17 = vsel %vm272_vm9, %v7814_v0, 0.0 }
0x30b1   :  { %4391 = vadd.xlane.f32.xlu2 %v4390_v17 }
0x30b4   :  { %v4350_v39 = vpop.xlane.xlu0 %4349 }
0x30b5   :  { %v4364_v12 = vsub.f32 %v4325_v15, %v4350_v39 }
0x30b7   :  { %v4376_v36 = vmul.f32 1.442695, %v4364_v12 }
0x30bc   :  { %v4353_v40 = vpop.xlane.xlu1 %4352 }
0x30bd   :  { %v4365_v32 = vsub.f32 %v4328_v7, %v4353_v40  ;;  %5439 = vrot.lane.b32.xlu0 %v5438_v27, %s5899_s24  ;;  %s4955_s24 = sshll.u32 %s8017_s15, 4  ;;  %s4956_s24 = int_to_ptr.hbm [resolvable:$true] %s4955_s24 }
0x30bf   :  { %v4378_v11 = vmul.f32 1.442695, %v4365_v32 }
0x30c1   :  { %5748 = vpow2.f32 %v4378_v11 }
0x30c2   :  { %5750 = vpow2.f32 %v4376_v36 }
0x30c4   :  { %v4356_v18 = vpop.xlane.xlu2 %4355 }
0x30c5   :  { %v4366_v28 = vsub.f32 %v4331_v2, %v4356_v18 }
0x30c7   :  { %v7821_v22 = vpop.eup %5748  ;;  %v4380_v55 = vmul.f32 1.442695, %v4366_v28 }
0x30c8   :  { %v4399_v20 = vsel %vm272_vm9, %v7821_v22, 0.0  ;;  %v7825_v62 = vpop.eup %5750 }
0x30c9   :  { %5752 = vpow2.f32 %v4380_v55  ;;  %4400 = vadd.xlane.f32.xlu2 %v4399_v20  ;;  %v4396_v63 = vsel %vm272_vm9, %v7825_v62, 0.0 }
0x30ca   :  { %5754 = vpow2.f32 %v4374_v44 }
0x30cc   :  { %v5430_v4 = vpop.permute.xlu2 %5429 }
0x30cd   :  { %v5431_v5 = vunpack.i.l.bf16 %v5430_v4  ;;  %v5432_v59 = vunpack.i.h.bf16 %v5430_v4 }
0x30cf   :  { %v7829_v3 = vpop.eup %5752  ;;  %4397 = vadd.xlane.f32.xlu1 %v4396_v63  ;;  %4584 = vmatpush.msrb.mxu3 %v5431_v5 }
0x30d0   :  { %v4402_v46 = vsel %vm272_vm9, %v7829_v3, 0.0  ;;  %v7834_v23 = vpop.eup %5754 }
0x30d1   :  { %4403 = vadd.xlane.f32.xlu2 %v4402_v46  ;;  %4585 = vmatpush.msrb.mxu3 %v5432_v59  ;;  %v4393_v50 = vsel %vm272_vm9, %v7834_v23, 0.0 }
0x30d4   :  { %v5435_v38 = vpop.permute.xlu1 %5434 }
0x30d5   :  { %v5436_v29 = vunpack.i.l.bf16 %v5435_v38  ;;  %v5437_v37 = vunpack.i.h.bf16 %v5435_v38 }
0x30d7   :  { %4586 = vmatpush.msrb.mxu3 %v5436_v29 }
0x30d9   :  { %4587 = vmatpush.msrb.mxu3 %v5437_v37 }
0x30e7   :  { %4394 = vadd.xlane.f32.xlu0 %v4393_v50 }
0x30ff   :  { %v4359_v60 = vpop.xlane.xlu1 %4358 }
0x3100   :  { %v4367_v15 = vsub.f32 %v7799_v19, %v4359_v60 }
0x3102   :  { %v4382_v49 = vmul.f32 1.442695, %v4367_v15 }
0x3104   :  { %5756 = vpow2.f32 %v4382_v49 }
0x310a   :  { %v7839_v53 = vpop.eup %5756 }
0x310b   :  { %v4405_v41 = vsel %vm272_vm9, %v7839_v53, 0.0 }
0x310c   :  { %4406 = vadd.xlane.f32.xlu0 %v4405_v41 }
0x3114   :  { %v4386_v42 = vpop.xlane.xlu0 %4385 }
0x3115   :  { %5758 = vrcp.f32 %v4386_v42  ;;  %v4419_v51 = vand.u32 2147483648, %v4386_v42  ;;  %vm4413_vm13 = vweird.f32 %v4386_v42  ;;  %v4417_v47 = vand.u32 2147483647, %v4386_v42 }
0x3117   :  { %v5445_v13 = vpop.permute.xlu1 %5444  ;;  %v4420_v52 = vor.u32 1.1754944e-38, %v4419_v51  ;;  %vm4418_vm15 = vcmp.eq.f32.partialorder %v4417_v47, 8.507059e+37 }
0x3118   :  { %v5446_v33 = vunpack.i.l.bf16 %v5445_v13  ;;  %v5447_v39 = vunpack.i.h.bf16 %v5445_v13 }
0x311b   :  { %v5759_v8 = vpop.eup %5758 }
0x311c   :  { %v4389_v7 = vpop.xlane.xlu0 %4388  ;;  %v4409_v45 = vmul.f32 %v5759_v8, %v4386_v42  ;;  %vm4414_vm12 = vweird.f32 %v5759_v8 }
0x311d   :  { %5760 = vrcp.f32 %v4389_v7  ;;  %vm4415_vm14 = vmor %vm4413_vm13, %vm4414_vm12  ;;  %v4433_v27 = vand.u32 2147483648, %v4389_v7  ;;  %vm4427_vm4 = vweird.f32 %v4389_v7  ;;  %v4431_v40 = vand.u32 2147483647, %v4389_v7 }
0x311e   :  { %v4410_v34 = vsub.f32 1.0, %v4409_v45 }
0x311f   :  { %v4434_v11 = vor.u32 1.1754944e-38, %v4433_v27  ;;  %vm4432_vm6 = vcmp.eq.f32.partialorder %v4431_v40, 8.507059e+37 }
0x3120   :  { %v4411_v9 = vmul.f32 %v5759_v8, %v4410_v34 }
0x3122   :  { %v4412_v48 = vadd.f32 %v5759_v8, %v4411_v9 }
0x3123   :  { %v5761_v35 = vpop.eup %5760 }
0x3124   :  { %v4392_v2 = vpop.xlane.xlu2 %4391  ;;  %v4423_v56 = vmul.f32 %v5761_v35, %v4389_v7  ;;  %v4416_v58 = vsel %vm4415_vm14, %v5759_v8, %v4412_v48  ;;  %vm4428_vm3 = vweird.f32 %v5761_v35 }
0x3125   :  { %5762 = vrcp.f32 %v4392_v2  ;;  %v4421_v26 = vsel %vm4418_vm15, %v4420_v52, %v4416_v58  ;;  %vm4429_vm5 = vmor %vm4427_vm4, %vm4428_vm3  ;;  %v4447_v28 = vand.u32 2147483648, %v4392_v2  ;;  %vm4441_vm10 = vweird.f32 %v4392_v2 }
0x3126   :  { %v4424_v43 = vsub.f32 1.0, %v4423_v56  ;;  %v4520_v31 = vmul.f32 %v7803_v14, %v4421_v26  ;;  %v4445_v55 = vand.u32 2147483647, %v4392_v2 }
0x3127   :  { %v4448_v4 = vor.u32 1.1754944e-38, %v4447_v28 }
0x3128   :  { %v4425_v30 = vmul.f32 %v5761_v35, %v4424_v43  ;;  %vm4446_vm12 = vcmp.eq.f32.partialorder %v4445_v55, 8.507059e+37 }
0x312a   :  { %v4426_v1 = vadd.f32 %v5761_v35, %v4425_v30 }
0x312b   :  { %v5763_v19 = vpop.eup %5762 }
0x312c   :  { %v4437_v54 = vmul.f32 %v5763_v19, %v4392_v2  ;;  %v4430_v32 = vsel %vm4429_vm5, %v5761_v35, %v4426_v1  ;;  %vm4442_vm7 = vweird.f32 %v5763_v19 }
0x312d   :  { %v4435_v36 = vsel %vm4432_vm6, %v4434_v11, %v4430_v32  ;;  %vm4443_vm11 = vmor %vm4441_vm10, %vm4442_vm7 }
0x312e   :  { %v4438_v17 = vsub.f32 1.0, %v4437_v54  ;;  %v4521_v20 = vmul.f32 %v7810_v57, %v4435_v36 }
0x312f   :  { %v5440_v61 = vpop.permute.xlu0 %5439 }
0x3130   :  { %v5441_v16 = vunpack.i.l.bf16 %v5440_v61  ;;  %v5442_v21 = vunpack.i.h.bf16 %v5440_v61  ;;  %v4439_v12 = vmul.f32 %v5763_v19, %v4438_v17 }
0x3132   :  { %4588 = vmatpush.msrb.mxu3 %v5441_v16  ;;  %v4440_v18 = vadd.f32 %v5763_v19, %v4439_v12 }
0x3134   :  { %4589 = vmatpush.msrb.mxu3 %v5442_v21  ;;  %v4444_v14 = vsel %vm4443_vm11, %v5763_v19, %v4440_v18 }
0x3135   :  { %v4449_v5 = vsel %vm4446_vm12, %v4448_v4, %v4444_v14 }
0x3136   :  { %4590 = vmatpush.msrb.mxu3 %v5446_v33  ;;  %v4522_v63 = vmul.f32 %v7814_v0, %v4449_v5 }
0x3138   :  { %4591 = vmatpush.msrb.mxu3 %v5447_v39 }
0x3139   :  { %5278 = vmatmul.msk.f32.vlgmr.msrb.gmra.mxu3 %vm272_vm9, %v4520_v31 }
0x313c   :  { %v4401_v46 = vpop.xlane.xlu2 %4400 }
0x313d   :  { %v4489_v54 = vand.u32 2147483648, %v4401_v46  ;;  %vm4483_vm11 = vweird.f32 %v4401_v46  ;;  %v4487_v52 = vand.u32 2147483647, %v4401_v46 }
0x313f   :  { %v4490_v33 = vor.u32 1.1754944e-38, %v4489_v54 }
0x3141   :  { %5279 = vmatmul.msk.f32.gmra.mxu3 %vm272_vm9, %v4521_v20 }
0x3142   :  { %v4398_v59 = vpop.xlane.xlu1 %4397 }
0x3143   :  { %5764 = vrcp.f32 %v4398_v59  ;;  %v4475_v56 = vand.u32 2147483648, %v4398_v59  ;;  %vm4469_vm5 = vweird.f32 %v4398_v59  ;;  %v4473_v43 = vand.u32 2147483647, %v4398_v59 }
0x3144   :  { %v4404_v50 = vpop.xlane.xlu2 %4403 }
0x3145   :  { %v4476_v16 = vor.u32 1.1754944e-38, %v4475_v56  ;;  %vm4474_vm7 = vcmp.eq.f32.partialorder %v4473_v43, 8.507059e+37  ;;  %v4503_v39 = vand.u32 2147483648, %v4404_v50  ;;  %v4501_v27 = vand.u32 2147483647, %v4404_v50  ;;  %v5294_v43 = vld [vmem:[%s8009_s7 + $0x50] sm:$0xff] }
0x3149   :  { %5280 = vmatmul.msk.f32.gmra.mxu3 %vm272_vm9, %v4522_v63  ;;  %v5765_v6 = vpop.eup %5764 }
0x314a   :  { %v4465_v29 = vmul.f32 %v5765_v6, %v4398_v59  ;;  %vm4470_vm3 = vweird.f32 %v5765_v6 }
0x314b   :  { %vm4471_vm6 = vmor %vm4469_vm5, %vm4470_vm3 }
0x314c   :  { %v4466_v44 = vsub.f32 1.0, %v4465_v29 }
0x314e   :  { %v4467_v0 = vmul.f32 %v5765_v6, %v4466_v44 }
0x3150   :  { %v4468_v2 = vadd.f32 %v5765_v6, %v4467_v0  ;;  %v5866_v0 = vld [vmem:[%s8003_s1 + $0x30] sm:$0xff] }
0x3152   :  { %v4472_v61 = vsel %vm4471_vm6, %v5765_v6, %v4468_v2 }
0x3153   :  { %v4477_v58 = vsel %vm4474_vm7, %v4476_v16, %v4472_v61 }
0x3154   :  { %v4524_v21 = vmul.f32 %v7825_v62, %v4477_v58  ;;  %v4504_v62 = vor.u32 1.1754944e-38, %v4503_v39 }
0x315a   :  { %v4395_v38 = vpop.xlane.xlu0 %4394 }
0x315b   :  { %5766 = vrcp.f32 %v4395_v38  ;;  %v4461_v41 = vand.u32 2147483648, %v4395_v38  ;;  %v4459_v7 = vand.u32 2147483647, %v4395_v38  ;;  %vm4455_vm14 = vweird.f32 %v4395_v38 }
0x315c   :  { %5768 = vrcp.f32 %v4401_v46 }
0x315d   :  { %5770 = vrcp.f32 %v4404_v50  ;;  %v4462_v34 = vor.u32 1.1754944e-38, %v4461_v41  ;;  %vm4460_vm4 = vcmp.eq.f32.partialorder %v4459_v7, 8.507059e+37  ;;  %v5865_v41 = vld [vmem:[%s8003_s1 + $0x28] sm:$0xff] }
0x3161   :  { %v5767_v57 = vpop.eup %5766 }
0x3162   :  { %v5769_v37 = vpop.eup %5768  ;;  %v4451_v60 = vmul.f32 %v5767_v57, %v4395_v38  ;;  %vm4456_vm13 = vweird.f32 %v5767_v57 }
0x3163   :  { %v4479_v49 = vmul.f32 %v5769_v37, %v4401_v46  ;;  %vm4457_vm15 = vmor %vm4455_vm14, %vm4456_vm13  ;;  %v5771_v9 = vpop.eup %5770  ;;  %vm4484_vm10 = vweird.f32 %v5769_v37  ;;  %vm4488_vm13 = vcmp.eq.f32.partialorder %v4487_v52, 8.507059e+37 }
0x3164   :  { %v4452_v15 = vsub.f32 1.0, %v4451_v60  ;;  %v4493_v47 = vmul.f32 %v5771_v9, %v4404_v50  ;;  %vm4485_vm12 = vmor %vm4483_vm11, %vm4484_vm10  ;;  %vm4498_vm14 = vweird.f32 %v5771_v9  ;;  %v5862_v60 = vld [vmem:[%s8003_s1 + $0x10] sm:$0xff] }
0x3165   :  { %v4480_v45 = vsub.f32 1.0, %v4479_v49  ;;  %v5864_v49 = vld [vmem:[%s8003_s1 + $0x20] sm:$0xff] }
0x3166   :  { %v4453_v42 = vmul.f32 %v5767_v57, %v4452_v15  ;;  %v4494_v30 = vsub.f32 1.0, %v4493_v47  ;;  %v5863_v15 = vld [vmem:[%s8003_s1 + $0x18] sm:$0xff] }
0x3167   :  { %v4481_v51 = vmul.f32 %v5769_v37, %v4480_v45 }
0x3168   :  { %v4454_v8 = vadd.f32 %v5767_v57, %v4453_v42  ;;  %v4495_v26 = vmul.f32 %v5771_v9, %v4494_v30  ;;  %v5867_v42 = vld [vmem:[%s8003_s1 + $0x38] sm:$0xff] }
0x3169   :  { %v4482_v13 = vadd.f32 %v5769_v37, %v4481_v51 }
0x316a   :  { %v4458_v35 = vsel %vm4457_vm15, %v5767_v57, %v4454_v8  ;;  %v4496_v17 = vadd.f32 %v5771_v9, %v4495_v26  ;;  %vm4497_vm15 = vweird.f32 %v4404_v50  ;;  %v5861_v50 = vld [vmem:[%s8003_s1 + $0x8] sm:$0xff] }
0x316b   :  { %v4463_v48 = vsel %vm4460_vm4, %v4462_v34, %v4458_v35  ;;  %vm4499_vm3 = vmor %vm4497_vm15, %vm4498_vm14  ;;  %vm4502_vm4 = vcmp.eq.f32.partialorder %v4501_v27, 8.507059e+37 }
0x316c   :  { %v4523_v19 = vmul.f32 %v7834_v23, %v4463_v48  ;;  %v4486_v23 = vsel %vm4485_vm12, %v5769_v37, %v4482_v13  ;;  %v4500_v40 = vsel %vm4499_vm3, %v5771_v9, %v4496_v17  ;;  %v5295_v48 = vld [vmem:[%s8009_s7 + $0x58] sm:$0xff] }
0x316d   :  { %v4491_v1 = vsel %vm4488_vm13, %v4490_v33, %v4486_v23  ;;  %v4505_v32 = vsel %vm4502_vm4, %v4504_v62, %v4500_v40  ;;  %4711 = vmatpush.msrb.mxu1 %v5295_v48  ;;  %v5491_v23 = vld [vmem:[%s8010_s8 + $0x5] ss:$0 sm:$0xff] }
0x316e   :  { %5281 = vmatmul.msk.f32.gmra.mxu3 %vm272_vm9, %v4523_v19  ;;  %v4525_v31 = vmul.f32 %v7821_v22, %v4491_v1  ;;  %v4526_v11 = vmul.f32 %v7829_v3, %v4505_v32 }
0x316f   :  { %4712 = vmatpush.msrb.mxu1 %v5294_v43 }
0x3176   :  { %5282 = vmatmul.msk.f32.gmra.mxu3 %vm272_vm9, %v4524_v21 }
0x317e   :  { %5283 = vmatmul.msk.f32.gmra.mxu3 %vm272_vm9, %v4525_v31 }
0x317f   :  { %v4407_v12 = vpop.xlane.xlu0 %4406 }
0x3180   :  { %5772 = vrcp.f32 %v4407_v12  ;;  %v4517_v55 = vand.u32 2147483648, %v4407_v12  ;;  %v4515_v22 = vand.u32 2147483647, %v4407_v12  ;;  %vm4511_vm6 = vweird.f32 %v4407_v12 }
0x3182   :  { %v4518_v4 = vor.u32 1.1754944e-38, %v4517_v55  ;;  %vm4516_vm10 = vcmp.eq.f32.partialorder %v4515_v22, 8.507059e+37  ;;  %v5302_v22 = vld [vmem:[%s8013_s11 + $0x58] sm:$0xff] }
0x3183   :  { %4815 = vmatpush.msra.mxu1 %v5302_v22 }
0x3186   :  { %v5773_v36 = vpop.eup %5772  ;;  %5284 = vmatmul.msk.f32.gmra.mxu3 %vm272_vm9, %v4526_v11 }
0x3187   :  { %v4507_v18 = vmul.f32 %v5773_v36, %v4407_v12  ;;  %vm4512_vm5 = vweird.f32 %v5773_v36 }
0x3188   :  { %vm4513_vm7 = vmor %vm4511_vm6, %vm4512_vm5 }
0x3189   :  { %v4508_v28 = vsub.f32 1.0, %v4507_v18 }
0x318b   :  { %v4509_v20 = vmul.f32 %v5773_v36, %v4508_v28 }
0x318d   :  { %v4510_v14 = vadd.f32 %v5773_v36, %v4509_v20 }
0x318f   :  { %v4514_v5 = vsel %vm4513_vm7, %v5773_v36, %v4510_v14  ;;  %v5301_v14 = vld [vmem:[%s8013_s11 + $0x50] sm:$0xff]  ;;  %s4953_s11 = sshll.u32 %s5903_s6, 4  ;;  %s4954_s11 = int_to_ptr.vmem [resolvable:$true] %s4953_s11 }
0x3190   :  { %v4519_v63 = vsel %vm4516_vm10, %v4518_v4, %v4514_v5  ;;  %4816 = vmatpush.msra.mxu1 %v5301_v14 }
0x3191   :  { %v4527_v59 = vmul.f32 %v7839_v53, %v4519_v63  ;;  %v5860_v53 = vld [vmem:[%s8003_s1] sm:$0xff] }
0x3193   :  { %5285 = vmatmul.msk.f32.gmra.mxu3 %vm272_vm9, %v4527_v59 }
0x31bc   :  { %v4593_v3 = vpop.f32.mrf.mxu3 }
0x31c4   :  { %v4596_v46 = vpop.f32.mrf.mxu3 }
0x31cc   :  { %v4599_v38 = vpop.f32.mrf.mxu3 }
0x31f1   :  { %v4602_v6 = vpop.f32.mrf.mxu3 }
0x31f9   :  { %v4605_v29 = vpop.f32.mrf.mxu3 }
0x3201   :  { %v4608_v57 = vpop.f32.mrf.mxu3 }
0x3209   :  { %v4611_v37 = vpop.f32.mrf.mxu3 }
0x3216   :  { %v4614_v44 = vpop.f32.mrf.mxu3 }
0x3217   :  { %4625 = vmatpush.msrb.mxu0 %v4614_v44 }
0x3219   :  { %4626 = vmatpush.msrb.mxu0 %v4611_v37 }
0x321b   :  { %4627 = vmatpush.msrb.mxu0 %v4608_v57 }
0x321d   :  { %4628 = vmatpush.msrb.mxu0 %v4605_v29 }
0x321f   :  { %4629 = vmatpush.msrb.mxu0 %v4602_v6 }
0x3221   :  { %4630 = vmatpush.msrb.mxu0 %v4599_v38 }
0x3223   :  { %4631 = vmatpush.msrb.mxu0 %v4596_v46 }
0x3225   :  { %4632 = vmatpush.msrb.mxu0 %v4593_v3 }
0x3226   :  { %5286 = vmatmul.msk.f32.vlgmr.msrb.gmra.mxu0 %vm272_vm9, %v5860_v53 }
0x322e   :  { %5287 = vmatmul.msk.f32.gmra.mxu0 %vm272_vm9, %v5861_v50  ;;  %v5492_v50 = vld [vmem:[%s8011_s9 + $0x5] ss:$0 sm:$0xff] }
0x3236   :  { %5288 = vmatmul.msk.f32.gmra.mxu0 %vm272_vm9, %v5862_v60 }
0x323e   :  { %5289 = vmatmul.msk.f32.gmra.mxu0 %vm272_vm9, %v5863_v15 }
0x3246   :  { %5290 = vmatmul.msk.f32.gmra.mxu0 %vm272_vm9, %v5864_v49 }
0x324e   :  { %5291 = vmatmul.msk.f32.gmra.mxu0 %vm272_vm9, %v5865_v41 }
0x3256   :  { %5292 = vmatmul.msk.f32.gmra.mxu0 %vm272_vm9, %v5866_v0 }
0x325e   :  { %5293 = vmatmul.msk.f32.gmra.mxu0 %vm272_vm9, %v5867_v42 }
0x32a3   :  { %v4634_v7 = vpop.f32.mrf.mxu0 }
0x32ab   :  { %v4637_v8 = vpop.f32.mrf.mxu0 }
0x32b3   :  { %v4640_v45 = vpop.f32.mrf.mxu0 }
0x32b4   :  { %4660 = vrot.lane.b32.xlu2 %v4640_v45, %s5900_s22 }
0x32bb   :  { %v4643_v34 = vpop.f32.mrf.mxu0 }
0x32bc   :  { %4662 = vrot.lane.b32.xlu2 %v4643_v34, %s5900_s22 }
0x32c3   :  { %v4646_v2 = vpop.f32.mrf.mxu0 }
0x32c4   :  { %4668 = vrot.lane.b32.xlu1 %v4646_v2, %s5901_s23 }
0x32cb   :  { %v4649_v35 = vpop.f32.mrf.mxu0 }
0x32d3   :  { %v4652_v9 = vpop.f32.mrf.mxu0 }
0x32d4   :  { %4676 = vrot.lane.b32.xlu0 %v4652_v9, %s5902_s25 }
0x32db   :  { %v4655_v56 = vpop.f32.mrf.mxu0 }
0x32dc   :  { %4670 = vrot.lane.b32.xlu0 %v4649_v35, %s5901_s23  ;;  %4678 = vrot.lane.b32.xlu1 %v4655_v56, %s5902_s25  ;;  %v5494_v56 = vld [vmem:[%s8014_s12 + $0x5] ss:$0 sm:$0xff] }
0x330e   :  { %v4661_v19 = vpop.permute.xlu2 %4660 }
0x330f   :  { %v4682_v47 = vsel %vm198_vm8, %v4634_v7, %v4661_v19 }
0x3316   :  { %v4663_v13 = vpop.permute.xlu2 %4662 }
0x3317   :  { %v4683_v30 = vsel %vm198_vm8, %v4637_v8, %v4663_v13  ;;  %v5313_v13 = vld [vmem:[%s8015_s13 + $0x178] sm:$0xff] }
0x3336   :  { %v4669_v51 = vpop.permute.xlu1 %4668 }
0x3337   :  { %v4684_v61 = vsel %vm645_vm1, %v4682_v47, %v4669_v51 }
0x3346   :  { %v4677_v16 = vpop.permute.xlu0 %4676 }
0x3347   :  { %v4686_v58 = vsel %vm648_vm2, %v4684_v61, %v4677_v16 }
0x3348   :  { %5296 = vmatmul.msk.f32.vlgmr.msrb.gmra.mxu1 %vm71_vm0, %v4686_v58 }
0x3349   :  { %4930 = vmatpush.msrb.mxu1 %v5313_v13 }
0x334e   :  { %v4671_v54 = vpop.permute.xlu0 %4670  ;;  %v4679_v52 = vpop.permute.xlu1 %4678 }
0x334f   :  { %v4685_v21 = vsel %vm645_vm1, %v4683_v30, %v4671_v54  ;;  %v5312_v54 = vld [vmem:[%s8015_s13 + $0x170] sm:$0xff] }
0x3350   :  { %v4687_v26 = vsel %vm648_vm2, %v4685_v21, %v4679_v52  ;;  %4931 = vmatpush.msrb.mxu1 %v5312_v54  ;;  %v5311_v21 = vld [vmem:[%s8015_s13 + $0x168] sm:$0xff] }
0x3351   :  { %5297 = vmatmul.msk.f32.gmra.mxu1 %vm71_vm0, %v4687_v26 }
0x3352   :  { %4932 = vmatpush.msrb.mxu1 %v5311_v21 }
0x33c5   :  { %v4714_v33 = vpop.f32.mrf.mxu1 }
0x33c6   :  { %v4720_v1 = vadd.f32 %v4714_v33, %v7657_v25  ;;  %v5310_v33 = vld [vmem:[%s8015_s13 + $0x160] sm:$0xff] }
0x33c7   :  { %4933 = vmatpush.msrb.mxu1 %v5310_v33 }
0x33c8   :  { %v7915_v17 = vadd.f32 %v5491_v23, %v4720_v1 }
0x33ca   :  { %v4733_v39 = vsel %vm71_vm0, %v7915_v17, 0.0 }
0x33cb   :  { %4734 = vadd.xlane.f32.xlu2 %v4733_v39 }
0x33ce   :  { %v4717_v27 = vpop.f32.mrf.mxu1 }
0x33cf   :  { %v4721_v31 = vadd.f32 %v4717_v27, %v7662_v24  ;;  %v5309_v27 = vld [vmem:[%s8015_s13 + $0x158] sm:$0xff] }
0x33d0   :  { %4934 = vmatpush.msrb.mxu1 %v5309_v27 }
0x33d1   :  { %v7920_v40 = vadd.f32 %v5491_v23, %v4721_v31 }
0x33d3   :  { %v4736_v62 = vsel %vm71_vm0, %v7920_v40, 0.0 }
0x33d4   :  { %4737 = vadd.xlane.f32.xlu0 %v4736_v62 }
0x343e   :  { %v4735_v12 = vpop.xlane.xlu2 %4734 }
0x343f   :  { %v4739_v32 = vmul.f32 %v4735_v12, %v5993_v10  ;;  %v5308_v12 = vld [vmem:[%s8015_s13 + $0x150] sm:$0xff] }
0x3440   :  { %4935 = vmatpush.msrb.mxu1 %v5308_v12 }
0x3441   :  { %v4741_v25 = vsub.f32 %v7915_v17, %v4739_v32 }
0x3443   :  { %v4743_v11 = vmul.f32 %v4741_v25, %v4741_v25 }
0x3445   :  { %v4745_v36 = vsel %vm71_vm0, %v4743_v11, 0.0  ;;  %v5307_v11 = vld [vmem:[%s8015_s13 + $0x148] sm:$0xff] }
0x3446   :  { %4746 = vadd.xlane.f32.xlu1 %v4745_v36  ;;  %4936 = vmatpush.msrb.mxu1 %v5307_v11 }
0x3447   :  { %v4738_v18 = vpop.xlane.xlu0 %4737 }
0x3448   :  { %v4740_v28 = vmul.f32 %v4738_v18, %v5993_v10 }
0x344a   :  { %v4742_v24 = vsub.f32 %v7920_v40, %v4740_v28  ;;  %v5306_v28 = vld [vmem:[%s8015_s13 + $0x140] sm:$0xff] }
0x344b   :  { %4937 = vmatpush.msrb.mxu1 %v5306_v28 }
0x344c   :  { %v4744_v55 = vmul.f32 %v4742_v24, %v4742_v24 }
0x344e   :  { %v4748_v20 = vsel %vm71_vm0, %v4744_v55, 0.0 }
0x344f   :  { %4749 = vadd.xlane.f32.xlu2 %v4748_v20 }
0x34b9   :  { %v4747_v4 = vpop.xlane.xlu1 %4746 }
0x34ba   :  { %v4751_v5 = vmul.f32 %v4747_v4, %v5993_v10 }
0x34bc   :  { %v4753_v63 = vadd.f32 1e-06, %v4751_v5 }
0x34be   :  { %5774 = vrsqrt.f32 %v4753_v63  ;;  %vm4761_vm1 = vweird.f32 %v4753_v63 }
0x34c2   :  { %v4750_v59 = vpop.xlane.xlu2 %4749 }
0x34c3   :  { %v4752_v3 = vmul.f32 %v4750_v59, %v5993_v10  ;;  %v5493_v10 = vld [vmem:[%s8012_s10 + $0x5] ss:$0 sm:$0xff] }
0x34c4   :  { %v5775_v46 = vpop.eup %5774 }
0x34c5   :  { %v4756_v38 = vmul.f32 %v5775_v46, %v4753_v63  ;;  %v4754_v6 = vadd.f32 1e-06, %v4752_v3  ;;  %vm4762_vm8 = vweird.f32 %v5775_v46 }
0x34c6   :  { %vm4763_vm2 = vmor %vm4761_vm1, %vm4762_vm8 }
0x34c7   :  { %v4757_v29 = vmul.f32 %v5775_v46, %v4756_v38  ;;  %5776 = vrsqrt.f32 %v4754_v6  ;;  %vm4771_vm12 = vweird.f32 %v4754_v6 }
0x34c9   :  { %v4758_v57 = vmul.f32 0.5, %v4757_v29 }
0x34cb   :  { %v4759_v37 = vsub.f32 1.5, %v4758_v57 }
0x34cd   :  { %v5777_v44 = vpop.eup %5776  ;;  %v4760_v53 = vmul.f32 %v5775_v46, %v4759_v37 }
0x34ce   :  { %v4766_v60 = vmul.f32 %v5777_v44, %v4754_v6  ;;  %vm4772_vm11 = vweird.f32 %v5777_v44 }
0x34cf   :  { %v4764_v15 = vsel %vm4763_vm2, %v5775_v46, %v4760_v53  ;;  %vm4773_vm13 = vmor %vm4771_vm12, %vm4772_vm11 }
0x34d0   :  { %v4775_v49 = vmul.f32 %v4764_v15, %v4741_v25  ;;  %v4767_v41 = vmul.f32 %v5777_v44, %v4766_v60 }
0x34d2   :  { %v4780_v0 = vmul.f32 %v5492_v50, %v4775_v49  ;;  %v4768_v42 = vmul.f32 0.5, %v4767_v41 }
0x34d4   :  { %v4785_v7 = vadd.f32 %v5493_v10, %v4780_v0  ;;  %v4769_v8 = vsub.f32 1.5, %v4768_v42 }
0x34d6   :  { %v4770_v45 = vmul.f32 %v5777_v44, %v4769_v8  ;;  %5304 = vmatmul.msk.f32.vlgmr.msra.gmra.mxu1 %vm71_vm0, %v4785_v7 }
0x34d8   :  { %v4774_v34 = vsel %vm4773_vm13, %v5777_v44, %v4770_v45 }
0x34d9   :  { %v4776_v2 = vmul.f32 %v4774_v34, %v4742_v24 }
0x34db   :  { %v4781_v35 = vmul.f32 %v5492_v50, %v4776_v2 }
0x34dd   :  { %v4786_v9 = vadd.f32 %v5493_v10, %v4781_v35 }
0x34df   :  { %5305 = vmatmul.msk.f32.gmra.mxu1 %vm71_vm0, %v4786_v9 }
0x3553   :  { %v4818_v48 = vpop.f32.mrf.mxu1 }
0x3554   :  { %v7949_v43 = vadd.f32 %v5494_v56, %v4818_v48 }
0x3556   :  { %v7952_v19 = vmul.f32 0.70710677, %v7949_v43  ;;  %v4824_v54 = vmul.f32 0.5, %v7949_v43  ;;  %v5495_v43 = vld [vmem:[%s8016_s14 + $0x5] ss:$0 sm:$0xff]  ;;  %s5904_s14 = smov 128  }
0x3558   :  { %v4828_v51 = vand.u32 2147483647, %v7952_v19  ;;  %vm4892_vm8 = vcmp.ge.f32.partialorder %v7952_v19, 0.0 }
0x355a   :  { %v4830_v47 = vmul.f32 0.3275911, %v4828_v51  ;;  %v4880_v22 = vsub.f32 0.0, %v4828_v51 }
0x355c   :  { %v4832_v61 = vadd.f32 1.0, %v4830_v47  ;;  %v4821_v16 = vpop.f32.mrf.mxu1  ;;  %v4882_v3 = vmul.f32 %v4880_v22, %v4828_v51 }
0x355d   :  { %v7955_v58 = vadd.f32 %v5494_v56, %v4821_v16 }
0x355e   :  { %5778 = vrcp.f32 %v4832_v61  ;;  %v4845_v62 = vand.u32 2147483648, %v4832_v61  ;;  %v4843_v25 = vand.u32 2147483647, %v4832_v61  ;;  %vm4839_vm15 = vweird.f32 %v4832_v61 }
0x355f   :  { %v7961_v30 = vmul.f32 0.70710677, %v7955_v58  ;;  %v4884_v44 = vmul.f32 1.442695, %v4882_v3 }
0x3560   :  { %v4846_v18 = vor.u32 1.1754944e-38, %v4845_v62  ;;  %vm4844_vm4 = vcmp.eq.f32.partialorder %v4843_v25, 8.507059e+37 }
0x3561   :  { %v4829_v52 = vand.u32 2147483647, %v7961_v30  ;;  %vm4893_vm1 = vcmp.ge.f32.partialorder %v7961_v30, 0.0 }
0x3563   :  { %v4831_v26 = vmul.f32 0.3275911, %v4829_v52  ;;  %v4881_v15 = vsub.f32 0.0, %v4829_v52 }
0x3564   :  { %v5779_v23 = vpop.eup %5778 }
0x3565   :  { %v4835_v1 = vmul.f32 %v5779_v23, %v4832_v61  ;;  %v4833_v39 = vadd.f32 1.0, %v4831_v26  ;;  %vm4840_vm14 = vweird.f32 %v5779_v23  ;;  %v4883_v42 = vmul.f32 %v4881_v15, %v4829_v52 }
0x3566   :  { %vm4841_vm3 = vmor %vm4839_vm15, %vm4840_vm14 }
0x3567   :  { %v4836_v31 = vsub.f32 1.0, %v4835_v1  ;;  %5780 = vrcp.f32 %v4833_v39  ;;  %v4859_v59 = vand.u32 2147483648, %v4833_v39  ;;  %v4857_v38 = vand.u32 2147483647, %v4833_v39 }
0x3568   :  { %vm4853_vm6 = vweird.f32 %v4833_v39  ;;  %5782 = vpow2.f32 %v4884_v44  ;;  %v4886_v2 = vmul.f32 1.442695, %v4883_v42 }
0x3569   :  { %v4837_v32 = vmul.f32 %v5779_v23, %v4836_v31  ;;  %v4860_v37 = vor.u32 1.1754944e-38, %v4859_v59  ;;  %vm4858_vm10 = vcmp.eq.f32.partialorder %v4857_v38, 8.507059e+37  ;;  %v4825_v31 = vmul.f32 0.5, %v7955_v58 }
0x356a   :  { %5784 = vpow2.f32 %v4886_v2 }
0x356b   :  { %v4838_v36 = vadd.f32 %v5779_v23, %v4837_v32 }
0x356d   :  { %v5781_v24 = vpop.eup %5780  ;;  %v4842_v55 = vsel %vm4841_vm3, %v5779_v23, %v4838_v36 }
0x356e   :  { %v4847_v20 = vsel %vm4844_vm4, %v4846_v18, %v4842_v55  ;;  %v4849_v14 = vmul.f32 %v5781_v24, %v4833_v39  ;;  %vm4854_vm5 = vweird.f32 %v5781_v24  ;;  %v5783_v35 = vpop.eup %5782 }
0x356f   :  { %v4862_v4 = vmul.f32 1.0614054, %v4847_v20  ;;  %vm4855_vm7 = vmor %vm4853_vm6, %vm4854_vm5 }
0x3570   :  { %v4850_v5 = vsub.f32 1.0, %v4849_v14  ;;  %v5785_v26 = vpop.eup %5784 }
0x3571   :  { %v4864_v63 = vadd.f32 -1.4531521, %v4862_v4 }
0x3572   :  { %v4851_v46 = vmul.f32 %v5781_v24, %v4850_v5 }
0x3573   :  { %v4866_v6 = vmul.f32 %v4864_v63, %v4847_v20 }
0x3574   :  { %v4852_v29 = vadd.f32 %v5781_v24, %v4851_v46 }
0x3575   :  { %v4868_v57 = vadd.f32 1.4214138, %v4866_v6 }
0x3576   :  { %v4856_v53 = vsel %vm4855_vm7, %v5781_v24, %v4852_v29 }
0x3577   :  { %v4870_v50 = vmul.f32 %v4868_v57, %v4847_v20  ;;  %v4861_v60 = vsel %vm4858_vm10, %v4860_v37, %v4856_v53 }
0x3578   :  { %v4863_v10 = vmul.f32 1.0614054, %v4861_v60 }
0x3579   :  { %v4872_v49 = vadd.f32 -0.28449672, %v4870_v50 }
0x357a   :  { %v4865_v41 = vadd.f32 -1.4531521, %v4863_v10 }
0x357b   :  { %v4874_v0 = vmul.f32 %v4872_v49, %v4847_v20 }
0x357c   :  { %v4867_v7 = vmul.f32 %v4865_v41, %v4861_v60 }
0x357d   :  { %v4876_v8 = vadd.f32 0.2548296, %v4874_v0 }
0x357e   :  { %v4869_v45 = vadd.f32 1.4214138, %v4867_v7 }
0x357f   :  { %v4878_v34 = vmul.f32 %v4876_v8, %v4847_v20 }
0x3580   :  { %v4871_v9 = vmul.f32 %v4869_v45, %v4861_v60 }
0x3581   :  { %v4888_v56 = vmul.f32 %v5783_v35, %v4878_v34 }
0x3582   :  { %v4873_v48 = vadd.f32 -0.28449672, %v4871_v9 }
0x3583   :  { %v4890_v51 = vsub.f32 1.0, %v4888_v56 }
0x3584   :  { %v4875_v47 = vmul.f32 %v4873_v48, %v4861_v60 }
0x3585   :  { %v4894_v61 = vsub.f32 0.0, %v4890_v51 }
0x3586   :  { %v4877_v16 = vadd.f32 0.2548296, %v4875_v47 }
0x3587   :  { %v4896_v13 = vsel %vm4892_vm8, %v4890_v51, %v4894_v61 }
0x3588   :  { %v4898_v52 = vadd.f32 1.0, %v4896_v13  ;;  %v4879_v21 = vmul.f32 %v4877_v16, %v4861_v60 }
0x358a   :  { %v4900_v23 = vmul.f32 %v4898_v52, %v4824_v54  ;;  %v4889_v33 = vmul.f32 %v5785_v26, %v4879_v21 }
0x358c   :  { %v4891_v1 = vsub.f32 1.0, %v4889_v33  ;;  %5315 = vmatmul.msk.f32.vlgmr.msrb.gmra.mxu1 %vm272_vm9, %v4900_v23 }
0x358e   :  { %v4895_v39 = vsub.f32 0.0, %v4891_v1 }
0x3590   :  { %v4897_v27 = vsel %vm4893_vm1, %v4891_v1, %v4895_v39 }
0x3591   :  { %v4899_v62 = vadd.f32 1.0, %v4897_v27 }
0x3593   :  { %v4901_v19 = vmul.f32 %v4899_v62, %v4825_v31 }
0x3595   :  { %5316 = vmatmul.msk.f32.gmra.mxu1 %vm272_vm9, %v4901_v19 }
0x3609   :  { %v4939_v12 = vpop.f32.mrf.mxu1 }
0x360a   :  { %v4940_v32 = vadd.f32 %v5495_v43, %v4939_v12 }
0x360c   :  { %v4945_v25 = vadd.f32 %v4940_v32, %v7915_v17 }
0x360e   :  { %4947 = vst.msk [vmem:[#allocation2] sm:$0xff] %vm71_vm0, %v4945_v25 }
0x3612   :  { %v4942_v30 = vpop.f32.mrf.mxu1 }
0x3613   :  { %v4943_v58 = vadd.f32 %v5495_v43, %v4942_v30 }
0x3615   :  { %v4946_v11 = vadd.f32 %v4943_v58, %v7920_v40 }
0x3617   :  { %4948 = vst.msk [vmem:[#allocation2 + $0x8] sm:$0xff] %vm71_vm0, %v4946_v11 }
0x3618   :  { %4961 = dma.vmem_to_hbm [thread:$0]  %s4954_s11, 256, %s4956_s24, [#allocation3], %s5904_s14, %s5904_s14, %s5901_s23  }
0x3619   :  { %5892 = dma.done.wait [#allocation3], 256  }
0x361a   :  { %5893 = vsyncadd [#allocation3], 4294967040 }
0x361b   :  { %4966 = vsyncpa [#allocation3], 1 }

</bundles_post_ra>
